<compile_context>
chip_gen: v6e
topology: v6e:2x2x1
jax: 0.10.0
libtpu: 0.0.40
codegen_flags: <defaults>
</compile_context>

<pallas_src>
import functools

import jax
import jax.numpy as jnp
import numpy as np
from jax.experimental import pallas as pl
from jax.experimental.pallas import tpu as pltpu

_PMAX = 5  # max 'same' padding in the module (dilation-5 3x3 conv)

_CONV_ORDER = ("e1", "e2", "e3", "e4",
               "b1a",
               "b2a", "b2b",
               "b3a", "b3b",
               "b4a", "b4b", "b4c")


# ----------------------------------------------------------------------------
# Fused per-stage Pallas kernel.
# ----------------------------------------------------------------------------
def _stage_kernel(*refs, H, W, Cb, upsample):
    q = Cb // 4
    e = Cb // 8
    t = (3 * Cb) // 16
    r1 = Cb - 3 * q

    pos = [0]

    def nxt():
        r = refs[pos[0]]
        pos[0] += 1
        return r

    x_ref = nxt()
    if upsample:
        uh_ref = nxt()
        uw_ref = nxt()
    p = {k: (nxt(), nxt()) for k in _CONV_ORDER}   # (stacked row-mats, bias)
    cl_m = [nxt() for _ in range(4)]               # ConvLinear split per branch
    cl_b = nxt()
    o_ref = nxt()
    xpad_ref = nxt()                               # (H + 2*_PMAX, W*q) f32 scratch

    def conv(xv, key, kh, ph, dh, cout, act):
        """Conv in (H, W*cin) layout: kh row-shift + banded-matmul steps."""
        mats_ref, b_ref = p[key]
        kcols = xv.shape[1]                        # W * cin (static)
        # bias folded into the accumulator init (broadcast over rows)
        acc = jnp.broadcast_to(b_ref[...], (H, W * cout)).astype(jnp.float32)
        if kh == 1:                                # no row halo needed
            acc = acc + jnp.dot(xv.astype(jnp.bfloat16), mats_ref[0],
                                preferred_element_type=jnp.float32)
        else:
            # zero-row halo in VMEM scratch (W-padding lives in the matrices)
            xpad_ref[...] = jnp.zeros(xpad_ref.shape, jnp.float32)
            xpad_ref[_PMAX:_PMAX + H, 0:kcols] = xv
            for i in range(kh):
                src = _PMAX - ph + i * dh
                acc = acc + jnp.dot(
                    xpad_ref[src:src + H, 0:kcols].astype(jnp.bfloat16),
                    mats_ref[i], preferred_element_type=jnp.float32)
        if act == "relu":
            acc = jnp.maximum(acc, 0.0)
        return acc

    # ---- input (+ fused bilinear 2x upsample, align_corners=True) ----
    if upsample:
        x0 = x_ref[0]                                            # (H0, W0*Cin)
        xh = jnp.dot(uh_ref[...], x0, preferred_element_type=jnp.float32)
        x = jnp.dot(xh, uw_ref[...], preferred_element_type=jnp.float32)
    else:
        x = x_ref[0]                                             # (H, W*Cin)

    # ---- 1x1 entry convs (one per branch) + ReLU ----
    z1 = conv(x, "e1", 1, 0, 1, q, "relu")
    z2 = conv(x, "e2", 1, 0, 1, q, "relu")
    z3 = conv(x, "e3", 1, 0, 1, q, "relu")
    z4 = conv(x, "e4", 1, 0, 1, e, "relu")

    # ---- branches ----
    o1 = conv(z1, "b1a", 3, 1, 1, r1, None)                      # 3x3 d1
    o2 = conv(conv(z2, "b2a", 3, 1, 1, q, "relu"),               # (3,1)
              "b2b", 3, 3, 3, q, None)                           # 3x3 d3
    o3 = conv(conv(z3, "b3a", 1, 0, 1, q, "relu"),               # (1,3)
              "b3b", 3, 3, 3, q, None)                           # 3x3 d3
    o4 = conv(conv(conv(z4, "b4a", 1, 0, 1, t, "relu"),          # (1,3)
                   "b4b", 3, 1, 1, q, "relu"),                   # (3,1)
              "b4c", 3, 5, 5, q, None)                           # 3x3 d5

    # ---- concat (free: folded into split ConvLinear) + 1x1 + LeakyReLU(0.1)
    acc = jnp.broadcast_to(cl_b[...], (H, W * Cb)).astype(jnp.float32)
    for ov, m_ref in zip((o1, o2, o3, o4), cl_m):
        acc = acc + jnp.dot(ov.astype(jnp.bfloat16), m_ref[...],
                            preferred_element_type=jnp.float32)
    acc = jnp.where(acc > 0.0, acc, 0.1 * acc)
    o_ref[0] = acc                                               # lane-dense store


def _stage_call(stage_params, x, *, Cin, Cb, upsample_mats=None):
    """One fused UNetHDC stage.  x: (N, H_in, W_in*Cin) f32, returns
    (N, H, W*Cb) f32 in the same lane-dense layout."""
    N, H_in, cols_in = x.shape
    if upsample_mats is not None:
        Uh, UwC = upsample_mats
        H = Uh.shape[0]
        W = UwC.shape[1] // Cin
    else:
        H = H_in
        W = cols_in // Cin
    q = Cb // 4

    inputs = [x]
    in_specs = [pl.BlockSpec((1, H_in, cols_in), lambda n: (n, 0, 0))]

    def add_const(arr):
        inputs.append(arr)
        zero = (0,) * arr.ndim
        in_specs.append(pl.BlockSpec(arr.shape, lambda n, _z=zero: _z))

    if upsample_mats is not None:
        add_const(Uh)
        add_const(UwC)
    for key in _CONV_ORDER:
        m, b = stage_params["convs"][key]
        add_const(m)
        add_const(b)
    for m in stage_params["cl_mats"]:
        add_const(m)
    add_const(stage_params["cl_bias"])

    kern = functools.partial(_stage_kernel, H=H, W=W, Cb=Cb,
                             upsample=upsample_mats is not None)
    return pl.pallas_call(
        kern,
        out_shape=jax.ShapeDtypeStruct((N, H, W * Cb), jnp.float32),
        grid=(N,),
        in_specs=in_specs,
        out_specs=pl.BlockSpec((1, H, W * Cb), lambda n: (n, 0, 0)),
        scratch_shapes=[pltpu.VMEM((H + 2 * _PMAX, W * q), jnp.float32)],
        compiler_params=pltpu.CompilerParams(
            dimension_semantics=("parallel",),
            vmem_limit_bytes=32 * 1024 * 1024),
    )(*inputs)


# ----------------------------------------------------------------------------
# Host-side parameter construction (PyTorch-Conv2d-like uniform init),
# folded into banded block matrices for the (H, W*C) layout.
# ----------------------------------------------------------------------------
def _build_conv_mats(rng, W, cin, cout, kh, kw, ph, pw, dh, dw):
    k = 1.0 / np.sqrt(cin * kh * kw)
    Wt = rng.uniform(-k, k, size=(kh, kw, cin, cout)).astype(np.float32)
    b = rng.uniform(-k, k, size=(cout,)).astype(np.float32)
    mats = np.zeros((kh, W * cin, W * cout), np.float32)
    for i in range(kh):
        for j in range(kw):
            for w in range(W):
                wi = w + j * dw - pw          # input column; OOB -> zero pad
                if 0 <= wi < W:
                    mats[i, wi * cin:(wi + 1) * cin,
                         w * cout:(w + 1) * cout] += Wt[i, j]
    bias_row = np.tile(b, W)[None, :]          # (1, W*cout)
    return (jnp.asarray(mats, jnp.bfloat16),
            jnp.asarray(bias_row, jnp.float32))


def _build_convlinear(rng, W, Cb, splits):
    k = 1.0 / np.sqrt(Cb)
    Wc = rng.uniform(-k, k, size=(Cb, Cb)).astype(np.float32)
    b = rng.uniform(-k, k, size=(Cb,)).astype(np.float32)
    eye = np.eye(W, dtype=np.float32)
    mats, off = [], 0
    for ck in splits:                          # split 1x1 weight per branch
        mats.append(jnp.asarray(np.kron(eye, Wc[off:off + ck, :]),
                                jnp.bfloat16))
        off += ck
    bias_row = jnp.asarray(np.tile(b, W)[None, :], jnp.float32)
    return mats, bias_row


def _build_stage(rng, W, Cin, Cb):
    q, e, t = Cb // 4, Cb // 8, (3 * Cb) // 16
    r1 = Cb - 3 * q
    B = functools.partial(_build_conv_mats, rng, W)
    convs = {
        "e1": B(Cin, q, 1, 1, 0, 0, 1, 1),
        "e2": B(Cin, q, 1, 1, 0, 0, 1, 1),
        "e3": B(Cin, q, 1, 1, 0, 0, 1, 1),
        "e4": B(Cin, e, 1, 1, 0, 0, 1, 1),
        "b1a": B(q, r1, 3, 3, 1, 1, 1, 1),
        "b2a": B(q, q, 3, 1, 1, 0, 1, 1),
        "b2b": B(q, q, 3, 3, 3, 3, 3, 3),
        "b3a": B(q, q, 1, 3, 0, 1, 1, 1),
        "b3b": B(q, q, 3, 3, 3, 3, 3, 3),
        "b4a": B(e, t, 1, 3, 0, 1, 1, 1),
        "b4b": B(t, q, 3, 1, 1, 0, 1, 1),
        "b4c": B(q, q, 3, 3, 5, 5, 5, 5),
    }
    cl_mats, cl_bias = _build_convlinear(rng, W, Cb, (r1, q, q, q))
    return dict(convs=convs, cl_mats=cl_mats, cl_bias=cl_bias)


def _bilinear_matrix(n):
    """(2n, n) matrix of nn.Upsample(scale=2, bilinear, align_corners=True)."""
    m = 2 * n
    U = np.zeros((m, n), np.float32)
    if n == 1:
        U[:, 0] = 1.0
        return U
    for o in range(m):
        src = o * (n - 1) / (m - 1)
        lo = int(np.floor(src))
        hi = min(lo + 1, n - 1)
        f = src - lo
        U[o, lo] += 1.0 - f
        U[o, hi] += f
    return U


def init_uphdc_params(seed, in_channels, out_channels, H0, W0):
    rng = np.random.default_rng(seed)
    W = 2 * W0
    Uh = _bilinear_matrix(H0)                                  # (2H0, H0)
    Uw = _bilinear_matrix(W0)                                  # (2W0, W0)
    UwC = np.kron(Uw.T, np.eye(in_channels, dtype=np.float32))  # (W0*C, 2W0*C)
    return dict(
        in_channels=in_channels,
        out_channels=out_channels,
        Uh=jnp.asarray(Uh, jnp.float32),
        UwC=jnp.asarray(UwC, jnp.float32),
        stage1=_build_stage(rng, W, in_channels, in_channels),
        stage2=_build_stage(rng, W, in_channels, out_channels),
    )


# ----------------------------------------------------------------------------
# Forward pass (accepts PyTorch-style NCHW tensors).
# ----------------------------------------------------------------------------
def uphdc_forward(params, x1, x2, image):
    to_nhwc = lambda a: jnp.transpose(a, (0, 2, 3, 1))
    x1, x2, image = to_nhwc(x1), to_nhwc(x2), to_nhwc(image)
    dY = x2.shape[1] - image.shape[1]
    dX = x2.shape[2] - image.shape[2]
    pad = ((0, 0), (dY // 2, dY - dY // 2), (dX // 2, dX - dX // 2), (0, 0))
    image = jnp.pad(image, pad)
    x1 = jnp.pad(x1, pad)
    x0 = jnp.concatenate([x1, x2, image], axis=-1)   # (N, H0, W0, Cin), tiny glue
    N, H0, W0, Cin = x0.shape
    x0 = x0.reshape(N, H0, W0 * Cin)                 # lane-dense kernel layout

    Cin_p = params["in_channels"]
    Cout = params["out_channels"]
    # stage 1: fused (upsample -> 4 branches -> ConvLinear1 -> LeakyReLU)
    y = _stage_call(params["stage1"], x0, Cin=Cin, Cb=Cin_p,
                    upsample_mats=(params["Uh"], params["UwC"]))
    # stage 2: fused (4 branches -> ConvLinear2 -> LeakyReLU)
    y = _stage_call(params["stage2"], y, Cin=Cin_p, Cb=Cout)

    H, W = 2 * H0, 2 * W0
    y = y.reshape(N, H, W, Cout)
    return jnp.transpose(y, (0, 3, 1, 2))            # back to NCHW


# ----------------------------------------------------------------------------
if __name__ == "__main__":
    key = jax.random.PRNGKey(0)
    kx1, kx2, kim = jax.random.split(key, 3)

    # channels: c(x1) + c(x2) + c(image) must equal in_channels of UNetHDC
    in_channels, out_channels = 16, 16
    N, H0, W0 = 2, 16, 16
    x1 = jax.random.normal(kx1, (N, 4, 14, 14), jnp.float32)
    x2 = jax.random.normal(kx2, (N, 8, H0, W0), jnp.float32)
    image = jax.random.normal(kim, (N, 4, 14, 14), jnp.float32)

    params = init_uphdc_params(0, in_channels, out_channels, H0, W0)

    fwd = jax.jit(lambda a, b, c: uphdc_forward(params, a, b, c))
    out = jax.block_until_ready(fwd(x1, x2, image))

    assert out.shape == (N, out_channels, 2 * H0, 2 * W0), out.shape
    assert bool(jnp.all(jnp.isfinite(out)))
    print("KERNEL_OK")
</pallas_src>

<mosaic_0001>
module attributes {stable_mosaic.version = 11 : i64} {
  func.func @_stage_kernel(%arg0: i32, %arg1: memref<1x16x256xf32, #tpu.memory_space<vmem>>, %arg2: memref<32x16xf32, #tpu.memory_space<vmem>>, %arg3: memref<256x512xf32, #tpu.memory_space<vmem>>, %arg4: memref<1x512x128xbf16, #tpu.memory_space<vmem>>, %arg5: memref<1x128xf32, #tpu.memory_space<vmem>>, %arg6: memref<1x512x128xbf16, #tpu.memory_space<vmem>>, %arg7: memref<1x128xf32, #tpu.memory_space<vmem>>, %arg8: memref<1x512x128xbf16, #tpu.memory_space<vmem>>, %arg9: memref<1x128xf32, #tpu.memory_space<vmem>>, %arg10: memref<1x512x64xbf16, #tpu.memory_space<vmem>>, %arg11: memref<1x64xf32, #tpu.memory_space<vmem>>, %arg12: memref<3x128x128xbf16, #tpu.memory_space<vmem>>, %arg13: memref<1x128xf32, #tpu.memory_space<vmem>>, %arg14: memref<3x128x128xbf16, #tpu.memory_space<vmem>>, %arg15: memref<1x128xf32, #tpu.memory_space<vmem>>, %arg16: memref<3x128x128xbf16, #tpu.memory_space<vmem>>, %arg17: memref<1x128xf32, #tpu.memory_space<vmem>>, %arg18: memref<1x128x128xbf16, #tpu.memory_space<vmem>>, %arg19: memref<1x128xf32, #tpu.memory_space<vmem>>, %arg20: memref<3x128x128xbf16, #tpu.memory_space<vmem>>, %arg21: memref<1x128xf32, #tpu.memory_space<vmem>>, %arg22: memref<1x64x96xbf16, #tpu.memory_space<vmem>>, %arg23: memref<1x96xf32, #tpu.memory_space<vmem>>, %arg24: memref<3x96x128xbf16, #tpu.memory_space<vmem>>, %arg25: memref<1x128xf32, #tpu.memory_space<vmem>>, %arg26: memref<3x128x128xbf16, #tpu.memory_space<vmem>>, %arg27: memref<1x128xf32, #tpu.memory_space<vmem>>, %arg28: memref<128x512xbf16, #tpu.memory_space<vmem>>, %arg29: memref<128x512xbf16, #tpu.memory_space<vmem>>, %arg30: memref<128x512xbf16, #tpu.memory_space<vmem>>, %arg31: memref<128x512xbf16, #tpu.memory_space<vmem>>, %arg32: memref<1x512xf32, #tpu.memory_space<vmem>>, %arg33: memref<1x32x512xf32, #tpu.memory_space<vmem>>, %arg34: memref<42x128xf32, #tpu.memory_space<vmem>>) attributes {dimension_semantics = [#tpu.dimension_semantics<parallel>], iteration_bounds = array<i64: 2>, scalar_prefetch = 0 : i64, scratch_operands = 1 : i64, tpu.core_type = #tpu.core_type<tc>, window_params = [{transform_indices = @transform_0, window_bounds = array<i64: 1, 16, 256>}, {pipeline_mode = #tpu.pipeline_mode<synchronous>, transform_indices = @transform_1, window_bounds = array<i64: 32, 16>}, {pipeline_mode = #tpu.pipeline_mode<synchronous>, transform_indices = @transform_2, window_bounds = array<i64: 256, 512>}, {pipeline_mode = #tpu.pipeline_mode<synchronous>, transform_indices = @transform_3, window_bounds = array<i64: 1, 512, 128>}, {pipeline_mode = #tpu.pipeline_mode<synchronous>, transform_indices = @transform_4, window_bounds = array<i64: 1, 128>}, {pipeline_mode = #tpu.pipeline_mode<synchronous>, transform_indices = @transform_5, window_bounds = array<i64: 1, 512, 128>}, {pipeline_mode = #tpu.pipeline_mode<synchronous>, transform_indices = @transform_6, window_bounds = array<i64: 1, 128>}, {pipeline_mode = #tpu.pipeline_mode<synchronous>, transform_indices = @transform_7, window_bounds = array<i64: 1, 512, 128>}, {pipeline_mode = #tpu.pipeline_mode<synchronous>, transform_indices = @transform_8, window_bounds = array<i64: 1, 128>}, {pipeline_mode = #tpu.pipeline_mode<synchronous>, transform_indices = @transform_9, window_bounds = array<i64: 1, 512, 64>}, {pipeline_mode = #tpu.pipeline_mode<synchronous>, transform_indices = @transform_10, window_bounds = array<i64: 1, 64>}, {pipeline_mode = #tpu.pipeline_mode<synchronous>, transform_indices = @transform_11, window_bounds = array<i64: 3, 128, 128>}, {pipeline_mode = #tpu.pipeline_mode<synchronous>, transform_indices = @transform_12, window_bounds = array<i64: 1, 128>}, {pipeline_mode = #tpu.pipeline_mode<synchronous>, transform_indices = @transform_13, window_bounds = array<i64: 3, 128, 128>}, {pipeline_mode = #tpu.pipeline_mode<synchronous>, transform_indices = @transform_14, window_bounds = array<i64: 1, 128>}, {pipeline_mode = #tpu.pipeline_mode<synchronous>, transform_indices = @transform_15, window_bounds = array<i64: 3, 128, 128>}, {pipeline_mode = #tpu.pipeline_mode<synchronous>, transform_indices = @transform_16, window_bounds = array<i64: 1, 128>}, {pipeline_mode = #tpu.pipeline_mode<synchronous>, transform_indices = @transform_17, window_bounds = array<i64: 1, 128, 128>}, {pipeline_mode = #tpu.pipeline_mode<synchronous>, transform_indices = @transform_18, window_bounds = array<i64: 1, 128>}, {pipeline_mode = #tpu.pipeline_mode<synchronous>, transform_indices = @transform_19, window_bounds = array<i64: 3, 128, 128>}, {pipeline_mode = #tpu.pipeline_mode<synchronous>, transform_indices = @transform_20, window_bounds = array<i64: 1, 128>}, {pipeline_mode = #tpu.pipeline_mode<synchronous>, transform_indices = @transform_21, window_bounds = array<i64: 1, 64, 96>}, {pipeline_mode = #tpu.pipeline_mode<synchronous>, transform_indices = @transform_22, window_bounds = array<i64: 1, 96>}, {pipeline_mode = #tpu.pipeline_mode<synchronous>, transform_indices = @transform_23, window_bounds = array<i64: 3, 96, 128>}, {pipeline_mode = #tpu.pipeline_mode<synchronous>, transform_indices = @transform_24, window_bounds = array<i64: 1, 128>}, {pipeline_mode = #tpu.pipeline_mode<synchronous>, transform_indices = @transform_25, window_bounds = array<i64: 3, 128, 128>}, {pipeline_mode = #tpu.pipeline_mode<synchronous>, transform_indices = @transform_26, window_bounds = array<i64: 1, 128>}, {pipeline_mode = #tpu.pipeline_mode<synchronous>, transform_indices = @transform_27, window_bounds = array<i64: 128, 512>}, {pipeline_mode = #tpu.pipeline_mode<synchronous>, transform_indices = @transform_28, window_bounds = array<i64: 128, 512>}, {pipeline_mode = #tpu.pipeline_mode<synchronous>, transform_indices = @transform_29, window_bounds = array<i64: 128, 512>}, {pipeline_mode = #tpu.pipeline_mode<synchronous>, transform_indices = @transform_30, window_bounds = array<i64: 128, 512>}, {pipeline_mode = #tpu.pipeline_mode<synchronous>, transform_indices = @transform_31, window_bounds = array<i64: 1, 512>}, {transform_indices = @transform_32, window_bounds = array<i64: 1, 32, 512>}]} {
    %c0 = arith.constant 0 : index
    %c0_0 = arith.constant 0 : index
    %c0_1 = arith.constant 0 : index
    %0 = vector.load %arg1[%c0, %c0_0, %c0_1] : memref<1x16x256xf32, #tpu.memory_space<vmem>>, vector<1x16x256xf32>
    %1 = vector.shape_cast %0 : vector<1x16x256xf32> to vector<16x256xf32>
    %c0_2 = arith.constant 0 : index
    %c0_3 = arith.constant 0 : index
    %2 = vector.load %arg2[%c0_2, %c0_3] : memref<32x16xf32, #tpu.memory_space<vmem>>, vector<32x16xf32>
    %cst = arith.constant dense<0.000000e+00> : vector<32x256xf32>
    %3 = tpu.matmul %2, %1, %cst {dimension_numbers = #tpu.dot_dimension_numbers<[1], [0], [0], [1], [0, 0, 1, 1], [], []>} : vector<32x16xf32>, vector<16x256xf32>, vector<32x256xf32> -> vector<32x256xf32>
    %c0_4 = arith.constant 0 : index
    %c0_5 = arith.constant 0 : index
    %4 = vector.load %arg3[%c0_4, %c0_5] : memref<256x512xf32, #tpu.memory_space<vmem>>, vector<256x512xf32>
    %cst_6 = arith.constant dense<0.000000e+00> : vector<32x512xf32>
    %5 = tpu.matmul %3, %4, %cst_6 {dimension_numbers = #tpu.dot_dimension_numbers<[1], [0], [0], [1], [0, 0, 1, 1], [], []>} : vector<32x256xf32>, vector<256x512xf32>, vector<32x512xf32> -> vector<32x512xf32>
    %c0_7 = arith.constant 0 : index
    %c0_8 = arith.constant 0 : index
    %6 = vector.load %arg5[%c0_7, %c0_8] : memref<1x128xf32, #tpu.memory_space<vmem>>, vector<1x128xf32>
    %7 = vector.shape_cast %6 : vector<1x128xf32> to vector<1x128xf32>
    %8 = vector.broadcast %7 : vector<1x128xf32> to vector<32x128xf32>
    %9 = arith.truncf %5 : vector<32x512xf32> to vector<32x512xbf16>
    %c0_9 = arith.constant 0 : index
    %c0_10 = arith.constant 0 : index
    %c0_11 = arith.constant 0 : index
    %10 = vector.load %arg4[%c0_9, %c0_10, %c0_11] : memref<1x512x128xbf16, #tpu.memory_space<vmem>>, vector<1x512x128xbf16>
    %11 = vector.shape_cast %10 : vector<1x512x128xbf16> to vector<512x128xbf16>
    %cst_12 = arith.constant dense<0.000000e+00> : vector<32x128xf32>
    %12 = tpu.matmul %9, %11, %cst_12 {dimension_numbers = #tpu.dot_dimension_numbers<[1], [0], [0], [1], [0, 0, 1, 1], [], []>} : vector<32x512xbf16>, vector<512x128xbf16>, vector<32x128xf32> -> vector<32x128xf32>
    %13 = arith.addf %8, %12 : vector<32x128xf32>
    %cst_13 = arith.constant 0.000000e+00 : f32
    %14 = vector.broadcast %cst_13 : f32 to vector<32x128xf32>
    %15 = arith.maximumf %13, %14 : vector<32x128xf32>
    %c0_14 = arith.constant 0 : index
    %c0_15 = arith.constant 0 : index
    %16 = vector.load %arg7[%c0_14, %c0_15] : memref<1x128xf32, #tpu.memory_space<vmem>>, vector<1x128xf32>
    %17 = vector.shape_cast %16 : vector<1x128xf32> to vector<1x128xf32>
    %18 = vector.broadcast %17 : vector<1x128xf32> to vector<32x128xf32>
    %19 = arith.truncf %5 : vector<32x512xf32> to vector<32x512xbf16>
    %c0_16 = arith.constant 0 : index
    %c0_17 = arith.constant 0 : index
    %c0_18 = arith.constant 0 : index
    %20 = vector.load %arg6[%c0_16, %c0_17, %c0_18] : memref<1x512x128xbf16, #tpu.memory_space<vmem>>, vector<1x512x128xbf16>
    %21 = vector.shape_cast %20 : vector<1x512x128xbf16> to vector<512x128xbf16>
    %cst_19 = arith.constant dense<0.000000e+00> : vector<32x128xf32>
    %22 = tpu.matmul %19, %21, %cst_19 {dimension_numbers = #tpu.dot_dimension_numbers<[1], [0], [0], [1], [0, 0, 1, 1], [], []>} : vector<32x512xbf16>, vector<512x128xbf16>, vector<32x128xf32> -> vector<32x128xf32>
    %23 = arith.addf %18, %22 : vector<32x128xf32>
    %cst_20 = arith.constant 0.000000e+00 : f32
    %24 = vector.broadcast %cst_20 : f32 to vector<32x128xf32>
    %25 = arith.maximumf %23, %24 : vector<32x128xf32>
    %c0_21 = arith.constant 0 : index
    %c0_22 = arith.constant 0 : index
    %26 = vector.load %arg9[%c0_21, %c0_22] : memref<1x128xf32, #tpu.memory_space<vmem>>, vector<1x128xf32>
    %27 = vector.shape_cast %26 : vector<1x128xf32> to vector<1x128xf32>
    %28 = vector.broadcast %27 : vector<1x128xf32> to vector<32x128xf32>
    %29 = arith.truncf %5 : vector<32x512xf32> to vector<32x512xbf16>
    %c0_23 = arith.constant 0 : index
    %c0_24 = arith.constant 0 : index
    %c0_25 = arith.constant 0 : index
    %30 = vector.load %arg8[%c0_23, %c0_24, %c0_25] : memref<1x512x128xbf16, #tpu.memory_space<vmem>>, vector<1x512x128xbf16>
    %31 = vector.shape_cast %30 : vector<1x512x128xbf16> to vector<512x128xbf16>
    %cst_26 = arith.constant dense<0.000000e+00> : vector<32x128xf32>
    %32 = tpu.matmul %29, %31, %cst_26 {dimension_numbers = #tpu.dot_dimension_numbers<[1], [0], [0], [1], [0, 0, 1, 1], [], []>} : vector<32x512xbf16>, vector<512x128xbf16>, vector<32x128xf32> -> vector<32x128xf32>
    %33 = arith.addf %28, %32 : vector<32x128xf32>
    %cst_27 = arith.constant 0.000000e+00 : f32
    %34 = vector.broadcast %cst_27 : f32 to vector<32x128xf32>
    %35 = arith.maximumf %33, %34 : vector<32x128xf32>
    %c0_28 = arith.constant 0 : index
    %c0_29 = arith.constant 0 : index
    %36 = vector.load %arg11[%c0_28, %c0_29] : memref<1x64xf32, #tpu.memory_space<vmem>>, vector<1x64xf32>
    %37 = vector.shape_cast %36 : vector<1x64xf32> to vector<1x64xf32>
    %38 = vector.broadcast %37 : vector<1x64xf32> to vector<32x64xf32>
    %39 = arith.truncf %5 : vector<32x512xf32> to vector<32x512xbf16>
    %c0_30 = arith.constant 0 : index
    %c0_31 = arith.constant 0 : index
    %c0_32 = arith.constant 0 : index
    %40 = vector.load %arg10[%c0_30, %c0_31, %c0_32] : memref<1x512x64xbf16, #tpu.memory_space<vmem>>, vector<1x512x64xbf16>
    %41 = vector.shape_cast %40 : vector<1x512x64xbf16> to vector<512x64xbf16>
    %cst_33 = arith.constant dense<0.000000e+00> : vector<32x64xf32>
    %42 = tpu.matmul %39, %41, %cst_33 {dimension_numbers = #tpu.dot_dimension_numbers<[1], [0], [0], [1], [0, 0, 1, 1], [], []>} : vector<32x512xbf16>, vector<512x64xbf16>, vector<32x64xf32> -> vector<32x64xf32>
    %43 = arith.addf %38, %42 : vector<32x64xf32>
    %cst_34 = arith.constant 0.000000e+00 : f32
    %44 = vector.broadcast %cst_34 : f32 to vector<32x64xf32>
    %45 = arith.maximumf %43, %44 : vector<32x64xf32>
    %c0_35 = arith.constant 0 : index
    %c0_36 = arith.constant 0 : index
    %46 = vector.load %arg13[%c0_35, %c0_36] : memref<1x128xf32, #tpu.memory_space<vmem>>, vector<1x128xf32>
    %47 = vector.shape_cast %46 : vector<1x128xf32> to vector<1x128xf32>
    %48 = vector.broadcast %47 : vector<1x128xf32> to vector<32x128xf32>
    %cst_37 = arith.constant 0.000000e+00 : f32
    %49 = vector.broadcast %cst_37 : f32 to vector<42x128xf32>
    %c0_38 = arith.constant 0 : index
    %c0_39 = arith.constant 0 : index
    %50 = vector.load %arg34[%c0_38, %c0_39] : memref<42x128xf32, #tpu.memory_space<vmem>>, vector<42x128xf32>
    tpu.vector_store %arg34[%c0_38, %c0_39], %49 {strides = array<i32>} : memref<42x128xf32, #tpu.memory_space<vmem>>, vector<42x128xf32>,
    %c5 = arith.constant 5 : index
    %c0_40 = arith.constant 0 : index
    %51 = vector.load %arg34[%c5, %c0_40] : memref<42x128xf32, #tpu.memory_space<vmem>>, vector<32x128xf32>
    tpu.vector_store %arg34[%c5, %c0_40], %15 {strides = array<i32>} : memref<42x128xf32, #tpu.memory_space<vmem>>, vector<32x128xf32>,
    %c4 = arith.constant 4 : index
    %c0_41 = arith.constant 0 : index
    %52 = vector.load %arg34[%c4, %c0_41] : memref<42x128xf32, #tpu.memory_space<vmem>>, vector<32x128xf32>
    %53 = arith.truncf %52 : vector<32x128xf32> to vector<32x128xbf16>
    %c0_42 = arith.constant 0 : index
    %c0_43 = arith.constant 0 : index
    %c0_44 = arith.constant 0 : index
    %54 = vector.load %arg12[%c0_42, %c0_43, %c0_44] : memref<3x128x128xbf16, #tpu.memory_space<vmem>>, vector<1x128x128xbf16>
    %55 = vector.shape_cast %54 : vector<1x128x128xbf16> to vector<128x128xbf16>
    %cst_45 = arith.constant dense<0.000000e+00> : vector<32x128xf32>
    %56 = tpu.matmul %53, %55, %cst_45 {dimension_numbers = #tpu.dot_dimension_numbers<[1], [0], [0], [1], [0, 0, 1, 1], [], []>} : vector<32x128xbf16>, vector<128x128xbf16>, vector<32x128xf32> -> vector<32x128xf32>
    %57 = arith.addf %48, %56 : vector<32x128xf32>
    %c5_46 = arith.constant 5 : index
    %c0_47 = arith.constant 0 : index
    %58 = vector.load %arg34[%c5_46, %c0_47] : memref<42x128xf32, #tpu.memory_space<vmem>>, vector<32x128xf32>
    %59 = arith.truncf %58 : vector<32x128xf32> to vector<32x128xbf16>
    %c1 = arith.constant 1 : index
    %c0_48 = arith.constant 0 : index
    %c0_49 = arith.constant 0 : index
    %60 = vector.load %arg12[%c1, %c0_48, %c0_49] : memref<3x128x128xbf16, #tpu.memory_space<vmem>>, vector<1x128x128xbf16>
    %61 = vector.shape_cast %60 : vector<1x128x128xbf16> to vector<128x128xbf16>
    %cst_50 = arith.constant dense<0.000000e+00> : vector<32x128xf32>
    %62 = tpu.matmul %59, %61, %cst_50 {dimension_numbers = #tpu.dot_dimension_numbers<[1], [0], [0], [1], [0, 0, 1, 1], [], []>} : vector<32x128xbf16>, vector<128x128xbf16>, vector<32x128xf32> -> vector<32x128xf32>
    %63 = arith.addf %57, %62 : vector<32x128xf32>
    %c6 = arith.constant 6 : index
    %c0_51 = arith.constant 0 : index
    %64 = vector.load %arg34[%c6, %c0_51] : memref<42x128xf32, #tpu.memory_space<vmem>>, vector<32x128xf32>
    %65 = arith.truncf %64 : vector<32x128xf32> to vector<32x128xbf16>
    %c2 = arith.constant 2 : index
    %c0_52 = arith.constant 0 : index
    %c0_53 = arith.constant 0 : index
    %66 = vector.load %arg12[%c2, %c0_52, %c0_53] : memref<3x128x128xbf16, #tpu.memory_space<vmem>>, vector<1x128x128xbf16>
    %67 = vector.shape_cast %66 : vector<1x128x128xbf16> to vector<128x128xbf16>
    %cst_54 = arith.constant dense<0.000000e+00> : vector<32x128xf32>
    %68 = tpu.matmul %65, %67, %cst_54 {dimension_numbers = #tpu.dot_dimension_numbers<[1], [0], [0], [1], [0, 0, 1, 1], [], []>} : vector<32x128xbf16>, vector<128x128xbf16>, vector<32x128xf32> -> vector<32x128xf32>
    %69 = arith.addf %63, %68 : vector<32x128xf32>
    %c0_55 = arith.constant 0 : index
    %c0_56 = arith.constant 0 : index
    %70 = vector.load %arg15[%c0_55, %c0_56] : memref<1x128xf32, #tpu.memory_space<vmem>>, vector<1x128xf32>
    %71 = vector.shape_cast %70 : vector<1x128xf32> to vector<1x128xf32>
    %72 = vector.broadcast %71 : vector<1x128xf32> to vector<32x128xf32>
    %cst_57 = arith.constant 0.000000e+00 : f32
    %73 = vector.broadcast %cst_57 : f32 to vector<42x128xf32>
    %c0_58 = arith.constant 0 : index
    %c0_59 = arith.constant 0 : index
    %74 = vector.load %arg34[%c0_58, %c0_59] : memref<42x128xf32, #tpu.memory_space<vmem>>, vector<42x128xf32>
    tpu.vector_store %arg34[%c0_58, %c0_59], %73 {strides = array<i32>} : memref<42x128xf32, #tpu.memory_space<vmem>>, vector<42x128xf32>,
    %c5_60 = arith.constant 5 : index
    %c0_61 = arith.constant 0 : index
    %75 = vector.load %arg34[%c5_60, %c0_61] : memref<42x128xf32, #tpu.memory_space<vmem>>, vector<32x128xf32>
    tpu.vector_store %arg34[%c5_60, %c0_61], %25 {strides = array<i32>} : memref<42x128xf32, #tpu.memory_space<vmem>>, vector<32x128xf32>,
    %c4_62 = arith.constant 4 : index
    %c0_63 = arith.constant 0 : index
    %76 = vector.load %arg34[%c4_62, %c0_63] : memref<42x128xf32, #tpu.memory_space<vmem>>, vector<32x128xf32>
    %77 = arith.truncf %76 : vector<32x128xf32> to vector<32x128xbf16>
    %c0_64 = arith.constant 0 : index
    %c0_65 = arith.constant 0 : index
    %c0_66 = arith.constant 0 : index
    %78 = vector.load %arg14[%c0_64, %c0_65, %c0_66] : memref<3x128x128xbf16, #tpu.memory_space<vmem>>, vector<1x128x128xbf16>
    %79 = vector.shape_cast %78 : vector<1x128x128xbf16> to vector<128x128xbf16>
    %cst_67 = arith.constant dense<0.000000e+00> : vector<32x128xf32>
    %80 = tpu.matmul %77, %79, %cst_67 {dimension_numbers = #tpu.dot_dimension_numbers<[1], [0], [0], [1], [0, 0, 1, 1], [], []>} : vector<32x128xbf16>, vector<128x128xbf16>, vector<32x128xf32> -> vector<32x128xf32>
    %81 = arith.addf %72, %80 : vector<32x128xf32>
    %c5_68 = arith.constant 5 : index
    %c0_69 = arith.constant 0 : index
    %82 = vector.load %arg34[%c5_68, %c0_69] : memref<42x128xf32, #tpu.memory_space<vmem>>, vector<32x128xf32>
    %83 = arith.truncf %82 : vector<32x128xf32> to vector<32x128xbf16>
    %c1_70 = arith.constant 1 : index
    %c0_71 = arith.constant 0 : index
    %c0_72 = arith.constant 0 : index
    %84 = vector.load %arg14[%c1_70, %c0_71, %c0_72] : memref<3x128x128xbf16, #tpu.memory_space<vmem>>, vector<1x128x128xbf16>
    %85 = vector.shape_cast %84 : vector<1x128x128xbf16> to vector<128x128xbf16>
    %cst_73 = arith.constant dense<0.000000e+00> : vector<32x128xf32>
    %86 = tpu.matmul %83, %85, %cst_73 {dimension_numbers = #tpu.dot_dimension_numbers<[1], [0], [0], [1], [0, 0, 1, 1], [], []>} : vector<32x128xbf16>, vector<128x128xbf16>, vector<32x128xf32> -> vector<32x128xf32>
    %87 = arith.addf %81, %86 : vector<32x128xf32>
    %c6_74 = arith.constant 6 : index
    %c0_75 = arith.constant 0 : index
    %88 = vector.load %arg34[%c6_74, %c0_75] : memref<42x128xf32, #tpu.memory_space<vmem>>, vector<32x128xf32>
    %89 = arith.truncf %88 : vector<32x128xf32> to vector<32x128xbf16>
    %c2_76 = arith.constant 2 : index
    %c0_77 = arith.constant 0 : index
    %c0_78 = arith.constant 0 : index
    %90 = vector.load %arg14[%c2_76, %c0_77, %c0_78] : memref<3x128x128xbf16, #tpu.memory_space<vmem>>, vector<1x128x128xbf16>
    %91 = vector.shape_cast %90 : vector<1x128x128xbf16> to vector<128x128xbf16>
    %cst_79 = arith.constant dense<0.000000e+00> : vector<32x128xf32>
    %92 = tpu.matmul %89, %91, %cst_79 {dimension_numbers = #tpu.dot_dimension_numbers<[1], [0], [0], [1], [0, 0, 1, 1], [], []>} : vector<32x128xbf16>, vector<128x128xbf16>, vector<32x128xf32> -> vector<32x128xf32>
    %93 = arith.addf %87, %92 : vector<32x128xf32>
    %cst_80 = arith.constant 0.000000e+00 : f32
    %94 = vector.broadcast %cst_80 : f32 to vector<32x128xf32>
    %95 = arith.maximumf %93, %94 : vector<32x128xf32>
    %c0_81 = arith.constant 0 : index
    %c0_82 = arith.constant 0 : index
    %96 = vector.load %arg17[%c0_81, %c0_82] : memref<1x128xf32, #tpu.memory_space<vmem>>, vector<1x128xf32>
    %97 = vector.shape_cast %96 : vector<1x128xf32> to vector<1x128xf32>
    %98 = vector.broadcast %97 : vector<1x128xf32> to vector<32x128xf32>
    %cst_83 = arith.constant 0.000000e+00 : f32
    %99 = vector.broadcast %cst_83 : f32 to vector<42x128xf32>
    %c0_84 = arith.constant 0 : index
    %c0_85 = arith.constant 0 : index
    %100 = vector.load %arg34[%c0_84, %c0_85] : memref<42x128xf32, #tpu.memory_space<vmem>>, vector<42x128xf32>
    tpu.vector_store %arg34[%c0_84, %c0_85], %99 {strides = array<i32>} : memref<42x128xf32, #tpu.memory_space<vmem>>, vector<42x128xf32>,
    %c5_86 = arith.constant 5 : index
    %c0_87 = arith.constant 0 : index
    %101 = vector.load %arg34[%c5_86, %c0_87] : memref<42x128xf32, #tpu.memory_space<vmem>>, vector<32x128xf32>
    tpu.vector_store %arg34[%c5_86, %c0_87], %95 {strides = array<i32>} : memref<42x128xf32, #tpu.memory_space<vmem>>, vector<32x128xf32>,
    %c2_88 = arith.constant 2 : index
    %c0_89 = arith.constant 0 : index
    %102 = vector.load %arg34[%c2_88, %c0_89] : memref<42x128xf32, #tpu.memory_space<vmem>>, vector<32x128xf32>
    %103 = arith.truncf %102 : vector<32x128xf32> to vector<32x128xbf16>
    %c0_90 = arith.constant 0 : index
    %c0_91 = arith.constant 0 : index
    %c0_92 = arith.constant 0 : index
    %104 = vector.load %arg16[%c0_90, %c0_91, %c0_92] : memref<3x128x128xbf16, #tpu.memory_space<vmem>>, vector<1x128x128xbf16>
    %105 = vector.shape_cast %104 : vector<1x128x128xbf16> to vector<128x128xbf16>
    %cst_93 = arith.constant dense<0.000000e+00> : vector<32x128xf32>
    %106 = tpu.matmul %103, %105, %cst_93 {dimension_numbers = #tpu.dot_dimension_numbers<[1], [0], [0], [1], [0, 0, 1, 1], [], []>} : vector<32x128xbf16>, vector<128x128xbf16>, vector<32x128xf32> -> vector<32x128xf32>
    %107 = arith.addf %98, %106 : vector<32x128xf32>
    %c5_94 = arith.constant 5 : index
    %c0_95 = arith.constant 0 : index
    %108 = vector.load %arg34[%c5_94, %c0_95] : memref<42x128xf32, #tpu.memory_space<vmem>>, vector<32x128xf32>
    %109 = arith.truncf %108 : vector<32x128xf32> to vector<32x128xbf16>
    %c1_96 = arith.constant 1 : index
    %c0_97 = arith.constant 0 : index
    %c0_98 = arith.constant 0 : index
    %110 = vector.load %arg16[%c1_96, %c0_97, %c0_98] : memref<3x128x128xbf16, #tpu.memory_space<vmem>>, vector<1x128x128xbf16>
    %111 = vector.shape_cast %110 : vector<1x128x128xbf16> to vector<128x128xbf16>
    %cst_99 = arith.constant dense<0.000000e+00> : vector<32x128xf32>
    %112 = tpu.matmul %109, %111, %cst_99 {dimension_numbers = #tpu.dot_dimension_numbers<[1], [0], [0], [1], [0, 0, 1, 1], [], []>} : vector<32x128xbf16>, vector<128x128xbf16>, vector<32x128xf32> -> vector<32x128xf32>
    %113 = arith.addf %107, %112 : vector<32x128xf32>
    %c8 = arith.constant 8 : index
    %c0_100 = arith.constant 0 : index
    %114 = vector.load %arg34[%c8, %c0_100] : memref<42x128xf32, #tpu.memory_space<vmem>>, vector<32x128xf32>
    %115 = arith.truncf %114 : vector<32x128xf32> to vector<32x128xbf16>
    %c2_101 = arith.constant 2 : index
    %c0_102 = arith.constant 0 : index
    %c0_103 = arith.constant 0 : index
    %116 = vector.load %arg16[%c2_101, %c0_102, %c0_103] : memref<3x128x128xbf16, #tpu.memory_space<vmem>>, vector<1x128x128xbf16>
    %117 = vector.shape_cast %116 : vector<1x128x128xbf16> to vector<128x128xbf16>
    %cst_104 = arith.constant dense<0.000000e+00> : vector<32x128xf32>
    %118 = tpu.matmul %115, %117, %cst_104 {dimension_numbers = #tpu.dot_dimension_numbers<[1], [0], [0], [1], [0, 0, 1, 1], [], []>} : vector<32x128xbf16>, vector<128x128xbf16>, vector<32x128xf32> -> vector<32x128xf32>
    %119 = arith.addf %113, %118 : vector<32x128xf32>
    %c0_105 = arith.constant 0 : index
    %c0_106 = arith.constant 0 : index
    %120 = vector.load %arg19[%c0_105, %c0_106] : memref<1x128xf32, #tpu.memory_space<vmem>>, vector<1x128xf32>
    %121 = vector.shape_cast %120 : vector<1x128xf32> to vector<1x128xf32>
    %122 = vector.broadcast %121 : vector<1x128xf32> to vector<32x128xf32>
    %123 = arith.truncf %35 : vector<32x128xf32> to vector<32x128xbf16>
    %c0_107 = arith.constant 0 : index
    %c0_108 = arith.constant 0 : index
    %c0_109 = arith.constant 0 : index
    %124 = vector.load %arg18[%c0_107, %c0_108, %c0_109] : memref<1x128x128xbf16, #tpu.memory_space<vmem>>, vector<1x128x128xbf16>
    %125 = vector.shape_cast %124 : vector<1x128x128xbf16> to vector<128x128xbf16>
    %cst_110 = arith.constant dense<0.000000e+00> : vector<32x128xf32>
    %126 = tpu.matmul %123, %125, %cst_110 {dimension_numbers = #tpu.dot_dimension_numbers<[1], [0], [0], [1], [0, 0, 1, 1], [], []>} : vector<32x128xbf16>, vector<128x128xbf16>, vector<32x128xf32> -> vector<32x128xf32>
    %127 = arith.addf %122, %126 : vector<32x128xf32>
    %cst_111 = arith.constant 0.000000e+00 : f32
    %128 = vector.broadcast %cst_111 : f32 to vector<32x128xf32>
    %129 = arith.maximumf %127, %128 : vector<32x128xf32>
    %c0_112 = arith.constant 0 : index
    %c0_113 = arith.constant 0 : index
    %130 = vector.load %arg21[%c0_112, %c0_113] : memref<1x128xf32, #tpu.memory_space<vmem>>, vector<1x128xf32>
    %131 = vector.shape_cast %130 : vector<1x128xf32> to vector<1x128xf32>
    %132 = vector.broadcast %131 : vector<1x128xf32> to vector<32x128xf32>
    %cst_114 = arith.constant 0.000000e+00 : f32
    %133 = vector.broadcast %cst_114 : f32 to vector<42x128xf32>
    %c0_115 = arith.constant 0 : index
    %c0_116 = arith.constant 0 : index
    %134 = vector.load %arg34[%c0_115, %c0_116] : memref<42x128xf32, #tpu.memory_space<vmem>>, vector<42x128xf32>
    tpu.vector_store %arg34[%c0_115, %c0_116], %133 {strides = array<i32>} : memref<42x128xf32, #tpu.memory_space<vmem>>, vector<42x128xf32>,
    %c5_117 = arith.constant 5 : index
    %c0_118 = arith.constant 0 : index
    %135 = vector.load %arg34[%c5_117, %c0_118] : memref<42x128xf32, #tpu.memory_space<vmem>>, vector<32x128xf32>
    tpu.vector_store %arg34[%c5_117, %c0_118], %129 {strides = array<i32>} : memref<42x128xf32, #tpu.memory_space<vmem>>, vector<32x128xf32>,
    %c2_119 = arith.constant 2 : index
    %c0_120 = arith.constant 0 : index
    %136 = vector.load %arg34[%c2_119, %c0_120] : memref<42x128xf32, #tpu.memory_space<vmem>>, vector<32x128xf32>
    %137 = arith.truncf %136 : vector<32x128xf32> to vector<32x128xbf16>
    %c0_121 = arith.constant 0 : index
    %c0_122 = arith.constant 0 : index
    %c0_123 = arith.constant 0 : index
    %138 = vector.load %arg20[%c0_121, %c0_122, %c0_123] : memref<3x128x128xbf16, #tpu.memory_space<vmem>>, vector<1x128x128xbf16>
    %139 = vector.shape_cast %138 : vector<1x128x128xbf16> to vector<128x128xbf16>
    %cst_124 = arith.constant dense<0.000000e+00> : vector<32x128xf32>
    %140 = tpu.matmul %137, %139, %cst_124 {dimension_numbers = #tpu.dot_dimension_numbers<[1], [0], [0], [1], [0, 0, 1, 1], [], []>} : vector<32x128xbf16>, vector<128x128xbf16>, vector<32x128xf32> -> vector<32x128xf32>
    %141 = arith.addf %132, %140 : vector<32x128xf32>
    %c5_125 = arith.constant 5 : index
    %c0_126 = arith.constant 0 : index
    %142 = vector.load %arg34[%c5_125, %c0_126] : memref<42x128xf32, #tpu.memory_space<vmem>>, vector<32x128xf32>
    %143 = arith.truncf %142 : vector<32x128xf32> to vector<32x128xbf16>
    %c1_127 = arith.constant 1 : index
    %c0_128 = arith.constant 0 : index
    %c0_129 = arith.constant 0 : index
    %144 = vector.load %arg20[%c1_127, %c0_128, %c0_129] : memref<3x128x128xbf16, #tpu.memory_space<vmem>>, vector<1x128x128xbf16>
    %145 = vector.shape_cast %144 : vector<1x128x128xbf16> to vector<128x128xbf16>
    %cst_130 = arith.constant dense<0.000000e+00> : vector<32x128xf32>
    %146 = tpu.matmul %143, %145, %cst_130 {dimension_numbers = #tpu.dot_dimension_numbers<[1], [0], [0], [1], [0, 0, 1, 1], [], []>} : vector<32x128xbf16>, vector<128x128xbf16>, vector<32x128xf32> -> vector<32x128xf32>
    %147 = arith.addf %141, %146 : vector<32x128xf32>
    %c8_131 = arith.constant 8 : index
    %c0_132 = arith.constant 0 : index
    %148 = vector.load %arg34[%c8_131, %c0_132] : memref<42x128xf32, #tpu.memory_space<vmem>>, vector<32x128xf32>
    %149 = arith.truncf %148 : vector<32x128xf32> to vector<32x128xbf16>
    %c2_133 = arith.constant 2 : index
    %c0_134 = arith.constant 0 : index
    %c0_135 = arith.constant 0 : index
    %150 = vector.load %arg20[%c2_133, %c0_134, %c0_135] : memref<3x128x128xbf16, #tpu.memory_space<vmem>>, vector<1x128x128xbf16>
    %151 = vector.shape_cast %150 : vector<1x128x128xbf16> to vector<128x128xbf16>
    %cst_136 = arith.constant dense<0.000000e+00> : vector<32x128xf32>
    %152 = tpu.matmul %149, %151, %cst_136 {dimension_numbers = #tpu.dot_dimension_numbers<[1], [0], [0], [1], [0, 0, 1, 1], [], []>} : vector<32x128xbf16>, vector<128x128xbf16>, vector<32x128xf32> -> vector<32x128xf32>
    %153 = arith.addf %147, %152 : vector<32x128xf32>
    %c0_137 = arith.constant 0 : index
    %c0_138 = arith.constant 0 : index
    %154 = vector.load %arg23[%c0_137, %c0_138] : memref<1x96xf32, #tpu.memory_space<vmem>>, vector<1x96xf32>
    %155 = vector.shape_cast %154 : vector<1x96xf32> to vector<1x96xf32>
    %156 = vector.broadcast %155 : vector<1x96xf32> to vector<32x96xf32>
    %157 = arith.truncf %45 : vector<32x64xf32> to vector<32x64xbf16>
    %c0_139 = arith.constant 0 : index
    %c0_140 = arith.constant 0 : index
    %c0_141 = arith.constant 0 : index
    %158 = vector.load %arg22[%c0_139, %c0_140, %c0_141] : memref<1x64x96xbf16, #tpu.memory_space<vmem>>, vector<1x64x96xbf16>
    %159 = vector.shape_cast %158 : vector<1x64x96xbf16> to vector<64x96xbf16>
    %cst_142 = arith.constant dense<0.000000e+00> : vector<32x96xf32>
    %160 = tpu.matmul %157, %159, %cst_142 {dimension_numbers = #tpu.dot_dimension_numbers<[1], [0], [0], [1], [0, 0, 1, 1], [], []>} : vector<32x64xbf16>, vector<64x96xbf16>, vector<32x96xf32> -> vector<32x96xf32>
    %161 = arith.addf %156, %160 : vector<32x96xf32>
    %cst_143 = arith.constant 0.000000e+00 : f32
    %162 = vector.broadcast %cst_143 : f32 to vector<32x96xf32>
    %163 = arith.maximumf %161, %162 : vector<32x96xf32>
    %c0_144 = arith.constant 0 : index
    %c0_145 = arith.constant 0 : index
    %164 = vector.load %arg25[%c0_144, %c0_145] : memref<1x128xf32, #tpu.memory_space<vmem>>, vector<1x128xf32>
    %165 = vector.shape_cast %164 : vector<1x128xf32> to vector<1x128xf32>
    %166 = vector.broadcast %165 : vector<1x128xf32> to vector<32x128xf32>
    %cst_146 = arith.constant 0.000000e+00 : f32
    %167 = vector.broadcast %cst_146 : f32 to vector<42x128xf32>
    %c0_147 = arith.constant 0 : index
    %c0_148 = arith.constant 0 : index
    %168 = vector.load %arg34[%c0_147, %c0_148] : memref<42x128xf32, #tpu.memory_space<vmem>>, vector<42x128xf32>
    tpu.vector_store %arg34[%c0_147, %c0_148], %167 {strides = array<i32>} : memref<42x128xf32, #tpu.memory_space<vmem>>, vector<42x128xf32>,
    %c5_149 = arith.constant 5 : index
    %c0_150 = arith.constant 0 : index
    %169 = vector.load %arg34[%c5_149, %c0_150] : memref<42x128xf32, #tpu.memory_space<vmem>>, vector<32x96xf32>
    tpu.vector_store %arg34[%c5_149, %c0_150], %163 {strides = array<i32>} : memref<42x128xf32, #tpu.memory_space<vmem>>, vector<32x96xf32>,
    %c4_151 = arith.constant 4 : index
    %c0_152 = arith.constant 0 : index
    %170 = vector.load %arg34[%c4_151, %c0_152] : memref<42x128xf32, #tpu.memory_space<vmem>>, vector<32x96xf32>
    %171 = arith.truncf %170 : vector<32x96xf32> to vector<32x96xbf16>
    %c0_153 = arith.constant 0 : index
    %c0_154 = arith.constant 0 : index
    %c0_155 = arith.constant 0 : index
    %172 = vector.load %arg24[%c0_153, %c0_154, %c0_155] : memref<3x96x128xbf16, #tpu.memory_space<vmem>>, vector<1x96x128xbf16>
    %173 = vector.shape_cast %172 : vector<1x96x128xbf16> to vector<96x128xbf16>
    %cst_156 = arith.constant dense<0.000000e+00> : vector<32x128xf32>
    %174 = tpu.matmul %171, %173, %cst_156 {dimension_numbers = #tpu.dot_dimension_numbers<[1], [0], [0], [1], [0, 0, 1, 1], [], []>} : vector<32x96xbf16>, vector<96x128xbf16>, vector<32x128xf32> -> vector<32x128xf32>
    %175 = arith.addf %166, %174 : vector<32x128xf32>
    %c5_157 = arith.constant 5 : index
    %c0_158 = arith.constant 0 : index
    %176 = vector.load %arg34[%c5_157, %c0_158] : memref<42x128xf32, #tpu.memory_space<vmem>>, vector<32x96xf32>
    %177 = arith.truncf %176 : vector<32x96xf32> to vector<32x96xbf16>
    %c1_159 = arith.constant 1 : index
    %c0_160 = arith.constant 0 : index
    %c0_161 = arith.constant 0 : index
    %178 = vector.load %arg24[%c1_159, %c0_160, %c0_161] : memref<3x96x128xbf16, #tpu.memory_space<vmem>>, vector<1x96x128xbf16>
    %179 = vector.shape_cast %178 : vector<1x96x128xbf16> to vector<96x128xbf16>
    %cst_162 = arith.constant dense<0.000000e+00> : vector<32x128xf32>
    %180 = tpu.matmul %177, %179, %cst_162 {dimension_numbers = #tpu.dot_dimension_numbers<[1], [0], [0], [1], [0, 0, 1, 1], [], []>} : vector<32x96xbf16>, vector<96x128xbf16>, vector<32x128xf32> -> vector<32x128xf32>
    %181 = arith.addf %175, %180 : vector<32x128xf32>
    %c6_163 = arith.constant 6 : index
    %c0_164 = arith.constant 0 : index
    %182 = vector.load %arg34[%c6_163, %c0_164] : memref<42x128xf32, #tpu.memory_space<vmem>>, vector<32x96xf32>
    %183 = arith.truncf %182 : vector<32x96xf32> to vector<32x96xbf16>
    %c2_165 = arith.constant 2 : index
    %c0_166 = arith.constant 0 : index
    %c0_167 = arith.constant 0 : index
    %184 = vector.load %arg24[%c2_165, %c0_166, %c0_167] : memref<3x96x128xbf16, #tpu.memory_space<vmem>>, vector<1x96x128xbf16>
    %185 = vector.shape_cast %184 : vector<1x96x128xbf16> to vector<96x128xbf16>
    %cst_168 = arith.constant dense<0.000000e+00> : vector<32x128xf32>
    %186 = tpu.matmul %183, %185, %cst_168 {dimension_numbers = #tpu.dot_dimension_numbers<[1], [0], [0], [1], [0, 0, 1, 1], [], []>} : vector<32x96xbf16>, vector<96x128xbf16>, vector<32x128xf32> -> vector<32x128xf32>
    %187 = arith.addf %181, %186 : vector<32x128xf32>
    %cst_169 = arith.constant 0.000000e+00 : f32
    %188 = vector.broadcast %cst_169 : f32 to vector<32x128xf32>
    %189 = arith.maximumf %187, %188 : vector<32x128xf32>
    %c0_170 = arith.constant 0 : index
    %c0_171 = arith.constant 0 : index
    %190 = vector.load %arg27[%c0_170, %c0_171] : memref<1x128xf32, #tpu.memory_space<vmem>>, vector<1x128xf32>
    %191 = vector.shape_cast %190 : vector<1x128xf32> to vector<1x128xf32>
    %192 = vector.broadcast %191 : vector<1x128xf32> to vector<32x128xf32>
    %cst_172 = arith.constant 0.000000e+00 : f32
    %193 = vector.broadcast %cst_172 : f32 to vector<42x128xf32>
    %c0_173 = arith.constant 0 : index
    %c0_174 = arith.constant 0 : index
    %194 = vector.load %arg34[%c0_173, %c0_174] : memref<42x128xf32, #tpu.memory_space<vmem>>, vector<42x128xf32>
    tpu.vector_store %arg34[%c0_173, %c0_174], %193 {strides = array<i32>} : memref<42x128xf32, #tpu.memory_space<vmem>>, vector<42x128xf32>,
    %c5_175 = arith.constant 5 : index
    %c0_176 = arith.constant 0 : index
    %195 = vector.load %arg34[%c5_175, %c0_176] : memref<42x128xf32, #tpu.memory_space<vmem>>, vector<32x128xf32>
    tpu.vector_store %arg34[%c5_175, %c0_176], %189 {strides = array<i32>} : memref<42x128xf32, #tpu.memory_space<vmem>>, vector<32x128xf32>,
    %c0_177 = arith.constant 0 : index
    %c0_178 = arith.constant 0 : index
    %196 = vector.load %arg34[%c0_177, %c0_178] : memref<42x128xf32, #tpu.memory_space<vmem>>, vector<32x128xf32>
    %197 = arith.truncf %196 : vector<32x128xf32> to vector<32x128xbf16>
    %c0_179 = arith.constant 0 : index
    %c0_180 = arith.constant 0 : index
    %c0_181 = arith.constant 0 : index
    %198 = vector.load %arg26[%c0_179, %c0_180, %c0_181] : memref<3x128x128xbf16, #tpu.memory_space<vmem>>, vector<1x128x128xbf16>
    %199 = vector.shape_cast %198 : vector<1x128x128xbf16> to vector<128x128xbf16>
    %cst_182 = arith.constant dense<0.000000e+00> : vector<32x128xf32>
    %200 = tpu.matmul %197, %199, %cst_182 {dimension_numbers = #tpu.dot_dimension_numbers<[1], [0], [0], [1], [0, 0, 1, 1], [], []>} : vector<32x128xbf16>, vector<128x128xbf16>, vector<32x128xf32> -> vector<32x128xf32>
    %201 = arith.addf %192, %200 : vector<32x128xf32>
    %c5_183 = arith.constant 5 : index
    %c0_184 = arith.constant 0 : index
    %202 = vector.load %arg34[%c5_183, %c0_184] : memref<42x128xf32, #tpu.memory_space<vmem>>, vector<32x128xf32>
    %203 = arith.truncf %202 : vector<32x128xf32> to vector<32x128xbf16>
    %c1_185 = arith.constant 1 : index
    %c0_186 = arith.constant 0 : index
    %c0_187 = arith.constant 0 : index
    %204 = vector.load %arg26[%c1_185, %c0_186, %c0_187] : memref<3x128x128xbf16, #tpu.memory_space<vmem>>, vector<1x128x128xbf16>
    %205 = vector.shape_cast %204 : vector<1x128x128xbf16> to vector<128x128xbf16>
    %cst_188 = arith.constant dense<0.000000e+00> : vector<32x128xf32>
    %206 = tpu.matmul %203, %205, %cst_188 {dimension_numbers = #tpu.dot_dimension_numbers<[1], [0], [0], [1], [0, 0, 1, 1], [], []>} : vector<32x128xbf16>, vector<128x128xbf16>, vector<32x128xf32> -> vector<32x128xf32>
    %207 = arith.addf %201, %206 : vector<32x128xf32>
    %c10 = arith.constant 10 : index
    %c0_189 = arith.constant 0 : index
    %208 = vector.load %arg34[%c10, %c0_189] : memref<42x128xf32, #tpu.memory_space<vmem>>, vector<32x128xf32>
    %209 = arith.truncf %208 : vector<32x128xf32> to vector<32x128xbf16>
    %c2_190 = arith.constant 2 : index
    %c0_191 = arith.constant 0 : index
    %c0_192 = arith.constant 0 : index
    %210 = vector.load %arg26[%c2_190, %c0_191, %c0_192] : memref<3x128x128xbf16, #tpu.memory_space<vmem>>, vector<1x128x128xbf16>
    %211 = vector.shape_cast %210 : vector<1x128x128xbf16> to vector<128x128xbf16>
    %cst_193 = arith.constant dense<0.000000e+00> : vector<32x128xf32>
    %212 = tpu.matmul %209, %211, %cst_193 {dimension_numbers = #tpu.dot_dimension_numbers<[1], [0], [0], [1], [0, 0, 1, 1], [], []>} : vector<32x128xbf16>, vector<128x128xbf16>, vector<32x128xf32> -> vector<32x128xf32>
    %213 = arith.addf %207, %212 : vector<32x128xf32>
    %c0_194 = arith.constant 0 : index
    %c0_195 = arith.constant 0 : index
    %214 = vector.load %arg32[%c0_194, %c0_195] : memref<1x512xf32, #tpu.memory_space<vmem>>, vector<1x512xf32>
    %215 = vector.shape_cast %214 : vector<1x512xf32> to vector<1x512xf32>
    %216 = vector.broadcast %215 : vector<1x512xf32> to vector<32x512xf32>
    %217 = arith.truncf %69 : vector<32x128xf32> to vector<32x128xbf16>
    %c0_196 = arith.constant 0 : index
    %c0_197 = arith.constant 0 : index
    %218 = vector.load %arg28[%c0_196, %c0_197] : memref<128x512xbf16, #tpu.memory_space<vmem>>, vector<128x512xbf16>
    %cst_198 = arith.constant dense<0.000000e+00> : vector<32x512xf32>
    %219 = tpu.matmul %217, %218, %cst_198 {dimension_numbers = #tpu.dot_dimension_numbers<[1], [0], [0], [1], [0, 0, 1, 1], [], []>} : vector<32x128xbf16>, vector<128x512xbf16>, vector<32x512xf32> -> vector<32x512xf32>
    %220 = arith.addf %216, %219 : vector<32x512xf32>
    %221 = arith.truncf %119 : vector<32x128xf32> to vector<32x128xbf16>
    %c0_199 = arith.constant 0 : index
    %c0_200 = arith.constant 0 : index
    %222 = vector.load %arg29[%c0_199, %c0_200] : memref<128x512xbf16, #tpu.memory_space<vmem>>, vector<128x512xbf16>
    %cst_201 = arith.constant dense<0.000000e+00> : vector<32x512xf32>
    %223 = tpu.matmul %221, %222, %cst_201 {dimension_numbers = #tpu.dot_dimension_numbers<[1], [0], [0], [1], [0, 0, 1, 1], [], []>} : vector<32x128xbf16>, vector<128x512xbf16>, vector<32x512xf32> -> vector<32x512xf32>
    %224 = arith.addf %220, %223 : vector<32x512xf32>
    %225 = arith.truncf %153 : vector<32x128xf32> to vector<32x128xbf16>
    %c0_202 = arith.constant 0 : index
    %c0_203 = arith.constant 0 : index
    %226 = vector.load %arg30[%c0_202, %c0_203] : memref<128x512xbf16, #tpu.memory_space<vmem>>, vector<128x512xbf16>
    %cst_204 = arith.constant dense<0.000000e+00> : vector<32x512xf32>
    %227 = tpu.matmul %225, %226, %cst_204 {dimension_numbers = #tpu.dot_dimension_numbers<[1], [0], [0], [1], [0, 0, 1, 1], [], []>} : vector<32x128xbf16>, vector<128x512xbf16>, vector<32x512xf32> -> vector<32x512xf32>
    %228 = arith.addf %224, %227 : vector<32x512xf32>
    %229 = arith.truncf %213 : vector<32x128xf32> to vector<32x128xbf16>
    %c0_205 = arith.constant 0 : index
    %c0_206 = arith.constant 0 : index
    %230 = vector.load %arg31[%c0_205, %c0_206] : memref<128x512xbf16, #tpu.memory_space<vmem>>, vector<128x512xbf16>
    %cst_207 = arith.constant dense<0.000000e+00> : vector<32x512xf32>
    %231 = tpu.matmul %229, %230, %cst_207 {dimension_numbers = #tpu.dot_dimension_numbers<[1], [0], [0], [1], [0, 0, 1, 1], [], []>} : vector<32x128xbf16>, vector<128x512xbf16>, vector<32x512xf32> -> vector<32x512xf32>
    %232 = arith.addf %228, %231 : vector<32x512xf32>
    %cst_208 = arith.constant 0.000000e+00 : f32
    %233 = vector.broadcast %cst_208 : f32 to vector<32x512xf32>
    %234 = arith.cmpf ogt, %232, %233 : vector<32x512xf32>
    %cst_209 = arith.constant 1.000000e-01 : f32
    %235 = vector.broadcast %cst_209 : f32 to vector<32x512xf32>
    %236 = arith.mulf %235, %232 : vector<32x512xf32>
    %237 = arith.select %234, %232, %236 : vector<32x512xi1>, vector<32x512xf32>
    %c0_210 = arith.constant 0 : index
    %c0_211 = arith.constant 0 : index
    %c0_212 = arith.constant 0 : index
    %238 = vector.load %arg33[%c0_210, %c0_211, %c0_212] : memref<1x32x512xf32, #tpu.memory_space<vmem>>, vector<1x32x512xf32>
    %239 = vector.shape_cast %238 : vector<1x32x512xf32> to vector<32x512xf32>
    %240 = vector.shape_cast %237 : vector<32x512xf32> to vector<1x32x512xf32>
    tpu.vector_store %arg33[%c0_210, %c0_211, %c0_212], %240 {strides = array<i32>} : memref<1x32x512xf32, #tpu.memory_space<vmem>>, vector<1x32x512xf32>,
    return
  }
  func.func @transform_0(%arg0: i32) -> (i32, i32, i32) {
    %c0_i32 = arith.constant 0 : i32
    %c0_i32_0 = arith.constant 0 : i32
    %c0_i32_1 = arith.constant 0 : i32
    return %arg0, %c0_i32, %c0_i32_0 : i32, i32, i32
  }
  func.func @transform_1(%arg0: i32) -> (i32, i32) {
    %c0_i32 = arith.constant 0 : i32
    %c0_i32_0 = arith.constant 0 : i32
    %c0_i32_1 = arith.constant 0 : i32
    return %c0_i32, %c0_i32_0 : i32, i32
  }
  func.func @transform_2(%arg0: i32) -> (i32, i32) {
    %c0_i32 = arith.constant 0 : i32
    %c0_i32_0 = arith.constant 0 : i32
    %c0_i32_1 = arith.constant 0 : i32
    return %c0_i32, %c0_i32_0 : i32, i32
  }
  func.func @transform_3(%arg0: i32) -> (i32, i32, i32) {
    %c0_i32 = arith.constant 0 : i32
    %c0_i32_0 = arith.constant 0 : i32
    %c0_i32_1 = arith.constant 0 : i32
    %c0_i32_2 = arith.constant 0 : i32
    return %c0_i32, %c0_i32_0, %c0_i32_1 : i32, i32, i32
  }
  func.func @transform_4(%arg0: i32) -> (i32, i32) {
    %c0_i32 = arith.constant 0 : i32
    %c0_i32_0 = arith.constant 0 : i32
    %c0_i32_1 = arith.constant 0 : i32
    return %c0_i32, %c0_i32_0 : i32, i32
  }
  func.func @transform_5(%arg0: i32) -> (i32, i32, i32) {
    %c0_i32 = arith.constant 0 : i32
    %c0_i32_0 = arith.constant 0 : i32
    %c0_i32_1 = arith.constant 0 : i32
    %c0_i32_2 = arith.constant 0 : i32
    return %c0_i32, %c0_i32_0, %c0_i32_1 : i32, i32, i32
  }
  func.func @transform_6(%arg0: i32) -> (i32, i32) {
    %c0_i32 = arith.constant 0 : i32
    %c0_i32_0 = arith.constant 0 : i32
    %c0_i32_1 = arith.constant 0 : i32
    return %c0_i32, %c0_i32_0 : i32, i32
  }
  func.func @transform_7(%arg0: i32) -> (i32, i32, i32) {
    %c0_i32 = arith.constant 0 : i32
    %c0_i32_0 = arith.constant 0 : i32
    %c0_i32_1 = arith.constant 0 : i32
    %c0_i32_2 = arith.constant 0 : i32
    return %c0_i32, %c0_i32_0, %c0_i32_1 : i32, i32, i32
  }
  func.func @transform_8(%arg0: i32) -> (i32, i32) {
    %c0_i32 = arith.constant 0 : i32
    %c0_i32_0 = arith.constant 0 : i32
    %c0_i32_1 = arith.constant 0 : i32
    return %c0_i32, %c0_i32_0 : i32, i32
  }
  func.func @transform_9(%arg0: i32) -> (i32, i32, i32) {
    %c0_i32 = arith.constant 0 : i32
    %c0_i32_0 = arith.constant 0 : i32
    %c0_i32_1 = arith.constant 0 : i32
    %c0_i32_2 = arith.constant 0 : i32
    return %c0_i32, %c0_i32_0, %c0_i32_1 : i32, i32, i32
  }
  func.func @transform_10(%arg0: i32) -> (i32, i32) {
    %c0_i32 = arith.constant 0 : i32
    %c0_i32_0 = arith.constant 0 : i32
    %c0_i32_1 = arith.constant 0 : i32
    return %c0_i32, %c0_i32_0 : i32, i32
  }
  func.func @transform_11(%arg0: i32) -> (i32, i32, i32) {
    %c0_i32 = arith.constant 0 : i32
    %c0_i32_0 = arith.constant 0 : i32
    %c0_i32_1 = arith.constant 0 : i32
    %c0_i32_2 = arith.constant 0 : i32
    return %c0_i32, %c0_i32_0, %c0_i32_1 : i32, i32, i32
  }
  func.func @transform_12(%arg0: i32) -> (i32, i32) {
    %c0_i32 = arith.constant 0 : i32
    %c0_i32_0 = arith.constant 0 : i32
    %c0_i32_1 = arith.constant 0 : i32
    return %c0_i32, %c0_i32_0 : i32, i32
  }
  func.func @transform_13(%arg0: i32) -> (i32, i32, i32) {
    %c0_i32 = arith.constant 0 : i32
    %c0_i32_0 = arith.constant 0 : i32
    %c0_i32_1 = arith.constant 0 : i32
    %c0_i32_2 = arith.constant 0 : i32
    return %c0_i32, %c0_i32_0, %c0_i32_1 : i32, i32, i32
  }
  func.func @transform_14(%arg0: i32) -> (i32, i32) {
    %c0_i32 = arith.constant 0 : i32
    %c0_i32_0 = arith.constant 0 : i32
    %c0_i32_1 = arith.constant 0 : i32
    return %c0_i32, %c0_i32_0 : i32, i32
  }
  func.func @transform_15(%arg0: i32) -> (i32, i32, i32) {
    %c0_i32 = arith.constant 0 : i32
    %c0_i32_0 = arith.constant 0 : i32
    %c0_i32_1 = arith.constant 0 : i32
    %c0_i32_2 = arith.constant 0 : i32
    return %c0_i32, %c0_i32_0, %c0_i32_1 : i32, i32, i32
  }
  func.func @transform_16(%arg0: i32) -> (i32, i32) {
    %c0_i32 = arith.constant 0 : i32
    %c0_i32_0 = arith.constant 0 : i32
    %c0_i32_1 = arith.constant 0 : i32
    return %c0_i32, %c0_i32_0 : i32, i32
  }
  func.func @transform_17(%arg0: i32) -> (i32, i32, i32) {
    %c0_i32 = arith.constant 0 : i32
    %c0_i32_0 = arith.constant 0 : i32
    %c0_i32_1 = arith.constant 0 : i32
    %c0_i32_2 = arith.constant 0 : i32
    return %c0_i32, %c0_i32_0, %c0_i32_1 : i32, i32, i32
  }
  func.func @transform_18(%arg0: i32) -> (i32, i32) {
    %c0_i32 = arith.constant 0 : i32
    %c0_i32_0 = arith.constant 0 : i32
    %c0_i32_1 = arith.constant 0 : i32
    return %c0_i32, %c0_i32_0 : i32, i32
  }
  func.func @transform_19(%arg0: i32) -> (i32, i32, i32) {
    %c0_i32 = arith.constant 0 : i32
    %c0_i32_0 = arith.constant 0 : i32
    %c0_i32_1 = arith.constant 0 : i32
    %c0_i32_2 = arith.constant 0 : i32
    return %c0_i32, %c0_i32_0, %c0_i32_1 : i32, i32, i32
  }
  func.func @transform_20(%arg0: i32) -> (i32, i32) {
    %c0_i32 = arith.constant 0 : i32
    %c0_i32_0 = arith.constant 0 : i32
    %c0_i32_1 = arith.constant 0 : i32
    return %c0_i32, %c0_i32_0 : i32, i32
  }
  func.func @transform_21(%arg0: i32) -> (i32, i32, i32) {
    %c0_i32 = arith.constant 0 : i32
    %c0_i32_0 = arith.constant 0 : i32
    %c0_i32_1 = arith.constant 0 : i32
    %c0_i32_2 = arith.constant 0 : i32
    return %c0_i32, %c0_i32_0, %c0_i32_1 : i32, i32, i32
  }
  func.func @transform_22(%arg0: i32) -> (i32, i32) {
    %c0_i32 = arith.constant 0 : i32
    %c0_i32_0 = arith.constant 0 : i32
    %c0_i32_1 = arith.constant 0 : i32
    return %c0_i32, %c0_i32_0 : i32, i32
  }
  func.func @transform_23(%arg0: i32) -> (i32, i32, i32) {
    %c0_i32 = arith.constant 0 : i32
    %c0_i32_0 = arith.constant 0 : i32
    %c0_i32_1 = arith.constant 0 : i32
    %c0_i32_2 = arith.constant 0 : i32
    return %c0_i32, %c0_i32_0, %c0_i32_1 : i32, i32, i32
  }
  func.func @transform_24(%arg0: i32) -> (i32, i32) {
    %c0_i32 = arith.constant 0 : i32
    %c0_i32_0 = arith.constant 0 : i32
    %c0_i32_1 = arith.constant 0 : i32
    return %c0_i32, %c0_i32_0 : i32, i32
  }
  func.func @transform_25(%arg0: i32) -> (i32, i32, i32) {
    %c0_i32 = arith.constant 0 : i32
    %c0_i32_0 = arith.constant 0 : i32
    %c0_i32_1 = arith.constant 0 : i32
    %c0_i32_2 = arith.constant 0 : i32
    return %c0_i32, %c0_i32_0, %c0_i32_1 : i32, i32, i32
  }
  func.func @transform_26(%arg0: i32) -> (i32, i32) {
    %c0_i32 = arith.constant 0 : i32
    %c0_i32_0 = arith.constant 0 : i32
    %c0_i32_1 = arith.constant 0 : i32
    return %c0_i32, %c0_i32_0 : i32, i32
  }
  func.func @transform_27(%arg0: i32) -> (i32, i32) {
    %c0_i32 = arith.constant 0 : i32
    %c0_i32_0 = arith.constant 0 : i32
    %c0_i32_1 = arith.constant 0 : i32
    return %c0_i32, %c0_i32_0 : i32, i32
  }
  func.func @transform_28(%arg0: i32) -> (i32, i32) {
    %c0_i32 = arith.constant 0 : i32
    %c0_i32_0 = arith.constant 0 : i32
    %c0_i32_1 = arith.constant 0 : i32
    return %c0_i32, %c0_i32_0 : i32, i32
  }
  func.func @transform_29(%arg0: i32) -> (i32, i32) {
    %c0_i32 = arith.constant 0 : i32
    %c0_i32_0 = arith.constant 0 : i32
    %c0_i32_1 = arith.constant 0 : i32
    return %c0_i32, %c0_i32_0 : i32, i32
  }
  func.func @transform_30(%arg0: i32) -> (i32, i32) {
    %c0_i32 = arith.constant 0 : i32
    %c0_i32_0 = arith.constant 0 : i32
    %c0_i32_1 = arith.constant 0 : i32
    return %c0_i32, %c0_i32_0 : i32, i32
  }
  func.func @transform_31(%arg0: i32) -> (i32, i32) {
    %c0_i32 = arith.constant 0 : i32
    %c0_i32_0 = arith.constant 0 : i32
    %c0_i32_1 = arith.constant 0 : i32
    return %c0_i32, %c0_i32_0 : i32, i32
  }
  func.func @transform_32(%arg0: i32) -> (i32, i32, i32) {
    %c0_i32 = arith.constant 0 : i32
    %c0_i32_0 = arith.constant 0 : i32
    %c0_i32_1 = arith.constant 0 : i32
    return %arg0, %c0_i32, %c0_i32_0 : i32, i32, i32
  }
}

module attributes {stable_mosaic.version = 11 : i64} {
  func.func @_stage_kernel(%arg0: i32, %arg1: memref<1x32x512xf32, #tpu.memory_space<vmem>>, %arg2: memref<1x512x128xbf16, #tpu.memory_space<vmem>>, %arg3: memref<1x128xf32, #tpu.memory_space<vmem>>, %arg4: memref<1x512x128xbf16, #tpu.memory_space<vmem>>, %arg5: memref<1x128xf32, #tpu.memory_space<vmem>>, %arg6: memref<1x512x128xbf16, #tpu.memory_space<vmem>>, %arg7: memref<1x128xf32, #tpu.memory_space<vmem>>, %arg8: memref<1x512x64xbf16, #tpu.memory_space<vmem>>, %arg9: memref<1x64xf32, #tpu.memory_space<vmem>>, %arg10: memref<3x128x128xbf16, #tpu.memory_space<vmem>>, %arg11: memref<1x128xf32, #tpu.memory_space<vmem>>, %arg12: memref<3x128x128xbf16, #tpu.memory_space<vmem>>, %arg13: memref<1x128xf32, #tpu.memory_space<vmem>>, %arg14: memref<3x128x128xbf16, #tpu.memory_space<vmem>>, %arg15: memref<1x128xf32, #tpu.memory_space<vmem>>, %arg16: memref<1x128x128xbf16, #tpu.memory_space<vmem>>, %arg17: memref<1x128xf32, #tpu.memory_space<vmem>>, %arg18: memref<3x128x128xbf16, #tpu.memory_space<vmem>>, %arg19: memref<1x128xf32, #tpu.memory_space<vmem>>, %arg20: memref<1x64x96xbf16, #tpu.memory_space<vmem>>, %arg21: memref<1x96xf32, #tpu.memory_space<vmem>>, %arg22: memref<3x96x128xbf16, #tpu.memory_space<vmem>>, %arg23: memref<1x128xf32, #tpu.memory_space<vmem>>, %arg24: memref<3x128x128xbf16, #tpu.memory_space<vmem>>, %arg25: memref<1x128xf32, #tpu.memory_space<vmem>>, %arg26: memref<128x512xbf16, #tpu.memory_space<vmem>>, %arg27: memref<128x512xbf16, #tpu.memory_space<vmem>>, %arg28: memref<128x512xbf16, #tpu.memory_space<vmem>>, %arg29: memref<128x512xbf16, #tpu.memory_space<vmem>>, %arg30: memref<1x512xf32, #tpu.memory_space<vmem>>, %arg31: memref<1x32x512xf32, #tpu.memory_space<vmem>>, %arg32: memref<42x128xf32, #tpu.memory_space<vmem>>) attributes {dimension_semantics = [#tpu.dimension_semantics<parallel>], iteration_bounds = array<i64: 2>, scalar_prefetch = 0 : i64, scratch_operands = 1 : i64, tpu.core_type = #tpu.core_type<tc>, window_params = [{transform_indices = @transform_0, window_bounds = array<i64: 1, 32, 512>}, {pipeline_mode = #tpu.pipeline_mode<synchronous>, transform_indices = @transform_1, window_bounds = array<i64: 1, 512, 128>}, {pipeline_mode = #tpu.pipeline_mode<synchronous>, transform_indices = @transform_2, window_bounds = array<i64: 1, 128>}, {pipeline_mode = #tpu.pipeline_mode<synchronous>, transform_indices = @transform_3, window_bounds = array<i64: 1, 512, 128>}, {pipeline_mode = #tpu.pipeline_mode<synchronous>, transform_indices = @transform_4, window_bounds = array<i64: 1, 128>}, {pipeline_mode = #tpu.pipeline_mode<synchronous>, transform_indices = @transform_5, window_bounds = array<i64: 1, 512, 128>}, {pipeline_mode = #tpu.pipeline_mode<synchronous>, transform_indices = @transform_6, window_bounds = array<i64: 1, 128>}, {pipeline_mode = #tpu.pipeline_mode<synchronous>, transform_indices = @transform_7, window_bounds = array<i64: 1, 512, 64>}, {pipeline_mode = #tpu.pipeline_mode<synchronous>, transform_indices = @transform_8, window_bounds = array<i64: 1, 64>}, {pipeline_mode = #tpu.pipeline_mode<synchronous>, transform_indices = @transform_9, window_bounds = array<i64: 3, 128, 128>}, {pipeline_mode = #tpu.pipeline_mode<synchronous>, transform_indices = @transform_10, window_bounds = array<i64: 1, 128>}, {pipeline_mode = #tpu.pipeline_mode<synchronous>, transform_indices = @transform_11, window_bounds = array<i64: 3, 128, 128>}, {pipeline_mode = #tpu.pipeline_mode<synchronous>, transform_indices = @transform_12, window_bounds = array<i64: 1, 128>}, {pipeline_mode = #tpu.pipeline_mode<synchronous>, transform_indices = @transform_13, window_bounds = array<i64: 3, 128, 128>}, {pipeline_mode = #tpu.pipeline_mode<synchronous>, transform_indices = @transform_14, window_bounds = array<i64: 1, 128>}, {pipeline_mode = #tpu.pipeline_mode<synchronous>, transform_indices = @transform_15, window_bounds = array<i64: 1, 128, 128>}, {pipeline_mode = #tpu.pipeline_mode<synchronous>, transform_indices = @transform_16, window_bounds = array<i64: 1, 128>}, {pipeline_mode = #tpu.pipeline_mode<synchronous>, transform_indices = @transform_17, window_bounds = array<i64: 3, 128, 128>}, {pipeline_mode = #tpu.pipeline_mode<synchronous>, transform_indices = @transform_18, window_bounds = array<i64: 1, 128>}, {pipeline_mode = #tpu.pipeline_mode<synchronous>, transform_indices = @transform_19, window_bounds = array<i64: 1, 64, 96>}, {pipeline_mode = #tpu.pipeline_mode<synchronous>, transform_indices = @transform_20, window_bounds = array<i64: 1, 96>}, {pipeline_mode = #tpu.pipeline_mode<synchronous>, transform_indices = @transform_21, window_bounds = array<i64: 3, 96, 128>}, {pipeline_mode = #tpu.pipeline_mode<synchronous>, transform_indices = @transform_22, window_bounds = array<i64: 1, 128>}, {pipeline_mode = #tpu.pipeline_mode<synchronous>, transform_indices = @transform_23, window_bounds = array<i64: 3, 128, 128>}, {pipeline_mode = #tpu.pipeline_mode<synchronous>, transform_indices = @transform_24, window_bounds = array<i64: 1, 128>}, {pipeline_mode = #tpu.pipeline_mode<synchronous>, transform_indices = @transform_25, window_bounds = array<i64: 128, 512>}, {pipeline_mode = #tpu.pipeline_mode<synchronous>, transform_indices = @transform_26, window_bounds = array<i64: 128, 512>}, {pipeline_mode = #tpu.pipeline_mode<synchronous>, transform_indices = @transform_27, window_bounds = array<i64: 128, 512>}, {pipeline_mode = #tpu.pipeline_mode<synchronous>, transform_indices = @transform_28, window_bounds = array<i64: 128, 512>}, {pipeline_mode = #tpu.pipeline_mode<synchronous>, transform_indices = @transform_29, window_bounds = array<i64: 1, 512>}, {transform_indices = @transform_30, window_bounds = array<i64: 1, 32, 512>}]} {
    %c0 = arith.constant 0 : index
    %c0_0 = arith.constant 0 : index
    %c0_1 = arith.constant 0 : index
    %0 = vector.load %arg1[%c0, %c0_0, %c0_1] : memref<1x32x512xf32, #tpu.memory_space<vmem>>, vector<1x32x512xf32>
    %1 = vector.shape_cast %0 : vector<1x32x512xf32> to vector<32x512xf32>
    %c0_2 = arith.constant 0 : index
    %c0_3 = arith.constant 0 : index
    %2 = vector.load %arg3[%c0_2, %c0_3] : memref<1x128xf32, #tpu.memory_space<vmem>>, vector<1x128xf32>
    %3 = vector.shape_cast %2 : vector<1x128xf32> to vector<1x128xf32>
    %4 = vector.broadcast %3 : vector<1x128xf32> to vector<32x128xf32>
    %5 = arith.truncf %1 : vector<32x512xf32> to vector<32x512xbf16>
    %c0_4 = arith.constant 0 : index
    %c0_5 = arith.constant 0 : index
    %c0_6 = arith.constant 0 : index
    %6 = vector.load %arg2[%c0_4, %c0_5, %c0_6] : memref<1x512x128xbf16, #tpu.memory_space<vmem>>, vector<1x512x128xbf16>
    %7 = vector.shape_cast %6 : vector<1x512x128xbf16> to vector<512x128xbf16>
    %cst = arith.constant dense<0.000000e+00> : vector<32x128xf32>
    %8 = tpu.matmul %5, %7, %cst {dimension_numbers = #tpu.dot_dimension_numbers<[1], [0], [0], [1], [0, 0, 1, 1], [], []>} : vector<32x512xbf16>, vector<512x128xbf16>, vector<32x128xf32> -> vector<32x128xf32>
    %9 = arith.addf %4, %8 : vector<32x128xf32>
    %cst_7 = arith.constant 0.000000e+00 : f32
    %10 = vector.broadcast %cst_7 : f32 to vector<32x128xf32>
    %11 = arith.maximumf %9, %10 : vector<32x128xf32>
    %c0_8 = arith.constant 0 : index
    %c0_9 = arith.constant 0 : index
    %12 = vector.load %arg5[%c0_8, %c0_9] : memref<1x128xf32, #tpu.memory_space<vmem>>, vector<1x128xf32>
    %13 = vector.shape_cast %12 : vector<1x128xf32> to vector<1x128xf32>
    %14 = vector.broadcast %13 : vector<1x128xf32> to vector<32x128xf32>
    %15 = arith.truncf %1 : vector<32x512xf32> to vector<32x512xbf16>
    %c0_10 = arith.constant 0 : index
    %c0_11 = arith.constant 0 : index
    %c0_12 = arith.constant 0 : index
    %16 = vector.load %arg4[%c0_10, %c0_11, %c0_12] : memref<1x512x128xbf16, #tpu.memory_space<vmem>>, vector<1x512x128xbf16>
    %17 = vector.shape_cast %16 : vector<1x512x128xbf16> to vector<512x128xbf16>
    %cst_13 = arith.constant dense<0.000000e+00> : vector<32x128xf32>
    %18 = tpu.matmul %15, %17, %cst_13 {dimension_numbers = #tpu.dot_dimension_numbers<[1], [0], [0], [1], [0, 0, 1, 1], [], []>} : vector<32x512xbf16>, vector<512x128xbf16>, vector<32x128xf32> -> vector<32x128xf32>
    %19 = arith.addf %14, %18 : vector<32x128xf32>
    %cst_14 = arith.constant 0.000000e+00 : f32
    %20 = vector.broadcast %cst_14 : f32 to vector<32x128xf32>
    %21 = arith.maximumf %19, %20 : vector<32x128xf32>
    %c0_15 = arith.constant 0 : index
    %c0_16 = arith.constant 0 : index
    %22 = vector.load %arg7[%c0_15, %c0_16] : memref<1x128xf32, #tpu.memory_space<vmem>>, vector<1x128xf32>
    %23 = vector.shape_cast %22 : vector<1x128xf32> to vector<1x128xf32>
    %24 = vector.broadcast %23 : vector<1x128xf32> to vector<32x128xf32>
    %25 = arith.truncf %1 : vector<32x512xf32> to vector<32x512xbf16>
    %c0_17 = arith.constant 0 : index
    %c0_18 = arith.constant 0 : index
    %c0_19 = arith.constant 0 : index
    %26 = vector.load %arg6[%c0_17, %c0_18, %c0_19] : memref<1x512x128xbf16, #tpu.memory_space<vmem>>, vector<1x512x128xbf16>
    %27 = vector.shape_cast %26 : vector<1x512x128xbf16> to vector<512x128xbf16>
    %cst_20 = arith.constant dense<0.000000e+00> : vector<32x128xf32>
    %28 = tpu.matmul %25, %27, %cst_20 {dimension_numbers = #tpu.dot_dimension_numbers<[1], [0], [0], [1], [0, 0, 1, 1], [], []>} : vector<32x512xbf16>, vector<512x128xbf16>, vector<32x128xf32> -> vector<32x128xf32>
    %29 = arith.addf %24, %28 : vector<32x128xf32>
    %cst_21 = arith.constant 0.000000e+00 : f32
    %30 = vector.broadcast %cst_21 : f32 to vector<32x128xf32>
    %31 = arith.maximumf %29, %30 : vector<32x128xf32>
    %c0_22 = arith.constant 0 : index
    %c0_23 = arith.constant 0 : index
    %32 = vector.load %arg9[%c0_22, %c0_23] : memref<1x64xf32, #tpu.memory_space<vmem>>, vector<1x64xf32>
    %33 = vector.shape_cast %32 : vector<1x64xf32> to vector<1x64xf32>
    %34 = vector.broadcast %33 : vector<1x64xf32> to vector<32x64xf32>
    %35 = arith.truncf %1 : vector<32x512xf32> to vector<32x512xbf16>
    %c0_24 = arith.constant 0 : index
    %c0_25 = arith.constant 0 : index
    %c0_26 = arith.constant 0 : index
    %36 = vector.load %arg8[%c0_24, %c0_25, %c0_26] : memref<1x512x64xbf16, #tpu.memory_space<vmem>>, vector<1x512x64xbf16>
    %37 = vector.shape_cast %36 : vector<1x512x64xbf16> to vector<512x64xbf16>
    %cst_27 = arith.constant dense<0.000000e+00> : vector<32x64xf32>
    %38 = tpu.matmul %35, %37, %cst_27 {dimension_numbers = #tpu.dot_dimension_numbers<[1], [0], [0], [1], [0, 0, 1, 1], [], []>} : vector<32x512xbf16>, vector<512x64xbf16>, vector<32x64xf32> -> vector<32x64xf32>
    %39 = arith.addf %34, %38 : vector<32x64xf32>
    %cst_28 = arith.constant 0.000000e+00 : f32
    %40 = vector.broadcast %cst_28 : f32 to vector<32x64xf32>
    %41 = arith.maximumf %39, %40 : vector<32x64xf32>
    %c0_29 = arith.constant 0 : index
    %c0_30 = arith.constant 0 : index
    %42 = vector.load %arg11[%c0_29, %c0_30] : memref<1x128xf32, #tpu.memory_space<vmem>>, vector<1x128xf32>
    %43 = vector.shape_cast %42 : vector<1x128xf32> to vector<1x128xf32>
    %44 = vector.broadcast %43 : vector<1x128xf32> to vector<32x128xf32>
    %cst_31 = arith.constant 0.000000e+00 : f32
    %45 = vector.broadcast %cst_31 : f32 to vector<42x128xf32>
    %c0_32 = arith.constant 0 : index
    %c0_33 = arith.constant 0 : index
    %46 = vector.load %arg32[%c0_32, %c0_33] : memref<42x128xf32, #tpu.memory_space<vmem>>, vector<42x128xf32>
    tpu.vector_store %arg32[%c0_32, %c0_33], %45 {strides = array<i32>} : memref<42x128xf32, #tpu.memory_space<vmem>>, vector<42x128xf32>,
    %c5 = arith.constant 5 : index
    %c0_34 = arith.constant 0 : index
    %47 = vector.load %arg32[%c5, %c0_34] : memref<42x128xf32, #tpu.memory_space<vmem>>, vector<32x128xf32>
    tpu.vector_store %arg32[%c5, %c0_34], %11 {strides = array<i32>} : memref<42x128xf32, #tpu.memory_space<vmem>>, vector<32x128xf32>,
    %c4 = arith.constant 4 : index
    %c0_35 = arith.constant 0 : index
    %48 = vector.load %arg32[%c4, %c0_35] : memref<42x128xf32, #tpu.memory_space<vmem>>, vector<32x128xf32>
    %49 = arith.truncf %48 : vector<32x128xf32> to vector<32x128xbf16>
    %c0_36 = arith.constant 0 : index
    %c0_37 = arith.constant 0 : index
    %c0_38 = arith.constant 0 : index
    %50 = vector.load %arg10[%c0_36, %c0_37, %c0_38] : memref<3x128x128xbf16, #tpu.memory_space<vmem>>, vector<1x128x128xbf16>
    %51 = vector.shape_cast %50 : vector<1x128x128xbf16> to vector<128x128xbf16>
    %cst_39 = arith.constant dense<0.000000e+00> : vector<32x128xf32>
    %52 = tpu.matmul %49, %51, %cst_39 {dimension_numbers = #tpu.dot_dimension_numbers<[1], [0], [0], [1], [0, 0, 1, 1], [], []>} : vector<32x128xbf16>, vector<128x128xbf16>, vector<32x128xf32> -> vector<32x128xf32>
    %53 = arith.addf %44, %52 : vector<32x128xf32>
    %c5_40 = arith.constant 5 : index
    %c0_41 = arith.constant 0 : index
    %54 = vector.load %arg32[%c5_40, %c0_41] : memref<42x128xf32, #tpu.memory_space<vmem>>, vector<32x128xf32>
    %55 = arith.truncf %54 : vector<32x128xf32> to vector<32x128xbf16>
    %c1 = arith.constant 1 : index
    %c0_42 = arith.constant 0 : index
    %c0_43 = arith.constant 0 : index
    %56 = vector.load %arg10[%c1, %c0_42, %c0_43] : memref<3x128x128xbf16, #tpu.memory_space<vmem>>, vector<1x128x128xbf16>
    %57 = vector.shape_cast %56 : vector<1x128x128xbf16> to vector<128x128xbf16>
    %cst_44 = arith.constant dense<0.000000e+00> : vector<32x128xf32>
    %58 = tpu.matmul %55, %57, %cst_44 {dimension_numbers = #tpu.dot_dimension_numbers<[1], [0], [0], [1], [0, 0, 1, 1], [], []>} : vector<32x128xbf16>, vector<128x128xbf16>, vector<32x128xf32> -> vector<32x128xf32>
    %59 = arith.addf %53, %58 : vector<32x128xf32>
    %c6 = arith.constant 6 : index
    %c0_45 = arith.constant 0 : index
    %60 = vector.load %arg32[%c6, %c0_45] : memref<42x128xf32, #tpu.memory_space<vmem>>, vector<32x128xf32>
    %61 = arith.truncf %60 : vector<32x128xf32> to vector<32x128xbf16>
    %c2 = arith.constant 2 : index
    %c0_46 = arith.constant 0 : index
    %c0_47 = arith.constant 0 : index
    %62 = vector.load %arg10[%c2, %c0_46, %c0_47] : memref<3x128x128xbf16, #tpu.memory_space<vmem>>, vector<1x128x128xbf16>
    %63 = vector.shape_cast %62 : vector<1x128x128xbf16> to vector<128x128xbf16>
    %cst_48 = arith.constant dense<0.000000e+00> : vector<32x128xf32>
    %64 = tpu.matmul %61, %63, %cst_48 {dimension_numbers = #tpu.dot_dimension_numbers<[1], [0], [0], [1], [0, 0, 1, 1], [], []>} : vector<32x128xbf16>, vector<128x128xbf16>, vector<32x128xf32> -> vector<32x128xf32>
    %65 = arith.addf %59, %64 : vector<32x128xf32>
    %c0_49 = arith.constant 0 : index
    %c0_50 = arith.constant 0 : index
    %66 = vector.load %arg13[%c0_49, %c0_50] : memref<1x128xf32, #tpu.memory_space<vmem>>, vector<1x128xf32>
    %67 = vector.shape_cast %66 : vector<1x128xf32> to vector<1x128xf32>
    %68 = vector.broadcast %67 : vector<1x128xf32> to vector<32x128xf32>
    %cst_51 = arith.constant 0.000000e+00 : f32
    %69 = vector.broadcast %cst_51 : f32 to vector<42x128xf32>
    %c0_52 = arith.constant 0 : index
    %c0_53 = arith.constant 0 : index
    %70 = vector.load %arg32[%c0_52, %c0_53] : memref<42x128xf32, #tpu.memory_space<vmem>>, vector<42x128xf32>
    tpu.vector_store %arg32[%c0_52, %c0_53], %69 {strides = array<i32>} : memref<42x128xf32, #tpu.memory_space<vmem>>, vector<42x128xf32>,
    %c5_54 = arith.constant 5 : index
    %c0_55 = arith.constant 0 : index
    %71 = vector.load %arg32[%c5_54, %c0_55] : memref<42x128xf32, #tpu.memory_space<vmem>>, vector<32x128xf32>
    tpu.vector_store %arg32[%c5_54, %c0_55], %21 {strides = array<i32>} : memref<42x128xf32, #tpu.memory_space<vmem>>, vector<32x128xf32>,
    %c4_56 = arith.constant 4 : index
    %c0_57 = arith.constant 0 : index
    %72 = vector.load %arg32[%c4_56, %c0_57] : memref<42x128xf32, #tpu.memory_space<vmem>>, vector<32x128xf32>
    %73 = arith.truncf %72 : vector<32x128xf32> to vector<32x128xbf16>
    %c0_58 = arith.constant 0 : index
    %c0_59 = arith.constant 0 : index
    %c0_60 = arith.constant 0 : index
    %74 = vector.load %arg12[%c0_58, %c0_59, %c0_60] : memref<3x128x128xbf16, #tpu.memory_space<vmem>>, vector<1x128x128xbf16>
    %75 = vector.shape_cast %74 : vector<1x128x128xbf16> to vector<128x128xbf16>
    %cst_61 = arith.constant dense<0.000000e+00> : vector<32x128xf32>
    %76 = tpu.matmul %73, %75, %cst_61 {dimension_numbers = #tpu.dot_dimension_numbers<[1], [0], [0], [1], [0, 0, 1, 1], [], []>} : vector<32x128xbf16>, vector<128x128xbf16>, vector<32x128xf32> -> vector<32x128xf32>
    %77 = arith.addf %68, %76 : vector<32x128xf32>
    %c5_62 = arith.constant 5 : index
    %c0_63 = arith.constant 0 : index
    %78 = vector.load %arg32[%c5_62, %c0_63] : memref<42x128xf32, #tpu.memory_space<vmem>>, vector<32x128xf32>
    %79 = arith.truncf %78 : vector<32x128xf32> to vector<32x128xbf16>
    %c1_64 = arith.constant 1 : index
    %c0_65 = arith.constant 0 : index
    %c0_66 = arith.constant 0 : index
    %80 = vector.load %arg12[%c1_64, %c0_65, %c0_66] : memref<3x128x128xbf16, #tpu.memory_space<vmem>>, vector<1x128x128xbf16>
    %81 = vector.shape_cast %80 : vector<1x128x128xbf16> to vector<128x128xbf16>
    %cst_67 = arith.constant dense<0.000000e+00> : vector<32x128xf32>
    %82 = tpu.matmul %79, %81, %cst_67 {dimension_numbers = #tpu.dot_dimension_numbers<[1], [0], [0], [1], [0, 0, 1, 1], [], []>} : vector<32x128xbf16>, vector<128x128xbf16>, vector<32x128xf32> -> vector<32x128xf32>
    %83 = arith.addf %77, %82 : vector<32x128xf32>
    %c6_68 = arith.constant 6 : index
    %c0_69 = arith.constant 0 : index
    %84 = vector.load %arg32[%c6_68, %c0_69] : memref<42x128xf32, #tpu.memory_space<vmem>>, vector<32x128xf32>
    %85 = arith.truncf %84 : vector<32x128xf32> to vector<32x128xbf16>
    %c2_70 = arith.constant 2 : index
    %c0_71 = arith.constant 0 : index
    %c0_72 = arith.constant 0 : index
    %86 = vector.load %arg12[%c2_70, %c0_71, %c0_72] : memref<3x128x128xbf16, #tpu.memory_space<vmem>>, vector<1x128x128xbf16>
    %87 = vector.shape_cast %86 : vector<1x128x128xbf16> to vector<128x128xbf16>
    %cst_73 = arith.constant dense<0.000000e+00> : vector<32x128xf32>
    %88 = tpu.matmul %85, %87, %cst_73 {dimension_numbers = #tpu.dot_dimension_numbers<[1], [0], [0], [1], [0, 0, 1, 1], [], []>} : vector<32x128xbf16>, vector<128x128xbf16>, vector<32x128xf32> -> vector<32x128xf32>
    %89 = arith.addf %83, %88 : vector<32x128xf32>
    %cst_74 = arith.constant 0.000000e+00 : f32
    %90 = vector.broadcast %cst_74 : f32 to vector<32x128xf32>
    %91 = arith.maximumf %89, %90 : vector<32x128xf32>
    %c0_75 = arith.constant 0 : index
    %c0_76 = arith.constant 0 : index
    %92 = vector.load %arg15[%c0_75, %c0_76] : memref<1x128xf32, #tpu.memory_space<vmem>>, vector<1x128xf32>
    %93 = vector.shape_cast %92 : vector<1x128xf32> to vector<1x128xf32>
    %94 = vector.broadcast %93 : vector<1x128xf32> to vector<32x128xf32>
    %cst_77 = arith.constant 0.000000e+00 : f32
    %95 = vector.broadcast %cst_77 : f32 to vector<42x128xf32>
    %c0_78 = arith.constant 0 : index
    %c0_79 = arith.constant 0 : index
    %96 = vector.load %arg32[%c0_78, %c0_79] : memref<42x128xf32, #tpu.memory_space<vmem>>, vector<42x128xf32>
    tpu.vector_store %arg32[%c0_78, %c0_79], %95 {strides = array<i32>} : memref<42x128xf32, #tpu.memory_space<vmem>>, vector<42x128xf32>,
    %c5_80 = arith.constant 5 : index
    %c0_81 = arith.constant 0 : index
    %97 = vector.load %arg32[%c5_80, %c0_81] : memref<42x128xf32, #tpu.memory_space<vmem>>, vector<32x128xf32>
    tpu.vector_store %arg32[%c5_80, %c0_81], %91 {strides = array<i32>} : memref<42x128xf32, #tpu.memory_space<vmem>>, vector<32x128xf32>,
    %c2_82 = arith.constant 2 : index
    %c0_83 = arith.constant 0 : index
    %98 = vector.load %arg32[%c2_82, %c0_83] : memref<42x128xf32, #tpu.memory_space<vmem>>, vector<32x128xf32>
    %99 = arith.truncf %98 : vector<32x128xf32> to vector<32x128xbf16>
    %c0_84 = arith.constant 0 : index
    %c0_85 = arith.constant 0 : index
    %c0_86 = arith.constant 0 : index
    %100 = vector.load %arg14[%c0_84, %c0_85, %c0_86] : memref<3x128x128xbf16, #tpu.memory_space<vmem>>, vector<1x128x128xbf16>
    %101 = vector.shape_cast %100 : vector<1x128x128xbf16> to vector<128x128xbf16>
    %cst_87 = arith.constant dense<0.000000e+00> : vector<32x128xf32>
    %102 = tpu.matmul %99, %101, %cst_87 {dimension_numbers = #tpu.dot_dimension_numbers<[1], [0], [0], [1], [0, 0, 1, 1], [], []>} : vector<32x128xbf16>, vector<128x128xbf16>, vector<32x128xf32> -> vector<32x128xf32>
    %103 = arith.addf %94, %102 : vector<32x128xf32>
    %c5_88 = arith.constant 5 : index
    %c0_89 = arith.constant 0 : index
    %104 = vector.load %arg32[%c5_88, %c0_89] : memref<42x128xf32, #tpu.memory_space<vmem>>, vector<32x128xf32>
    %105 = arith.truncf %104 : vector<32x128xf32> to vector<32x128xbf16>
    %c1_90 = arith.constant 1 : index
    %c0_91 = arith.constant 0 : index
    %c0_92 = arith.constant 0 : index
    %106 = vector.load %arg14[%c1_90, %c0_91, %c0_92] : memref<3x128x128xbf16, #tpu.memory_space<vmem>>, vector<1x128x128xbf16>
    %107 = vector.shape_cast %106 : vector<1x128x128xbf16> to vector<128x128xbf16>
    %cst_93 = arith.constant dense<0.000000e+00> : vector<32x128xf32>
    %108 = tpu.matmul %105, %107, %cst_93 {dimension_numbers = #tpu.dot_dimension_numbers<[1], [0], [0], [1], [0, 0, 1, 1], [], []>} : vector<32x128xbf16>, vector<128x128xbf16>, vector<32x128xf32> -> vector<32x128xf32>
    %109 = arith.addf %103, %108 : vector<32x128xf32>
    %c8 = arith.constant 8 : index
    %c0_94 = arith.constant 0 : index
    %110 = vector.load %arg32[%c8, %c0_94] : memref<42x128xf32, #tpu.memory_space<vmem>>, vector<32x128xf32>
    %111 = arith.truncf %110 : vector<32x128xf32> to vector<32x128xbf16>
    %c2_95 = arith.constant 2 : index
    %c0_96 = arith.constant 0 : index
    %c0_97 = arith.constant 0 : index
    %112 = vector.load %arg14[%c2_95, %c0_96, %c0_97] : memref<3x128x128xbf16, #tpu.memory_space<vmem>>, vector<1x128x128xbf16>
    %113 = vector.shape_cast %112 : vector<1x128x128xbf16> to vector<128x128xbf16>
    %cst_98 = arith.constant dense<0.000000e+00> : vector<32x128xf32>
    %114 = tpu.matmul %111, %113, %cst_98 {dimension_numbers = #tpu.dot_dimension_numbers<[1], [0], [0], [1], [0, 0, 1, 1], [], []>} : vector<32x128xbf16>, vector<128x128xbf16>, vector<32x128xf32> -> vector<32x128xf32>
    %115 = arith.addf %109, %114 : vector<32x128xf32>
    %c0_99 = arith.constant 0 : index
    %c0_100 = arith.constant 0 : index
    %116 = vector.load %arg17[%c0_99, %c0_100] : memref<1x128xf32, #tpu.memory_space<vmem>>, vector<1x128xf32>
    %117 = vector.shape_cast %116 : vector<1x128xf32> to vector<1x128xf32>
    %118 = vector.broadcast %117 : vector<1x128xf32> to vector<32x128xf32>
    %119 = arith.truncf %31 : vector<32x128xf32> to vector<32x128xbf16>
    %c0_101 = arith.constant 0 : index
    %c0_102 = arith.constant 0 : index
    %c0_103 = arith.constant 0 : index
    %120 = vector.load %arg16[%c0_101, %c0_102, %c0_103] : memref<1x128x128xbf16, #tpu.memory_space<vmem>>, vector<1x128x128xbf16>
    %121 = vector.shape_cast %120 : vector<1x128x128xbf16> to vector<128x128xbf16>
    %cst_104 = arith.constant dense<0.000000e+00> : vector<32x128xf32>
    %122 = tpu.matmul %119, %121, %cst_104 {dimension_numbers = #tpu.dot_dimension_numbers<[1], [0], [0], [1], [0, 0, 1, 1], [], []>} : vector<32x128xbf16>, vector<128x128xbf16>, vector<32x128xf32> -> vector<32x128xf32>
    %123 = arith.addf %118, %122 : vector<32x128xf32>
    %cst_105 = arith.constant 0.000000e+00 : f32
    %124 = vector.broadcast %cst_105 : f32 to vector<32x128xf32>
    %125 = arith.maximumf %123, %124 : vector<32x128xf32>
    %c0_106 = arith.constant 0 : index
    %c0_107 = arith.constant 0 : index
    %126 = vector.load %arg19[%c0_106, %c0_107] : memref<1x128xf32, #tpu.memory_space<vmem>>, vector<1x128xf32>
    %127 = vector.shape_cast %126 : vector<1x128xf32> to vector<1x128xf32>
    %128 = vector.broadcast %127 : vector<1x128xf32> to vector<32x128xf32>
    %cst_108 = arith.constant 0.000000e+00 : f32
    %129 = vector.broadcast %cst_108 : f32 to vector<42x128xf32>
    %c0_109 = arith.constant 0 : index
    %c0_110 = arith.constant 0 : index
    %130 = vector.load %arg32[%c0_109, %c0_110] : memref<42x128xf32, #tpu.memory_space<vmem>>, vector<42x128xf32>
    tpu.vector_store %arg32[%c0_109, %c0_110], %129 {strides = array<i32>} : memref<42x128xf32, #tpu.memory_space<vmem>>, vector<42x128xf32>,
    %c5_111 = arith.constant 5 : index
    %c0_112 = arith.constant 0 : index
    %131 = vector.load %arg32[%c5_111, %c0_112] : memref<42x128xf32, #tpu.memory_space<vmem>>, vector<32x128xf32>
    tpu.vector_store %arg32[%c5_111, %c0_112], %125 {strides = array<i32>} : memref<42x128xf32, #tpu.memory_space<vmem>>, vector<32x128xf32>,
    %c2_113 = arith.constant 2 : index
    %c0_114 = arith.constant 0 : index
    %132 = vector.load %arg32[%c2_113, %c0_114] : memref<42x128xf32, #tpu.memory_space<vmem>>, vector<32x128xf32>
    %133 = arith.truncf %132 : vector<32x128xf32> to vector<32x128xbf16>
    %c0_115 = arith.constant 0 : index
    %c0_116 = arith.constant 0 : index
    %c0_117 = arith.constant 0 : index
    %134 = vector.load %arg18[%c0_115, %c0_116, %c0_117] : memref<3x128x128xbf16, #tpu.memory_space<vmem>>, vector<1x128x128xbf16>
    %135 = vector.shape_cast %134 : vector<1x128x128xbf16> to vector<128x128xbf16>
    %cst_118 = arith.constant dense<0.000000e+00> : vector<32x128xf32>
    %136 = tpu.matmul %133, %135, %cst_118 {dimension_numbers = #tpu.dot_dimension_numbers<[1], [0], [0], [1], [0, 0, 1, 1], [], []>} : vector<32x128xbf16>, vector<128x128xbf16>, vector<32x128xf32> -> vector<32x128xf32>
    %137 = arith.addf %128, %136 : vector<32x128xf32>
    %c5_119 = arith.constant 5 : index
    %c0_120 = arith.constant 0 : index
    %138 = vector.load %arg32[%c5_119, %c0_120] : memref<42x128xf32, #tpu.memory_space<vmem>>, vector<32x128xf32>
    %139 = arith.truncf %138 : vector<32x128xf32> to vector<32x128xbf16>
    %c1_121 = arith.constant 1 : index
    %c0_122 = arith.constant 0 : index
    %c0_123 = arith.constant 0 : index
    %140 = vector.load %arg18[%c1_121, %c0_122, %c0_123] : memref<3x128x128xbf16, #tpu.memory_space<vmem>>, vector<1x128x128xbf16>
    %141 = vector.shape_cast %140 : vector<1x128x128xbf16> to vector<128x128xbf16>
    %cst_124 = arith.constant dense<0.000000e+00> : vector<32x128xf32>
    %142 = tpu.matmul %139, %141, %cst_124 {dimension_numbers = #tpu.dot_dimension_numbers<[1], [0], [0], [1], [0, 0, 1, 1], [], []>} : vector<32x128xbf16>, vector<128x128xbf16>, vector<32x128xf32> -> vector<32x128xf32>
    %143 = arith.addf %137, %142 : vector<32x128xf32>
    %c8_125 = arith.constant 8 : index
    %c0_126 = arith.constant 0 : index
    %144 = vector.load %arg32[%c8_125, %c0_126] : memref<42x128xf32, #tpu.memory_space<vmem>>, vector<32x128xf32>
    %145 = arith.truncf %144 : vector<32x128xf32> to vector<32x128xbf16>
    %c2_127 = arith.constant 2 : index
    %c0_128 = arith.constant 0 : index
    %c0_129 = arith.constant 0 : index
    %146 = vector.load %arg18[%c2_127, %c0_128, %c0_129] : memref<3x128x128xbf16, #tpu.memory_space<vmem>>, vector<1x128x128xbf16>
    %147 = vector.shape_cast %146 : vector<1x128x128xbf16> to vector<128x128xbf16>
    %cst_130 = arith.constant dense<0.000000e+00> : vector<32x128xf32>
    %148 = tpu.matmul %145, %147, %cst_130 {dimension_numbers = #tpu.dot_dimension_numbers<[1], [0], [0], [1], [0, 0, 1, 1], [], []>} : vector<32x128xbf16>, vector<128x128xbf16>, vector<32x128xf32> -> vector<32x128xf32>
    %149 = arith.addf %143, %148 : vector<32x128xf32>
    %c0_131 = arith.constant 0 : index
    %c0_132 = arith.constant 0 : index
    %150 = vector.load %arg21[%c0_131, %c0_132] : memref<1x96xf32, #tpu.memory_space<vmem>>, vector<1x96xf32>
    %151 = vector.shape_cast %150 : vector<1x96xf32> to vector<1x96xf32>
    %152 = vector.broadcast %151 : vector<1x96xf32> to vector<32x96xf32>
    %153 = arith.truncf %41 : vector<32x64xf32> to vector<32x64xbf16>
    %c0_133 = arith.constant 0 : index
    %c0_134 = arith.constant 0 : index
    %c0_135 = arith.constant 0 : index
    %154 = vector.load %arg20[%c0_133, %c0_134, %c0_135] : memref<1x64x96xbf16, #tpu.memory_space<vmem>>, vector<1x64x96xbf16>
    %155 = vector.shape_cast %154 : vector<1x64x96xbf16> to vector<64x96xbf16>
    %cst_136 = arith.constant dense<0.000000e+00> : vector<32x96xf32>
    %156 = tpu.matmul %153, %155, %cst_136 {dimension_numbers = #tpu.dot_dimension_numbers<[1], [0], [0], [1], [0, 0, 1, 1], [], []>} : vector<32x64xbf16>, vector<64x96xbf16>, vector<32x96xf32> -> vector<32x96xf32>
    %157 = arith.addf %152, %156 : vector<32x96xf32>
    %cst_137 = arith.constant 0.000000e+00 : f32
    %158 = vector.broadcast %cst_137 : f32 to vector<32x96xf32>
    %159 = arith.maximumf %157, %158 : vector<32x96xf32>
    %c0_138 = arith.constant 0 : index
    %c0_139 = arith.constant 0 : index
    %160 = vector.load %arg23[%c0_138, %c0_139] : memref<1x128xf32, #tpu.memory_space<vmem>>, vector<1x128xf32>
    %161 = vector.shape_cast %160 : vector<1x128xf32> to vector<1x128xf32>
    %162 = vector.broadcast %161 : vector<1x128xf32> to vector<32x128xf32>
    %cst_140 = arith.constant 0.000000e+00 : f32
    %163 = vector.broadcast %cst_140 : f32 to vector<42x128xf32>
    %c0_141 = arith.constant 0 : index
    %c0_142 = arith.constant 0 : index
    %164 = vector.load %arg32[%c0_141, %c0_142] : memref<42x128xf32, #tpu.memory_space<vmem>>, vector<42x128xf32>
    tpu.vector_store %arg32[%c0_141, %c0_142], %163 {strides = array<i32>} : memref<42x128xf32, #tpu.memory_space<vmem>>, vector<42x128xf32>,
    %c5_143 = arith.constant 5 : index
    %c0_144 = arith.constant 0 : index
    %165 = vector.load %arg32[%c5_143, %c0_144] : memref<42x128xf32, #tpu.memory_space<vmem>>, vector<32x96xf32>
    tpu.vector_store %arg32[%c5_143, %c0_144], %159 {strides = array<i32>} : memref<42x128xf32, #tpu.memory_space<vmem>>, vector<32x96xf32>,
    %c4_145 = arith.constant 4 : index
    %c0_146 = arith.constant 0 : index
    %166 = vector.load %arg32[%c4_145, %c0_146] : memref<42x128xf32, #tpu.memory_space<vmem>>, vector<32x96xf32>
    %167 = arith.truncf %166 : vector<32x96xf32> to vector<32x96xbf16>
    %c0_147 = arith.constant 0 : index
    %c0_148 = arith.constant 0 : index
    %c0_149 = arith.constant 0 : index
    %168 = vector.load %arg22[%c0_147, %c0_148, %c0_149] : memref<3x96x128xbf16, #tpu.memory_space<vmem>>, vector<1x96x128xbf16>
    %169 = vector.shape_cast %168 : vector<1x96x128xbf16> to vector<96x128xbf16>
    %cst_150 = arith.constant dense<0.000000e+00> : vector<32x128xf32>
    %170 = tpu.matmul %167, %169, %cst_150 {dimension_numbers = #tpu.dot_dimension_numbers<[1], [0], [0], [1], [0, 0, 1, 1], [], []>} : vector<32x96xbf16>, vector<96x128xbf16>, vector<32x128xf32> -> vector<32x128xf32>
    %171 = arith.addf %162, %170 : vector<32x128xf32>
    %c5_151 = arith.constant 5 : index
    %c0_152 = arith.constant 0 : index
    %172 = vector.load %arg32[%c5_151, %c0_152] : memref<42x128xf32, #tpu.memory_space<vmem>>, vector<32x96xf32>
    %173 = arith.truncf %172 : vector<32x96xf32> to vector<32x96xbf16>
    %c1_153 = arith.constant 1 : index
    %c0_154 = arith.constant 0 : index
    %c0_155 = arith.constant 0 : index
    %174 = vector.load %arg22[%c1_153, %c0_154, %c0_155] : memref<3x96x128xbf16, #tpu.memory_space<vmem>>, vector<1x96x128xbf16>
    %175 = vector.shape_cast %174 : vector<1x96x128xbf16> to vector<96x128xbf16>
    %cst_156 = arith.constant dense<0.000000e+00> : vector<32x128xf32>
    %176 = tpu.matmul %173, %175, %cst_156 {dimension_numbers = #tpu.dot_dimension_numbers<[1], [0], [0], [1], [0, 0, 1, 1], [], []>} : vector<32x96xbf16>, vector<96x128xbf16>, vector<32x128xf32> -> vector<32x128xf32>
    %177 = arith.addf %171, %176 : vector<32x128xf32>
    %c6_157 = arith.constant 6 : index
    %c0_158 = arith.constant 0 : index
    %178 = vector.load %arg32[%c6_157, %c0_158] : memref<42x128xf32, #tpu.memory_space<vmem>>, vector<32x96xf32>
    %179 = arith.truncf %178 : vector<32x96xf32> to vector<32x96xbf16>
    %c2_159 = arith.constant 2 : index
    %c0_160 = arith.constant 0 : index
    %c0_161 = arith.constant 0 : index
    %180 = vector.load %arg22[%c2_159, %c0_160, %c0_161] : memref<3x96x128xbf16, #tpu.memory_space<vmem>>, vector<1x96x128xbf16>
    %181 = vector.shape_cast %180 : vector<1x96x128xbf16> to vector<96x128xbf16>
    %cst_162 = arith.constant dense<0.000000e+00> : vector<32x128xf32>
    %182 = tpu.matmul %179, %181, %cst_162 {dimension_numbers = #tpu.dot_dimension_numbers<[1], [0], [0], [1], [0, 0, 1, 1], [], []>} : vector<32x96xbf16>, vector<96x128xbf16>, vector<32x128xf32> -> vector<32x128xf32>
    %183 = arith.addf %177, %182 : vector<32x128xf32>
    %cst_163 = arith.constant 0.000000e+00 : f32
    %184 = vector.broadcast %cst_163 : f32 to vector<32x128xf32>
    %185 = arith.maximumf %183, %184 : vector<32x128xf32>
    %c0_164 = arith.constant 0 : index
    %c0_165 = arith.constant 0 : index
    %186 = vector.load %arg25[%c0_164, %c0_165] : memref<1x128xf32, #tpu.memory_space<vmem>>, vector<1x128xf32>
    %187 = vector.shape_cast %186 : vector<1x128xf32> to vector<1x128xf32>
    %188 = vector.broadcast %187 : vector<1x128xf32> to vector<32x128xf32>
    %cst_166 = arith.constant 0.000000e+00 : f32
    %189 = vector.broadcast %cst_166 : f32 to vector<42x128xf32>
    %c0_167 = arith.constant 0 : index
    %c0_168 = arith.constant 0 : index
    %190 = vector.load %arg32[%c0_167, %c0_168] : memref<42x128xf32, #tpu.memory_space<vmem>>, vector<42x128xf32>
    tpu.vector_store %arg32[%c0_167, %c0_168], %189 {strides = array<i32>} : memref<42x128xf32, #tpu.memory_space<vmem>>, vector<42x128xf32>,
    %c5_169 = arith.constant 5 : index
    %c0_170 = arith.constant 0 : index
    %191 = vector.load %arg32[%c5_169, %c0_170] : memref<42x128xf32, #tpu.memory_space<vmem>>, vector<32x128xf32>
    tpu.vector_store %arg32[%c5_169, %c0_170], %185 {strides = array<i32>} : memref<42x128xf32, #tpu.memory_space<vmem>>, vector<32x128xf32>,
    %c0_171 = arith.constant 0 : index
    %c0_172 = arith.constant 0 : index
    %192 = vector.load %arg32[%c0_171, %c0_172] : memref<42x128xf32, #tpu.memory_space<vmem>>, vector<32x128xf32>
    %193 = arith.truncf %192 : vector<32x128xf32> to vector<32x128xbf16>
    %c0_173 = arith.constant 0 : index
    %c0_174 = arith.constant 0 : index
    %c0_175 = arith.constant 0 : index
    %194 = vector.load %arg24[%c0_173, %c0_174, %c0_175] : memref<3x128x128xbf16, #tpu.memory_space<vmem>>, vector<1x128x128xbf16>
    %195 = vector.shape_cast %194 : vector<1x128x128xbf16> to vector<128x128xbf16>
    %cst_176 = arith.constant dense<0.000000e+00> : vector<32x128xf32>
    %196 = tpu.matmul %193, %195, %cst_176 {dimension_numbers = #tpu.dot_dimension_numbers<[1], [0], [0], [1], [0, 0, 1, 1], [], []>} : vector<32x128xbf16>, vector<128x128xbf16>, vector<32x128xf32> -> vector<32x128xf32>
    %197 = arith.addf %188, %196 : vector<32x128xf32>
    %c5_177 = arith.constant 5 : index
    %c0_178 = arith.constant 0 : index
    %198 = vector.load %arg32[%c5_177, %c0_178] : memref<42x128xf32, #tpu.memory_space<vmem>>, vector<32x128xf32>
    %199 = arith.truncf %198 : vector<32x128xf32> to vector<32x128xbf16>
    %c1_179 = arith.constant 1 : index
    %c0_180 = arith.constant 0 : index
    %c0_181 = arith.constant 0 : index
    %200 = vector.load %arg24[%c1_179, %c0_180, %c0_181] : memref<3x128x128xbf16, #tpu.memory_space<vmem>>, vector<1x128x128xbf16>
    %201 = vector.shape_cast %200 : vector<1x128x128xbf16> to vector<128x128xbf16>
    %cst_182 = arith.constant dense<0.000000e+00> : vector<32x128xf32>
    %202 = tpu.matmul %199, %201, %cst_182 {dimension_numbers = #tpu.dot_dimension_numbers<[1], [0], [0], [1], [0, 0, 1, 1], [], []>} : vector<32x128xbf16>, vector<128x128xbf16>, vector<32x128xf32> -> vector<32x128xf32>
    %203 = arith.addf %197, %202 : vector<32x128xf32>
    %c10 = arith.constant 10 : index
    %c0_183 = arith.constant 0 : index
    %204 = vector.load %arg32[%c10, %c0_183] : memref<42x128xf32, #tpu.memory_space<vmem>>, vector<32x128xf32>
    %205 = arith.truncf %204 : vector<32x128xf32> to vector<32x128xbf16>
    %c2_184 = arith.constant 2 : index
    %c0_185 = arith.constant 0 : index
    %c0_186 = arith.constant 0 : index
    %206 = vector.load %arg24[%c2_184, %c0_185, %c0_186] : memref<3x128x128xbf16, #tpu.memory_space<vmem>>, vector<1x128x128xbf16>
    %207 = vector.shape_cast %206 : vector<1x128x128xbf16> to vector<128x128xbf16>
    %cst_187 = arith.constant dense<0.000000e+00> : vector<32x128xf32>
    %208 = tpu.matmul %205, %207, %cst_187 {dimension_numbers = #tpu.dot_dimension_numbers<[1], [0], [0], [1], [0, 0, 1, 1], [], []>} : vector<32x128xbf16>, vector<128x128xbf16>, vector<32x128xf32> -> vector<32x128xf32>
    %209 = arith.addf %203, %208 : vector<32x128xf32>
    %c0_188 = arith.constant 0 : index
    %c0_189 = arith.constant 0 : index
    %210 = vector.load %arg30[%c0_188, %c0_189] : memref<1x512xf32, #tpu.memory_space<vmem>>, vector<1x512xf32>
    %211 = vector.shape_cast %210 : vector<1x512xf32> to vector<1x512xf32>
    %212 = vector.broadcast %211 : vector<1x512xf32> to vector<32x512xf32>
    %213 = arith.truncf %65 : vector<32x128xf32> to vector<32x128xbf16>
    %c0_190 = arith.constant 0 : index
    %c0_191 = arith.constant 0 : index
    %214 = vector.load %arg26[%c0_190, %c0_191] : memref<128x512xbf16, #tpu.memory_space<vmem>>, vector<128x512xbf16>
    %cst_192 = arith.constant dense<0.000000e+00> : vector<32x512xf32>
    %215 = tpu.matmul %213, %214, %cst_192 {dimension_numbers = #tpu.dot_dimension_numbers<[1], [0], [0], [1], [0, 0, 1, 1], [], []>} : vector<32x128xbf16>, vector<128x512xbf16>, vector<32x512xf32> -> vector<32x512xf32>
    %216 = arith.addf %212, %215 : vector<32x512xf32>
    %217 = arith.truncf %115 : vector<32x128xf32> to vector<32x128xbf16>
    %c0_193 = arith.constant 0 : index
    %c0_194 = arith.constant 0 : index
    %218 = vector.load %arg27[%c0_193, %c0_194] : memref<128x512xbf16, #tpu.memory_space<vmem>>, vector<128x512xbf16>
    %cst_195 = arith.constant dense<0.000000e+00> : vector<32x512xf32>
    %219 = tpu.matmul %217, %218, %cst_195 {dimension_numbers = #tpu.dot_dimension_numbers<[1], [0], [0], [1], [0, 0, 1, 1], [], []>} : vector<32x128xbf16>, vector<128x512xbf16>, vector<32x512xf32> -> vector<32x512xf32>
    %220 = arith.addf %216, %219 : vector<32x512xf32>
    %221 = arith.truncf %149 : vector<32x128xf32> to vector<32x128xbf16>
    %c0_196 = arith.constant 0 : index
    %c0_197 = arith.constant 0 : index
    %222 = vector.load %arg28[%c0_196, %c0_197] : memref<128x512xbf16, #tpu.memory_space<vmem>>, vector<128x512xbf16>
    %cst_198 = arith.constant dense<0.000000e+00> : vector<32x512xf32>
    %223 = tpu.matmul %221, %222, %cst_198 {dimension_numbers = #tpu.dot_dimension_numbers<[1], [0], [0], [1], [0, 0, 1, 1], [], []>} : vector<32x128xbf16>, vector<128x512xbf16>, vector<32x512xf32> -> vector<32x512xf32>
    %224 = arith.addf %220, %223 : vector<32x512xf32>
    %225 = arith.truncf %209 : vector<32x128xf32> to vector<32x128xbf16>
    %c0_199 = arith.constant 0 : index
    %c0_200 = arith.constant 0 : index
    %226 = vector.load %arg29[%c0_199, %c0_200] : memref<128x512xbf16, #tpu.memory_space<vmem>>, vector<128x512xbf16>
    %cst_201 = arith.constant dense<0.000000e+00> : vector<32x512xf32>
    %227 = tpu.matmul %225, %226, %cst_201 {dimension_numbers = #tpu.dot_dimension_numbers<[1], [0], [0], [1], [0, 0, 1, 1], [], []>} : vector<32x128xbf16>, vector<128x512xbf16>, vector<32x512xf32> -> vector<32x512xf32>
    %228 = arith.addf %224, %227 : vector<32x512xf32>
    %cst_202 = arith.constant 0.000000e+00 : f32
    %229 = vector.broadcast %cst_202 : f32 to vector<32x512xf32>
    %230 = arith.cmpf ogt, %228, %229 : vector<32x512xf32>
    %cst_203 = arith.constant 1.000000e-01 : f32
    %231 = vector.broadcast %cst_203 : f32 to vector<32x512xf32>
    %232 = arith.mulf %231, %228 : vector<32x512xf32>
    %233 = arith.select %230, %228, %232 : vector<32x512xi1>, vector<32x512xf32>
    %c0_204 = arith.constant 0 : index
    %c0_205 = arith.constant 0 : index
    %c0_206 = arith.constant 0 : index
    %234 = vector.load %arg31[%c0_204, %c0_205, %c0_206] : memref<1x32x512xf32, #tpu.memory_space<vmem>>, vector<1x32x512xf32>
    %235 = vector.shape_cast %234 : vector<1x32x512xf32> to vector<32x512xf32>
    %236 = vector.shape_cast %233 : vector<32x512xf32> to vector<1x32x512xf32>
    tpu.vector_store %arg31[%c0_204, %c0_205, %c0_206], %236 {strides = array<i32>} : memref<1x32x512xf32, #tpu.memory_space<vmem>>, vector<1x32x512xf32>,
    return
  }
  func.func @transform_0(%arg0: i32) -> (i32, i32, i32) {
    %c0_i32 = arith.constant 0 : i32
    %c0_i32_0 = arith.constant 0 : i32
    %c0_i32_1 = arith.constant 0 : i32
    return %arg0, %c0_i32, %c0_i32_0 : i32, i32, i32
  }
  func.func @transform_1(%arg0: i32) -> (i32, i32, i32) {
    %c0_i32 = arith.constant 0 : i32
    %c0_i32_0 = arith.constant 0 : i32
    %c0_i32_1 = arith.constant 0 : i32
    %c0_i32_2 = arith.constant 0 : i32
    return %c0_i32, %c0_i32_0, %c0_i32_1 : i32, i32, i32
  }
  func.func @transform_2(%arg0: i32) -> (i32, i32) {
    %c0_i32 = arith.constant 0 : i32
    %c0_i32_0 = arith.constant 0 : i32
    %c0_i32_1 = arith.constant 0 : i32
    return %c0_i32, %c0_i32_0 : i32, i32
  }
  func.func @transform_3(%arg0: i32) -> (i32, i32, i32) {
    %c0_i32 = arith.constant 0 : i32
    %c0_i32_0 = arith.constant 0 : i32
    %c0_i32_1 = arith.constant 0 : i32
    %c0_i32_2 = arith.constant 0 : i32
    return %c0_i32, %c0_i32_0, %c0_i32_1 : i32, i32, i32
  }
  func.func @transform_4(%arg0: i32) -> (i32, i32) {
    %c0_i32 = arith.constant 0 : i32
    %c0_i32_0 = arith.constant 0 : i32
    %c0_i32_1 = arith.constant 0 : i32
    return %c0_i32, %c0_i32_0 : i32, i32
  }
  func.func @transform_5(%arg0: i32) -> (i32, i32, i32) {
    %c0_i32 = arith.constant 0 : i32
    %c0_i32_0 = arith.constant 0 : i32
    %c0_i32_1 = arith.constant 0 : i32
    %c0_i32_2 = arith.constant 0 : i32
    return %c0_i32, %c0_i32_0, %c0_i32_1 : i32, i32, i32
  }
  func.func @transform_6(%arg0: i32) -> (i32, i32) {
    %c0_i32 = arith.constant 0 : i32
    %c0_i32_0 = arith.constant 0 : i32
    %c0_i32_1 = arith.constant 0 : i32
    return %c0_i32, %c0_i32_0 : i32, i32
  }
  func.func @transform_7(%arg0: i32) -> (i32, i32, i32) {
    %c0_i32 = arith.constant 0 : i32
    %c0_i32_0 = arith.constant 0 : i32
    %c0_i32_1 = arith.constant 0 : i32
    %c0_i32_2 = arith.constant 0 : i32
    return %c0_i32, %c0_i32_0, %c0_i32_1 : i32, i32, i32
  }
  func.func @transform_8(%arg0: i32) -> (i32, i32) {
    %c0_i32 = arith.constant 0 : i32
    %c0_i32_0 = arith.constant 0 : i32
    %c0_i32_1 = arith.constant 0 : i32
    return %c0_i32, %c0_i32_0 : i32, i32
  }
  func.func @transform_9(%arg0: i32) -> (i32, i32, i32) {
    %c0_i32 = arith.constant 0 : i32
    %c0_i32_0 = arith.constant 0 : i32
    %c0_i32_1 = arith.constant 0 : i32
    %c0_i32_2 = arith.constant 0 : i32
    return %c0_i32, %c0_i32_0, %c0_i32_1 : i32, i32, i32
  }
  func.func @transform_10(%arg0: i32) -> (i32, i32) {
    %c0_i32 = arith.constant 0 : i32
    %c0_i32_0 = arith.constant 0 : i32
    %c0_i32_1 = arith.constant 0 : i32
    return %c0_i32, %c0_i32_0 : i32, i32
  }
  func.func @transform_11(%arg0: i32) -> (i32, i32, i32) {
    %c0_i32 = arith.constant 0 : i32
    %c0_i32_0 = arith.constant 0 : i32
    %c0_i32_1 = arith.constant 0 : i32
    %c0_i32_2 = arith.constant 0 : i32
    return %c0_i32, %c0_i32_0, %c0_i32_1 : i32, i32, i32
  }
  func.func @transform_12(%arg0: i32) -> (i32, i32) {
    %c0_i32 = arith.constant 0 : i32
    %c0_i32_0 = arith.constant 0 : i32
    %c0_i32_1 = arith.constant 0 : i32
    return %c0_i32, %c0_i32_0 : i32, i32
  }
  func.func @transform_13(%arg0: i32) -> (i32, i32, i32) {
    %c0_i32 = arith.constant 0 : i32
    %c0_i32_0 = arith.constant 0 : i32
    %c0_i32_1 = arith.constant 0 : i32
    %c0_i32_2 = arith.constant 0 : i32
    return %c0_i32, %c0_i32_0, %c0_i32_1 : i32, i32, i32
  }
  func.func @transform_14(%arg0: i32) -> (i32, i32) {
    %c0_i32 = arith.constant 0 : i32
    %c0_i32_0 = arith.constant 0 : i32
    %c0_i32_1 = arith.constant 0 : i32
    return %c0_i32, %c0_i32_0 : i32, i32
  }
  func.func @transform_15(%arg0: i32) -> (i32, i32, i32) {
    %c0_i32 = arith.constant 0 : i32
    %c0_i32_0 = arith.constant 0 : i32
    %c0_i32_1 = arith.constant 0 : i32
    %c0_i32_2 = arith.constant 0 : i32
    return %c0_i32, %c0_i32_0, %c0_i32_1 : i32, i32, i32
  }
  func.func @transform_16(%arg0: i32) -> (i32, i32) {
    %c0_i32 = arith.constant 0 : i32
    %c0_i32_0 = arith.constant 0 : i32
    %c0_i32_1 = arith.constant 0 : i32
    return %c0_i32, %c0_i32_0 : i32, i32
  }
  func.func @transform_17(%arg0: i32) -> (i32, i32, i32) {
    %c0_i32 = arith.constant 0 : i32
    %c0_i32_0 = arith.constant 0 : i32
    %c0_i32_1 = arith.constant 0 : i32
    %c0_i32_2 = arith.constant 0 : i32
    return %c0_i32, %c0_i32_0, %c0_i32_1 : i32, i32, i32
  }
  func.func @transform_18(%arg0: i32) -> (i32, i32) {
    %c0_i32 = arith.constant 0 : i32
    %c0_i32_0 = arith.constant 0 : i32
    %c0_i32_1 = arith.constant 0 : i32
    return %c0_i32, %c0_i32_0 : i32, i32
  }
  func.func @transform_19(%arg0: i32) -> (i32, i32, i32) {
    %c0_i32 = arith.constant 0 : i32
    %c0_i32_0 = arith.constant 0 : i32
    %c0_i32_1 = arith.constant 0 : i32
    %c0_i32_2 = arith.constant 0 : i32
    return %c0_i32, %c0_i32_0, %c0_i32_1 : i32, i32, i32
  }
  func.func @transform_20(%arg0: i32) -> (i32, i32) {
    %c0_i32 = arith.constant 0 : i32
    %c0_i32_0 = arith.constant 0 : i32
    %c0_i32_1 = arith.constant 0 : i32
    return %c0_i32, %c0_i32_0 : i32, i32
  }
  func.func @transform_21(%arg0: i32) -> (i32, i32, i32) {
    %c0_i32 = arith.constant 0 : i32
    %c0_i32_0 = arith.constant 0 : i32
    %c0_i32_1 = arith.constant 0 : i32
    %c0_i32_2 = arith.constant 0 : i32
    return %c0_i32, %c0_i32_0, %c0_i32_1 : i32, i32, i32
  }
  func.func @transform_22(%arg0: i32) -> (i32, i32) {
    %c0_i32 = arith.constant 0 : i32
    %c0_i32_0 = arith.constant 0 : i32
    %c0_i32_1 = arith.constant 0 : i32
    return %c0_i32, %c0_i32_0 : i32, i32
  }
  func.func @transform_23(%arg0: i32) -> (i32, i32, i32) {
    %c0_i32 = arith.constant 0 : i32
    %c0_i32_0 = arith.constant 0 : i32
    %c0_i32_1 = arith.constant 0 : i32
    %c0_i32_2 = arith.constant 0 : i32
    return %c0_i32, %c0_i32_0, %c0_i32_1 : i32, i32, i32
  }
  func.func @transform_24(%arg0: i32) -> (i32, i32) {
    %c0_i32 = arith.constant 0 : i32
    %c0_i32_0 = arith.constant 0 : i32
    %c0_i32_1 = arith.constant 0 : i32
    return %c0_i32, %c0_i32_0 : i32, i32
  }
  func.func @transform_25(%arg0: i32) -> (i32, i32) {
    %c0_i32 = arith.constant 0 : i32
    %c0_i32_0 = arith.constant 0 : i32
    %c0_i32_1 = arith.constant 0 : i32
    return %c0_i32, %c0_i32_0 : i32, i32
  }
  func.func @transform_26(%arg0: i32) -> (i32, i32) {
    %c0_i32 = arith.constant 0 : i32
    %c0_i32_0 = arith.constant 0 : i32
    %c0_i32_1 = arith.constant 0 : i32
    return %c0_i32, %c0_i32_0 : i32, i32
  }
  func.func @transform_27(%arg0: i32) -> (i32, i32) {
    %c0_i32 = arith.constant 0 : i32
    %c0_i32_0 = arith.constant 0 : i32
    %c0_i32_1 = arith.constant 0 : i32
    return %c0_i32, %c0_i32_0 : i32, i32
  }
  func.func @transform_28(%arg0: i32) -> (i32, i32) {
    %c0_i32 = arith.constant 0 : i32
    %c0_i32_0 = arith.constant 0 : i32
    %c0_i32_1 = arith.constant 0 : i32
    return %c0_i32, %c0_i32_0 : i32, i32
  }
  func.func @transform_29(%arg0: i32) -> (i32, i32) {
    %c0_i32 = arith.constant 0 : i32
    %c0_i32_0 = arith.constant 0 : i32
    %c0_i32_1 = arith.constant 0 : i32
    return %c0_i32, %c0_i32_0 : i32, i32
  }
  func.func @transform_30(%arg0: i32) -> (i32, i32, i32) {
    %c0_i32 = arith.constant 0 : i32
    %c0_i32_0 = arith.constant 0 : i32
    %c0_i32_1 = arith.constant 0 : i32
    return %arg0, %c0_i32, %c0_i32_0 : i32, i32, i32
  }
}

</mosaic_0001>

<bundles_post_ra>
// kernel: _lambda_.3
= control target key start
LH: loop header
LB: loop body
LE: loop exit
PB: predicated region body
PF: predicated region fallthrough
CT: control target
= control target key end

     0   :  { %s8344_s6 = smov 1   ;;  %s8345_s10 = smov 2   ;;  %s9312_s0 = inlined_call_operand.smem [shape: u32[31], index: -1, kind: input, shape index: {}] }
   0x1   :  { %s8384_s5 = sld [smem:[%s9312_s0]]   ;;  %s8346_s14 = smov 3  }
   0x2   :  { %s8389_s9 = sld [smem:[%s9312_s0 + %s8344_s6]]   ;;  %s8347_s18 = smov 4  }
   0x3   :  { %s8394_s13 = sld [smem:[%s9312_s0 + %s8345_s10]]   ;;  %s8348_s22 = smov 5  }
   0x4   :  { %s8399_s17 = sld [smem:[%s9312_s0 + %s8346_s14]]   ;;  %s8349_s26 = smov 6  }
   0x5   :  { %s8404_s21 = sld [smem:[%s9312_s0 + %s8347_s18]]   ;;  %s8350_s30 = smov 7  }
   0x6   :  { %s8409_s25 = sld [smem:[%s9312_s0 + %s8348_s22]]   ;;  %s8351_s4 = smov 8  }
   0x7   :  { %s8414_s29 = sld [smem:[%s9312_s0 + %s8349_s26]]   ;;  %s8352_s10 = smov 9  }
   0x8   :  { %s8419_s3 = sld [smem:[%s9312_s0 + %s8350_s30]]   ;;  %s8353_s15 = smov 10  }
   0x9   :  { %s8424_s8 = sld [smem:[%s9312_s0 + %s8351_s4]]   ;;  %s8354_s20 = smov 11  }
   0xa   :  { %s8429_s14 = sld [smem:[%s9312_s0 + %s8352_s10]]   ;;  %s8355_s26 = smov 12  }
   0xb   :  { %s8434_s19 = sld [smem:[%s9312_s0 + %s8353_s15]]   ;;  %s8356_s1 = smov 13  }
   0xc   :  { %s8439_s24 = sld [smem:[%s9312_s0 + %s8354_s20]]   ;;  %s8357_s7 = smov 14  }
   0xd   :  { %s8444_s30 = sld [smem:[%s9312_s0 + %s8355_s26]]   ;;  %s8358_s15 = smov 15  }
   0xe   :  { %s8449_s6 = sld [smem:[%s9312_s0 + %s8356_s1]]   ;;  %s8359_s22 = smov 16  }
   0xf   :  { %s8454_s12 = sld [smem:[%s9312_s0 + %s8357_s7]]   ;;  %s8360_s28 = smov 17  }
  0x10   :  { %s8459_s20 = sld [smem:[%s9312_s0 + %s8358_s15]]   ;;  %s8361_s7 = smov 18  }
  0x11   :  { %s8464_s27 = sld [smem:[%s9312_s0 + %s8359_s22]]   ;;  %s8362_s15 = smov 19  }
  0x12   :  { %s8469_s4 = sld [smem:[%s9312_s0 + %s8360_s28]]   ;;  %s8363_s22 = smov 20  }
  0x13   :  { %9319 = sst [smem:[#allocation3_spill]] %s8444_s30  ;;  %s8364_s28 = smov 21  }
  0x14   :  { %s8479_s30 = sld [smem:[%s9312_s0 + %s8362_s15]]   ;;  %s8366_s15 = smov 23  }
  0x15   :  { %9320 = sst [smem:[#allocation4_spill]] %s8454_s12 }
  0x16   :  { %s8474_s12 = sld [smem:[%s9312_s0 + %s8361_s7]]   ;;  %s8365_s7 = smov 22  }
  0x17   :  { %9321 = sst [smem:[#allocation5_spill]] %s8464_s27 }
  0x18   :  { %9322 = sst [smem:[#allocation6_spill]] %s8469_s4 }
  0x19   :  { %s8484_s27 = sld [smem:[%s9312_s0 + %s8363_s22]]   ;;  %s8367_s22 = smov 24  }
  0x1a   :  { %9324 = sst [smem:[#allocation8_spill]] %s8479_s30 }
  0x1b   :  { %s8489_s4 = sld [smem:[%s9312_s0 + %s8364_s28]]   ;;  %s8368_s28 = smov 25  }
  0x1c   :  { %9323 = sst [smem:[#allocation7_spill]] %s8474_s12 }
  0x1d   :  { %s8494_s12 = sld [smem:[%s9312_s0 + %s8365_s7]]   ;;  %s8369_s7 = smov 26  }
  0x1e   :  { %s8499_s30 = sld [smem:[%s9312_s0 + %s8366_s15]]   ;;  %s8370_s15 = smov 27  }
  0x1f   :  { %9325 = sst [smem:[#allocation9_spill]] %s8484_s27 }
  0x20   :  { %s8504_s27 = sld [smem:[%s9312_s0 + %s8367_s22]]   ;;  %s8371_s22 = smov 28  }
  0x21   :  { %9326 = sst [smem:[#allocation10_spill]] %s8489_s4 }
  0x22   :  { %s8509_s4 = sld [smem:[%s9312_s0 + %s8368_s28]]   ;;  %s8372_s28 = smov 29  }
  0x23   :  { %9327 = sst [smem:[#allocation11_spill]] %s8494_s12 }
  0x24   :  { %9328 = sst [smem:[#allocation12_spill]] %s8499_s30 }
  0x25   :  { %s8514_s12 = sld [smem:[%s9312_s0 + %s8369_s7]]   ;;  %s8373_s7 = smov 30  }
  0x26   :  { %9329 = sst [smem:[#allocation13_spill]] %s8504_s27 }
  0x27   :  { %s8519_s30 = sld [smem:[%s9312_s0 + %s8370_s15]]   ;;  %s8536_s15 = smov 0  }
  0x28   :  { %9330 = sst [smem:[#allocation14_spill]] %s8509_s4 }
  0x29   :  { %s8524_s27 = sld [smem:[%s9312_s0 + %s8371_s22]]  }
  0x2a   :  { %s8529_s4 = sld [smem:[%s9312_s0 + %s8372_s28]]  }
  0x2b   :  { %9331 = sst [smem:[#allocation15_spill]] %s8514_s12 }
  0x2c   :  { %s8534_s12 = sld [smem:[%s9312_s0 + %s8373_s7]]  }
  0x2d LB: > { %s6409_s16 = sadd.s32 4294967295, %s8342_s15   ;;  %p6413_p0 = scmp.ge.s32.totalorder %s8342_s15, 1  ;;  %s8342_s15 = sphi %s8536_s15, %s71_s15  }
  0x2e   : > { %p843_p1 = scmp.lt.s32.totalorder %s8342_s15, 3 }
  0x30   : > { %p844_p2 = pnand %p6413_p0, %p843_p1 }
  0x32   : > { %847 = sbr.rel (%p844_p2) target bundleno = 1745 (0x6d1), region = 140 }
  0x37   : > { %v7866_v0 = vld [vmem:[%s8389_s9 + $0x78] sm:$0xff]   ;;  %v7870_v4 = vld [vmem:[%s8389_s9 + $0x70] sm:$0xff]   ;;  %v7874_v8 = vld [vmem:[%s8389_s9 + $0x68] sm:$0xff]   ;;  %p921_p3 = scmp.lt.s32.totalorder %s6409_s16, 1  ;;  %s9332_s22 = sld [smem:[#allocation3_spill]]  ;;  %vm4159_vm0 = vcmask 523264  }
  0x38   : > { %v7867_v1 = vld [vmem:[%s8389_s9 + $0xf8] sm:$0xff]   ;;  %7032 = vmatprep.subr.bf16.mxu0 %v7866_v0  ;;  %v7871_v5 = vld [vmem:[%s8389_s9 + $0xf0] sm:$0xff]   ;;  %v7875_v9 = vld [vmem:[%s8389_s9 + $0xe8] sm:$0xff]   ;;  %s9333_s23 = sld [smem:[#allocation6_spill]]  ;;  %vm4236_vm1 = vcmask 785408  }
  0x39   : > { %v7868_v2 = vld [vmem:[%s8389_s9 + $0x38] sm:$0xff]   ;;  %7060 = vmatprep.subr.bf16.mxu1 %v7867_v1  ;;  %v7872_v6 = vld [vmem:[%s8389_s9 + $0x30] sm:$0xff]   ;;  %v7876_v10 = vld [vmem:[%s8389_s9 + $0x28] sm:$0xff]   ;;  %s9350_s16 = smov (!%p921_p3, %s6409_s16), 1  ;;  %s9334_s26 = sld [smem:[#allocation8_spill]] }
  0x3a   : > { %v7869_v3 = vld [vmem:[%s8389_s9 + $0xb8] sm:$0xff]   ;;  %7033 = vmatpush3.bf16.msra.mxu0 %v7868_v2  ;;  %v7873_v7 = vld [vmem:[%s8389_s9 + $0xb0] sm:$0xff]   ;;  %v7877_v11 = vld [vmem:[%s8389_s9 + $0xa8] sm:$0xff]   ;;  %s7030_s0 = sshll.u32 %s9350_s16, 7  ;;  %s9335_s28 = sld [smem:[#allocation4_spill]] }
  0x3b   : > { %7061 = vmatpush3.bf16.msra.mxu1 %v7869_v3  ;;  %7034 = vmatprep.subr.bf16.mxu0 %v7870_v4  ;;  %v7878_v12 = vld [vmem:[%s8389_s9 + $0x60] sm:$0xff]   ;;  %v7882_v16 = vld [vmem:[%s8389_s9 + $0x58] sm:$0xff]   ;;  %v7886_v20 = vld [vmem:[%s8389_s9 + $0x50] sm:$0xff]   ;;  %s8584_s18 = scalar_lea.vmem %s8384_s5, %s7030_s0  ;;  %s9336_s1 = sld [smem:[#allocation5_spill]] }
  0x3c   : > { %7062 = vmatprep.subr.bf16.mxu1 %v7871_v5  ;;  %v7879_v13 = vld [vmem:[%s8389_s9 + $0xe0] sm:$0xff]   ;;  %v7883_v17 = vld [vmem:[%s8389_s9 + $0xd8] sm:$0xff]   ;;  %v7887_v21 = vld [vmem:[%s8389_s9 + $0xd0] sm:$0xff]   ;;  %s9337_s2 = sld [smem:[#allocation10_spill]] }
  0x3d   : > { %v7880_v14 = vld [vmem:[%s8389_s9 + $0x20] sm:$0xff]   ;;  %v7884_v18 = vld [vmem:[%s8389_s9 + $0x18] sm:$0xff]   ;;  %v7888_v22 = vld [vmem:[%s8389_s9 + $0x10] sm:$0xff]   ;;  %s9338_s7 = sld [smem:[#allocation7_spill]] }
  0x3e   : > { %7035 = vmatpush3.bf16.msra.mxu0 %v7872_v6  ;;  %v7881_v15 = vld [vmem:[%s8389_s9 + $0xa0] sm:$0xff]   ;;  %v7885_v19 = vld [vmem:[%s8389_s9 + $0x98] sm:$0xff]   ;;  %v7889_v23 = vld [vmem:[%s8389_s9 + $0x90] sm:$0xff]   ;;  %s9339_s10 = sld [smem:[#allocation9_spill]] }
  0x3f   : > { %7063 = vmatpush3.bf16.msra.mxu1 %v7873_v7  ;;  %7036 = vmatprep.subr.bf16.mxu0 %v7874_v8  ;;  %v7890_v24 = vld [vmem:[%s8389_s9 + $0x48] sm:$0xff]   ;;  %v7894_v28 = vld [vmem:[%s8389_s9 + $0x40] sm:$0xff]   ;;  %v935_v34 = vld [vmem:[%s8584_s18 + $0x18] sm:$0xff]  ;;  %s9340_s11 = sld [smem:[#allocation12_spill]] }
  0x40   : > { %7064 = vmatprep.subr.bf16.mxu1 %v7875_v9  ;;  %v7891_v25 = vld [vmem:[%s8389_s9 + $0xc8] sm:$0xff]   ;;  %v7895_v29 = vld [vmem:[%s8389_s9 + $0xc0] sm:$0xff]   ;;  %v939_v36 = vld [vmem:[%s8584_s18 + $0x38] sm:$0xff] }
  0x41   : > { %v7892_v26 = vld [vmem:[%s8389_s9 + $0x8] sm:$0xff]   ;;  %v7896_v30 = vld [vmem:[%s8389_s9] sm:$0xff]   ;;  %v8596_v39 = vpack.c.bf16 %v939_v36, %v935_v34  ;;  %v934_v41 = vld [vmem:[%s8584_s18 + $0x10] sm:$0xff] }
  0x42   : > { %7037 = vmatpush3.bf16.msra.mxu0 %v7876_v10  ;;  %v7893_v27 = vld [vmem:[%s8389_s9 + $0x88] sm:$0xff]   ;;  %v7897_v31 = vld [vmem:[%s8389_s9 + $0x80] sm:$0xff]   ;;  %v938_v42 = vld [vmem:[%s8584_s18 + $0x30] sm:$0xff] }
  0x43   : > { %7065 = vmatpush3.bf16.msra.mxu1 %v7877_v11  ;;  %7038 = vmatprep.subr.bf16.mxu0 %v7878_v12  ;;  %v933_v32 = vld [vmem:[%s8584_s18 + $0x8] sm:$0xff]  ;;  %v932_v37 = vld [vmem:[%s8584_s18] sm:$0xff]  ;;  %v8603_v43 = vpack.c.bf16 %v938_v42, %v934_v41  ;;  %v7898_v44 = vld [vmem:[%s8399_s17 + $0x78] sm:$0xff]  }
  0x44   : > { %7066 = vmatprep.subr.bf16.mxu1 %v7879_v13  ;;  %v937_v33 = vld [vmem:[%s8584_s18 + $0x28] sm:$0xff]  ;;  %v936_v38 = vld [vmem:[%s8584_s18 + $0x20] sm:$0xff]  ;;  %1300 = vmatprep.mubr.bf16.mxu1 %v8596_v39  ;;  %v7899_v45 = vld [vmem:[%s8399_s17 + $0xf8] sm:$0xff]  }
  0x45   : > { %v8591_v35 = vpack.c.bf16 %v937_v33, %v933_v32  ;;  %v8598_v40 = vpack.c.bf16 %v936_v38, %v932_v37  ;;  %v7900_v46 = vld [vmem:[%s8399_s17 + $0x38] sm:$0xff]   ;;  %v7902_v48 = vld [vmem:[%s8399_s17 + $0x70] sm:$0xff]   ;;  %v941_v52 = vld [vmem:[%s8584_s18 + $0x48] sm:$0xff] }
  0x46   : > { %7039 = vmatpush3.bf16.msra.mxu0 %v7880_v14  ;;  %v7901_v47 = vld [vmem:[%s8399_s17 + $0xb8] sm:$0xff]   ;;  %v7903_v49 = vld [vmem:[%s8399_s17 + $0xf0] sm:$0xff]   ;;  %v945_v53 = vld [vmem:[%s8584_s18 + $0x68] sm:$0xff] }
  0x47   : > { %7067 = vmatpush3.bf16.msra.mxu1 %v7881_v15  ;;  %7040 = vmatprep.subr.bf16.mxu0 %v7882_v16  ;;  %v7904_v50 = vld [vmem:[%s8399_s17 + $0x30] sm:$0xff]   ;;  %v943_v54 = vld [vmem:[%s8584_s18 + $0x58] sm:$0xff]  ;;  %v8620_v56 = vpack.c.bf16 %v945_v53, %v941_v52  ;;  %v940_v58 = vld [vmem:[%s8584_s18 + $0x40] sm:$0xff] }
  0x48   : > { %7068 = vmatprep.subr.bf16.mxu1 %v7883_v17  ;;  %1251 = vmatprep.mubr.bf16.mxu0 %v8591_v35  ;;  %v7905_v51 = vld [vmem:[%s8399_s17 + $0xb0] sm:$0xff]   ;;  %v947_v55 = vld [vmem:[%s8584_s18 + $0x78] sm:$0xff]  ;;  %v944_v59 = vld [vmem:[%s8584_s18 + $0x60] sm:$0xff] }
  0x49   : > { %v8622_v57 = vpack.c.bf16 %v947_v55, %v943_v54  ;;  %v942_v60 = vld [vmem:[%s8584_s18 + $0x50] sm:$0xff]  ;;  %v8627_v61 = vpack.c.bf16 %v944_v59, %v940_v58  ;;  %v7906_v0 = vld [vmem:[%s8399_s17 + $0x68] sm:$0xff]   ;;  %v7910_v4 = vld [vmem:[%s8399_s17 + $0x60] sm:$0xff]  }
  0x4a   : > { %7041 = vmatpush3.bf16.msra.mxu0 %v7884_v18  ;;  %v946_v62 = vld [vmem:[%s8584_s18 + $0x70] sm:$0xff]  ;;  %v7907_v1 = vld [vmem:[%s8399_s17 + $0xe8] sm:$0xff]   ;;  %v7911_v5 = vld [vmem:[%s8399_s17 + $0xe0] sm:$0xff]   ;;  %s9341_s18 = sld [smem:[#allocation14_spill]] }
  0x4b   : > { %7069 = vmatpush3.bf16.msra.mxu1 %v7885_v19  ;;  %7042 = vmatprep.subr.bf16.mxu0 %v7886_v20  ;;  %v8632_v63 = vpack.c.bf16 %v946_v62, %v942_v60  ;;  %v7908_v2 = vld [vmem:[%s8399_s17 + $0x28] sm:$0xff]   ;;  %v7912_v6 = vld [vmem:[%s8399_s17 + $0x20] sm:$0xff]   ;;  %v7914_v8 = vld [vmem:[%s8399_s17 + $0x58] sm:$0xff]  }
  0x4c   : > { %7070 = vmatprep.subr.bf16.mxu1 %v7887_v21  ;;  %v7909_v3 = vld [vmem:[%s8399_s17 + $0xa8] sm:$0xff]   ;;  %v7913_v7 = vld [vmem:[%s8399_s17 + $0xa0] sm:$0xff]   ;;  %v7915_v9 = vld [vmem:[%s8399_s17 + $0xd8] sm:$0xff]  }
  0x4d   : > { %v7916_v10 = vld [vmem:[%s8399_s17 + $0x18] sm:$0xff]   ;;  %v7918_v12 = vld [vmem:[%s8399_s17 + $0x50] sm:$0xff]   ;;  %v7922_v16 = vld [vmem:[%s8399_s17 + $0x48] sm:$0xff]  }
  0x4e   : > { %7043 = vmatpush3.bf16.msra.mxu0 %v7888_v22  ;;  %v7917_v11 = vld [vmem:[%s8399_s17 + $0x98] sm:$0xff]   ;;  %v7919_v13 = vld [vmem:[%s8399_s17 + $0xd0] sm:$0xff]   ;;  %v7923_v17 = vld [vmem:[%s8399_s17 + $0xc8] sm:$0xff]  }
  0x4f   : > { %7071 = vmatpush3.bf16.msra.mxu1 %v7889_v23  ;;  %7044 = vmatprep.subr.bf16.mxu0 %v7890_v24  ;;  %v7920_v14 = vld [vmem:[%s8399_s17 + $0x10] sm:$0xff]   ;;  %v7924_v18 = vld [vmem:[%s8399_s17 + $0x8] sm:$0xff]   ;;  %v7926_v20 = vld [vmem:[%s8399_s17 + $0x40] sm:$0xff]  }
  0x50   : > { %7072 = vmatprep.subr.bf16.mxu1 %v7891_v25  ;;  %v7921_v15 = vld [vmem:[%s8399_s17 + $0x90] sm:$0xff]   ;;  %v7925_v19 = vld [vmem:[%s8399_s17 + $0x88] sm:$0xff]   ;;  %v7927_v21 = vld [vmem:[%s8399_s17 + $0xc0] sm:$0xff]  }
  0x51   : > { %v7928_v22 = vld [vmem:[%s8399_s17] sm:$0xff]   ;;  %v7930_v24 = vld [vmem:[%s8409_s25 + $0x78] sm:$0xff]   ;;  %v7938_v32 = vld [vmem:[%s8409_s25 + $0x68] sm:$0xff]  }
  0x52   : > { %7045 = vmatpush3.bf16.msra.mxu0 %v7892_v26  ;;  %v7929_v23 = vld [vmem:[%s8399_s17 + $0x80] sm:$0xff]   ;;  %v7931_v25 = vld [vmem:[%s8409_s25 + $0xf8] sm:$0xff]   ;;  %v7939_v33 = vld [vmem:[%s8409_s25 + $0xe8] sm:$0xff]  }
  0x53   : > { %7073 = vmatpush3.bf16.msra.mxu1 %v7893_v27  ;;  %7046 = vmatprep.subr.bf16.mxu0 %v7894_v28  ;;  %v7932_v26 = vld [vmem:[%s8409_s25 + $0x38] sm:$0xff]   ;;  %v7934_v28 = vld [vmem:[%s8409_s25 + $0x70] sm:$0xff]   ;;  %v7940_v34 = vld [vmem:[%s8409_s25 + $0x28] sm:$0xff]  }
  0x54   : > { %7074 = vmatprep.subr.bf16.mxu1 %v7895_v29  ;;  %v7933_v27 = vld [vmem:[%s8409_s25 + $0xb8] sm:$0xff]   ;;  %v7935_v29 = vld [vmem:[%s8409_s25 + $0xf0] sm:$0xff]   ;;  %v7941_v36 = vld [vmem:[%s8409_s25 + $0xa8] sm:$0xff]  }
  0x55   : > { %v7942_v37 = vld [vmem:[%s8409_s25 + $0x60] sm:$0xff]   ;;  %v7954_v52 = vld [vmem:[%s8409_s25 + $0x48] sm:$0xff]  }
  0x56   : > { %7047 = vmatpush3.bf16.msra.mxu0 %v7896_v30  ;;  %v7936_v30 = vld [vmem:[%s8409_s25 + $0x30] sm:$0xff]   ;;  %v7943_v38 = vld [vmem:[%s8409_s25 + $0xe0] sm:$0xff]   ;;  %v7955_v53 = vld [vmem:[%s8409_s25 + $0xc8] sm:$0xff]  }
  0x57   : > { %7075 = vmatpush3.bf16.msra.mxu1 %v7897_v31  ;;  %7088 = vmatprep.subr.bf16.mxu0 %v7898_v44  ;;  %v7937_v31 = vld [vmem:[%s8409_s25 + $0xb0] sm:$0xff]   ;;  %v7944_v41 = vld [vmem:[%s8409_s25 + $0x20] sm:$0xff]   ;;  %v7946_v44 = vld [vmem:[%s8409_s25 + $0x58] sm:$0xff]  }
  0x58   : > { %7116 = vmatprep.subr.bf16.mxu1 %v7899_v45  ;;  %v7945_v42 = vld [vmem:[%s8409_s25 + $0xa0] sm:$0xff]   ;;  %v7947_v45 = vld [vmem:[%s8409_s25 + $0xd8] sm:$0xff]   ;;  %v7956_v54 = vld [vmem:[%s8409_s25 + $0x8] sm:$0xff]  }
  0x59   : > { %1252 = vmatmul.mubr.bf16.vlgmr.msra.gmra.mxu0 %v8598_v40  ;;  %v7957_v55 = vld [vmem:[%s8409_s25 + $0x88] sm:$0xff]   ;;  %v7958_v58 = vld [vmem:[%s8409_s25 + $0x40] sm:$0xff]  }
  0x5a   : > { %1301 = vmatmul.mubr.bf16.vlgmr.msra.gmra.mxu1 %v8603_v43  ;;  %7089 = vmatpush3.bf16.msra.mxu0 %v7900_v46  ;;  %v7948_v46 = vld [vmem:[%s8409_s25 + $0x18] sm:$0xff]   ;;  %v7959_v59 = vld [vmem:[%s8409_s25 + $0xc0] sm:$0xff]  }
  0x5b   : > { %7117 = vmatpush3.bf16.msra.mxu1 %v7901_v47  ;;  %7090 = vmatprep.subr.bf16.mxu0 %v7902_v48  ;;  %v7949_v47 = vld [vmem:[%s8409_s25 + $0x98] sm:$0xff]   ;;  %v7950_v48 = vld [vmem:[%s8409_s25 + $0x50] sm:$0xff]   ;;  %v7960_v60 = vld [vmem:[%s8409_s25] sm:$0xff]  }
  0x5c   : > { %7118 = vmatprep.subr.bf16.mxu1 %v7903_v49  ;;  %1259 = vmatprep.mubr.bf16.mxu0 %v8620_v56  ;;  %v7951_v49 = vld [vmem:[%s8409_s25 + $0xd0] sm:$0xff]   ;;  %v7961_v62 = vld [vmem:[%s8409_s25 + $0x80] sm:$0xff]  }
  0x5d   : > { %1308 = vmatprep.mubr.bf16.mxu1 %v8622_v57 }
  0x5e   : > { %7091 = vmatpush3.bf16.msra.mxu0 %v7904_v50  ;;  %v7952_v50 = vld [vmem:[%s8409_s25 + $0x10] sm:$0xff]  }
  0x5f   : > { %7119 = vmatpush3.bf16.msra.mxu1 %v7905_v51  ;;  %7092 = vmatprep.subr.bf16.mxu0 %v7906_v0  ;;  %v7953_v51 = vld [vmem:[%s8409_s25 + $0x90] sm:$0xff]   ;;  %v7962_v0 = vld [vmem:[%s8419_s3 + $0x78] sm:$0xff]  }
  0x60   : > { %7120 = vmatprep.subr.bf16.mxu1 %v7907_v1  ;;  %v7963_v1 = vld [vmem:[%s8419_s3 + $0xf8] sm:$0xff]  }
  0x61   : > { %1260 = vmatmul.mubr.bf16.gmra.mxu0 %v8627_v61 }
  0x62   : > { %1309 = vmatmul.mubr.bf16.gmra.mxu1 %v8632_v63  ;;  %1620 = vmatprep.mubr.bf16.mxu0 %v8591_v35 }
  0x63   : > { %7093 = vmatpush3.bf16.msra.mxu0 %v7908_v2  ;;  %1669 = vmatprep.mubr.bf16.mxu1 %v8596_v39  ;;  %v7964_v2 = vld [vmem:[%s8419_s3 + $0x38] sm:$0xff]  }
  0x64   : > { %7121 = vmatpush3.bf16.msra.mxu1 %v7909_v3  ;;  %7094 = vmatprep.subr.bf16.mxu0 %v7910_v4  ;;  %v7965_v3 = vld [vmem:[%s8419_s3 + $0xb8] sm:$0xff]   ;;  %v7966_v4 = vld [vmem:[%s8419_s3 + $0x70] sm:$0xff]  }
  0x65   : > { %7122 = vmatprep.subr.bf16.mxu1 %v7911_v5  ;;  %v7967_v5 = vld [vmem:[%s8419_s3 + $0xf0] sm:$0xff]  }
  0x67   : > { %7095 = vmatpush3.bf16.msra.mxu0 %v7912_v6  ;;  %v7968_v6 = vld [vmem:[%s8419_s3 + $0x30] sm:$0xff]  }
  0x68   : > { %7123 = vmatpush3.bf16.msra.mxu1 %v7913_v7  ;;  %7096 = vmatprep.subr.bf16.mxu0 %v7914_v8  ;;  %v7969_v7 = vld [vmem:[%s8419_s3 + $0xb0] sm:$0xff]   ;;  %v7970_v8 = vld [vmem:[%s8419_s3 + $0x68] sm:$0xff]  }
  0x69   : > { %7124 = vmatprep.subr.bf16.mxu1 %v7915_v9  ;;  %v7971_v9 = vld [vmem:[%s8419_s3 + $0xe8] sm:$0xff]  }
  0x6b   : > { %7097 = vmatpush3.bf16.msra.mxu0 %v7916_v10  ;;  %v8374_v10 = vmov 0.0  }
  0x6c   : > { %7125 = vmatpush3.bf16.msra.mxu1 %v7917_v11  ;;  %7098 = vmatprep.subr.bf16.mxu0 %v7918_v12  ;;  %2439 = vst [vmem:[#allocation2] sm:$0xff] %v8374_v10  ;;  %2440 = vst [vmem:[#allocation2 + $0x8] sm:$0xff] %v8374_v10  ;;  %v7972_v11 = vld [vmem:[%s8419_s3 + $0x28] sm:$0xff]  }
  0x6d   : > { %7126 = vmatprep.subr.bf16.mxu1 %v7919_v13  ;;  %2441 = vst [vmem:[#allocation2 + $0x10] sm:$0xff] %v8374_v10  ;;  %2442 = vst [vmem:[#allocation2 + $0x18] sm:$0xff] %v8374_v10  ;;  %v7973_v12 = vld [vmem:[%s8419_s3 + $0xa8] sm:$0xff]   ;;  %v7974_v13 = vld [vmem:[%s8419_s3 + $0x60] sm:$0xff]  }
  0x6e   : > { %2443 = vst [vmem:[#allocation2 + $0x20] sm:$0xff] %v8374_v10  ;;  %2444 = vst [vmem:[#allocation2 + $0x28] sm:$0x3] %v8374_v10 }
  0x6f   : > { %7099 = vmatpush3.bf16.msra.mxu0 %v7920_v14  ;;  %2832 = vst [vmem:[#allocation2 + $0x28] sm:$0x3] %v8374_v10  ;;  %v7975_v14 = vld [vmem:[%s8419_s3 + $0xe0] sm:$0xff]  }
  0x70   : > { %7127 = vmatpush3.bf16.msra.mxu1 %v7921_v15  ;;  %7100 = vmatprep.subr.bf16.mxu0 %v7922_v16  ;;  %3224 = vst [vmem:[#allocation2 + $0x28] sm:$0x3] %v8374_v10  ;;  %v7976_v15 = vld [vmem:[%s8419_s3 + $0x20] sm:$0xff]  }
  0x71   : > { %7128 = vmatprep.subr.bf16.mxu1 %v7923_v17  ;;  %3742 = vst [vmem:[#allocation2 + $0x28] sm:$0x3] %v8374_v10  ;;  %v7977_v16 = vld [vmem:[%s8419_s3 + $0xa0] sm:$0xff]   ;;  %v7978_v17 = vld [vmem:[%s8419_s3 + $0x58] sm:$0xff]  }
  0x72   : > { %4235 = vst [vmem:[#allocation2 + $0x28] sm:$0x3] %v8374_v10 }
  0x73   : > { %7101 = vmatpush3.bf16.msra.mxu0 %v7924_v18  ;;  %4598 = vst [vmem:[#allocation2 + $0x28] sm:$0x3] %v8374_v10  ;;  %v7979_v18 = vld [vmem:[%s8419_s3 + $0xd8] sm:$0xff]  }
  0x74   : > { %7129 = vmatpush3.bf16.msra.mxu1 %v7925_v19  ;;  %7102 = vmatprep.subr.bf16.mxu0 %v7926_v20  ;;  %v7980_v19 = vld [vmem:[%s8419_s3 + $0x18] sm:$0xff]  }
  0x75   : > { %7130 = vmatprep.subr.bf16.mxu1 %v7927_v21  ;;  %v7981_v20 = vld [vmem:[%s8419_s3 + $0x98] sm:$0xff]   ;;  %v7982_v21 = vld [vmem:[%s8419_s3 + $0x50] sm:$0xff]  }
  0x77   : > { %7103 = vmatpush3.bf16.msra.mxu0 %v7928_v22  ;;  %v7983_v22 = vld [vmem:[%s8419_s3 + $0xd0] sm:$0xff]  }
  0x78   : > { %7131 = vmatpush3.bf16.msra.mxu1 %v7929_v23  ;;  %7144 = vmatprep.subr.bf16.mxu0 %v7930_v24  ;;  %v7986_v23 = vld [vmem:[%s8419_s3 + $0x48] sm:$0xff]  }
  0x79   : > { %7172 = vmatprep.subr.bf16.mxu1 %v7931_v25  ;;  %v7987_v24 = vld [vmem:[%s8419_s3 + $0xc8] sm:$0xff]  }
  0x7a   : > { %1621 = vmatmul.mubr.bf16.vlgmr.msra.gmra.mxu0 %v8598_v40  ;;  %v7988_v25 = vld [vmem:[%s8419_s3 + $0x8] sm:$0xff]  }
  0x7b   : > { %1670 = vmatmul.mubr.bf16.vlgmr.msra.gmra.mxu1 %v8603_v43  ;;  %1628 = vmatprep.mubr.bf16.mxu0 %v8620_v56 }
  0x7c   : > { %1677 = vmatprep.mubr.bf16.mxu1 %v8622_v57  ;;  %7145 = vmatpush3.bf16.msra.mxu0 %v7932_v26  ;;  %v7989_v26 = vld [vmem:[%s8419_s3 + $0x88] sm:$0xff]  }
  0x7d   : > { %7173 = vmatpush3.bf16.msra.mxu1 %v7933_v27  ;;  %7146 = vmatprep.subr.bf16.mxu0 %v7934_v28  ;;  %v7990_v27 = vld [vmem:[%s8419_s3 + $0x40] sm:$0xff]  }
  0x7e   : > { %7174 = vmatprep.subr.bf16.mxu1 %v7935_v29  ;;  %v7991_v28 = vld [vmem:[%s8419_s3 + $0xc0] sm:$0xff]  }
  0x7f   : > { %v7992_v29 = vld [vmem:[%s8419_s3] sm:$0xff]  }
  0x80   : > { %7147 = vmatpush3.bf16.msra.mxu0 %v7936_v30  ;;  %v7993_v30 = vld [vmem:[%s8419_s3 + $0x80] sm:$0xff]  }
  0x81   : > { %7175 = vmatpush3.bf16.msra.mxu1 %v7937_v31  ;;  %7148 = vmatprep.subr.bf16.mxu0 %v7938_v32  ;;  %v7994_v31 = vld [vmem:[%s8429_s14 + $0x38] sm:$0xff]  }
  0x82   : > { %1629 = vmatmul.mubr.bf16.gmra.mxu0 %v8627_v61  ;;  %7176 = vmatprep.subr.bf16.mxu1 %v7939_v33  ;;  %v7995_v32 = vld [vmem:[%s8429_s14 + $0x78] sm:$0xff]   ;;  %v7996_v33 = vld [vmem:[%s8429_s14 + $0x30] sm:$0xff]  }
  0x83   : > { %1678 = vmatmul.mubr.bf16.gmra.mxu1 %v8632_v63  ;;  %1989 = vmatprep.mubr.bf16.mxu0 %v8591_v35 }
  0x84   : > { %7149 = vmatpush3.bf16.msra.mxu0 %v7940_v34  ;;  %2038 = vmatprep.mubr.bf16.mxu1 %v8596_v39  ;;  %v7997_v34 = vld [vmem:[%s8429_s14 + $0x70] sm:$0xff]  }
  0x85   : > { %7177 = vmatpush3.bf16.msra.mxu1 %v7941_v36  ;;  %7150 = vmatprep.subr.bf16.mxu0 %v7942_v37  ;;  %v7998_v36 = vld [vmem:[%s8429_s14 + $0x28] sm:$0xff]  }
  0x86   : > { %7178 = vmatprep.subr.bf16.mxu1 %v7943_v38  ;;  %v7999_v37 = vld [vmem:[%s8429_s14 + $0x68] sm:$0xff]   ;;  %v8000_v38 = vld [vmem:[%s8429_s14 + $0x20] sm:$0xff]  }
  0x88   : > { %7151 = vmatpush3.bf16.msra.mxu0 %v7944_v41  ;;  %v8005_v41 = vld [vmem:[%s8429_s14 + $0x50] sm:$0xff]  }
  0x89   : > { %7179 = vmatpush3.bf16.msra.mxu1 %v7945_v42  ;;  %7152 = vmatprep.subr.bf16.mxu0 %v7946_v44  ;;  %v8008_v42 = vld [vmem:[%s8429_s14] sm:$0xff]  }
  0x8a   : > { %7180 = vmatprep.subr.bf16.mxu1 %v7947_v45  ;;  %v8009_v44 = vld [vmem:[%s8429_s14 + $0x40] sm:$0xff]   ;;  %v8776_v45 = vld [vmem:[%s8429_s14 + $0xb8] sm:$0xff]  }
  0x8c   : > { %7153 = vmatpush3.bf16.msra.mxu0 %v7948_v46  ;;  %v8011_v46 = vld [vmem:[%s8439_s24 + $0x38] sm:$0xff]  }
  0x8d   : > { %7181 = vmatpush3.bf16.msra.mxu1 %v7949_v47  ;;  %7154 = vmatprep.subr.bf16.mxu0 %v7950_v48 }
  0x8e   : > { %7182 = vmatprep.subr.bf16.mxu1 %v7951_v49 }
  0x90   : > { %7155 = vmatpush3.bf16.msra.mxu0 %v7952_v50 }
  0x91   : > { %7183 = vmatpush3.bf16.msra.mxu1 %v7953_v51  ;;  %7156 = vmatprep.subr.bf16.mxu0 %v7954_v52  ;;  %v6418_v51 = vld [vmem:[%s8394_s13] ss:$0 sm:$0xff] }
  0x92   : > { %7184 = vmatprep.subr.bf16.mxu1 %v7955_v53 }
  0x94   : > { %7157 = vmatpush3.bf16.msra.mxu0 %v7956_v54 }
  0x95   : > { %7185 = vmatpush3.bf16.msra.mxu1 %v7957_v55  ;;  %7158 = vmatprep.subr.bf16.mxu0 %v7958_v58 }
  0x96   : > { %7186 = vmatprep.subr.bf16.mxu1 %v7959_v59 }
  0x98   : > { %7159 = vmatpush3.bf16.msra.mxu0 %v7960_v60 }
  0x99   : > { %7187 = vmatpush3.bf16.msra.mxu1 %v7961_v62  ;;  %7200 = vmatprep.subr.bf16.mxu0 %v7962_v0 }
  0x9a   : > { %7228 = vmatprep.subr.bf16.mxu1 %v7963_v1 }
  0x9b   : > { %1990 = vmatmul.mubr.bf16.vlgmr.msra.gmra.mxu0 %v8598_v40 }
  0x9c   : > { %2039 = vmatmul.mubr.bf16.vlgmr.msra.gmra.mxu1 %v8603_v43  ;;  %7201 = vmatpush3.bf16.msra.mxu0 %v7964_v2 }
  0x9d   : > { %7229 = vmatpush3.bf16.msra.mxu1 %v7965_v3  ;;  %7202 = vmatprep.subr.bf16.mxu0 %v7966_v4 }
  0x9e   : > { %7230 = vmatprep.subr.bf16.mxu1 %v7967_v5  ;;  %1997 = vmatprep.mubr.bf16.mxu0 %v8620_v56 }
  0x9f   : > { %2046 = vmatprep.mubr.bf16.mxu1 %v8622_v57 }
  0xa0   : > { %7203 = vmatpush3.bf16.msra.mxu0 %v7968_v6 }
  0xa1   : > { %7231 = vmatpush3.bf16.msra.mxu1 %v7969_v7  ;;  %7204 = vmatprep.subr.bf16.mxu0 %v7970_v8 }
  0xa2   : > { %7232 = vmatprep.subr.bf16.mxu1 %v7971_v9 }
  0xa3   : > { %1998 = vmatmul.mubr.bf16.gmra.mxu0 %v8627_v61 }
  0xa4   : > { %7205 = vmatpush3.bf16.msra.mxu0 %v7972_v11  ;;  %2047 = vmatmul.mubr.bf16.gmra.mxu1 %v8632_v63 }
  0xa5   : > { %7233 = vmatpush3.bf16.msra.mxu1 %v7973_v12  ;;  %7206 = vmatprep.subr.bf16.mxu0 %v7974_v13 }
  0xa6   : > { %7234 = vmatprep.subr.bf16.mxu1 %v7975_v14  ;;  %2358 = vmatprep.mubr.bf16.mxu0 %v8591_v35  ;;  %v7984_v35 = vld [vmem:[%s8419_s3 + $0x10] sm:$0xff]  }
  0xa7   : > { %2407 = vmatprep.mubr.bf16.mxu1 %v8596_v39  ;;  %v7985_v39 = vld [vmem:[%s8419_s3 + $0x90] sm:$0xff]  }
  0xa8   : > { %7207 = vmatpush3.bf16.msra.mxu0 %v7976_v15 }
  0xa9   : > { %7235 = vmatpush3.bf16.msra.mxu1 %v7977_v16  ;;  %7208 = vmatprep.subr.bf16.mxu0 %v7978_v17 }
  0xaa   : > { %7236 = vmatprep.subr.bf16.mxu1 %v7979_v18 }
  0xac   : > { %7209 = vmatpush3.bf16.msra.mxu0 %v7980_v19 }
  0xad   : > { %7237 = vmatpush3.bf16.msra.mxu1 %v7981_v20  ;;  %7210 = vmatprep.subr.bf16.mxu0 %v7982_v21 }
  0xae   : > { %7238 = vmatprep.subr.bf16.mxu1 %v7983_v22 }
  0xb0   : > { %7211 = vmatpush3.bf16.msra.mxu0 %v7984_v35 }
  0xb1   : > { %7239 = vmatpush3.bf16.msra.mxu1 %v7985_v39  ;;  %7212 = vmatprep.subr.bf16.mxu0 %v7986_v23 }
  0xb2   : > { %7240 = vmatprep.subr.bf16.mxu1 %v7987_v24 }
  0xb4   : > { %7213 = vmatpush3.bf16.msra.mxu0 %v7988_v25 }
  0xb5   : > { %7241 = vmatpush3.bf16.msra.mxu1 %v7989_v26  ;;  %7214 = vmatprep.subr.bf16.mxu0 %v7990_v27 }
  0xb6   : > { %7242 = vmatprep.subr.bf16.mxu1 %v7991_v28  ;;  %v8013_v28 = vld [vmem:[%s8439_s24 + $0x30] sm:$0xff]  }
  0xb8   : > { %7215 = vmatpush3.bf16.msra.mxu0 %v7992_v29 }
  0xb9   : > { %7243 = vmatpush3.bf16.msra.mxu1 %v7993_v30  ;;  %7446 = vmatprep.subr.bf16.mxu0 %v7994_v31 }
  0xba   : > { %7466 = vmatprep.subr.bf16.mxu1 %v7995_v32 }
  0xbb   : > { %2359 = vmatmul.mubr.bf16.vlgmr.msra.gmra.mxu0 %v8598_v40  ;;  %v8001_v40 = vld [vmem:[%s8429_s14 + $0x60] sm:$0xff]  }
  0xbc   : > { %2408 = vmatmul.mubr.bf16.vlgmr.msra.gmra.mxu1 %v8603_v43  ;;  %7447 = vmatpush3.bf16.msra.mxu0 %v7994_v31  ;;  %v8002_v43 = vld [vmem:[%s8429_s14 + $0x18] sm:$0xff]   ;;  %v8015_v31 = vld [vmem:[%s8439_s24 + $0x28] sm:$0xff]  }
  0xbd   : > { %7467 = vmatpush3.bf16.msra.mxu1 %v7995_v32  ;;  %7448 = vmatprep.subr.bf16.mxu0 %v7996_v33 }
  0xbe   : > { %7468 = vmatprep.subr.bf16.mxu1 %v7997_v34  ;;  %2366 = vmatprep.mubr.bf16.mxu0 %v8620_v56  ;;  %v8003_v56 = vld [vmem:[%s8429_s14 + $0x58] sm:$0xff]  }
  0xbf   : > { %2415 = vmatprep.mubr.bf16.mxu1 %v8622_v57  ;;  %v8004_v57 = vld [vmem:[%s8429_s14 + $0x10] sm:$0xff]  }
  0xc0   : > { %7449 = vmatpush3.bf16.msra.mxu0 %v7996_v33  ;;  %v8012_v33 = vld [vmem:[%s8429_s14 + $0xb0] sm:$0xff]  }
  0xc1   : > { %7469 = vmatpush3.bf16.msra.mxu1 %v7997_v34  ;;  %7450 = vmatprep.subr.bf16.mxu0 %v7998_v36 }
  0xc2   : > { %7470 = vmatprep.subr.bf16.mxu1 %v7999_v37 }
  0xc3   : > { %2367 = vmatmul.mubr.bf16.gmra.mxu0 %v8627_v61  ;;  %v8006_v61 = vld [vmem:[%s8429_s14 + $0x8] sm:$0xff]  }
  0xc4   : > { %7451 = vmatpush3.bf16.msra.mxu0 %v7998_v36  ;;  %2416 = vmatmul.mubr.bf16.gmra.mxu1 %v8632_v63  ;;  %v8007_v63 = vld [vmem:[%s8429_s14 + $0x48] sm:$0xff]  }
  0xc5   : > { %7471 = vmatpush3.bf16.msra.mxu1 %v7999_v37  ;;  %7452 = vmatprep.subr.bf16.mxu0 %v8000_v38 }
  0xc6   : > { %7472 = vmatprep.subr.bf16.mxu1 %v8001_v40 }
  0xc8   : > { %7453 = vmatpush3.bf16.msra.mxu0 %v8000_v38  ;;  %v8017_v38 = vld [vmem:[%s8439_s24 + $0x20] sm:$0xff]  }
  0xc9   : > { %7473 = vmatpush3.bf16.msra.mxu1 %v8001_v40  ;;  %7454 = vmatprep.subr.bf16.mxu0 %v8002_v43 }
  0xca   : > { %7474 = vmatprep.subr.bf16.mxu1 %v8003_v56 }
  0xcc   : > { %7455 = vmatpush3.bf16.msra.mxu0 %v8002_v43 }
  0xcd   : > { %7475 = vmatpush3.bf16.msra.mxu1 %v8003_v56  ;;  %7456 = vmatprep.subr.bf16.mxu0 %v8004_v57 }
  0xce   : > { %7476 = vmatprep.subr.bf16.mxu1 %v8005_v41 }
  0xd0   : > { %7457 = vmatpush3.bf16.msra.mxu0 %v8004_v57  ;;  %v8014_v57 = vld [vmem:[%s8429_s14 + $0xa8] sm:$0xff]  }
  0xd1   : > { %7477 = vmatpush3.bf16.msra.mxu1 %v8005_v41  ;;  %7458 = vmatprep.subr.bf16.mxu0 %v8006_v61 }
  0xd2   : > { %7478 = vmatprep.subr.bf16.mxu1 %v8007_v63 }
  0xd4   : > { %7459 = vmatpush3.bf16.msra.mxu0 %v8006_v61  ;;  %v8019_v61 = vld [vmem:[%s8439_s24 + $0x18] sm:$0xff]  }
  0xd5   : > { %7479 = vmatpush3.bf16.msra.mxu1 %v8007_v63  ;;  %7460 = vmatprep.subr.bf16.mxu0 %v8008_v42 }
  0xd6   : > { %7480 = vmatprep.subr.bf16.mxu1 %v8009_v44 }
  0xd8   : > { %7461 = vmatpush3.bf16.msra.mxu0 %v8008_v42 }
  0xd9   : > { %7481 = vmatpush3.bf16.msra.mxu1 %v8009_v44  ;;  %7486 = vmatprep.subr.bf16.mxu0 %v8776_v45  ;;  %v6451_v44 = vld [vmem:[%s8404_s21] ss:$0 sm:$0xff] }
  0xda   : > { %7506 = vmatprep.subr.bf16.mxu1 %v8011_v46 }
 0x119   : > { %v7048_v47 = vpop.f32.mrf.mxu0 }
 0x11a   : > { %v7076_v48 = vpop.f32.mrf.mxu1 }
 0x11b   : > { %v7049_v49 = vpop.f32.mrf.mxu0 }
 0x11c   : > { %v7050_v50 = vadd.f32 %v7049_v49, %v7048_v47  ;;  %v7077_v52 = vpop.f32.mrf.mxu1  ;;  %v8016_v49 = vld [vmem:[%s8429_s14 + $0xa0] sm:$0xff]  }
 0x11d   : > { %v7078_v53 = vadd.f32 %v7077_v52, %v7076_v48  ;;  %v7051_v54 = vpop.f32.mrf.mxu0 }
 0x11e   : > { %v7079_v55 = vpop.f32.mrf.mxu1 }
 0x11f   : > { %v1303_v58 = vadd.f32 %v7078_v53, %v7050_v50  ;;  %v7052_v59 = vpop.f32.mrf.mxu0 }
 0x120   : > { %v7053_v60 = vadd.f32 %v7052_v59, %v7051_v54  ;;  %v7080_v62 = vpop.f32.mrf.mxu1 }
 0x121   : > { %v1317_v0 = vadd.f32 %v6418_v51, %v1303_v58  ;;  %v7081_v1 = vadd.f32 %v7080_v62, %v7079_v55  ;;  %v7054_v4 = vpop.f32.mrf.mxu0 }
 0x122   : > { %v7082_v6 = vpop.f32.mrf.mxu1 }
 0x123   : > { %v1321_v2 = vmax.f32 %v1317_v0, 0.0  ;;  %v1306_v3 = vadd.f32 %v7081_v1, %v7053_v60  ;;  %v7055_v7 = vpop.f32.mrf.mxu0  ;;  %v8018_v60 = vld [vmem:[%s8429_s14 + $0x98] sm:$0xff]   ;;  %v8023_v0 = vld [vmem:[%s8439_s24 + $0x8] sm:$0xff]  }
 0x124   : > { %v7056_v9 = vadd.f32 %v7055_v7, %v7054_v4  ;;  %v7083_v11 = vpop.f32.mrf.mxu1 }
 0x125   : > { %2445 = vst [vmem:[#allocation2 + $0x5] sm:$0xff] %v1321_v2  ;;  %v1318_v5 = vadd.f32 %v6418_v51, %v1306_v3  ;;  %v7084_v12 = vadd.f32 %v7083_v11, %v7082_v6  ;;  %v7057_v13 = vpop.f32.mrf.mxu0 }
 0x126   : > { %v7085_v14 = vpop.f32.mrf.mxu1 }
 0x127   : > { %v1322_v8 = vmax.f32 %v1318_v5, 0.0  ;;  %v1311_v16 = vadd.f32 %v7084_v12, %v7056_v9  ;;  %v7058_v17 = vpop.f32.mrf.mxu0  ;;  %v8020_v9 = vld [vmem:[%s8429_s14 + $0x90] sm:$0xff]   ;;  %v8025_v12 = vld [vmem:[%s8439_s24] sm:$0xff]  }
 0x128   : > { %v7059_v18 = vadd.f32 %v7058_v17, %v7057_v13  ;;  %v7086_v19 = vpop.f32.mrf.mxu1 }
 0x129   : > { %2446 = vst [vmem:[#allocation2 + $0xd] sm:$0xff] %v1322_v8  ;;  %v2576_v15 = vpack.c.bf16 %v1322_v8, %v1321_v2  ;;  %v1319_v20 = vadd.f32 %v6418_v51, %v1311_v16  ;;  %v7087_v21 = vadd.f32 %v7086_v19, %v7085_v14 }
 0x12b   : > { %7482 = vmatprep.mubr.bf16.mxu1 %v2576_v15  ;;  %v1323_v35 = vmax.f32 %v1319_v20, 0.0  ;;  %v1314_v39 = vadd.f32 %v7087_v21, %v7059_v18  ;;  %v8022_v20 = vld [vmem:[%s8429_s14 + $0x88] sm:$0xff]  }
 0x12c   : > { %v2449_v22 = vld [vmem:[#allocation2 + $0x4] sm:$0xff] }
 0x12d   : > { %2447 = vst [vmem:[#allocation2 + $0x15] sm:$0xff] %v1323_v35  ;;  %v1320_v25 = vadd.f32 %v6418_v51, %v1314_v39  ;;  %v8021_v51 = vld [vmem:[%s8439_s24 + $0x10] sm:$0xff]  }
 0x12f   : > { %v1324_v27 = vmax.f32 %v1320_v25, 0.0 }
 0x130   : > { %v2450_v23 = vld [vmem:[#allocation2 + $0xc] sm:$0xff] }
 0x131   : > { %v2696_v24 = vld [vmem:[#allocation2 + $0x6] sm:$0xff]  ;;  %v2453_v26 = vpack.c.bf16 %v2450_v23, %v2449_v22  ;;  %2448 = vst [vmem:[#allocation2 + $0x1d] sm:$0xff] %v1324_v27  ;;  %v2577_v29 = vpack.c.bf16 %v1324_v27, %v1323_v35  ;;  %v8027_v35 = vld [vmem:[%s8439_s24 + $0xb8] sm:$0xff]  }
 0x132   : > { %2827 = vst [vmem:[#allocation2] sm:$0xff] %v8374_v10  ;;  %v8024_v23 = vld [vmem:[%s8429_s14 + $0x80] sm:$0xff]  }
 0x133   : > { %7462 = vmatprep.mubr.bf16.mxu0 %v2453_v26  ;;  %7483 = vmatmul.mubr.bf16.vlgmr.msra.gmra.mxu1 %v2577_v29  ;;  %v8026_v29 = vld [vmem:[%s8439_s24 + $0x78] sm:$0xff]  }
 0x134   : > { %v2697_v30 = vld [vmem:[#allocation2 + $0xe] sm:$0xff]  ;;  %7507 = vmatpush3.bf16.msra.mxu1 %v8011_v46 }
 0x135   : > { %2828 = vst [vmem:[#allocation2 + $0x8] sm:$0xff] %v8374_v10  ;;  %7508 = vmatprep.subr.bf16.mxu1 %v8013_v28  ;;  %v2451_v32 = vld [vmem:[#allocation2 + $0x14] sm:$0xff]  ;;  %v2700_v43 = vpack.c.bf16 %v2697_v30, %v2696_v24 }
 0x138   : > { %v2452_v34 = vld [vmem:[#allocation2 + $0x1c] sm:$0xff]  ;;  %7509 = vmatpush3.bf16.msra.mxu1 %v8013_v28 }
 0x139   : > { %v8786_v36 = vld [vmem:[#allocation2 + $0x16] sm:$0xff]  ;;  %v8788_v37 = vld [vmem:[#allocation2 + $0x1e] sm:$0xff]  ;;  %v2454_v40 = vpack.c.bf16 %v2452_v34, %v2451_v32  ;;  %7510 = vmatprep.subr.bf16.mxu1 %v8015_v31 }
 0x13a   : > { %2829 = vst [vmem:[#allocation2 + $0x10] sm:$0xff] %v8374_v10  ;;  %2830 = vst [vmem:[#allocation2 + $0x18] sm:$0xff] %v8374_v10  ;;  %v7104_v56 = vpop.f32.mrf.mxu0  ;;  %v8029_v34 = vld [vmem:[%s8439_s24 + $0xb0] sm:$0xff]  }
 0x13b   : > { %2831 = vst [vmem:[#allocation2 + $0x20] sm:$0xff] %v8374_v10  ;;  %7463 = vmatmul.mubr.bf16.vlgmr.msra.gmra.mxu0 %v2454_v40  ;;  %v7132_v41 = vpop.f32.mrf.mxu1 }
 0x13c   : > { %7487 = vmatpush3.bf16.msra.mxu0 %v8776_v45  ;;  %7502 = vmatprep.mubr.bf16.mxu0 %v2700_v43  ;;  %v7105_v63 = vpop.f32.mrf.mxu0 }
 0x13d   : > { %7488 = vmatprep.subr.bf16.mxu0 %v8012_v33  ;;  %7511 = vmatpush3.bf16.msra.mxu1 %v8015_v31  ;;  %v7106_v42 = vadd.f32 %v7105_v63, %v7104_v56  ;;  %v7133_v46 = vpop.f32.mrf.mxu1  ;;  %v8028_v31 = vld [vmem:[%s8439_s24 + $0x70] sm:$0xff]  }
 0x13e   : > { %7512 = vmatprep.subr.bf16.mxu1 %v8017_v38  ;;  %v7134_v47 = vadd.f32 %v7133_v46, %v7132_v41  ;;  %v7107_v48 = vpop.f32.mrf.mxu0  ;;  %v8030_v41 = vld [vmem:[%s8439_s24 + $0x68] sm:$0xff]  }
 0x13f   : > { %v7135_v50 = vpop.f32.mrf.mxu1 }
 0x140   : > { %7489 = vmatpush3.bf16.msra.mxu0 %v8012_v33  ;;  %v1672_v52 = vadd.f32 %v7134_v47, %v7106_v42  ;;  %v7108_v53 = vpop.f32.mrf.mxu0  ;;  %v2701_v33 = vpack.c.bf16 %v8788_v37, %v8786_v36  ;;  %v8031_v42 = vld [vmem:[%s8439_s24 + $0xa8] sm:$0xff]   ;;  %v8032_v47 = vld [vmem:[%s8439_s24 + $0x60] sm:$0xff]  }
 0x141   : > { %7490 = vmatprep.subr.bf16.mxu0 %v8014_v57  ;;  %7513 = vmatpush3.bf16.msra.mxu1 %v8017_v38  ;;  %v7109_v45 = vadd.f32 %v7108_v53, %v7107_v48  ;;  %v7136_v54 = vpop.f32.mrf.mxu1  ;;  %v8034_v53 = vld [vmem:[%s8439_s24 + $0x58] sm:$0xff]  }
 0x142   : > { %7514 = vmatprep.subr.bf16.mxu1 %v8019_v61  ;;  %v8800_v55 = vadd.f32 %v6451_v44, %v1672_v52  ;;  %v7137_v58 = vadd.f32 %v7136_v54, %v7135_v50  ;;  %v7110_v59 = vpop.f32.mrf.mxu0  ;;  %v8033_v50 = vld [vmem:[%s8439_s24 + $0xa0] sm:$0xff]  }
 0x143   : > { %v7138_v62 = vpop.f32.mrf.mxu1 }
 0x144   : > { %7491 = vmatpush3.bf16.msra.mxu0 %v8014_v57  ;;  %v1690_v1 = vmax.f32 %v8800_v55, 0.0  ;;  %v1675_v2 = vadd.f32 %v7137_v58, %v7109_v45  ;;  %v7111_v3 = vpop.f32.mrf.mxu0  ;;  %v8035_v55 = vld [vmem:[%s8439_s24 + $0x98] sm:$0xff]  }
 0x145   : > { %7492 = vmatprep.subr.bf16.mxu0 %v8016_v49  ;;  %7515 = vmatpush3.bf16.msra.mxu1 %v8019_v61  ;;  %v7112_v4 = vadd.f32 %v7111_v3, %v7110_v59  ;;  %v7139_v5 = vpop.f32.mrf.mxu1 }
 0x146   : > { %7516 = vmatprep.subr.bf16.mxu1 %v8021_v51  ;;  %2833 = vst [vmem:[#allocation2 + $0x5] sm:$0xff] %v1690_v1  ;;  %v1687_v6 = vadd.f32 %v6451_v44, %v1675_v2  ;;  %v7140_v7 = vadd.f32 %v7139_v5, %v7138_v62  ;;  %v7113_v8 = vpop.f32.mrf.mxu0  ;;  %v8863_v5 = vld [vmem:[%s8414_s29] ss:$0 sm:$0xff] }
 0x147   : > { %v7141_v11 = vpop.f32.mrf.mxu1 }
 0x148   : > { %7493 = vmatpush3.bf16.msra.mxu0 %v8016_v49  ;;  %v1691_v13 = vmax.f32 %v1687_v6, 0.0  ;;  %v1680_v14 = vadd.f32 %v7140_v7, %v7112_v4  ;;  %v7114_v15 = vpop.f32.mrf.mxu0  ;;  %v8037_v4 = vld [vmem:[%s8439_s24 + $0x90] sm:$0xff]  }
 0x149   : > { %7494 = vmatprep.subr.bf16.mxu0 %v8018_v60  ;;  %7517 = vmatpush3.bf16.msra.mxu1 %v8021_v51  ;;  %v7115_v16 = vadd.f32 %v7114_v15, %v7113_v8  ;;  %v7142_v17 = vpop.f32.mrf.mxu1 }
 0x14a   : > { %7518 = vmatprep.subr.bf16.mxu1 %v8023_v0  ;;  %2834 = vst [vmem:[#allocation2 + $0xd] sm:$0xff] %v1691_v13  ;;  %v8809_v18 = vadd.f32 %v6451_v44, %v1680_v14  ;;  %v7143_v19 = vadd.f32 %v7142_v17, %v7141_v11  ;;  %v2964_v56 = vpack.c.bf16 %v1691_v13, %v1690_v1  ;;  %v8038_v11 = vld [vmem:[%s8439_s24 + $0x48] sm:$0xff]  }
 0x14b   : > { %v8039_v13 = vld [vmem:[%s8439_s24 + $0x88] sm:$0xff]  }
 0x14c   : > { %7495 = vmatpush3.bf16.msra.mxu0 %v8018_v60  ;;  %v1692_v21 = vmax.f32 %v8809_v18, 0.0  ;;  %v1683_v22 = vadd.f32 %v7143_v19, %v7115_v16  ;;  %v8040_v16 = vld [vmem:[%s8439_s24 + $0x40] sm:$0xff]  }
 0x14d   : > { %7496 = vmatprep.subr.bf16.mxu0 %v8020_v9  ;;  %7519 = vmatpush3.bf16.msra.mxu1 %v8023_v0  ;;  %v2837_v24 = vld [vmem:[#allocation2 + $0x4] sm:$0xff]  ;;  %v8036_v0 = vld [vmem:[%s8439_s24 + $0x50] sm:$0xff]  }
 0x14e   : > { %7520 = vmatprep.subr.bf16.mxu1 %v8025_v12  ;;  %2835 = vst [vmem:[#allocation2 + $0x15] sm:$0xff] %v1692_v21  ;;  %v8816_v39 = vadd.f32 %v6451_v44, %v1683_v22  ;;  %v8041_v19 = vld [vmem:[%s8439_s24 + $0x80] sm:$0xff]  }
 0x150   : > { %7497 = vmatpush3.bf16.msra.mxu0 %v8020_v9  ;;  %v1693_v25 = vmax.f32 %v8816_v39, 0.0 }
 0x151   : > { %7498 = vmatprep.subr.bf16.mxu0 %v8022_v20  ;;  %7521 = vmatpush3.bf16.msra.mxu1 %v8025_v12  ;;  %v2838_v26 = vld [vmem:[#allocation2 + $0xc] sm:$0xff] }
 0x152   : > { %v3084_v27 = vld [vmem:[#allocation2 + $0x6] sm:$0xff]  ;;  %7546 = vmatprep.subr.bf16.mxu1 %v8027_v35  ;;  %2836 = vst [vmem:[#allocation2 + $0x1d] sm:$0xff] %v1693_v25  ;;  %v2841_v28 = vpack.c.bf16 %v2838_v26, %v2837_v24  ;;  %v2965_v22 = vpack.c.bf16 %v1693_v25, %v1692_v21 }
 0x153   : > { %3219 = vst [vmem:[#allocation2] sm:$0xff] %v8374_v10 }
 0x154   : > { %7499 = vmatpush3.bf16.msra.mxu0 %v8022_v20  ;;  %7522 = vmatprep.mubr.bf16.mxu1 %v2841_v28 }
 0x155   : > { %7500 = vmatprep.subr.bf16.mxu0 %v8024_v23  ;;  %v3085_v30 = vld [vmem:[#allocation2 + $0xe] sm:$0xff] }
 0x156   : > { %3220 = vst [vmem:[#allocation2 + $0x8] sm:$0xff] %v8374_v10  ;;  %v2839_v32 = vld [vmem:[#allocation2 + $0x14] sm:$0xff]  ;;  %v3088_v36 = vpack.c.bf16 %v3085_v30, %v3084_v27 }
 0x158   : > { %7501 = vmatpush3.bf16.msra.mxu0 %v8024_v23 }
 0x159   : > { %7526 = vmatprep.subr.bf16.mxu0 %v8026_v29  ;;  %v2840_v38 = vld [vmem:[#allocation2 + $0x1c] sm:$0xff] }
 0x15a   : > { %v8829_v40 = vld [vmem:[#allocation2 + $0x16] sm:$0xff]  ;;  %v8831_v43 = vld [vmem:[#allocation2 + $0x1e] sm:$0xff]  ;;  %v2842_v57 = vpack.c.bf16 %v2840_v38, %v2839_v32 }
 0x15b   : > { %7503 = vmatmul.mubr.bf16.vlgmr.msra.gmra.mxu0 %v2701_v33  ;;  %3221 = vst [vmem:[#allocation2 + $0x10] sm:$0xff] %v8374_v10  ;;  %3222 = vst [vmem:[#allocation2 + $0x18] sm:$0xff] %v8374_v10  ;;  %v8838_v37 = vpop.f32.mrf.mxu0 }
 0x15c   : > { %3223 = vst [vmem:[#allocation2 + $0x20] sm:$0xff] %v8374_v10  ;;  %7527 = vmatpush3.bf16.msra.mxu0 %v8026_v29  ;;  %7542 = vmatprep.mubr.bf16.mxu0 %v2964_v56  ;;  %v8841_v61 = vpop.f32.mrf.mxu1 }
 0x15d   : > { %7523 = vmatmul.mubr.bf16.vlgmr.msra.gmra.mxu1 %v2842_v57  ;;  %7528 = vmatprep.subr.bf16.mxu0 %v8028_v31  ;;  %v8843_v63 = vpop.f32.mrf.mxu0 }
 0x15e   : > { %7547 = vmatpush3.bf16.msra.mxu1 %v8027_v35  ;;  %7562 = vmatprep.mubr.bf16.mxu1 %v3088_v36  ;;  %v8846_v44 = vpop.f32.mrf.mxu1  ;;  %v3089_v35 = vpack.c.bf16 %v8831_v43, %v8829_v40 }
 0x15f   : > { %7548 = vmatprep.subr.bf16.mxu1 %v8029_v34  ;;  %v8848_v46 = vpop.f32.mrf.mxu0 }
 0x160   : > { %7529 = vmatpush3.bf16.msra.mxu0 %v8028_v31  ;;  %v8851_v48 = vpop.f32.mrf.mxu1  ;;  %v6517_v31 = vld [vmem:[%s8424_s8] ss:$0 sm:$0xff] }
 0x161   : > { %7530 = vmatprep.subr.bf16.mxu0 %v8030_v41  ;;  %v8853_v49 = vpop.f32.mrf.mxu0 }
 0x162   : > { %7549 = vmatpush3.bf16.msra.mxu1 %v8029_v34  ;;  %v8856_v51 = vpop.f32.mrf.mxu1 }
 0x163   : > { %7550 = vmatprep.subr.bf16.mxu1 %v8031_v42  ;;  %v7166_v52 = vpop.f32.mrf.mxu0 }
 0x164   : > { %7531 = vmatpush3.bf16.msra.mxu0 %v8030_v41  ;;  %v7194_v45 = vpop.f32.mrf.mxu1 }
 0x165   : > { %7532 = vmatprep.subr.bf16.mxu0 %v8032_v47  ;;  %v7167_v54 = vpop.f32.mrf.mxu0 }
 0x166   : > { %7551 = vmatpush3.bf16.msra.mxu1 %v8031_v42  ;;  %v7168_v58 = vadd.f32 %v7167_v54, %v7166_v52  ;;  %v7195_v59 = vpop.f32.mrf.mxu1 }
 0x167   : > { %7552 = vmatprep.subr.bf16.mxu1 %v8033_v50  ;;  %v7196_v60 = vadd.f32 %v7195_v59, %v7194_v45  ;;  %v7169_v62 = vpop.f32.mrf.mxu0 }
 0x168   : > { %7533 = vmatpush3.bf16.msra.mxu0 %v8032_v47  ;;  %v7197_v1 = vpop.f32.mrf.mxu1 }
 0x169   : > { %7534 = vmatprep.subr.bf16.mxu0 %v8034_v53  ;;  %v2049_v2 = vadd.f32 %v7196_v60, %v7168_v58  ;;  %v7170_v3 = vpop.f32.mrf.mxu0 }
 0x16a   : > { %7553 = vmatpush3.bf16.msra.mxu1 %v8033_v50  ;;  %v7171_v6 = vadd.f32 %v7170_v3, %v7169_v62  ;;  %v7198_v7 = vpop.f32.mrf.mxu1 }
 0x16b   : > { %7554 = vmatprep.subr.bf16.mxu1 %v8035_v55  ;;  %v2057_v8 = vadd.f32 %v8863_v5, %v2049_v2  ;;  %v7199_v9 = vadd.f32 %v7198_v7, %v7197_v1  ;;  %v8043_v7 = vld [vmem:[%s8449_s6 + $0x78] sm:$0xff]  }
 0x16c   : > { %7535 = vmatpush3.bf16.msra.mxu0 %v8034_v53 }
 0x16d   : > { %7536 = vmatprep.subr.bf16.mxu0 %v8036_v0  ;;  %v2052_v12 = vadd.f32 %v7199_v9, %v7171_v6  ;;  %v2061_v14 = vmax.f32 %v2057_v8, 0.0  ;;  %v8042_v6 = vld [vmem:[%s8449_s6 + $0x38] sm:$0xff]   ;;  %v8044_v8 = vld [vmem:[%s8449_s6 + $0x30] sm:$0xff]  }
 0x16e   : > { %7555 = vmatpush3.bf16.msra.mxu1 %v8035_v55  ;;  %v8045_v9 = vld [vmem:[%s8449_s6 + $0x70] sm:$0xff]  }
 0x16f   : > { %7556 = vmatprep.subr.bf16.mxu1 %v8037_v4  ;;  %v2058_v15 = vadd.f32 %v8863_v5, %v2052_v12  ;;  %v8047_v12 = vld [vmem:[%s8449_s6 + $0x68] sm:$0xff]  }
 0x170   : > { %7537 = vmatpush3.bf16.msra.mxu0 %v8036_v0 }
 0x171   : > { %7538 = vmatprep.subr.bf16.mxu0 %v8038_v11  ;;  %v2062_v17 = vmax.f32 %v2058_v15, 0.0  ;;  %v8048_v15 = vld [vmem:[%s8449_s6 + $0x20] sm:$0xff]  }
 0x172   : > { %7557 = vmatpush3.bf16.msra.mxu1 %v8037_v4 }
 0x173   : > { %7558 = vmatprep.subr.bf16.mxu1 %v8039_v13  ;;  %v8871_v20 = vpack.c.bf16 %v2062_v17, %v2061_v14  ;;  %v8051_v14 = vld [vmem:[%s8449_s6 + $0x58] sm:$0xff]  }
 0x174   : > { %7539 = vmatpush3.bf16.msra.mxu0 %v8038_v11  ;;  %v8046_v11 = vld [vmem:[%s8449_s6 + $0x28] sm:$0xff]   ;;  %v8050_v17 = vld [vmem:[%s8449_s6 + $0x18] sm:$0xff]  }
 0x175   : > { %7540 = vmatprep.subr.bf16.mxu0 %v8040_v16 }
 0x176   : > { %7559 = vmatpush3.bf16.msra.mxu1 %v8039_v13  ;;  %v8049_v13 = vld [vmem:[%s8449_s6 + $0x60] sm:$0xff]  }
 0x177   : > { %7560 = vmatprep.subr.bf16.mxu1 %v8041_v19 }
 0x178   : > { %7541 = vmatpush3.bf16.msra.mxu0 %v8040_v16  ;;  %v8053_v16 = vld [vmem:[%s8449_s6 + $0x50] sm:$0xff]  }
 0x179   : > { %7566 = vmatprep.subr.bf16.mxu0 %v8042_v6 }
 0x17a   : > { %7561 = vmatpush3.bf16.msra.mxu1 %v8041_v19  ;;  %v8055_v19 = vld [vmem:[%s8449_s6 + $0x48] sm:$0xff]  }
 0x17b   : > { %7543 = vmatmul.mubr.bf16.vlgmr.msra.gmra.mxu0 %v2965_v22  ;;  %v7216_v23 = vpop.f32.mrf.mxu0  ;;  %7586 = vmatprep.subr.bf16.mxu1 %v8043_v7  ;;  %v8052_v22 = vld [vmem:[%s8449_s6 + $0x10] sm:$0xff]  }
 0x17c   : > { %v7244_v24 = vpop.f32.mrf.mxu1  ;;  %7567 = vmatpush3.bf16.msra.mxu0 %v8042_v6  ;;  %v7165_v6 = vadd.f32 %v8853_v49, %v8848_v46 }
 0x17d   : > { %7563 = vmatmul.mubr.bf16.vlgmr.msra.gmra.mxu1 %v3089_v35  ;;  %v7217_v26 = vpop.f32.mrf.mxu0  ;;  %7568 = vmatprep.subr.bf16.mxu0 %v8044_v8  ;;  %v8057_v35 = vld [vmem:[%s8449_s6 + $0x40] sm:$0xff]  }
 0x17e   : > { %v7218_v27 = vadd.f32 %v7217_v26, %v7216_v23  ;;  %v7245_v28 = vpop.f32.mrf.mxu1  ;;  %7587 = vmatpush3.bf16.msra.mxu1 %v8043_v7  ;;  %v8054_v23 = vld [vmem:[%s8449_s6 + $0x8] sm:$0xff]   ;;  %v8901_v26 = vld [vmem:[%s8459_s20 + $0x38] sm:$0xff]   ;;  %v7193_v7 = vadd.f32 %v8856_v51, %v8851_v48 }
 0x17f   : > { %v7246_v29 = vadd.f32 %v7245_v28, %v7244_v24  ;;  %v7219_v30 = vpop.f32.mrf.mxu0  ;;  %7588 = vmatprep.subr.bf16.mxu1 %v8045_v9  ;;  %v8056_v24 = vld [vmem:[%s8449_s6] sm:$0xff]  }
 0x180   : > { %v7247_v32 = vpop.f32.mrf.mxu1  ;;  %7569 = vmatpush3.bf16.msra.mxu0 %v8044_v8 }
 0x181   : > { %v2410_v33 = vadd.f32 %v7246_v29, %v7218_v27  ;;  %v7220_v18 = vpop.f32.mrf.mxu0  ;;  %7570 = vmatprep.subr.bf16.mxu0 %v8046_v11  ;;  %v8905_v27 = vld [vmem:[%s8449_s6 + $0xb8] sm:$0xff]   ;;  %v6550_v29 = vld [vmem:[%s8434_s19] ss:$0 sm:$0xff] }
 0x182   : > { %v7221_v34 = vadd.f32 %v7220_v18, %v7219_v30  ;;  %v7248_v39 = vpop.f32.mrf.mxu1  ;;  %7589 = vmatpush3.bf16.msra.mxu1 %v8045_v9 }
 0x183   : > { %v2424_v21 = vadd.f32 %v6517_v31, %v2410_v33  ;;  %v7249_v25 = vadd.f32 %v7248_v39, %v7247_v32  ;;  %v7222_v38 = vpop.f32.mrf.mxu0  ;;  %7590 = vmatprep.subr.bf16.mxu1 %v8047_v12 }
 0x184   : > { %v7250_v56 = vpop.f32.mrf.mxu1  ;;  %7571 = vmatpush3.bf16.msra.mxu0 %v8046_v11 }
 0x185   : > { %v2413_v57 = vadd.f32 %v7249_v25, %v7221_v34  ;;  %v7223_v40 = vpop.f32.mrf.mxu0  ;;  %v2428_v41 = vmax.f32 %v2424_v21, 0.0  ;;  %7572 = vmatprep.subr.bf16.mxu0 %v8048_v15 }
 0x186   : > { %v7224_v43 = vadd.f32 %v7223_v40, %v7222_v38  ;;  %v7251_v36 = vpop.f32.mrf.mxu1  ;;  %7591 = vmatpush3.bf16.msra.mxu1 %v8047_v12 }
 0x187   : > { %v2425_v42 = vadd.f32 %v6517_v31, %v2413_v57  ;;  %v7252_v47 = vadd.f32 %v7251_v36, %v7250_v56  ;;  %v7225_v50 = vpop.f32.mrf.mxu0  ;;  %7592 = vmatprep.subr.bf16.mxu1 %v8049_v13 }
 0x188   : > { %v7253_v52 = vpop.f32.mrf.mxu1  ;;  %7573 = vmatpush3.bf16.msra.mxu0 %v8048_v15 }
 0x189   : > { %v2429_v53 = vmax.f32 %v2425_v42, 0.0  ;;  %v2418_v45 = vadd.f32 %v7252_v47, %v7224_v43  ;;  %v7226_v54 = vpop.f32.mrf.mxu0  ;;  %7574 = vmatprep.subr.bf16.mxu0 %v8050_v17 }
 0x18a   : > { %v7227_v55 = vadd.f32 %v7226_v54, %v7225_v50  ;;  %v7254_v58 = vpop.f32.mrf.mxu1  ;;  %7593 = vmatpush3.bf16.msra.mxu1 %v8049_v13 }
 0x18b   : > { %v8880_v59 = vpack.c.bf16 %v2429_v53, %v2428_v41  ;;  %v2426_v60 = vadd.f32 %v6517_v31, %v2418_v45  ;;  %v7255_v62 = vadd.f32 %v7254_v58, %v7253_v52  ;;  %7594 = vmatprep.subr.bf16.mxu1 %v8051_v14 }
 0x18c   : > { %7575 = vmatpush3.bf16.msra.mxu0 %v8050_v17  ;;  %v2044_v17 = vadd.f32 %v7193_v7, %v7165_v6  ;;  %v8073_v6 = vld [vmem:[%s8459_s20] sm:$0xff]   ;;  %v8070_v7 = vld [vmem:[%s8449_s6 + $0x88] sm:$0xff]  }
 0x18d   : > { %v2421_v0 = vadd.f32 %v7255_v62, %v7227_v55  ;;  %v2430_v1 = vmax.f32 %v2426_v60, 0.0  ;;  %7576 = vmatprep.subr.bf16.mxu0 %v8052_v22 }
 0x18e   : > { %7595 = vmatpush3.bf16.msra.mxu1 %v8051_v14 }
 0x18f   : > { %v2427_v2 = vadd.f32 %v6517_v31, %v2421_v0  ;;  %7596 = vmatprep.subr.bf16.mxu1 %v8053_v16  ;;  %v6607_v0 = vld [vmem:[%s9332_s22] ss:$0 sm:$0xff]  ;;  %s9342_s22 = sld [smem:[#allocation11_spill]] }
 0x190   : > { %7577 = vmatpush3.bf16.msra.mxu0 %v8052_v22 }
 0x191   : > { %v2431_v3 = vmax.f32 %v2427_v2, 0.0  ;;  %7578 = vmatprep.subr.bf16.mxu0 %v8054_v23  ;;  %v7162_v2 = vadd.f32 %v8843_v63, %v8838_v37 }
 0x192   : > { %7597 = vmatpush3.bf16.msra.mxu1 %v8053_v16 }
 0x193   : > { %v8882_v4 = vpack.c.bf16 %v2431_v3, %v2430_v1  ;;  %7598 = vmatprep.subr.bf16.mxu1 %v8055_v19  ;;  %v7190_v3 = vadd.f32 %v8846_v44, %v8841_v61 }
 0x194   : > { %7579 = vmatpush3.bf16.msra.mxu0 %v8054_v23 }
 0x195   : > { %7580 = vmatprep.subr.bf16.mxu0 %v8056_v24  ;;  %v2041_v14 = vadd.f32 %v7190_v3, %v7162_v2  ;;  %v8066_v2 = vld [vmem:[%s8449_s6 + $0x98] sm:$0xff]   ;;  %v8068_v3 = vld [vmem:[%s8449_s6 + $0x90] sm:$0xff]  }
 0x196   : > { %7599 = vmatpush3.bf16.msra.mxu1 %v8055_v19 }
 0x197   : > { %7600 = vmatprep.subr.bf16.mxu1 %v8057_v35  ;;  %v2055_v48 = vadd.f32 %v8863_v5, %v2041_v14  ;;  %v8076_v14 = vld [vmem:[%s9333_s23 + $0x30] sm:$0xff]  }
 0x198   : > { %7581 = vmatpush3.bf16.msra.mxu0 %v8056_v24  ;;  %v2056_v24 = vadd.f32 %v8863_v5, %v2044_v17  ;;  %v8083_v17 = vld [vmem:[%s9333_s23 + $0x58] sm:$0xff]  }
 0x199   : > { %7606 = vmatprep.subr.bf16.mxu0 %v8905_v27 }
 0x19a   : > { %7601 = vmatpush3.bf16.msra.mxu1 %v8057_v35 }
 0x19b   : > { %7626 = vmatprep.subr.bf16.mxu1 %v8901_v26 }
 0x1f3   : > { %v7484_v28 = vpop.f32.mrf.mxu1 }
 0x1f5   : > { %v2677_v31 = vpop.f32.mrf.mxu1 }
 0x1f7   : > { %v7485_v21 = vpop.f32.mrf.mxu1 }
 0x1f9   : > { %v2680_v43 = vpop.f32.mrf.mxu1 }
 0x1fb   : > { %v7464_v30 = vpop.f32.mrf.mxu0 }
 0x1fc   : > { %v2570_v32 = vadd.f32 %v7464_v30, %v6550_v29 }
 0x1fd   : > { %v2553_v33 = vpop.f32.mrf.mxu0 }
 0x1fe   : > { %v2694_v18 = vadd.f32 %v7484_v28, %v2570_v32  ;;  %v2568_v34 = vadd.f32 %v6550_v29, %v2553_v33 }
 0x1ff   : > { %v7465_v39 = vpop.f32.mrf.mxu0 }
 0x200   : > { %v2692_v25 = vadd.f32 %v2677_v31, %v2568_v34  ;;  %v2571_v38 = vadd.f32 %v7465_v39, %v6550_v29  ;;  %v2060_v34 = vmax.f32 %v2056_v24, 0.0 }
 0x201   : > { %v2556_v56 = vpop.f32.mrf.mxu0 }
 0x202   : > { %v2695_v57 = vadd.f32 %v7485_v21, %v2571_v38  ;;  %v2569_v40 = vadd.f32 %v6550_v29, %v2556_v56  ;;  %v8061_v38 = vld [vmem:[%s8459_s20 + $0x30] sm:$0xff]  }
 0x204   : > { %v2693_v36 = vadd.f32 %v2680_v43, %v2569_v40  ;;  %v8063_v40 = vld [vmem:[%s8459_s20 + $0x28] sm:$0xff]  }
 0x21b   : > { %v7504_v41 = vpop.f32.mrf.mxu0 }
 0x21c   : > { %v2818_v42 = vadd.f32 %v7504_v41, %v2694_v18  ;;  %v2059_v18 = vmax.f32 %v2055_v48, 0.0  ;;  %v8964_v48 = vld [vmem:[%s9333_s23 + $0xb8] sm:$0xff]  }
 0x21d   : > { %v2801_v47 = vpop.f32.mrf.mxu0  ;;  %v7524_v60 = vpop.f32.mrf.mxu1 }
 0x21e   : > { %v2816_v50 = vadd.f32 %v2801_v47, %v2692_v25  ;;  %v2958_v8 = vadd.f32 %v7524_v60, %v6607_v0  ;;  %v3607_v5 = vpack.c.bf16 %v2060_v34, %v2059_v18  ;;  %v8062_v60 = vld [vmem:[%s8449_s6 + $0xa8] sm:$0xff]  }
 0x21f   : > { %v7505_v52 = vpop.f32.mrf.mxu0  ;;  %v2941_v62 = vpop.f32.mrf.mxu1 }
 0x220   : > { %v2819_v53 = vadd.f32 %v7505_v52, %v2695_v57  ;;  %v2956_v12 = vadd.f32 %v6607_v0, %v2941_v62  ;;  %v8067_v62 = vld [vmem:[%s8459_s20 + $0x18] sm:$0xff]  }
 0x221   : > { %v2804_v45 = vpop.f32.mrf.mxu0  ;;  %v7525_v1 = vpop.f32.mrf.mxu1 }
 0x222   : > { %v8909_v54 = vpack.c.bf16 %v2819_v53, %v2818_v42  ;;  %v2817_v55 = vadd.f32 %v2804_v45, %v2693_v36  ;;  %v2959_v19 = vadd.f32 %v7525_v1, %v6607_v0  ;;  %v8069_v1 = vld [vmem:[%s8459_s20 + $0x10] sm:$0xff]  }
 0x223   : > { %v2944_v9 = vpop.f32.mrf.mxu1 }
 0x224   : > { %v8911_v58 = vpack.c.bf16 %v2817_v55, %v2816_v50  ;;  %v2957_v44 = vadd.f32 %v6607_v0, %v2944_v9  ;;  %v8065_v55 = vld [vmem:[%s8459_s20 + $0x20] sm:$0xff]  }
 0x225   : > { %v8064_v0 = vld [vmem:[%s8449_s6 + $0xa0] sm:$0xff]  }
 0x23b   : > { %v7544_v11 = vpop.f32.mrf.mxu0 }
 0x23c   : > { %v3082_v13 = vadd.f32 %v7544_v11, %v2958_v8  ;;  %v8072_v8 = vld [vmem:[%s8449_s6 + $0x80] sm:$0xff]   ;;  %v8075_v11 = vld [vmem:[%s9333_s23 + $0x78] sm:$0xff]  }
 0x23d   : > { %v7564_v15 = vpop.f32.mrf.mxu1  ;;  %v3065_v16 = vpop.f32.mrf.mxu0 }
 0x23e   : > { %v3206_v37 = vadd.f32 %v7564_v15, %v3082_v13  ;;  %v3080_v63 = vadd.f32 %v3065_v16, %v2956_v12  ;;  %v8077_v12 = vld [vmem:[%s9333_s23 + $0x70] sm:$0xff]   ;;  %v8074_v13 = vld [vmem:[%s9333_s23 + $0x38] sm:$0xff]   ;;  %v8079_v15 = vld [vmem:[%s9333_s23 + $0x68] sm:$0xff]  }
 0x23f   : > { %v3189_v22 = vpop.f32.mrf.mxu1  ;;  %v7545_v61 = vpop.f32.mrf.mxu0  ;;  %v8081_v16 = vld [vmem:[%s9333_s23 + $0x60] sm:$0xff]  }
 0x240   : > { %v3210_v35 = vmax.f32 %v3206_v37, 0.0  ;;  %v3204_v46 = vadd.f32 %v3189_v22, %v3080_v63  ;;  %v3083_v49 = vadd.f32 %v7545_v61, %v2959_v19  ;;  %v8080_v19 = vld [vmem:[%s9333_s23 + $0x20] sm:$0xff]   ;;  %v8085_v37 = vld [vmem:[%s9333_s23 + $0x50] sm:$0xff]   ;;  %v8082_v63 = vld [vmem:[%s9333_s23 + $0x18] sm:$0xff]  }
 0x241   : > { %v7565_v51 = vpop.f32.mrf.mxu1  ;;  %v3068_v23 = vpop.f32.mrf.mxu0  ;;  %v8087_v22 = vld [vmem:[%s9333_s23 + $0x48] sm:$0xff]   ;;  %v8084_v61 = vld [vmem:[%s9333_s23 + $0x10] sm:$0xff]  }
 0x242   : > { %3227 = vst [vmem:[#allocation2 + $0x15] sm:$0xff] %v3210_v35  ;;  %v3208_v28 = vmax.f32 %v3204_v46, 0.0  ;;  %v3207_v29 = vadd.f32 %v7565_v51, %v3083_v49  ;;  %v3081_v30 = vadd.f32 %v3068_v23, %v2957_v44  ;;  %v8089_v44 = vld [vmem:[%s9333_s23 + $0x40] sm:$0xff]   ;;  %v8091_v46 = vld [vmem:[%s9334_s26 + $0x18] sm:$0xff]  }
 0x243   : > { %v3192_v31 = vpop.f32.mrf.mxu1  ;;  %v8088_v49 = vld [vmem:[%s9333_s23] sm:$0xff]  }
 0x244   : > { %3225 = vst [vmem:[#allocation2 + $0x5] sm:$0xff] %v3208_v28  ;;  %v3211_v32 = vmax.f32 %v3207_v29, 0.0  ;;  %v3205_v33 = vadd.f32 %v3192_v31, %v3081_v30  ;;  %v6664_v23 = vld [vmem:[%s9335_s28] ss:$0 sm:$0xff]  ;;  %s9343_s28 = sld [smem:[#allocation15_spill]] }
 0x246   : > { %3228 = vst [vmem:[#allocation2 + $0x1d] sm:$0xff] %v3211_v32  ;;  %v3209_v39 = vmax.f32 %v3205_v33, 0.0  ;;  %v3357_v25 = vpack.c.bf16 %v3211_v32, %v3210_v35  ;;  %v8086_v35 = vld [vmem:[%s9333_s23 + $0x8] sm:$0xff]  }
 0x248   : > { %3226 = vst [vmem:[#allocation2 + $0xd] sm:$0xff] %v3209_v39  ;;  %v3356_v21 = vpack.c.bf16 %v3209_v39, %v3208_v28 }
 0x24a   : > { %7602 = vmatprep.mubr.bf16.mxu1 %v3356_v21 }
 0x24b   : > { %v3229_v56 = vld [vmem:[#allocation2 + $0x2] sm:$0xff]  ;;  %7603 = vmatmul.mubr.bf16.vlgmr.msra.gmra.mxu1 %v3357_v25 }
 0x24c   : > { %3737 = vst [vmem:[#allocation2] sm:$0xff] %v8374_v10  ;;  %7627 = vmatpush3.bf16.msra.mxu1 %v8901_v26  ;;  %7642 = vmatprep.mubr.bf16.mxu1 %v3607_v5  ;;  %v8060_v26 = vld [vmem:[%s8449_s6 + $0xb0] sm:$0xff]  }
 0x24d   : > { %v3232_v57 = vld [vmem:[#allocation2 + $0x1a] sm:$0xff]  ;;  %7628 = vmatprep.subr.bf16.mxu1 %v8061_v38 }
 0x24e   : > { %v3479_v43 = vld [vmem:[#allocation2 + $0x20] sm:$0xff]  ;;  %v3478_v36 = vld [vmem:[#allocation2 + $0x18] sm:$0xff] }
 0x24f   : > { %3741 = vst [vmem:[#allocation2 + $0x20] sm:$0xff] %v8374_v10  ;;  %v3230_v41 = vld [vmem:[#allocation2 + $0xa] sm:$0xff]  ;;  %v3231_v42 = vld [vmem:[#allocation2 + $0x12] sm:$0xff]  ;;  %v3481_v9 = vpack.c.bf16 %v3479_v43, %v3478_v36 }
 0x250   : > { %v3476_v47 = vld [vmem:[#allocation2 + $0x8] sm:$0xff]  ;;  %v3233_v50 = vpack.c.bf16 %v3230_v41, %v3229_v56  ;;  %v3234_v52 = vpack.c.bf16 %v3232_v57, %v3231_v42  ;;  %v3477_v53 = vld [vmem:[#allocation2 + $0x10] sm:$0xff]  ;;  %7629 = vmatpush3.bf16.msra.mxu1 %v8061_v38  ;;  %3740 = vst [vmem:[#allocation2 + $0x18] sm:$0xff] %v8374_v10  ;;  %v6721_v57 = vld [vmem:[%s9336_s1] ss:$0 sm:$0xff]  ;;  %s9344_s1 = sld [smem:[#allocation13_spill]] }
 0x251   : > { %3738 = vst [vmem:[#allocation2 + $0x8] sm:$0xff] %v8374_v10  ;;  %3739 = vst [vmem:[#allocation2 + $0x10] sm:$0xff] %v8374_v10  ;;  %7630 = vmatprep.subr.bf16.mxu1 %v8063_v40  ;;  %v3480_v45 = vpack.c.bf16 %v3477_v53, %v3476_v47 }
 0x252   : > { %7582 = vmatprep.mubr.bf16.mxu0 %v3233_v50 }
 0x253   : > { %7583 = vmatmul.mubr.bf16.vlgmr.msra.gmra.mxu0 %v3234_v52 }
 0x254   : > { %7607 = vmatpush3.bf16.msra.mxu0 %v8905_v27  ;;  %7622 = vmatprep.mubr.bf16.mxu0 %v3480_v45  ;;  %v8071_v27 = vld [vmem:[%s8459_s20 + $0x8] sm:$0xff]  }
 0x255   : > { %7608 = vmatprep.subr.bf16.mxu0 %v8060_v26  ;;  %7631 = vmatpush3.bf16.msra.mxu1 %v8063_v40 }
 0x256   : > { %7632 = vmatprep.subr.bf16.mxu1 %v8065_v55 }
 0x258   : > { %7609 = vmatpush3.bf16.msra.mxu0 %v8060_v26 }
 0x259   : > { %7610 = vmatprep.subr.bf16.mxu0 %v8062_v60  ;;  %7633 = vmatpush3.bf16.msra.mxu1 %v8065_v55 }
 0x25a   : > { %7634 = vmatprep.subr.bf16.mxu1 %v8067_v62 }
 0x25c   : > { %7611 = vmatpush3.bf16.msra.mxu0 %v8062_v60 }
 0x25d   : > { %7612 = vmatprep.subr.bf16.mxu0 %v8064_v0  ;;  %7635 = vmatpush3.bf16.msra.mxu1 %v8067_v62 }
 0x25e   : > { %7636 = vmatprep.subr.bf16.mxu1 %v8069_v1 }
 0x260   : > { %7613 = vmatpush3.bf16.msra.mxu0 %v8064_v0 }
 0x261   : > { %7614 = vmatprep.subr.bf16.mxu0 %v8066_v2  ;;  %7637 = vmatpush3.bf16.msra.mxu1 %v8069_v1 }
 0x262   : > { %7638 = vmatprep.subr.bf16.mxu1 %v8071_v27 }
 0x264   : > { %7615 = vmatpush3.bf16.msra.mxu0 %v8066_v2 }
 0x265   : > { %7616 = vmatprep.subr.bf16.mxu0 %v8068_v3  ;;  %7639 = vmatpush3.bf16.msra.mxu1 %v8071_v27 }
 0x266   : > { %7640 = vmatprep.subr.bf16.mxu1 %v8073_v6 }
 0x268   : > { %7617 = vmatpush3.bf16.msra.mxu0 %v8068_v3 }
 0x269   : > { %7618 = vmatprep.subr.bf16.mxu0 %v8070_v7  ;;  %7641 = vmatpush3.bf16.msra.mxu1 %v8073_v6 }
 0x26a   : > { %7666 = vmatprep.subr.bf16.mxu1 %v8075_v11 }
 0x26c   : > { %7619 = vmatpush3.bf16.msra.mxu0 %v8070_v7  ;;  %7643 = vmatmul.mubr.bf16.vlgmr.msra.gmra.mxu1 %v8871_v20  ;;  %v8078_v20 = vld [vmem:[%s9333_s23 + $0x28] sm:$0xff]   ;;  %v8093_v7 = vld [vmem:[%s9334_s26 + $0x10] sm:$0xff]  }
 0x26d   : > { %7620 = vmatprep.subr.bf16.mxu0 %v8072_v8  ;;  %7667 = vmatpush3.bf16.msra.mxu1 %v8075_v11 }
 0x26e   : > { %7668 = vmatprep.subr.bf16.mxu1 %v8077_v12 }
 0x270   : > { %7621 = vmatpush3.bf16.msra.mxu0 %v8072_v8 }
 0x271   : > { %7646 = vmatprep.subr.bf16.mxu0 %v8074_v13  ;;  %7669 = vmatpush3.bf16.msra.mxu1 %v8077_v12 }
 0x272   : > { %7670 = vmatprep.subr.bf16.mxu1 %v8079_v15 }
 0x273   : > { %7623 = vmatmul.mubr.bf16.vlgmr.msra.gmra.mxu0 %v3481_v9 }
 0x274   : > { %7647 = vmatpush3.bf16.msra.mxu0 %v8074_v13 }
 0x275   : > { %7648 = vmatprep.subr.bf16.mxu0 %v8076_v14  ;;  %7671 = vmatpush3.bf16.msra.mxu1 %v8079_v15  ;;  %v8095_v15 = vld [vmem:[%s9334_s26 + $0x8] sm:$0xff]  }
 0x276   : > { %7672 = vmatprep.subr.bf16.mxu1 %v8081_v16 }
 0x278   : > { %7649 = vmatpush3.bf16.msra.mxu0 %v8076_v14 }
 0x279   : > { %7650 = vmatprep.subr.bf16.mxu0 %v8078_v20  ;;  %7673 = vmatpush3.bf16.msra.mxu1 %v8081_v16 }
 0x27a   : > { %7674 = vmatprep.subr.bf16.mxu1 %v8083_v17 }
 0x27c   : > { %7651 = vmatpush3.bf16.msra.mxu0 %v8078_v20 }
 0x27d   : > { %7675 = vmatpush3.bf16.msra.mxu1 %v8083_v17  ;;  %7652 = vmatprep.subr.bf16.mxu0 %v8080_v19 }
 0x27e   : > { %7676 = vmatprep.subr.bf16.mxu1 %v8085_v37 }
 0x280   : > { %7653 = vmatpush3.bf16.msra.mxu0 %v8080_v19 }
 0x281   : > { %7677 = vmatpush3.bf16.msra.mxu1 %v8085_v37  ;;  %7654 = vmatprep.subr.bf16.mxu0 %v8082_v63 }
 0x282   : > { %7678 = vmatprep.subr.bf16.mxu1 %v8087_v22 }
 0x284   : > { %7655 = vmatpush3.bf16.msra.mxu0 %v8082_v63 }
 0x285   : > { %7679 = vmatpush3.bf16.msra.mxu1 %v8087_v22  ;;  %7656 = vmatprep.subr.bf16.mxu0 %v8084_v61 }
 0x286   : > { %7680 = vmatprep.subr.bf16.mxu1 %v8089_v44 }
 0x288   : > { %7657 = vmatpush3.bf16.msra.mxu0 %v8084_v61 }
 0x289   : > { %7681 = vmatpush3.bf16.msra.mxu1 %v8089_v44  ;;  %7658 = vmatprep.subr.bf16.mxu0 %v8086_v35 }
 0x28a   : > { %7706 = vmatprep.subr.bf16.mxu1 %v8091_v46 }
 0x28c   : > { %7659 = vmatpush3.bf16.msra.mxu0 %v8086_v35  ;;  %v8097_v35 = vld [vmem:[%s9334_s26] sm:$0xff]  }
 0x28d   : > { %7660 = vmatprep.subr.bf16.mxu0 %v8088_v49 }
 0x290   : > { %7661 = vmatpush3.bf16.msra.mxu0 %v8088_v49  ;;  %v8096_v49 = vld [vmem:[%s9333_s23 + $0xa0] sm:$0xff]  }
 0x291   : > { %7686 = vmatprep.subr.bf16.mxu0 %v8964_v48 }
 0x30b   : > { %v7604_v51 = vpop.f32.mrf.mxu1 }
 0x30d   : > { %v3457_v28 = vpop.f32.mrf.mxu1 }
 0x30f   : > { %v7605_v18 = vpop.f32.mrf.mxu1 }
 0x311   : > { %v3460_v5 = vpop.f32.mrf.mxu1 }
 0x313   : > { %v7584_v24 = vpop.f32.mrf.mxu0 }
 0x314   : > { %v3350_v29 = vadd.f32 %v7584_v24, %v6664_v23  ;;  %v8101_v24 = vld [vmem:[%s9333_s23 + $0x80] sm:$0xff]  }
 0x315   : > { %v3333_v30 = vpop.f32.mrf.mxu0 }
 0x316   : > { %v3474_v31 = vadd.f32 %v7604_v51, %v3350_v29  ;;  %v3348_v32 = vadd.f32 %v6664_v23, %v3333_v30  ;;  %v8098_v51 = vld [vmem:[%s9333_s23 + $0x98] sm:$0xff]   ;;  %v8104_v30 = vld [vmem:[%s9337_s2 + $0x20] sm:$0xff]  }
 0x317   : > { %v7585_v33 = vpop.f32.mrf.mxu0  ;;  %v8103_v29 = vld [vmem:[%s9337_s2 + $0x58] sm:$0xff]  }
 0x318   : > { %v3472_v34 = vadd.f32 %v3457_v28, %v3348_v32  ;;  %v3351_v39 = vadd.f32 %v7585_v33, %v6664_v23  ;;  %v8102_v28 = vld [vmem:[%s9337_s2 + $0x28] sm:$0xff]   ;;  %v8106_v32 = vld [vmem:[%s9337_s2 + $0x18] sm:$0xff]  }
 0x319   : > { %v3336_v21 = vpop.f32.mrf.mxu0  ;;  %v8107_v33 = vld [vmem:[%s9337_s2 + $0x48] sm:$0xff]  }
 0x31a   : > { %v3475_v25 = vadd.f32 %v7605_v18, %v3351_v39  ;;  %v3349_v38 = vadd.f32 %v6664_v23, %v3336_v21  ;;  %v8100_v23 = vld [vmem:[%s9333_s23 + $0x88] sm:$0xff]   ;;  %v8108_v18 = vld [vmem:[%s9337_s2 + $0x10] sm:$0xff]   ;;  %v8111_v21 = vld [vmem:[%s9337_s2 + $0x38] sm:$0xff]  }
 0x31b   : > { %v8110_v39 = vld [vmem:[%s9337_s2 + $0x8] sm:$0xff]  }
 0x31c   : > { %v3473_v56 = vadd.f32 %v3460_v5, %v3349_v38  ;;  %v8113_v38 = vld [vmem:[%s9337_s2 + $0x30] sm:$0xff]   ;;  %v9006_v5 = vld [vmem:[%s9337_s2 + $0x88] sm:$0xff]  }
 0x32c   : > { %v7644_v40 = vpop.f32.mrf.mxu1 }
 0x32d   : > { %v3724_v43 = vadd.f32 %v7644_v40, %v6721_v57 }
 0x32e   : > { %v3707_v36 = vpop.f32.mrf.mxu1 }
 0x32f   : > { %v3728_v41 = vmax.f32 %v3724_v43, 0.0  ;;  %v3722_v42 = vadd.f32 %v6721_v57, %v3707_v36 }
 0x330   : > { %v7645_v47 = vpop.f32.mrf.mxu1 }
 0x331   : > { %3745 = vst [vmem:[#allocation2 + $0x15] sm:$0xff] %v3728_v41  ;;  %v3726_v50 = vmax.f32 %v3722_v42, 0.0  ;;  %v3725_v52 = vadd.f32 %v7645_v47, %v6721_v57 }
 0x332   : > { %v3710_v53 = vpop.f32.mrf.mxu1 }
 0x333   : > { %v7624_v26 = vpop.f32.mrf.mxu0  ;;  %3743 = vst [vmem:[#allocation2 + $0x5] sm:$0xff] %v3726_v50  ;;  %v3729_v45 = vmax.f32 %v3725_v52, 0.0  ;;  %v3723_v55 = vadd.f32 %v6721_v57, %v3710_v53  ;;  %v6730_v57 = vld [vmem:[%s9338_s7] ss:$0 sm:$0xff]  ;;  %s9285_s7 = scalar_lea.vmem %s8534_s12, %s7030_s0 }
 0x334   : > { %v3598_v60 = vadd.f32 %v7624_v26, %v3474_v31  ;;  %v8105_v31 = vld [vmem:[%s9337_s2 + $0x50] sm:$0xff]  }
 0x335   : > { %v3581_v62 = vpop.f32.mrf.mxu0  ;;  %3746 = vst [vmem:[#allocation2 + $0x1d] sm:$0xff] %v3729_v45  ;;  %v3727_v0 = vmax.f32 %v3723_v55, 0.0  ;;  %v3875_v6 = vpack.c.bf16 %v3729_v45, %v3728_v41 }
 0x336   : > { %v3596_v1 = vadd.f32 %v3581_v62, %v3472_v34  ;;  %v8109_v34 = vld [vmem:[%s9337_s2 + $0x40] sm:$0xff]  }
 0x337   : > { %v7625_v2 = vpop.f32.mrf.mxu0  ;;  %3744 = vst [vmem:[#allocation2 + $0xd] sm:$0xff] %v3727_v0  ;;  %v3874_v27 = vpack.c.bf16 %v3727_v0, %v3726_v50  ;;  %v6787_v0 = vld [vmem:[%s9339_s10] ss:$0 sm:$0xff] }
 0x338   : > { %v3599_v3 = vadd.f32 %v7625_v2, %v3475_v25  ;;  %v8112_v25 = vld [vmem:[%s9337_s2] sm:$0xff]  }
 0x339   : > { %v3584_v8 = vpop.f32.mrf.mxu0  ;;  %7682 = vmatprep.mubr.bf16.mxu1 %v3874_v27 }
 0x33a   : > { %v8970_v9 = vpack.c.bf16 %v3599_v3, %v3598_v60  ;;  %v3597_v11 = vadd.f32 %v3584_v8, %v3473_v56  ;;  %v3747_v12 = vld [vmem:[#allocation2 + $0x2] sm:$0xff]  ;;  %7683 = vmatmul.mubr.bf16.vlgmr.msra.gmra.mxu1 %v3875_v6 }
 0x33b   : > { %4230 = vst [vmem:[#allocation2] sm:$0xff] %v8374_v10  ;;  %7707 = vmatpush3.bf16.msra.mxu1 %v8091_v46  ;;  %7714 = vmatprep.mubr.msk.bf16.mxu1 %vm4159_vm0, %v8880_v59  ;;  %v8092_v59 = vld [vmem:[%s9333_s23 + $0xb0] sm:$0xff]   ;;  %v8094_v46 = vld [vmem:[%s9333_s23 + $0xa8] sm:$0xff]  }
 0x33c   : > { %v8975_v13 = vpack.c.bf16 %v3597_v11, %v3596_v1  ;;  %v3750_v14 = vld [vmem:[#allocation2 + $0x1a] sm:$0xff]  ;;  %7708 = vmatprep.subr.bf16.mxu1 %v8093_v7 }
 0x33d   : > { %v3997_v20 = vld [vmem:[#allocation2 + $0x20] sm:$0xff]  ;;  %v3996_v16 = vld [vmem:[#allocation2 + $0x18] sm:$0xff] }
 0x33e   : > { %4234 = vst [vmem:[#allocation2 + $0x20] sm:$0xff] %v8374_v10  ;;  %v3748_v17 = vld [vmem:[#allocation2 + $0xa] sm:$0xff]  ;;  %v3749_v19 = vld [vmem:[#allocation2 + $0x12] sm:$0xff] }
 0x33f   : > { %v3994_v37 = vld [vmem:[#allocation2 + $0x8] sm:$0xff]  ;;  %v3751_v63 = vpack.c.bf16 %v3748_v17, %v3747_v12  ;;  %v3752_v22 = vpack.c.bf16 %v3750_v14, %v3749_v19  ;;  %v3995_v61 = vld [vmem:[#allocation2 + $0x10] sm:$0xff]  ;;  %7709 = vmatpush3.bf16.msra.mxu1 %v8093_v7  ;;  %4233 = vst [vmem:[#allocation2 + $0x18] sm:$0xff] %v8374_v10 }
 0x340   : > { %4231 = vst [vmem:[#allocation2 + $0x8] sm:$0xff] %v8374_v10  ;;  %4232 = vst [vmem:[#allocation2 + $0x10] sm:$0xff] %v8374_v10  ;;  %7710 = vmatprep.subr.bf16.mxu1 %v8095_v15  ;;  %v3998_v44 = vpack.c.bf16 %v3995_v61, %v3994_v37 }
 0x341   : > { %7662 = vmatprep.mubr.bf16.mxu0 %v3751_v63 }
 0x342   : > { %7663 = vmatmul.mubr.bf16.vlgmr.msra.gmra.mxu0 %v3752_v22 }
 0x343   : > { %7687 = vmatpush3.bf16.msra.mxu0 %v8964_v48  ;;  %7702 = vmatprep.mubr.bf16.mxu0 %v3998_v44  ;;  %v8099_v48 = vld [vmem:[%s9333_s23 + $0x90] sm:$0xff]  }
 0x344   : > { %7688 = vmatprep.subr.bf16.mxu0 %v8092_v59  ;;  %7711 = vmatpush3.bf16.msra.mxu1 %v8095_v15 }
 0x345   : > { %7712 = vmatprep.subr.bf16.mxu1 %v8097_v35 }
 0x347   : > { %7689 = vmatpush3.bf16.msra.mxu0 %v8092_v59 }
 0x348   : > { %7690 = vmatprep.subr.bf16.mxu0 %v8094_v46  ;;  %7713 = vmatpush3.bf16.msra.mxu1 %v8097_v35 }
 0x349   : > { %7718 = vmatprep.subr.bf16.mxu1 %v8102_v28 }
 0x34b   : > { %7691 = vmatpush3.bf16.msra.mxu0 %v8094_v46  ;;  %7715 = vmatmul.mubr.msk.bf16.vlgmr.msra.gmra.mxu1 %vm4159_vm0, %v8882_v4  ;;  %v3999_v4 = vpack.c.bf16 %v3997_v20, %v3996_v16 }
 0x34c   : > { %7692 = vmatprep.subr.bf16.mxu0 %v8096_v49  ;;  %7719 = vmatpush3.bf16.msra.mxu1 %v8102_v28  ;;  %v8115_v28 = vld [vmem:[%s9337_s2 + $0x80] sm:$0xff]  }
 0x34d   : > { %7720 = vmatprep.subr.bf16.mxu1 %v8104_v30 }
 0x34f   : > { %7693 = vmatpush3.bf16.msra.mxu0 %v8096_v49 }
 0x350   : > { %7694 = vmatprep.subr.bf16.mxu0 %v8098_v51  ;;  %7721 = vmatpush3.bf16.msra.mxu1 %v8104_v30 }
 0x351   : > { %7722 = vmatprep.subr.bf16.mxu1 %v8106_v32 }
 0x353   : > { %7695 = vmatpush3.bf16.msra.mxu0 %v8098_v51 }
 0x354   : > { %7696 = vmatprep.subr.bf16.mxu0 %v8099_v48  ;;  %7723 = vmatpush3.bf16.msra.mxu1 %v8106_v32  ;;  %v8116_v32 = vld [vmem:[%s9337_s2 + $0x78] sm:$0xff]  }
 0x355   : > { %7724 = vmatprep.subr.bf16.mxu1 %v8108_v18 }
 0x357   : > { %7697 = vmatpush3.bf16.msra.mxu0 %v8099_v48 }
 0x358   : > { %7698 = vmatprep.subr.bf16.mxu0 %v8100_v23  ;;  %7725 = vmatpush3.bf16.msra.mxu1 %v8108_v18 }
 0x359   : > { %7726 = vmatprep.subr.bf16.mxu1 %v8110_v39 }
 0x35b   : > { %7699 = vmatpush3.bf16.msra.mxu0 %v8100_v23 }
 0x35c   : > { %7700 = vmatprep.subr.bf16.mxu0 %v8101_v24  ;;  %7727 = vmatpush3.bf16.msra.mxu1 %v8110_v39  ;;  %v8117_v39 = vld [vmem:[%s9337_s2 + $0x70] sm:$0xff]  }
 0x35d   : > { %7728 = vmatprep.subr.bf16.mxu1 %v8112_v25 }
 0x35f   : > { %7701 = vmatpush3.bf16.msra.mxu0 %v8101_v24 }
 0x360   : > { %7734 = vmatprep.subr.bf16.mxu0 %v8103_v29  ;;  %7729 = vmatpush3.bf16.msra.mxu1 %v8112_v25 }
 0x361   : > { %7750 = vmatprep.subr.bf16.mxu1 %v9006_v5 }
 0x362   : > { %7703 = vmatmul.mubr.bf16.vlgmr.msra.gmra.mxu0 %v3999_v4 }
 0x363   : > { %7735 = vmatpush3.bf16.msra.mxu0 %v8103_v29 }
 0x364   : > { %7736 = vmatprep.subr.bf16.mxu0 %v8105_v31 }
 0x367   : > { %7737 = vmatpush3.bf16.msra.mxu0 %v8105_v31 }
 0x368   : > { %7738 = vmatprep.subr.bf16.mxu0 %v8107_v33 }
 0x36b   : > { %7739 = vmatpush3.bf16.msra.mxu0 %v8107_v33 }
 0x36c   : > { %7740 = vmatprep.subr.bf16.mxu0 %v8109_v34 }
 0x36f   : > { %7741 = vmatpush3.bf16.msra.mxu0 %v8109_v34 }
 0x370   : > { %7742 = vmatprep.subr.bf16.mxu0 %v8111_v21 }
 0x373   : > { %7743 = vmatpush3.bf16.msra.mxu0 %v8111_v21 }
 0x374   : > { %7744 = vmatprep.subr.bf16.mxu0 %v8113_v38 }
 0x377   : > { %7745 = vmatpush3.bf16.msra.mxu0 %v8113_v38 }
 0x3fa   : > { %v7684_v56 = vpop.f32.mrf.mxu1 }
 0x3fc   : > { %v3975_v40 = vpop.f32.mrf.mxu1 }
 0x3fe   : > { %v7685_v50 = vpop.f32.mrf.mxu1 }
 0x400   : > { %v3978_v62 = vpop.f32.mrf.mxu1 }
 0x402   : > { %v7664_v43 = vpop.f32.mrf.mxu0 }
 0x403   : > { %v3868_v36 = vadd.f32 %v7664_v43, %v6730_v57  ;;  %v8121_v43 = vld [vmem:[%s9340_s11 + $0x78] sm:$0xff]  }
 0x404   : > { %v3851_v41 = vpop.f32.mrf.mxu0 }
 0x405   : > { %v3992_v42 = vadd.f32 %v7684_v56, %v3868_v36  ;;  %v3866_v47 = vadd.f32 %v6730_v57, %v3851_v41  ;;  %v8118_v56 = vld [vmem:[%s9337_s2 + $0x68] sm:$0xff]   ;;  %v8123_v36 = vld [vmem:[%s9340_s11 + $0x70] sm:$0xff]   ;;  %v8120_v41 = vld [vmem:[%s9340_s11 + $0x38] sm:$0xff]  }
 0x406   : > { %v7665_v52 = vpop.f32.mrf.mxu0  ;;  %7766 = vmatprep.subr.bf16.mxu0 %v8120_v41 }
 0x407   : > { %v3990_v53 = vadd.f32 %v3975_v40, %v3866_v47  ;;  %v3869_v26 = vadd.f32 %v7665_v52, %v6730_v57  ;;  %v8125_v47 = vld [vmem:[%s9340_s11 + $0x68] sm:$0xff]   ;;  %v8127_v52 = vld [vmem:[%s9340_s11 + $0x60] sm:$0xff]  }
 0x408   : > { %v3854_v45 = vpop.f32.mrf.mxu0 }
 0x409   : > { %v3993_v55 = vadd.f32 %v7685_v50, %v3869_v26  ;;  %v3867_v60 = vadd.f32 %v6730_v57, %v3854_v45  ;;  %v8119_v57 = vld [vmem:[%s9337_s2 + $0x60] sm:$0xff]   ;;  %v8124_v50 = vld [vmem:[%s9340_s11 + $0x28] sm:$0xff]   ;;  %v8131_v45 = vld [vmem:[%s9340_s11 + $0x50] sm:$0xff]  }
 0x40a   : > { %v8126_v26 = vld [vmem:[%s9340_s11 + $0x20] sm:$0xff]  }
 0x40b   : > { %v3991_v1 = vadd.f32 %v3978_v62, %v3867_v60  ;;  %v7716_v2 = vpop.f32.mrf.mxu1  ;;  %v8133_v60 = vld [vmem:[%s9340_s11 + $0x48] sm:$0xff]   ;;  %v8130_v62 = vld [vmem:[%s9340_s11 + $0x10] sm:$0xff]  }
 0x40c   : > { %v4217_v27 = vadd.f32 %v7716_v2, %v6787_v0  ;;  %v8134_v2 = vld [vmem:[%s9340_s11] sm:$0xff]  }
 0x40d   : > { %v4200_v3 = vpop.f32.mrf.mxu1 }
 0x40e   : > { %v4221_v6 = vmax.f32 %v4217_v27, 0.0  ;;  %v4215_v7 = vadd.f32 %v6787_v0, %v4200_v3  ;;  %v8139_v27 = vld [vmem:[%s9341_s18 + $0xe4] ss:$16 sps:$4 sm:$0xff]   ;;  %v8136_v3 = vld [vmem:[%s9340_s11 + $0xb8] sm:$0xff]  }
 0x40f   : > { %v7717_v8 = vpop.f32.mrf.mxu1 }
 0x410   : > { %v4219_v11 = vmax.f32 %v4215_v7, 0.0  ;;  %v4218_v12 = vadd.f32 %v7717_v8, %v6787_v0  ;;  %4239 = vst.msk [vmem:[#allocation2 + $0x15] sm:$0xff] %vm4236_vm1, %v4221_v6  ;;  %v6794_v8 = vld [vmem:[%s9342_s22] ss:$0 sm:$0xff] }
 0x411   : > { %v4203_v14 = vpop.f32.mrf.mxu1 }
 0x412   : > { %v4222_v15 = vmax.f32 %v4218_v12, 0.0  ;;  %v4216_v20 = vadd.f32 %v6787_v0, %v4203_v14  ;;  %4237 = vst.msk [vmem:[#allocation2 + $0x5] sm:$0xff] %vm4236_vm1, %v4219_v11  ;;  %v8135_v0 = vld [vmem:[%s9340_s11 + $0x40] sm:$0xff]  }
 0x414   : > { %v4220_v16 = vmax.f32 %v4216_v20, 0.0  ;;  %4240 = vst.msk [vmem:[#allocation2 + $0x1d] sm:$0xff] %vm4236_vm1, %v4222_v15 }
 0x416   : > { %4238 = vst.msk [vmem:[#allocation2 + $0xd] sm:$0xff] %vm4236_vm1, %v4220_v16 }
 0x417   : > { %v4356_v63 = vld [vmem:[#allocation2 + $0x15] sm:$0xff] }
 0x419   : > { %v4241_v17 = vld [vmem:[#allocation2 + $0x4] sm:$0xff] }
 0x41a   : > { %v4354_v19 = vld [vmem:[#allocation2 + $0x5] sm:$0xff] }
 0x41b   : > { %v4244_v37 = vld [vmem:[#allocation2 + $0x1c] sm:$0xff] }
 0x41c   : > { %v4357_v22 = vld [vmem:[#allocation2 + $0x1d] sm:$0xff] }
 0x41d   : > { %v4470_v61 = vld [vmem:[#allocation2 + $0x16] sm:$0xff]  ;;  %v4471_v59 = vld [vmem:[#allocation2 + $0x1e] sm:$0xff]  ;;  %v4242_v44 = vld [vmem:[#allocation2 + $0xc] sm:$0xff]  ;;  %v4359_v4 = vpack.c.bf16 %v4357_v22, %v4356_v63 }
 0x41e   : > { %v4355_v35 = vld [vmem:[#allocation2 + $0xd] sm:$0xff]  ;;  %4597 = vst [vmem:[#allocation2 + $0x20] sm:$0xff] %v8374_v10  ;;  %v4245_v49 = vpack.c.bf16 %v4242_v44, %v4241_v17  ;;  %v4473_v40 = vpack.c.bf16 %v4471_v59, %v4470_v61 }
 0x41f   : > { %v4243_v46 = vld [vmem:[#allocation2 + $0x14] sm:$0xff]  ;;  %v4358_v51 = vpack.c.bf16 %v4355_v35, %v4354_v19  ;;  %v4468_v23 = vld [vmem:[#allocation2 + $0x6] sm:$0xff] }
 0x420   : > { %v4246_v48 = vpack.c.bf16 %v4244_v37, %v4243_v46  ;;  %v4469_v24 = vld [vmem:[#allocation2 + $0xe] sm:$0xff]  ;;  %4596 = vst [vmem:[#allocation2 + $0x18] sm:$0xff] %v8374_v10  ;;  %4593 = vst [vmem:[#allocation2] sm:$0xff] %v8374_v10  ;;  %7730 = vmatprep.mubr.msk.bf16.mxu1 %vm4236_vm1, %v4245_v49 }
 0x421   : > { %4594 = vst [vmem:[#allocation2 + $0x8] sm:$0xff] %v8374_v10  ;;  %4595 = vst [vmem:[#allocation2 + $0x10] sm:$0xff] %v8374_v10  ;;  %7746 = vmatprep.mubr.msk.bf16.mxu0 %vm4236_vm1, %v4358_v51  ;;  %v4472_v29 = vpack.c.bf16 %v4469_v24, %v4468_v23 }
 0x422   : > { %7731 = vmatmul.mubr.msk.bf16.vlgmr.msra.gmra.mxu1 %vm4236_vm1, %v4246_v48  ;;  %7747 = vmatmul.mubr.msk.bf16.vlgmr.msra.gmra.mxu0 %vm4236_vm1, %v4359_v4  ;;  %v7704_v30 = vpop.f32.mrf.mxu0 }
 0x423   : > { %7751 = vmatpush3.bf16.msra.mxu1 %v9006_v5  ;;  %7762 = vmatprep.mubr.msk.bf16.mxu1 %vm4236_vm1, %v4472_v29  ;;  %v4116_v31 = vadd.f32 %v7704_v30, %v3992_v42  ;;  %v8122_v42 = vld [vmem:[%s9340_s11 + $0x30] sm:$0xff]  }
 0x424   : > { %7752 = vmatprep.subr.bf16.mxu1 %v8115_v28  ;;  %v4099_v10 = vpop.f32.mrf.mxu0  ;;  %7767 = vmatpush3.bf16.msra.mxu0 %v8120_v41 }
 0x425   : > { %v4114_v33 = vadd.f32 %v4099_v10, %v3990_v53  ;;  %7768 = vmatprep.subr.bf16.mxu0 %v8122_v42  ;;  %v8129_v53 = vld [vmem:[%s9340_s11 + $0x58] sm:$0xff]   ;;  %v8137_v10 = vld [vmem:[%s9341_s18 + $0xe0] ss:$16 sps:$4 sm:$0xff]  }
 0x426   : > { %v7705_v18 = vpop.f32.mrf.mxu0 }
 0x427   : > { %7753 = vmatpush3.bf16.msra.mxu1 %v8115_v28  ;;  %v4117_v34 = vadd.f32 %v7705_v18, %v3993_v55  ;;  %v8128_v55 = vld [vmem:[%s9340_s11 + $0x18] sm:$0xff]   ;;  %v8143_v18 = vld [vmem:[%s9341_s18 + $0xc4] ss:$16 sps:$4 sm:$0xff]  }
 0x428   : > { %7754 = vmatprep.subr.bf16.mxu1 %v8116_v32  ;;  %v4102_v21 = vpop.f32.mrf.mxu0  ;;  %7769 = vmatpush3.bf16.msra.mxu0 %v8122_v42 }
 0x429   : > { %v9029_v25 = vpack.c.bf16 %v4117_v34, %v4116_v31  ;;  %v4115_v38 = vadd.f32 %v4102_v21, %v3991_v1  ;;  %7770 = vmatprep.subr.bf16.mxu0 %v8124_v50  ;;  %v8132_v1 = vld [vmem:[%s9340_s11 + $0x8] sm:$0xff]   ;;  %v8141_v34 = vld [vmem:[%s9341_s18 + $0xc0] ss:$16 sps:$4 sm:$0xff]   ;;  %v8147_v21 = vld [vmem:[%s9341_s18 + $0xa4] ss:$16 sps:$4 sm:$0xff]  }
 0x42b   : > { %7755 = vmatpush3.bf16.msra.mxu1 %v8116_v32  ;;  %v9031_v5 = vpack.c.bf16 %v4115_v38, %v4114_v33 }
 0x42c   : > { %7756 = vmatprep.subr.bf16.mxu1 %v8117_v39  ;;  %7771 = vmatpush3.bf16.msra.mxu0 %v8124_v50  ;;  %v8145_v50 = vld [vmem:[%s9341_s18 + $0xa0] ss:$16 sps:$4 sm:$0xff]  }
 0x42d   : > { %7772 = vmatprep.subr.bf16.mxu0 %v8126_v26 }
 0x42f   : > { %7757 = vmatpush3.bf16.msra.mxu1 %v8117_v39  ;;  %v8375_v39 = vmov 0  }
 0x430   : > { %7758 = vmatprep.subr.bf16.mxu1 %v8118_v56  ;;  %7773 = vmatpush3.bf16.msra.mxu0 %v8126_v26  ;;  %v8144_v26 = vld [vmem:[%s9340_s11 + $0xa8] sm:$0xff]  }
 0x431   : > { %7774 = vmatprep.subr.bf16.mxu0 %v8128_v55 }
 0x433   : > { %7759 = vmatpush3.bf16.msra.mxu1 %v8118_v56 }
 0x434   : > { %7760 = vmatprep.subr.bf16.mxu1 %v8119_v57  ;;  %7775 = vmatpush3.bf16.msra.mxu0 %v8128_v55  ;;  %v8155_v55 = vld [vmem:[%s9341_s18 + $0x64] ss:$16 sps:$4 sm:$0xff]  }
 0x435   : > { %7776 = vmatprep.subr.bf16.mxu0 %v8130_v62 }
 0x437   : > { %7761 = vmatpush3.bf16.msra.mxu1 %v8119_v57 }
 0x438   : > { %7786 = vmatprep.subr.bf16.mxu1 %v8121_v43  ;;  %7777 = vmatpush3.bf16.msra.mxu0 %v8130_v62  ;;  %v8153_v62 = vld [vmem:[%s9341_s18 + $0x60] ss:$16 sps:$4 sm:$0xff]  }
 0x439   : > { %7778 = vmatprep.subr.bf16.mxu0 %v8132_v1 }
 0x43a   : > { %7763 = vmatmul.mubr.msk.bf16.vlgmr.msra.gmra.mxu1 %vm4236_vm1, %v4473_v40 }
 0x43b   : > { %7787 = vmatpush3.bf16.msra.mxu1 %v8121_v43 }
 0x43c   : > { %7788 = vmatprep.subr.bf16.mxu1 %v8123_v36  ;;  %7779 = vmatpush3.bf16.msra.mxu0 %v8132_v1  ;;  %v8152_v1 = vld [vmem:[%s9340_s11 + $0x98] sm:$0xff]  }
 0x43d   : > { %7780 = vmatprep.subr.bf16.mxu0 %v8134_v2 }
 0x43f   : > { %7789 = vmatpush3.bf16.msra.mxu1 %v8123_v36 }
 0x440   : > { %7790 = vmatprep.subr.bf16.mxu1 %v8125_v47  ;;  %7781 = vmatpush3.bf16.msra.mxu0 %v8134_v2  ;;  %v8157_v2 = vld [vmem:[%s9341_s18 + $0x40] ss:$16 sps:$4 sm:$0xff]  }
 0x441   : > { %7806 = vmatprep.subr.bf16.mxu0 %v8136_v3 }
 0x443   : > { %7791 = vmatpush3.bf16.msra.mxu1 %v8125_v47  ;;  %v8140_v47 = vld [vmem:[%s9340_s11 + $0xb0] sm:$0xff]  }
 0x444   : > { %7792 = vmatprep.subr.bf16.mxu1 %v8127_v52 }
 0x447   : > { %7793 = vmatpush3.bf16.msra.mxu1 %v8127_v52 }
 0x448   : > { %7794 = vmatprep.subr.bf16.mxu1 %v8129_v53 }
 0x44b   : > { %7795 = vmatpush3.bf16.msra.mxu1 %v8129_v53  ;;  %v8151_v53 = vld [vmem:[%s9341_s18 + $0x84] ss:$16 sps:$4 sm:$0xff]  }
 0x44c   : > { %7796 = vmatprep.subr.bf16.mxu1 %v8131_v45 }
 0x44f   : > { %7797 = vmatpush3.bf16.msra.mxu1 %v8131_v45  ;;  %v8149_v45 = vld [vmem:[%s9341_s18 + $0x80] ss:$16 sps:$4 sm:$0xff]  }
 0x450   : > { %7798 = vmatprep.subr.bf16.mxu1 %v8133_v60 }
 0x453   : > { %7799 = vmatpush3.bf16.msra.mxu1 %v8133_v60  ;;  %v8148_v60 = vld [vmem:[%s9340_s11 + $0xa0] sm:$0xff]  }
 0x454   : > { %7800 = vmatprep.subr.bf16.mxu1 %v8135_v0 }
 0x457   : > { %7801 = vmatpush3.bf16.msra.mxu1 %v8135_v0  ;;  %v8159_v0 = vld [vmem:[%s9341_s18 + $0x44] ss:$16 sps:$4 sm:$0xff]  }
 0x458   : > { %5190 = vmatprep.subr.bf16.mxu1 %v8139_v27  ;;  %v8163_v27 = vld [vmem:[%s9341_s18 + $0x24] ss:$16 sps:$4 sm:$0xff]  }
 0x4e2   : > { %v7732_v6 = vpop.f32.mrf.mxu1  ;;  %v7748_v11 = vpop.f32.mrf.mxu0 }
 0x4e3   : > { %v4352_v14 = vadd.f32 %v7732_v6, %v6794_v8  ;;  %v8161_v6 = vld [vmem:[%s9341_s18 + $0x20] ss:$16 sps:$4 sm:$0xff]  }
 0x4e4   : > { %v4335_v7 = vpop.f32.mrf.mxu1  ;;  %v4449_v15 = vpop.f32.mrf.mxu0 }
 0x4e5   : > { %v4350_v20 = vadd.f32 %v6794_v8, %v4335_v7  ;;  %v4466_v17 = vadd.f32 %v7748_v11, %v4352_v14  ;;  %v8167_v7 = vld [vmem:[%s9341_s18 + $0x4] ss:$16 sps:$4 sm:$0xff]   ;;  %v8165_v11 = vld [vmem:[%s9341_s18] ss:$16 sps:$4 sm:$0xff]  }
 0x4e6   : > { %v7733_v12 = vpop.f32.mrf.mxu1  ;;  %v7749_v37 = vpop.f32.mrf.mxu0  ;;  %v8164_v14 = vld [vmem:[%s9340_s11 + $0x80] sm:$0xff]  }
 0x4e7   : > { %v4353_v19 = vadd.f32 %v7733_v12, %v6794_v8  ;;  %v4464_v22 = vadd.f32 %v4449_v15, %v4350_v20  ;;  %v8173_v12 = vld [vmem:[%s9343_s28 + $0xe4] ss:$16 sps:$4 sm:$0xff]   ;;  %v8171_v15 = vld [vmem:[%s9343_s28 + $0xe0] ss:$16 sps:$4 sm:$0xff]  }
 0x4e8   : > { %v4338_v16 = vpop.f32.mrf.mxu1  ;;  %v4452_v51 = vpop.f32.mrf.mxu0  ;;  %v8179_v20 = vld [vmem:[%s9343_s28 + $0xc4] ss:$16 sps:$4 sm:$0xff]  }
 0x4e9   : > { %v4351_v61 = vadd.f32 %v6794_v8, %v4338_v16  ;;  %v4467_v35 = vadd.f32 %v7749_v37, %v4353_v19  ;;  %v8160_v8 = vld [vmem:[%s9340_s11 + $0x88] sm:$0xff]  }
 0x4ea   : > { %v8170_v16 = vld [vmem:[%s9341_s18 + $0xec] ss:$16 sps:$4 sm:$0xff]  }
 0x4eb   : > { %v4465_v23 = vadd.f32 %v4452_v51, %v4351_v61  ;;  %v8189_v51 = vld [vmem:[%s9343_s28 + $0x80] ss:$16 sps:$4 sm:$0xff]  }
 0x4fa   : > { %v7764_v63 = vpop.f32.mrf.mxu1 }
 0x4fb   : > { %v4580_v59 = vadd.f32 %v7764_v63, %v4466_v17  ;;  %v8177_v17 = vld [vmem:[%s9343_s28 + $0xc0] ss:$16 sps:$4 sm:$0xff]   ;;  %v8185_v63 = vld [vmem:[%s9343_s28 + $0xa4] ss:$16 sps:$4 sm:$0xff]  }
 0x4fc   : > { %v4563_v44 = vpop.f32.mrf.mxu1 }
 0x4fd   : > { %v4584_v46 = vmax.f32 %v4580_v59, 0.0  ;;  %v4578_v49 = vadd.f32 %v4563_v44, %v4464_v22  ;;  %v8168_v22 = vld [vmem:[%s9341_s18 + $0xe8] ss:$16 sps:$4 sm:$0xff]   ;;  %v8176_v59 = vld [vmem:[%s9341_s18 + $0xcc] ss:$16 sps:$4 sm:$0xff]  }
 0x4fe   : > { %v7765_v48 = vpop.f32.mrf.mxu1  ;;  %v8183_v44 = vld [vmem:[%s9343_s28 + $0xa0] ss:$16 sps:$4 sm:$0xff]  }
 0x4ff   : > { %4601 = vst [vmem:[#allocation2 + $0x15] sm:$0xff] %v4584_v46  ;;  %v4582_v24 = vmax.f32 %v4578_v49, 0.0  ;;  %v4581_v4 = vadd.f32 %v7765_v48, %v4467_v35  ;;  %v8191_v35 = vld [vmem:[%s9343_s28 + $0x84] ss:$16 sps:$4 sm:$0xff]   ;;  %v8182_v49 = vld [vmem:[%s9341_s18 + $0xac] ss:$16 sps:$4 sm:$0xff]  }
 0x500   : > { %v4566_v28 = vpop.f32.mrf.mxu1  ;;  %v8197_v48 = vld [vmem:[%s9343_s28 + $0x64] ss:$16 sps:$4 sm:$0xff]  }
 0x501   : > { %4599 = vst [vmem:[#allocation2 + $0x5] sm:$0xff] %v4582_v24  ;;  %v4585_v29 = vmax.f32 %v4581_v4, 0.0  ;;  %v4579_v30 = vadd.f32 %v4566_v28, %v4465_v23  ;;  %v8180_v23 = vld [vmem:[%s9341_s18 + $0xa8] ss:$16 sps:$4 sm:$0xff]   ;;  %v8195_v4 = vld [vmem:[%s9343_s28 + $0x60] ss:$16 sps:$4 sm:$0xff]  }
 0x502   : > { %v8203_v28 = vld [vmem:[%s9343_s28 + $0x44] ss:$16 sps:$4 sm:$0xff]  }
 0x503   : > { %4602 = vst [vmem:[#allocation2 + $0x1d] sm:$0xff] %v4585_v29  ;;  %v4583_v31 = vmax.f32 %v4579_v30, 0.0  ;;  %v4731_v33 = vpack.c.bf16 %v4585_v29, %v4584_v46  ;;  %v8174_v46 = vld [vmem:[%s9341_s18 + $0xc8] ss:$16 sps:$4 sm:$0xff]   ;;  %v8194_v30 = vld [vmem:[%s9341_s18 + $0x6c] ss:$16 sps:$4 sm:$0xff]  }
 0x504   : > { %v8186_v29 = vld [vmem:[%s9341_s18 + $0x88] ss:$16 sps:$4 sm:$0xff]  }
 0x505   : > { %4600 = vst [vmem:[#allocation2 + $0xd] sm:$0xff] %v4583_v31  ;;  %v4730_v32 = vpack.c.bf16 %v4583_v31, %v4582_v24  ;;  %v8188_v24 = vld [vmem:[%s9341_s18 + $0x8c] ss:$16 sps:$4 sm:$0xff]   ;;  %v8201_v31 = vld [vmem:[%s9343_s28 + $0x40] ss:$16 sps:$4 sm:$0xff]  }
 0x507   : > { %7802 = vmatprep.mubr.bf16.mxu1 %v4730_v32  ;;  %v8209_v32 = vld [vmem:[%s9343_s28 + $0x24] ss:$16 sps:$4 sm:$0xff]  }
 0x508   : > { %7803 = vmatmul.mubr.bf16.vlgmr.msra.gmra.mxu1 %v4731_v33  ;;  %v4603_v38 = vld [vmem:[#allocation2] sm:$0xff]  ;;  %v8200_v33 = vld [vmem:[%s9341_s18 + $0x4c] ss:$16 sps:$4 sm:$0xff]  }
 0x509   : > { %5191 = vmatpush1.bf16.msra.mxu1 %v8137_v10  ;;  %5222 = vmatprep.mubr.bf16.mxu1 %v8375_v39  ;;  %v8192_v10 = vld [vmem:[%s9341_s18 + $0x68] ss:$16 sps:$4 sm:$0xff]  }
 0x50a   : > { %5192 = vmatprep.subr.bf16.mxu1 %v8143_v18  ;;  %v4606_v56 = vld [vmem:[#allocation2 + $0x18] sm:$0xff]  ;;  %v4853_v37 = vld [vmem:[#allocation2 + $0x22] sm:$0xff] }
 0x50b   : > { %v4852_v19 = vld [vmem:[#allocation2 + $0x1a] sm:$0xff] }
 0x50c   : > { %v4604_v57 = vld [vmem:[#allocation2 + $0x8] sm:$0xff]  ;;  %v4605_v40 = vld [vmem:[#allocation2 + $0x10] sm:$0xff]  ;;  %v4855_v61 = vpack.c.bf16 %v4853_v37, %v4852_v19 }
 0x50d   : > { %v4850_v43 = vld [vmem:[#allocation2 + $0xa] sm:$0xff]  ;;  %v4607_v36 = vpack.c.bf16 %v4604_v57, %v4603_v38  ;;  %v4608_v41 = vpack.c.bf16 %v4606_v56, %v4605_v40  ;;  %v4851_v42 = vld [vmem:[#allocation2 + $0x12] sm:$0xff]  ;;  %5193 = vmatpush1.bf16.msra.mxu1 %v8141_v34 }
 0x50e   : > { %5194 = vmatprep.subr.bf16.mxu1 %v8147_v21  ;;  %v4854_v52 = vpack.c.bf16 %v4851_v42, %v4850_v43  ;;  %v8207_v18 = vld [vmem:[%s9343_s28 + $0x20] ss:$16 sps:$4 sm:$0xff]   ;;  %v8215_v34 = vld [vmem:[%s9343_s28 + $0x4] ss:$16 sps:$4 sm:$0xff]   ;;  %v8198_v21 = vld [vmem:[%s9341_s18 + $0x48] ss:$16 sps:$4 sm:$0xff]  }
 0x50f   : > { %7782 = vmatprep.mubr.bf16.mxu0 %v4607_v36  ;;  %v8206_v38 = vld [vmem:[%s9341_s18 + $0x2c] ss:$16 sps:$4 sm:$0xff]   ;;  %v8213_v56 = vld [vmem:[%s9343_s28] ss:$16 sps:$4 sm:$0xff]   ;;  %v8221_v57 = vld [vmem:[%s8519_s30 + $0xe4] ss:$16 sps:$4 sm:$0xff]  }
 0x510   : > { %7783 = vmatmul.mubr.bf16.vlgmr.msra.gmra.mxu0 %v4608_v41  ;;  %v8204_v40 = vld [vmem:[%s9341_s18 + $0x28] ss:$16 sps:$4 sm:$0xff]   ;;  %v8212_v43 = vld [vmem:[%s9341_s18 + $0xc] ss:$16 sps:$4 sm:$0xff]   ;;  %v8219_v36 = vld [vmem:[%s8519_s30 + $0xe0] ss:$16 sps:$4 sm:$0xff]  }
 0x511   : > { %7807 = vmatpush3.bf16.msra.mxu0 %v8136_v3  ;;  %7822 = vmatprep.mubr.bf16.mxu0 %v4854_v52  ;;  %v8156_v3 = vld [vmem:[%s9340_s11 + $0x90] sm:$0xff]   ;;  %v8210_v42 = vld [vmem:[%s9341_s18 + $0x8] ss:$16 sps:$4 sm:$0xff]  }
 0x512   : > { %7808 = vmatprep.subr.bf16.mxu0 %v8140_v47  ;;  %5195 = vmatpush1.bf16.msra.mxu1 %v8145_v50  ;;  %v8227_v41 = vld [vmem:[%s8519_s30 + $0xc4] ss:$16 sps:$4 sm:$0xff]   ;;  %v8225_v50 = vld [vmem:[%s8519_s30 + $0xc0] ss:$16 sps:$4 sm:$0xff]   ;;  %v8252_v37 = vld [vmem:[%s9343_s28 + $0x28] ss:$16 sps:$4 sm:$0xff]  }
 0x513   : > { %5196 = vmatprep.subr.bf16.mxu1 %v8151_v53  ;;  %v8233_v52 = vld [vmem:[%s8519_s30 + $0xa4] ss:$16 sps:$4 sm:$0xff]   ;;  %v8216_v53 = vld [vmem:[%s9343_s28 + $0xe8] ss:$16 sps:$4 sm:$0xff]  }
 0x514   : > { %v8290_v19 = vld [vmem:[%s8524_s27 + $0xe4] ss:$16 sps:$4 sm:$0xff]  }
 0x515   : > { %7809 = vmatpush3.bf16.msra.mxu0 %v8140_v47  ;;  %v8218_v47 = vld [vmem:[%s9343_s28 + $0xec] ss:$16 sps:$4 sm:$0xff]  }
 0x516   : > { %7810 = vmatprep.subr.bf16.mxu0 %v8144_v26  ;;  %5197 = vmatpush1.bf16.msra.mxu1 %v8149_v45  ;;  %v8231_v45 = vld [vmem:[%s8519_s30 + $0xa0] ss:$16 sps:$4 sm:$0xff]  }
 0x517   : > { %5198 = vmatprep.subr.bf16.mxu1 %v8155_v55  ;;  %v8239_v55 = vld [vmem:[%s8519_s30 + $0x84] ss:$16 sps:$4 sm:$0xff]  }
 0x519   : > { %7811 = vmatpush3.bf16.msra.mxu0 %v8144_v26  ;;  %v8224_v26 = vld [vmem:[%s9343_s28 + $0xcc] ss:$16 sps:$4 sm:$0xff]  }
 0x51a   : > { %7812 = vmatprep.subr.bf16.mxu0 %v8148_v60  ;;  %5199 = vmatpush1.bf16.msra.mxu1 %v8153_v62  ;;  %v8230_v62 = vld [vmem:[%s9343_s28 + $0xac] ss:$16 sps:$4 sm:$0xff]  }
 0x51b   : > { %5200 = vmatprep.subr.bf16.mxu1 %v8159_v0  ;;  %v8237_v0 = vld [vmem:[%s8519_s30 + $0x80] ss:$16 sps:$4 sm:$0xff]  }
 0x51d   : > { %7813 = vmatpush3.bf16.msra.mxu0 %v8148_v60  ;;  %v8222_v60 = vld [vmem:[%s9343_s28 + $0xc8] ss:$16 sps:$4 sm:$0xff]  }
 0x51e   : > { %7814 = vmatprep.subr.bf16.mxu0 %v8152_v1  ;;  %5201 = vmatpush1.bf16.msra.mxu1 %v8157_v2  ;;  %v8236_v2 = vld [vmem:[%s9343_s28 + $0x8c] ss:$16 sps:$4 sm:$0xff]  }
 0x51f   : > { %5202 = vmatprep.subr.bf16.mxu1 %v8163_v27  ;;  %v8243_v27 = vld [vmem:[%s8519_s30 + $0x60] ss:$16 sps:$4 sm:$0xff]  }
 0x521   : > { %7815 = vmatpush3.bf16.msra.mxu0 %v8152_v1  ;;  %v8228_v1 = vld [vmem:[%s9343_s28 + $0xa8] ss:$16 sps:$4 sm:$0xff]  }
 0x522   : > { %7816 = vmatprep.subr.bf16.mxu0 %v8156_v3  ;;  %5203 = vmatpush1.bf16.msra.mxu1 %v8161_v6  ;;  %v8234_v6 = vld [vmem:[%s9343_s28 + $0x88] ss:$16 sps:$4 sm:$0xff]  }
 0x523   : > { %5204 = vmatprep.subr.bf16.mxu1 %v8167_v7  ;;  %v8242_v7 = vld [vmem:[%s9343_s28 + $0x6c] ss:$16 sps:$4 sm:$0xff]  }
 0x525   : > { %7817 = vmatpush3.bf16.msra.mxu0 %v8156_v3  ;;  %v8251_v3 = vld [vmem:[%s8519_s30 + $0x44] ss:$16 sps:$4 sm:$0xff]  }
 0x526   : > { %7818 = vmatprep.subr.bf16.mxu0 %v8160_v8  ;;  %5205 = vmatpush1.bf16.msra.mxu1 %v8165_v11  ;;  %v8257_v11 = vld [vmem:[%s8519_s30 + $0x24] ss:$16 sps:$4 sm:$0xff]  }
 0x527   : > { %5506 = vmatprep.subr.bf16.mxu1 %v8173_v12  ;;  %v8248_v12 = vld [vmem:[%s9343_s28 + $0x4c] ss:$16 sps:$4 sm:$0xff]  }
 0x529   : > { %7819 = vmatpush3.bf16.msra.mxu0 %v8160_v8  ;;  %5223 = vmatmul.mubr.bf16.vlgmr.msra.gmra.mxu1 %v8911_v58  ;;  %v8249_v8 = vld [vmem:[%s8519_s30 + $0x40] ss:$16 sps:$4 sm:$0xff]  }
 0x52a   : > { %7820 = vmatprep.subr.bf16.mxu0 %v8164_v14  ;;  %5507 = vmatpush1.bf16.msra.mxu1 %v8171_v15  ;;  %v8263_v15 = vld [vmem:[%s8519_s30 + $0x4] ss:$16 sps:$4 sm:$0xff]  }
 0x52b   : > { %5508 = vmatprep.subr.bf16.mxu1 %v8179_v20  ;;  %5232 = vmatprep.mubr.bf16.mxu1 %v8375_v39  ;;  %v8246_v20 = vld [vmem:[%s9343_s28 + $0x48] ss:$16 sps:$4 sm:$0xff]  }
 0x52d   : > { %7821 = vmatpush3.bf16.msra.mxu0 %v8164_v14  ;;  %v8255_v14 = vld [vmem:[%s8519_s30 + $0x20] ss:$16 sps:$4 sm:$0xff]  }
 0x52e   : > { %5243 = vmatprep.subr.bf16.mxu0 %v8170_v16  ;;  %5509 = vmatpush1.bf16.msra.mxu1 %v8177_v17  ;;  %v8254_v16 = vld [vmem:[%s9343_s28 + $0x2c] ss:$16 sps:$4 sm:$0xff]   ;;  %v8261_v17 = vld [vmem:[%s8519_s30] ss:$16 sps:$4 sm:$0xff]  }
 0x52f   : > { %5510 = vmatprep.subr.bf16.mxu1 %v8185_v63  ;;  %v8260_v63 = vld [vmem:[%s9343_s28 + $0xc] ss:$16 sps:$4 sm:$0xff]  }
 0x530   : > { %7823 = vmatmul.mubr.bf16.vlgmr.msra.gmra.mxu0 %v4855_v61  ;;  %v8296_v61 = vld [vmem:[%s8524_s27 + $0xc4] ss:$16 sps:$4 sm:$0xff]  }
 0x531   : > { %5244 = vmatpush1.bf16.msra.mxu0 %v8168_v22  ;;  %5233 = vmatmul.mubr.bf16.gmra.mxu1 %v8909_v54  ;;  %v8288_v22 = vld [vmem:[%s8524_s27 + $0xe0] ss:$16 sps:$4 sm:$0xff]  }
 0x532   : > { %5245 = vmatprep.subr.bf16.mxu0 %v8176_v59  ;;  %5511 = vmatpush1.bf16.msra.mxu1 %v8183_v44  ;;  %v8258_v59 = vld [vmem:[%s9343_s28 + $0x8] ss:$16 sps:$4 sm:$0xff]   ;;  %v8266_v44 = vld [vmem:[%s8519_s30 + $0xec] ss:$16 sps:$4 sm:$0xff]  }
 0x533   : > { %5512 = vmatprep.subr.bf16.mxu1 %v8191_v35  ;;  %5275 = vmatprep.mubr.bf16.mxu0 %v8375_v39  ;;  %v8294_v35 = vld [vmem:[%s8524_s27 + $0xc0] ss:$16 sps:$4 sm:$0xff]  }
 0x534   : > { %5538 = vmatprep.mubr.bf16.mxu1 %v8375_v39 }
 0x535   : > { %5246 = vmatpush1.bf16.msra.mxu0 %v8174_v46  ;;  %v8302_v46 = vld [vmem:[%s8524_s27 + $0xa4] ss:$16 sps:$4 sm:$0xff]  }
 0x536   : > { %5247 = vmatprep.subr.bf16.mxu0 %v8182_v49  ;;  %5513 = vmatpush1.bf16.msra.mxu1 %v8189_v51  ;;  %v8264_v49 = vld [vmem:[%s8519_s30 + $0xe8] ss:$16 sps:$4 sm:$0xff]   ;;  %v8269_v51 = vld [vmem:[%s8519_s30 + $0xcc] ss:$16 sps:$4 sm:$0xff]  }
 0x537   : > { %5514 = vmatprep.subr.bf16.mxu1 %v8197_v48  ;;  %v8300_v48 = vld [vmem:[%s8524_s27 + $0xa0] ss:$16 sps:$4 sm:$0xff]  }
 0x539   : > { %5248 = vmatpush1.bf16.msra.mxu0 %v8180_v23  ;;  %v8308_v23 = vld [vmem:[%s8524_s27 + $0x84] ss:$16 sps:$4 sm:$0xff]  }
 0x53a   : > { %5249 = vmatprep.subr.bf16.mxu0 %v8188_v24  ;;  %5515 = vmatpush1.bf16.msra.mxu1 %v8195_v4  ;;  %v8267_v24 = vld [vmem:[%s8519_s30 + $0xc8] ss:$16 sps:$4 sm:$0xff]   ;;  %v8272_v4 = vld [vmem:[%s8519_s30 + $0xac] ss:$16 sps:$4 sm:$0xff]  }
 0x53b   : > { %5516 = vmatprep.subr.bf16.mxu1 %v8203_v28  ;;  %v8306_v28 = vld [vmem:[%s8524_s27 + $0x80] ss:$16 sps:$4 sm:$0xff]  }
 0x53d   : > { %5250 = vmatpush1.bf16.msra.mxu0 %v8186_v29  ;;  %v8270_v29 = vld [vmem:[%s8519_s30 + $0xa8] ss:$16 sps:$4 sm:$0xff]  }
 0x53e   : > { %5251 = vmatprep.subr.bf16.mxu0 %v8194_v30  ;;  %5517 = vmatpush1.bf16.msra.mxu1 %v8201_v31  ;;  %v8275_v30 = vld [vmem:[%s8519_s30 + $0x8c] ss:$16 sps:$4 sm:$0xff]   ;;  %v8312_v31 = vld [vmem:[%s8524_s27 + $0x60] ss:$16 sps:$4 sm:$0xff]  }
 0x53f   : > { %5518 = vmatprep.subr.bf16.mxu1 %v8209_v32  ;;  %v8320_v32 = vld [vmem:[%s8524_s27 + $0x44] ss:$16 sps:$4 sm:$0xff]  }
 0x541   : > { %5252 = vmatpush1.bf16.msra.mxu0 %v8192_v10  ;;  %v8273_v10 = vld [vmem:[%s8519_s30 + $0x88] ss:$16 sps:$4 sm:$0xff]  }
 0x542   : > { %5253 = vmatprep.subr.bf16.mxu0 %v8200_v33  ;;  %5519 = vmatpush1.bf16.msra.mxu1 %v8207_v18  ;;  %v8278_v33 = vld [vmem:[%s8519_s30 + $0x6c] ss:$16 sps:$4 sm:$0xff]   ;;  %v8318_v18 = vld [vmem:[%s8524_s27 + $0x40] ss:$16 sps:$4 sm:$0xff]  }
 0x543   : > { %5520 = vmatprep.subr.bf16.mxu1 %v8215_v34  ;;  %v8326_v34 = vld [vmem:[%s8524_s27 + $0x24] ss:$16 sps:$4 sm:$0xff]  }
 0x545   : > { %5254 = vmatpush1.bf16.msra.mxu0 %v8198_v21  ;;  %v8281_v21 = vld [vmem:[%s8519_s30 + $0x4c] ss:$16 sps:$4 sm:$0xff]  }
 0x546   : > { %5255 = vmatprep.subr.bf16.mxu0 %v8206_v38  ;;  %5521 = vmatpush1.bf16.msra.mxu1 %v8213_v56  ;;  %v8324_v38 = vld [vmem:[%s8524_s27 + $0x20] ss:$16 sps:$4 sm:$0xff]   ;;  %v8332_v56 = vld [vmem:[%s8524_s27 + $0x4] ss:$16 sps:$4 sm:$0xff]  }
 0x547   : > { %5822 = vmatprep.subr.bf16.mxu1 %v8221_v57  ;;  %v8279_v57 = vld [vmem:[%s8519_s30 + $0x48] ss:$16 sps:$4 sm:$0xff]  }
 0x549   : > { %5256 = vmatpush1.bf16.msra.mxu0 %v8204_v40  ;;  %5539 = vmatmul.mubr.bf16.vlgmr.msra.gmra.mxu1 %v8975_v13  ;;  %v8284_v40 = vld [vmem:[%s8519_s30 + $0x2c] ss:$16 sps:$4 sm:$0xff]  }
 0x54a   : > { %5257 = vmatprep.subr.bf16.mxu0 %v8212_v43  ;;  %5823 = vmatpush1.bf16.msra.mxu1 %v8219_v36  ;;  %v8330_v43 = vld [vmem:[%s8524_s27] ss:$16 sps:$4 sm:$0xff]   ;;  %v8282_v36 = vld [vmem:[%s8519_s30 + $0x28] ss:$16 sps:$4 sm:$0xff]  }
 0x54b   : > { %5824 = vmatprep.subr.bf16.mxu1 %v8227_v41  ;;  %5548 = vmatprep.mubr.bf16.mxu1 %v8375_v39  ;;  %v8287_v41 = vld [vmem:[%s8519_s30 + $0xc] ss:$16 sps:$4 sm:$0xff]  }
 0x54d   : > { %5258 = vmatpush1.bf16.msra.mxu0 %v8210_v42  ;;  %v8285_v42 = vld [vmem:[%s8519_s30 + $0x8] ss:$16 sps:$4 sm:$0xff]  }
 0x54e   : > { %5559 = vmatprep.subr.bf16.mxu0 %v8218_v47  ;;  %5825 = vmatpush1.bf16.msra.mxu1 %v8225_v50  ;;  %v8293_v47 = vld [vmem:[%s8524_s27 + $0xec] ss:$16 sps:$4 sm:$0xff]   ;;  %v8291_v50 = vld [vmem:[%s8524_s27 + $0xe8] ss:$16 sps:$4 sm:$0xff]  }
 0x54f   : > { %5826 = vmatprep.subr.bf16.mxu1 %v8233_v52  ;;  %v8299_v52 = vld [vmem:[%s8524_s27 + $0xcc] ss:$16 sps:$4 sm:$0xff]  }
 0x550   : > { %5276 = vmatmul.mubr.bf16.vlgmr.msra.gmra.mxu0 %v8911_v58  ;;  %v8245_v58 = vld [vmem:[%s8519_s30 + $0x64] ss:$16 sps:$4 sm:$0xff]  }
 0x551   : > { %5560 = vmatpush1.bf16.msra.mxu0 %v8216_v53  ;;  %5285 = vmatprep.mubr.bf16.mxu0 %v8375_v39  ;;  %v8297_v53 = vld [vmem:[%s8524_s27 + $0xc8] ss:$16 sps:$4 sm:$0xff]  }
 0x552   : > { %5561 = vmatprep.subr.bf16.mxu0 %v8224_v26  ;;  %5549 = vmatmul.mubr.bf16.gmra.mxu1 %v8970_v9  ;;  %v8305_v26 = vld [vmem:[%s8524_s27 + $0xac] ss:$16 sps:$4 sm:$0xff]  }
 0x553   : > { %5827 = vmatpush1.bf16.msra.mxu1 %v8231_v45  ;;  %5854 = vmatprep.mubr.bf16.mxu1 %v8375_v39  ;;  %v8303_v45 = vld [vmem:[%s8524_s27 + $0xa8] ss:$16 sps:$4 sm:$0xff]  }
 0x554   : > { %5828 = vmatprep.subr.bf16.mxu1 %v8239_v55  ;;  %v8311_v55 = vld [vmem:[%s8524_s27 + $0x8c] ss:$16 sps:$4 sm:$0xff]  }
 0x555   : > { %5562 = vmatpush1.bf16.msra.mxu0 %v8222_v60  ;;  %v8317_v60 = vld [vmem:[%s8524_s27 + $0x6c] ss:$16 sps:$4 sm:$0xff]  }
 0x556   : > { %5563 = vmatprep.subr.bf16.mxu0 %v8230_v62  ;;  %v8315_v62 = vld [vmem:[%s8524_s27 + $0x68] ss:$16 sps:$4 sm:$0xff]  }
 0x557   : > { %5829 = vmatpush1.bf16.msra.mxu1 %v8237_v0  ;;  %v8323_v0 = vld [vmem:[%s8524_s27 + $0x4c] ss:$16 sps:$4 sm:$0xff]  }
 0x558   : > { %5286 = vmatmul.mubr.bf16.gmra.mxu0 %v8909_v54  ;;  %5830 = vmatprep.subr.bf16.mxu1 %v8245_v58  ;;  %v8240_v54 = vld [vmem:[%s9343_s28 + $0x68] ss:$16 sps:$4 sm:$0xff]  }
 0x559   : > { %5564 = vmatpush1.bf16.msra.mxu0 %v8228_v1  ;;  %5591 = vmatprep.mubr.bf16.mxu0 %v8375_v39  ;;  %v8321_v58 = vld [vmem:[%s8524_s27 + $0x48] ss:$16 sps:$4 sm:$0xff]   ;;  %v8329_v1 = vld [vmem:[%s8524_s27 + $0x2c] ss:$16 sps:$4 sm:$0xff]  }
 0x55a   : > { %5565 = vmatprep.subr.bf16.mxu0 %v8236_v2  ;;  %v8327_v2 = vld [vmem:[%s8524_s27 + $0x28] ss:$16 sps:$4 sm:$0xff]  }
 0x55b   : > { %5831 = vmatpush1.bf16.msra.mxu1 %v8243_v27  ;;  %v8333_v27 = vld [vmem:[%s8524_s27 + $0x8] ss:$16 sps:$4 sm:$0xff]  }
 0x55c   : > { %5832 = vmatprep.subr.bf16.mxu1 %v8251_v3 }
 0x55d   : > { %5566 = vmatpush1.bf16.msra.mxu0 %v8234_v6 }
 0x55e   : > { %5567 = vmatprep.subr.bf16.mxu0 %v8242_v7 }
 0x55f   : > { %5833 = vmatpush1.bf16.msra.mxu1 %v8249_v8 }
 0x560   : > { %5834 = vmatprep.subr.bf16.mxu1 %v8257_v11 }
 0x561   : > { %5568 = vmatpush1.bf16.msra.mxu0 %v8240_v54 }
 0x562   : > { %5569 = vmatprep.subr.bf16.mxu0 %v8248_v12  ;;  %v6843_v12 = vld [vmem:[%s9344_s1] ss:$0 sm:$0xff] }
 0x563   : > { %5835 = vmatpush1.bf16.msra.mxu1 %v8255_v14 }
 0x564   : > { %5836 = vmatprep.subr.bf16.mxu1 %v8263_v15 }
 0x565   : > { %5570 = vmatpush1.bf16.msra.mxu0 %v8246_v20 }
 0x566   : > { %5571 = vmatprep.subr.bf16.mxu0 %v8254_v16 }
 0x567   : > { %5837 = vmatpush1.bf16.msra.mxu1 %v8261_v17 }
 0x568   : > { %6138 = vmatprep.subr.bf16.mxu1 %v8290_v19 }
 0x569   : > { %5572 = vmatpush1.bf16.msra.mxu0 %v8252_v37 }
 0x56a   : > { %5573 = vmatprep.subr.bf16.mxu0 %v8260_v63  ;;  %5855 = vmatmul.mubr.bf16.vlgmr.msra.gmra.mxu1 %v9031_v5 }
 0x56b   : > { %5864 = vmatprep.mubr.bf16.mxu1 %v8375_v39  ;;  %6139 = vmatpush1.bf16.msra.mxu1 %v8288_v22 }
 0x56c   : > { %6140 = vmatprep.subr.bf16.mxu1 %v8296_v61 }
 0x56d   : > { %5574 = vmatpush1.bf16.msra.mxu0 %v8258_v59 }
 0x56e   : > { %5875 = vmatprep.subr.bf16.mxu0 %v8266_v44 }
 0x56f   : > { %6141 = vmatpush1.bf16.msra.mxu1 %v8294_v35 }
 0x570   : > { %5592 = vmatmul.mubr.bf16.vlgmr.msra.gmra.mxu0 %v8975_v13  ;;  %6142 = vmatprep.subr.bf16.mxu1 %v8302_v46  ;;  %v8314_v13 = vld [vmem:[%s8524_s27 + $0x64] ss:$16 sps:$4 sm:$0xff]  }
 0x571   : > { %5876 = vmatpush1.bf16.msra.mxu0 %v8264_v49  ;;  %5601 = vmatprep.mubr.bf16.mxu0 %v8375_v39 }
 0x572   : > { %5877 = vmatprep.subr.bf16.mxu0 %v8269_v51  ;;  %5865 = vmatmul.mubr.bf16.gmra.mxu1 %v9029_v25 }
 0x573   : > { %6143 = vmatpush1.bf16.msra.mxu1 %v8300_v48  ;;  %6170 = vmatprep.mubr.bf16.mxu1 %v8375_v39 }
 0x574   : > { %6144 = vmatprep.subr.bf16.mxu1 %v8308_v23 }
 0x575   : > { %5878 = vmatpush1.bf16.msra.mxu0 %v8267_v24 }
 0x576   : > { %5879 = vmatprep.subr.bf16.mxu0 %v8272_v4 }
 0x577   : > { %6145 = vmatpush1.bf16.msra.mxu1 %v8306_v28 }
 0x578   : > { %5602 = vmatmul.mubr.bf16.gmra.mxu0 %v8970_v9  ;;  %6146 = vmatprep.subr.bf16.mxu1 %v8314_v13  ;;  %v8276_v9 = vld [vmem:[%s8519_s30 + $0x68] ss:$16 sps:$4 sm:$0xff]  }
 0x579   : > { %5880 = vmatpush1.bf16.msra.mxu0 %v8270_v29  ;;  %5907 = vmatprep.mubr.bf16.mxu0 %v8375_v39 }
 0x57a   : > { %5881 = vmatprep.subr.bf16.mxu0 %v8275_v30 }
 0x57b   : > { %6147 = vmatpush1.bf16.msra.mxu1 %v8312_v31 }
 0x57c   : > { %6148 = vmatprep.subr.bf16.mxu1 %v8320_v32 }
 0x57d   : > { %5882 = vmatpush1.bf16.msra.mxu0 %v8273_v10 }
 0x57e   : > { %5883 = vmatprep.subr.bf16.mxu0 %v8278_v33 }
 0x57f   : > { %6149 = vmatpush1.bf16.msra.mxu1 %v8318_v18 }
 0x580   : > { %6150 = vmatprep.subr.bf16.mxu1 %v8326_v34 }
 0x581   : > { %5884 = vmatpush1.bf16.msra.mxu0 %v8276_v9 }
 0x582   : > { %5885 = vmatprep.subr.bf16.mxu0 %v8281_v21 }
 0x583   : > { %6151 = vmatpush1.bf16.msra.mxu1 %v8324_v38 }
 0x584   : > { %6152 = vmatprep.subr.bf16.mxu1 %v8332_v56 }
 0x585   : > { %5886 = vmatpush1.bf16.msra.mxu0 %v8279_v57 }
 0x586   : > { %5887 = vmatprep.subr.bf16.mxu0 %v8284_v40 }
 0x587   : > { %6153 = vmatpush1.bf16.msra.mxu1 %v8330_v43 }
 0x589   : > { %5888 = vmatpush1.bf16.msra.mxu0 %v8282_v36 }
 0x58a   : > { %5889 = vmatprep.subr.bf16.mxu0 %v8287_v41 }
 0x58d   : > { %5890 = vmatpush1.bf16.msra.mxu0 %v8285_v42 }
 0x58e   : > { %6191 = vmatprep.subr.bf16.mxu0 %v8293_v47 }
 0x590   : > { %5908 = vmatmul.mubr.bf16.vlgmr.msra.gmra.mxu0 %v9031_v5  ;;  %v8309_v5 = vld [vmem:[%s8524_s27 + $0x88] ss:$16 sps:$4 sm:$0xff]  }
 0x591   : > { %5917 = vmatprep.mubr.bf16.mxu0 %v8375_v39  ;;  %6192 = vmatpush1.bf16.msra.mxu0 %v8291_v50 }
 0x592   : > { %6193 = vmatprep.subr.bf16.mxu0 %v8299_v52 }
 0x595   : > { %6194 = vmatpush1.bf16.msra.mxu0 %v8297_v53 }
 0x596   : > { %6195 = vmatprep.subr.bf16.mxu0 %v8305_v26 }
 0x598   : > { %5918 = vmatmul.mubr.bf16.gmra.mxu0 %v9029_v25  ;;  %v8335_v25 = vld [vmem:[%s8524_s27 + $0xc] ss:$16 sps:$4 sm:$0xff]  }
 0x599   : > { %6196 = vmatpush1.bf16.msra.mxu0 %v8303_v45  ;;  %6223 = vmatprep.mubr.bf16.mxu0 %v8375_v39 }
 0x59a   : > { %6197 = vmatprep.subr.bf16.mxu0 %v8311_v55 }
 0x59d   : > { %6198 = vmatpush1.bf16.msra.mxu0 %v8309_v5 }
 0x59e   : > { %6199 = vmatprep.subr.bf16.mxu0 %v8317_v60 }
 0x5a1   : > { %6200 = vmatpush1.bf16.msra.mxu0 %v8315_v62 }
 0x5a2   : > { %6201 = vmatprep.subr.bf16.mxu0 %v8323_v0 }
 0x5a5   : > { %6202 = vmatpush1.bf16.msra.mxu0 %v8321_v58 }
 0x5a6   : > { %6203 = vmatprep.subr.bf16.mxu0 %v8329_v1 }
 0x5a9   : > { %6204 = vmatpush1.bf16.msra.mxu0 %v8327_v2 }
 0x5aa   : > { %6205 = vmatprep.subr.bf16.mxu0 %v8335_v25 }
 0x5ad   : > { %6206 = vmatpush1.bf16.msra.mxu0 %v8333_v27  ;;  %v4976_v27 = vlaneseq }
 0x5c8   : > { %v7804_v7 = vpop.f32.mrf.mxu1 }
 0x5ca   : > { %v4831_v11 = vpop.f32.mrf.mxu1 }
 0x5cc   : > { %v7805_v14 = vpop.f32.mrf.mxu1 }
 0x5ce   : > { %v4834_v19 = vpop.f32.mrf.mxu1 }
 0x5d0   : > { %v7784_v3 = vpop.f32.mrf.mxu0 }
 0x5d1   : > { %v4724_v46 = vadd.f32 %v7784_v3, %v6843_v12 }
 0x5d2   : > { %v4707_v6 = vpop.f32.mrf.mxu0 }
 0x5d3   : > { %v4722_v20 = vadd.f32 %v6843_v12, %v4707_v6  ;;  %v4848_v48 = vadd.f32 %v7804_v7, %v4724_v46  ;;  %v4977_v7 = vshrl.u32 %v4976_v27, 7 }
 0x5d4   : > { %v7785_v8 = vpop.f32.mrf.mxu0 }
 0x5d5   : > { %v4846_v63 = vadd.f32 %v4831_v11, %v4722_v20  ;;  %v4725_v59 = vadd.f32 %v7785_v8, %v6843_v12  ;;  %v4986_v20 = vsub.s32 2, %v4977_v7 }
 0x5d6   : > { %v4710_v54 = vpop.f32.mrf.mxu0 }
 0x5d7   : > { %v4723_v16 = vadd.f32 %v6843_v12, %v4710_v54  ;;  %v4849_v51 = vadd.f32 %v7805_v14, %v4725_v59  ;;  %v4978_v54 = vsub.s32 0, %v4977_v7  ;;  %v4982_v12 = vsub.s32 1, %v4977_v7  ;;  %v4974_v14 = vld [vmem:[%s8529_s4] sm:$0xf] }
 0x5d9   : > { %v4847_v22 = vadd.f32 %v4834_v19, %v4723_v16  ;;  %v4990_v16 = vsub.s32 3, %v4977_v7  ;;  %v4979_v19 = vrot.slane %v4974_v14, %v4978_v54 }
 0x5e9   : > { %v5224_v28 = vpop.f32.mrf.mxu1 }
 0x5eb   : > { %v5226_v29 = vpop.f32.mrf.mxu1 }
 0x5ed   : > { %v5228_v31 = vpop.f32.mrf.mxu1 }
 0x5ee   : > { %v5300_v46 = vadd.f32 %v5228_v31, %v4979_v19 }
 0x5ef   : > { %v5230_v10 = vpop.f32.mrf.mxu1 }
 0x5f0   : > { %v7824_v15 = vpop.f32.mrf.mxu0 }
 0x5f1   : > { %v4972_v24 = vadd.f32 %v7824_v15, %v4848_v48  ;;  %v5234_v18 = vpop.f32.mrf.mxu1 }
 0x5f2   : > { %v4955_v17 = vpop.f32.mrf.mxu0 }
 0x5f3   : > { %v4970_v44 = vadd.f32 %v4955_v17, %v4846_v63  ;;  %v5236_v34 = vpop.f32.mrf.mxu1 }
 0x5f4   : > { %v7825_v37 = vpop.f32.mrf.mxu0 }
 0x5f5   : > { %v4973_v23 = vadd.f32 %v7825_v37, %v4849_v51  ;;  %v5238_v21 = vpop.f32.mrf.mxu1  ;;  %v4983_v37 = vrot.slane %v4974_v14, %v4982_v12  ;;  %v5304_v51 = vadd.f32 %v5234_v18, %v4979_v19 }
 0x5f6   : > { %v4958_v61 = vpop.f32.mrf.mxu0 }
 0x5f7   : > { %v4971_v35 = vadd.f32 %v4958_v61, %v4847_v22  ;;  %v5945_v4 = vpack.c.bf16 %v4973_v23, %v4972_v24  ;;  %v5240_v56 = vpop.f32.mrf.mxu1  ;;  %v4987_v22 = vrot.slane %v4974_v14, %v4986_v20  ;;  %v4991_v61 = vrot.slane %v4974_v14, %v4990_v16 }
 0x5f8   : > { %v5305_v48 = vadd.f32 %v5236_v34, %v4983_v37  ;;  %v5308_v23 = vadd.f32 %v5238_v21, %v4979_v19  ;;  %v5309_v24 = vadd.f32 %v5240_v56, %v4983_v37 }
 0x5f9   : > { %v5944_v49 = vpack.c.bf16 %v4971_v35, %v4970_v44  ;;  %v5296_v44 = vadd.f32 %v5224_v28, %v4979_v19  ;;  %v5297_v35 = vadd.f32 %v5226_v29, %v4983_v37 }
 0x5fb   : > { %6171 = vmatmul.mubr.bf16.vlgmr.msra.gmra.mxu1 %v5944_v49  ;;  %6224 = vmatmul.mubr.bf16.vlgmr.msra.gmra.mxu0 %v5944_v49  ;;  %v5301_v49 = vadd.f32 %v5230_v10, %v4983_v37 }
 0x5fc   : > { %6180 = vmatprep.mubr.bf16.mxu1 %v8375_v39  ;;  %6233 = vmatprep.mubr.bf16.mxu0 %v8375_v39 }
 0x603   : > { %6181 = vmatmul.mubr.bf16.gmra.mxu1 %v5945_v4  ;;  %6234 = vmatmul.mubr.bf16.gmra.mxu0 %v5945_v4 }
 0x609   : > { %v5540_v40 = vpop.f32.mrf.mxu1 }
 0x60a   : > { %v5612_v4 = vadd.f32 %v5540_v40, %v5296_v44 }
 0x60b   : > { %v5542_v36 = vpop.f32.mrf.mxu1 }
 0x60c   : > { %v5613_v27 = vadd.f32 %v5542_v36, %v5297_v35 }
 0x60d   : > { %v5544_v42 = vpop.f32.mrf.mxu1 }
 0x60f   : > { %v5546_v50 = vpop.f32.mrf.mxu1 }
 0x610   : > { %v9218_v13 = vpop.f32.mrf.mxu0 }
 0x611   : > { %v5298_v54 = vadd.f32 %v9218_v13, %v4987_v22 }
 0x612   : > { %v9220_v30 = vpop.f32.mrf.mxu0  ;;  %v5550_v53 = vpop.f32.mrf.mxu1 }
 0x613   : > { %v5299_v12 = vadd.f32 %v9220_v30, %v4991_v61  ;;  %v5620_v20 = vadd.f32 %v5550_v53, %v5304_v51 }
 0x614   : > { %v9222_v32 = vpop.f32.mrf.mxu0  ;;  %v5552_v45 = vpop.f32.mrf.mxu1 }
 0x615   : > { %v5302_v14 = vadd.f32 %v9222_v32, %v4987_v22  ;;  %v5621_v10 = vadd.f32 %v5552_v45, %v5305_v48 }
 0x616   : > { %v9224_v33 = vpop.f32.mrf.mxu0  ;;  %v5554_v5 = vpop.f32.mrf.mxu1 }
 0x617   : > { %v5303_v29 = vadd.f32 %v9224_v33, %v4991_v61  ;;  %v5624_v18 = vadd.f32 %v5554_v5, %v5308_v23 }
 0x618   : > { %v9226_v39 = vpop.f32.mrf.mxu0  ;;  %v5556_v62 = vpop.f32.mrf.mxu1 }
 0x619   : > { %v5306_v31 = vadd.f32 %v9226_v39, %v4987_v22  ;;  %v5625_v40 = vadd.f32 %v5556_v62, %v5309_v24 }
 0x61a   : > { %v9228_v9 = vpop.f32.mrf.mxu0 }
 0x61b   : > { %v5307_v34 = vadd.f32 %v9228_v9, %v4991_v61 }
 0x61c   : > { %v9230_v38 = vpop.f32.mrf.mxu0 }
 0x61d   : > { %v5310_v21 = vadd.f32 %v9230_v38, %v4987_v22 }
 0x61e   : > { %v9232_v57 = vpop.f32.mrf.mxu0 }
 0x61f   : > { %v5311_v56 = vadd.f32 %v9232_v57, %v4991_v61 }
 0x62a   : > { %v5856_v58 = vpop.f32.mrf.mxu1 }
 0x62b   : > { %v5928_v30 = vadd.f32 %v5856_v58, %v5612_v4 }
 0x62c   : > { %v5858_v2 = vpop.f32.mrf.mxu1 }
 0x62d   : > { %v5929_v36 = vadd.f32 %v5858_v2, %v5613_v27 }
 0x62e   : > { %v5860_v3 = vpop.f32.mrf.mxu1 }
 0x630   : > { %v9234_v43 = vpop.f32.mrf.mxu0  ;;  %v5862_v8 = vpop.f32.mrf.mxu1 }
 0x631   : > { %v5614_v13 = vadd.f32 %v9234_v43, %v5298_v54 }
 0x632   : > { %v9236_v41 = vpop.f32.mrf.mxu0  ;;  %v5866_v15 = vpop.f32.mrf.mxu1 }
 0x633   : > { %v5936_v53 = vadd.f32 %v5866_v15, %v5620_v20 }
 0x634   : > { %v9238_v47 = vpop.f32.mrf.mxu0  ;;  %v5868_v63 = vpop.f32.mrf.mxu1 }
 0x635   : > { %v5618_v33 = vadd.f32 %v9238_v47, %v5302_v14  ;;  %v9269_v5 = vadd.f32 %v5868_v63, %v5621_v10 }
 0x636   : > { %v9240_v52 = vpop.f32.mrf.mxu0  ;;  %v5870_v7 = vpop.f32.mrf.mxu1 }
 0x637   : > { %v5619_v9 = vadd.f32 %v9240_v52, %v5303_v29  ;;  %v9271_v38 = vadd.f32 %v5870_v7, %v5624_v18 }
 0x638   : > { %v9242_v26 = vpop.f32.mrf.mxu0 }
 0x639   : > { %v5622_v43 = vadd.f32 %v9242_v26, %v5306_v31 }
 0x63a   : > { %v9244_v55 = vpop.f32.mrf.mxu0 }
 0x63b   : > { %v5623_v62 = vadd.f32 %v9244_v55, %v5307_v34 }
 0x63c   : > { %v9246_v60 = vpop.f32.mrf.mxu0 }
 0x63e   : > { %v9248_v0 = vpop.f32.mrf.mxu0 }
 0x650   : > { %v5909_v1 = vpop.f32.mrf.mxu0 }
 0x651   : > { %v5930_v57 = vadd.f32 %v5909_v1, %v5614_v13 }
 0x652   : > { %v9250_v25 = vpop.f32.mrf.mxu0 }
 0x654   : > { %v9252_v6 = vpop.f32.mrf.mxu0 }
 0x655   : > { %9345 = vst [vmem:[#allocation16_spill] sm:$0xff] %v9252_v6  ;;  %v5617_v6 = vadd.f32 %v5546_v50, %v5301_v49  ;;  %v5615_v50 = vadd.f32 %v9236_v41, %v5299_v12  ;;  %v5626_v41 = vadd.f32 %v9246_v60, %v5310_v21 }
 0x656   : > { %v9254_v11 = vpop.f32.mrf.mxu0 }
 0x657   : > { %9346 = vst [vmem:[#allocation17_spill] sm:$0xff] %v9254_v11  ;;  %v5616_v11 = vadd.f32 %v5544_v42, %v5300_v46  ;;  %v5872_v42 = vpop.f32.mrf.mxu1  ;;  %v5933_v39 = vadd.f32 %v5862_v8, %v5617_v6  ;;  %v5931_v52 = vadd.f32 %v9250_v25, %v5615_v50 }
 0x658   : > { %v5919_v17 = vpop.f32.mrf.mxu0  ;;  %v9276_v58 = vadd.f32 %v5872_v42, %v5625_v40 }
 0x659   : > { %v5932_v32 = vadd.f32 %v5860_v3, %v5616_v11  ;;  %v5627_v3 = vadd.f32 %v9248_v0, %v5311_v56  ;;  %v5938_v16 = vadd.f32 %v5919_v17, %v5622_v43 }
 0x65a   : > { %v5921_v59 = vpop.f32.mrf.mxu0 }
 0x65b   : > { %v5939_v19 = vadd.f32 %v5921_v59, %v5623_v62 }
 0x65c   : > { %v5923_v28 = vpop.f32.mrf.mxu0  ;;  %v9347_v11 = vld [vmem:[#allocation16_spill] sm:$0xff] }
 0x65d   : > { %v5934_v1 = vadd.f32 %v9347_v11, %v5618_v33  ;;  %v5942_v25 = vadd.f32 %v5923_v28, %v5626_v41 }
 0x65e   : > { %v5925_v45 = vpop.f32.mrf.mxu0  ;;  %v9348_v15 = vld [vmem:[#allocation17_spill] sm:$0xff] }
 0x65f   : > { %v5935_v26 = vadd.f32 %v9348_v15, %v5619_v9  ;;  %v9287_v63 = vadd.f32 %v5925_v45, %v5627_v3 }
 0x6bb   : > { %v6172_v47 = vpop.f32.mrf.mxu1  ;;  %v6225_v2 = vpop.f32.mrf.mxu0 }
 0x6bc   : > { %v6244_v6 = vadd.f32 %v6172_v47, %v5928_v30  ;;  %v6246_v8 = vadd.f32 %v6225_v2, %v5930_v57 }
 0x6bd   : > { %v6174_v37 = vpop.f32.mrf.mxu1  ;;  %v6227_v55 = vpop.f32.mrf.mxu0 }
 0x6be   : > { %vm6260_vm2 = vcmp.gt.f32.partialorder %v6244_v6, 0.0  ;;  %v6276_v60 = vmul.f32 0.1, %v6244_v6  ;;  %vm6262_vm3 = vcmp.gt.f32.partialorder %v6246_v8, 0.0  ;;  %v6278_v0 = vmul.f32 0.1, %v6246_v8 }
 0x6bf   : > { %v6245_v22 = vadd.f32 %v6174_v37, %v5929_v36  ;;  %v6247_v61 = vadd.f32 %v6227_v55, %v5931_v52  ;;  %v6176_v44 = vpop.f32.mrf.mxu1  ;;  %v6229_v35 = vpop.f32.mrf.mxu0 }
 0x6c0   : > { %v6292_v17 = vsel %vm6260_vm2, %v6244_v6, %v6276_v60  ;;  %v6294_v59 = vsel %vm6262_vm3, %v6246_v8, %v6278_v0  ;;  %v6248_v46 = vadd.f32 %v6176_v44, %v5932_v32  ;;  %v6250_v49 = vadd.f32 %v6229_v35, %v5934_v1 }
 0x6c1   : > { %6308 = vst [vmem:[%s9285_s7] sm:$0xff] %v6292_v17  ;;  %6310 = vst [vmem:[%s9285_s7 + $0x10] sm:$0xff] %v6294_v59  ;;  %vm6261_vm4 = vcmp.gt.f32.partialorder %v6245_v22, 0.0  ;;  %v6277_v51 = vmul.f32 0.1, %v6245_v22  ;;  %vm6263_vm5 = vcmp.gt.f32.partialorder %v6247_v61, 0.0  ;;  %v6178_v23 = vpop.f32.mrf.mxu1  ;;  %v6231_v24 = vpop.f32.mrf.mxu0 }
 0x6c2   : > { %v6279_v48 = vmul.f32 0.1, %v6247_v61  ;;  %vm6264_vm6 = vcmp.gt.f32.partialorder %v6248_v46, 0.0  ;;  %v6280_v4 = vmul.f32 0.1, %v6248_v46  ;;  %vm6266_vm7 = vcmp.gt.f32.partialorder %v6250_v49, 0.0 }
 0x6c3   : > { %v6282_v27 = vmul.f32 0.1, %v6250_v49  ;;  %v6293_v7 = vsel %vm6261_vm4, %v6245_v22, %v6277_v51  ;;  %v6249_v12 = vadd.f32 %v6178_v23, %v5933_v39  ;;  %v6251_v14 = vadd.f32 %v6231_v24, %v5935_v26  ;;  %v6182_v20 = vpop.f32.mrf.mxu1  ;;  %v6235_v28 = vpop.f32.mrf.mxu0 }
 0x6c4   : > { %v6295_v54 = vsel %vm6263_vm5, %v6247_v61, %v6279_v48  ;;  %6309 = vst [vmem:[%s9285_s7 + $0x8] sm:$0xff] %v6293_v7  ;;  %v6296_v29 = vsel %vm6264_vm6, %v6248_v46, %v6280_v4  ;;  %v6252_v10 = vadd.f32 %v6182_v20, %v5936_v53  ;;  %v6254_v18 = vadd.f32 %v6235_v28, %v5938_v16 }
 0x6c5   : > { %6311 = vst [vmem:[%s9285_s7 + $0x18] sm:$0xff] %v6295_v54  ;;  %v6298_v31 = vsel %vm6266_vm7, %v6250_v49, %v6282_v27  ;;  %6312 = vst [vmem:[%s9285_s7 + $0x20] sm:$0xff] %v6296_v29  ;;  %vm6265_vm8 = vcmp.gt.f32.partialorder %v6249_v12, 0.0  ;;  %v6281_v34 = vmul.f32 0.1, %v6249_v12  ;;  %vm6267_vm9 = vcmp.gt.f32.partialorder %v6251_v14, 0.0  ;;  %v6184_v56 = vpop.f32.mrf.mxu1  ;;  %v6237_v40 = vpop.f32.mrf.mxu0 }
 0x6c6   : > { %6314 = vst [vmem:[%s9285_s7 + $0x30] sm:$0xff] %v6298_v31  ;;  %v6283_v21 = vmul.f32 0.1, %v6251_v14  ;;  %vm6268_vm10 = vcmp.gt.f32.partialorder %v6252_v10, 0.0  ;;  %v6284_v13 = vmul.f32 0.1, %v6252_v10  ;;  %v6253_v42 = vadd.f32 %v6184_v56, %v9269_v5 }
 0x6c7   : > { %vm6270_vm11 = vcmp.gt.f32.partialorder %v6254_v18, 0.0  ;;  %v6286_v30 = vmul.f32 0.1, %v6254_v18  ;;  %v6297_v36 = vsel %vm6265_vm8, %v6249_v12, %v6281_v34  ;;  %v6255_v50 = vadd.f32 %v6237_v40, %v5939_v19  ;;  %v6186_v33 = vpop.f32.mrf.mxu1  ;;  %v6239_v39 = vpop.f32.mrf.mxu0 }
 0x6c8   : > { %v6299_v32 = vsel %vm6267_vm9, %v6251_v14, %v6283_v21  ;;  %6313 = vst [vmem:[%s9285_s7 + $0x28] sm:$0xff] %v6297_v36  ;;  %v6300_v53 = vsel %vm6268_vm10, %v6252_v10, %v6284_v13  ;;  %v6256_v9 = vadd.f32 %v6186_v33, %v9271_v38  ;;  %v6258_v57 = vadd.f32 %v6239_v39, %v5942_v25 }
 0x6c9   : > { %6315 = vst [vmem:[%s9285_s7 + $0x38] sm:$0xff] %v6299_v32  ;;  %v6302_v45 = vsel %vm6270_vm11, %v6254_v18, %v6286_v30  ;;  %6316 = vst [vmem:[%s9285_s7 + $0x40] sm:$0xff] %v6300_v53  ;;  %vm6269_vm12 = vcmp.gt.f32.partialorder %v6253_v42, 0.0  ;;  %v6285_v43 = vmul.f32 0.1, %v6253_v42  ;;  %vm6271_vm13 = vcmp.gt.f32.partialorder %v6255_v50, 0.0  ;;  %v6188_v5 = vpop.f32.mrf.mxu1  ;;  %v6241_v41 = vpop.f32.mrf.mxu0 }
 0x6ca   : > { %6318 = vst [vmem:[%s9285_s7 + $0x50] sm:$0xff] %v6302_v45  ;;  %v6287_v62 = vmul.f32 0.1, %v6255_v50  ;;  %vm6272_vm14 = vcmp.gt.f32.partialorder %v6256_v9, 0.0  ;;  %v6288_v47 = vmul.f32 0.1, %v6256_v9  ;;  %v6257_v52 = vadd.f32 %v6188_v5, %v9276_v58 }
 0x6cb   : > { %vm6274_vm15 = vcmp.gt.f32.partialorder %v6258_v57, 0.0  ;;  %v6290_v2 = vmul.f32 0.1, %v6258_v57  ;;  %v6301_v3 = vsel %vm6269_vm12, %v6253_v42, %v6285_v43  ;;  %v6259_v6 = vadd.f32 %v6241_v41, %v9287_v63 }
 0x6cc   : > { %v6303_v38 = vsel %vm6271_vm13, %v6255_v50, %v6287_v62  ;;  %6317 = vst [vmem:[%s9285_s7 + $0x48] sm:$0xff] %v6301_v3  ;;  %v6304_v8 = vsel %vm6272_vm14, %v6256_v9, %v6288_v47  ;;  %vm6273_vm0 = vcmp.gt.f32.partialorder %v6257_v52, 0.0  ;;  %v6289_v1 = vmul.f32 0.1, %v6257_v52 }
 0x6cd   : > { %6319 = vst [vmem:[%s9285_s7 + $0x58] sm:$0xff] %v6303_v38  ;;  %v6306_v11 = vsel %vm6274_vm15, %v6258_v57, %v6290_v2  ;;  %6320 = vst [vmem:[%s9285_s7 + $0x60] sm:$0xff] %v6304_v8  ;;  %vm6275_vm1 = vcmp.gt.f32.partialorder %v6259_v6, 0.0  ;;  %v6291_v15 = vmul.f32 0.1, %v6259_v6 }
 0x6ce   : > { %6322 = vst [vmem:[%s9285_s7 + $0x70] sm:$0xff] %v6306_v11  ;;  %v6305_v26 = vsel %vm6273_vm0, %v6257_v52, %v6289_v1 }
 0x6cf   : > { %v6307_v16 = vsel %vm6275_vm1, %v6259_v6, %v6291_v15  ;;  %6321 = vst [vmem:[%s9285_s7 + $0x68] sm:$0xff] %v6305_v26 }
 0x6d0   : > { %6323 = vst [vmem:[%s9285_s7 + $0x78] sm:$0xff] %v6307_v16 }
 0x6d1 PF: > { %s71_s15 = sadd.s32 1, %s8342_s15  }
 0x6d2   : > { %p68_p4 = scmp.ge.s32.totalorder %s71_s15, 4  }
 0x6d4   :  { %70 = sbr.rel (!%p68_p4) target bundleno = 45 (0x2d), region = 212 }

// kernel: _lambda_.2
= control target key start
LH: loop header
LB: loop body
LE: loop exit
PB: predicated region body
PF: predicated region fallthrough
CT: control target
= control target key end

     0   :  { %s9893_s6 = smov 1   ;;  %s9894_s10 = smov 2   ;;  %s11038_s0 = inlined_call_operand.smem [shape: u32[33], index: -1, kind: input, shape index: {}] }
   0x1   :  { %s9959_s5 = sld [smem:[%s11038_s0]]   ;;  %s9895_s14 = smov 3  }
   0x2   :  { %s9964_s9 = sld [smem:[%s11038_s0 + %s9893_s6]]   ;;  %s9896_s18 = smov 4  }
   0x3   :  { %s9969_s13 = sld [smem:[%s11038_s0 + %s9894_s10]]   ;;  %s9897_s22 = smov 5  }
   0x4   :  { %s9974_s17 = sld [smem:[%s11038_s0 + %s9895_s14]]   ;;  %s9898_s26 = smov 6  }
   0x5   :  { %s9979_s21 = sld [smem:[%s11038_s0 + %s9896_s18]]   ;;  %s9899_s30 = smov 7  }
   0x6   :  { %s9984_s25 = sld [smem:[%s11038_s0 + %s9897_s22]]   ;;  %s9900_s4 = smov 8  }
   0x7   :  { %11053 = sst [smem:[#allocation45_spill]] %s9959_s5  ;;  %s9901_s10 = smov 9  }
   0x8   :  { %s9989_s29 = sld [smem:[%s11038_s0 + %s9898_s26]]   ;;  %s9902_s15 = smov 10  }
   0x9   :  { %11054 = sst [smem:[#allocation46_spill]] %s9969_s13  ;;  %s9903_s20 = smov 11  }
   0xa   :  { %11055 = sst [smem:[#allocation47_spill]] %s9974_s17  ;;  %s9904_s26 = smov 12  }
   0xb   :  { %s9994_s3 = sld [smem:[%s11038_s0 + %s9899_s30]]   ;;  %s9905_s1 = smov 13  }
   0xc   :  { %11056 = sst [smem:[#allocation48_spill]] %s9984_s25  ;;  %s9906_s7 = smov 14  }
   0xd   :  { %s9999_s8 = sld [smem:[%s11038_s0 + %s9900_s4]]   ;;  %s9908_s22 = smov 16  }
   0xe   :  { %s10004_s14 = sld [smem:[%s11038_s0 + %s9901_s10]]   ;;  %s9909_s28 = smov 17  }
   0xf   :  { %s10009_s19 = sld [smem:[%s11038_s0 + %s9902_s15]]   ;;  %s9907_s15 = smov 15  }
  0x10   :  { %s10014_s24 = sld [smem:[%s11038_s0 + %s9903_s20]]  }
  0x11   :  { %11057 = sst [smem:[#allocation49_spill]] %s9994_s3 }
  0x12   :  { %s10019_s30 = sld [smem:[%s11038_s0 + %s9904_s26]]  }
  0x13   :  { %s10024_s6 = sld [smem:[%s11038_s0 + %s9905_s1]]  }
  0x14   :  { %11058 = sst [smem:[#allocation50_spill]] %s10004_s14 }
  0x15   :  { %s10029_s12 = sld [smem:[%s11038_s0 + %s9906_s7]]   ;;  %s9910_s7 = smov 18  }
  0x16   :  { %s10034_s20 = sld [smem:[%s11038_s0 + %s9907_s15]]   ;;  %s9911_s15 = smov 19  }
  0x17   :  { %s10039_s27 = sld [smem:[%s11038_s0 + %s9908_s22]]   ;;  %s9912_s22 = smov 20  }
  0x18   :  { %s10044_s4 = sld [smem:[%s11038_s0 + %s9909_s28]]   ;;  %s9913_s28 = smov 21  }
  0x19   :  { %11059 = sst [smem:[#allocation51_spill]] %s10024_s6 }
  0x1a   :  { %s10049_s14 = sld [smem:[%s11038_s0 + %s9910_s7]]   ;;  %s9914_s7 = smov 22  }
  0x1b   :  { %11060 = sst [smem:[#allocation52_spill]] %s10029_s12 }
  0x1c   :  { %11061 = sst [smem:[#allocation53_spill]] %s10034_s20 }
  0x1d   :  { %s10054_s3 = sld [smem:[%s11038_s0 + %s9911_s15]]   ;;  %s9915_s15 = smov 23  }
  0x1e   :  { %11062 = sst [smem:[#allocation54_spill]] %s10044_s4 }
  0x1f   :  { %s10059_s25 = sld [smem:[%s11038_s0 + %s9912_s22]]   ;;  %s9916_s22 = smov 24  }
  0x20   :  { %11063 = sst [smem:[#allocation55_spill]] %s10049_s14 }
  0x21   :  { %s10064_s4 = sld [smem:[%s11038_s0 + %s9913_s28]]   ;;  %s9917_s28 = smov 25  }
  0x22   :  { %s10069_s13 = sld [smem:[%s11038_s0 + %s9914_s7]]   ;;  %s9918_s7 = smov 26  }
  0x23   :  { %11064 = sst [smem:[#allocation56_spill]] %s10054_s3 }
  0x24   :  { %s10074_s5 = sld [smem:[%s11038_s0 + %s9915_s15]]   ;;  %s9919_s15 = smov 27  }
  0x25   :  { %11065 = sst [smem:[#allocation57_spill]] %s10059_s25 }
  0x26   :  { %s10079_s25 = sld [smem:[%s11038_s0 + %s9916_s22]]   ;;  %s9920_s22 = smov 28  }
  0x27   :  { %11066 = sst [smem:[#allocation58_spill]] %s10064_s4 }
  0x28   :  { %s10084_s4 = sld [smem:[%s11038_s0 + %s9917_s28]]   ;;  %s9921_s28 = smov 29  }
  0x29   :  { %s10089_s14 = sld [smem:[%s11038_s0 + %s9918_s7]]   ;;  %s9922_s7 = smov 30  }
  0x2a   :  { %11067 = sst [smem:[#allocation59_spill]] %s10074_s5 }
  0x2b   :  { %s10094_s5 = sld [smem:[%s11038_s0 + %s9919_s15]]   ;;  %s9923_s15 = smov 31  }
  0x2c   :  { %s10099_s20 = sld [smem:[%s11038_s0 + %s9920_s22]]   ;;  %s9924_s22 = smov 32  }
  0x2e   :  { %11068 = sst [smem:[#allocation60_spill]] %s10084_s4 }
  0x2f   :  { %11069 = sst [smem:[#allocation61_spill]] %s10089_s14 }
  0x30   :  { %s10104_s4 = sld [smem:[%s11038_s0 + %s9921_s28]]  }
  0x31   :  { %11070 = sst [smem:[#allocation62_spill]] %s10094_s5 }
  0x32   :  { %11071 = sst [smem:[#allocation63_spill]] %s10099_s20 }
  0x33   :  { %s10109_s14 = sld [smem:[%s11038_s0 + %s9922_s7]]  }
  0x34   :  { %s10114_s5 = sld [smem:[%s11038_s0 + %s9923_s15]]  }
  0x35   :  { %s10119_s20 = sld [smem:[%s11038_s0 + %s9924_s22]]  }
  0x36   :  { %70 = vsyncpa [#allocation4], 0 }
  0x37   :  { %71 = vsyncpa [#allocation6], 0 }
  0x38   :  { %72 = vsyncpa [#allocation9], 0 }
  0x39   :  { %73 = vsyncpa [#allocation12], 0 }
  0x3a   :  { %74 = vsyncpa [#allocation15], 0 }
  0x3b   :  { %75 = vsyncpa [#allocation18], 0 }
  0x3c   :  { %76 = vsyncpa [#allocation21], 0 }
  0x3d   :  { %77 = vsyncpa [#allocation24], 0 }
  0x3e   :  { %78 = vsyncpa [#allocation27], 0 }
  0x3f   :  { %79 = vsyncpa [#allocation30], 0 }
  0x40   :  { %80 = vsyncpa [#allocation33], 0  ;;  %s10121_s28 = smov 0  }
  0x41 LB: > { %s9925_s0 = smov [#allocation5]   ;;  %s10127_s2 = sadd.s32 4294967295, %s9891_s28   ;;  %s9891_s28 = sphi %s10121_s28, %s86_s28  }
  0x42   : > { %s822_s1 = sshll.u32 %s9925_s0, 4  ;;  %p7329_p0 = scmp.ge.s32.totalorder %s9891_s28, 1  ;;  %s823_s1 = int_to_ptr.vmem [resolvable:$true] %s822_s1 }
  0x43   : > { %p794_p1 = scmp.lt.s32.totalorder %s9891_s28, 3  ;;  %p11049_p2 = scmp.eq.s32.totalorder %s10127_s2, 0 }
  0x44   : > { %s9926_s10 = smov [#allocation8]   ;;  %s9927_s16 = smov [#allocation11]  }
  0x45   : > { %p10132_p3 = pnand %p7329_p0, %p794_p1  ;;  %s850_s11 = sshll.u32 %s9926_s10, 4  ;;  %s10138_s11 = int_to_ptr.vmem [resolvable:$true] %s850_s11 }
  0x46   : > { %s878_s18 = sshll.u32 %s9927_s16, 4  ;;  %s9928_s22 = smov [#allocation14]   ;;  %s10146_s18 = int_to_ptr.vmem [resolvable:$true] %s878_s18 }
  0x47   : > { %s11072_s7 = scalar_select %p10132_p3, 1, 0 }
  0x48   : > { %p8684_p4 = pneg %p10132_p3  ;;  %s10148_s23 = sshll.u32 %s9928_s22, 4  ;;  %s903_s23 = int_to_ptr.vmem [resolvable:$true] %s10148_s23 }
  0x49   : > { %s9332_s0 = scalar_lea.vmem %s823_s1, 4096  ;;  %p9340_p10 = scmp.lt.s32.totalorder %s823_s1, %s823_s1 }
  0x4a   : > { %p10142_p5 = pnand %p11049_p2, %p8684_p4  ;;  %p9333_p7 = scmp.ne.s32.totalorder %s823_s1, %s9332_s0 }
  0x4b   : > { %p9341_p11 = scmp.lt.s32.totalorder %s9332_s0, %s9332_s0 }
  0x4c   : > { %p10152_p6 = pneg %p10142_p5 }
  0x4d   : > { %p9342_p12 = por %p9341_p11, %p9340_p10 }
  0x4e   : > { %p9335_p8 = pnand %p9333_p7, %p10152_p6 }
  0x50   : > { %p9336_p9 = pneg %p9335_p8 }
  0x52   : > { %p9343_p13 = pnand %p9342_p12, %p9336_p9 }
  0x54   : > { %9346 = shalt.err (!%p9343_p13)
}
  0x55   : > { %s11047_s10 = smov 64   ;;  %s11075_s17 = sld [smem:[#allocation47_spill]] }
  0x56   : > { %s11050_s16 = smov 4   ;;  %s9358_s22 = scalar_lea.vmem %s10138_s11, 16 }
  0x57   : > { %p9359_p0 = scmp.ne.s32.totalorder %s10138_s11, %s9358_s22  ;;  %s9365_s0 = scalar_lea.vmem %s10138_s11, 32 }
  0x58   : > { %p9366_p7 = scmp.lt.s32.totalorder %s10138_s11, %s10138_s11  ;;  %p9367_p8 = scmp.lt.s32.totalorder %s9365_s0, %s9358_s22 }
  0x59   : > { %p9361_p1 = pnand %p9359_p0, %p10152_p6 }
  0x5a   : > { %p9368_p9 = por %p9367_p8, %p9366_p7 }
  0x5b   : > { %8690 = dma.hbm_to_vmem [thread:$0]  (!%p10142_p5), %s11075_s17, 4096, %s823_s1, [#allocation6], %s11047_s10, %s11047_s10, %s11050_s16  }
  0x5c   : > { %p9362_p4 = pneg %p9361_p1 }
  0x5e   : > { %p9369_p10 = pnand %p9368_p9, %p9362_p4 }
  0x60   : > { %9372 = shalt.err (!%p9369_p10)
}
  0x61   : > { %8696 = dma.hbm_to_vmem [thread:$0]  (!%p10142_p5), %s9989_s29, 16, %s10138_s11, [#allocation9]  }
  0x62   : > { %s9384_s1 = scalar_lea.vmem %s10146_s18, 16  ;;  %s9391_s10 = scalar_lea.vmem %s10146_s18, 32 }
  0x63   : > { %p9385_p11 = scmp.ne.s32.totalorder %s10146_s18, %s9384_s1  ;;  %p9392_p0 = scmp.lt.s32.totalorder %s10146_s18, %s10146_s18 }
  0x64   : > { %p9393_p1 = scmp.lt.s32.totalorder %s9391_s10, %s9384_s1 }
  0x65   : > { %p9387_p12 = pnand %p9385_p11, %p10152_p6 }
  0x66   : > { %p9394_p4 = por %p9393_p1, %p9392_p0 }
  0x67   : > { %p9388_p13 = pneg %p9387_p12 }
  0x69   : > { %p9395_p7 = pnand %p9394_p4, %p9388_p13 }
  0x6b   : > { %9398 = shalt.err (!%p9395_p7)
}
  0x6c   : > { %8702 = dma.hbm_to_vmem [thread:$0]  (!%p10142_p5), %s10009_s19, 16, %s10146_s18, [#allocation12]  }
  0x6d   : > { %s9410_s11 = scalar_lea.vmem %s903_s23, 16  ;;  %s9417_s22 = scalar_lea.vmem %s903_s23, 32 }
  0x6e   : > { %p9411_p8 = scmp.ne.s32.totalorder %s903_s23, %s9410_s11  ;;  %p9418_p11 = scmp.lt.s32.totalorder %s903_s23, %s903_s23 }
  0x6f   : > { %p9419_p12 = scmp.lt.s32.totalorder %s9417_s22, %s9410_s11 }
  0x70   : > { %p9413_p9 = pnand %p9411_p8, %p10152_p6 }
  0x71   : > { %p9420_p2 = por %p9419_p12, %p9418_p11 }
  0x72   : > { %p9414_p10 = pneg %p9413_p9 }
  0x74   : > { %p9421_p0 = pnand %p9420_p2, %p9414_p10 }
  0x76   : > { %9424 = shalt.err (!%p9421_p0)
}
  0x77   : > { %8708 = dma.hbm_to_vmem [thread:$0]  (!%p10142_p5), %s10019_s30, 16, %s903_s23, [#allocation15]  }
  0x78   : > { %s9931_s10 = smov [#allocation17]   ;;  %s9932_s18 = smov [#allocation20]  }
  0x79   : > { %s926_s0 = sshll.u32 %s9931_s10, 4  ;;  %s950_s1 = sshll.u32 %s9932_s18, 4  ;;  %s927_s0 = int_to_ptr.vmem [resolvable:$true] %s926_s0  ;;  %s951_s1 = int_to_ptr.vmem [resolvable:$true] %s950_s1 }
  0x7a   : > { %s9436_s16 = scalar_lea.vmem %s927_s0, 16  ;;  %s9443_s17 = scalar_lea.vmem %s927_s0, 32 }
  0x7b   : > { %p9437_p13 = scmp.ne.s32.totalorder %s927_s0, %s9436_s16  ;;  %p9444_p7 = scmp.lt.s32.totalorder %s927_s0, %s927_s0 }
  0x7c   : > { %p9445_p8 = scmp.lt.s32.totalorder %s9443_s17, %s9436_s16 }
  0x7d   : > { %p9439_p1 = pnand %p9437_p13, %p10152_p6 }
  0x7e   : > { %p9446_p2 = por %p9445_p8, %p9444_p7 }
  0x7f   : > { %p9440_p4 = pneg %p9439_p1 }
  0x81   : > { %p9447_p9 = pnand %p9446_p2, %p9440_p4 }
  0x83   : > { %9450 = shalt.err (!%p9447_p9)
}
  0x84   : > { %s11076_s12 = sld [smem:[#allocation52_spill]]  ;;  %s9462_s23 = scalar_lea.vmem %s951_s1, 16 }
  0x85   : > { %p9463_p10 = scmp.ne.s32.totalorder %s951_s1, %s9462_s23  ;;  %s9469_s11 = scalar_lea.vmem %s951_s1, 32 }
  0x86   : > { %p9470_p0 = scmp.lt.s32.totalorder %s951_s1, %s951_s1  ;;  %p9471_p13 = scmp.lt.s32.totalorder %s9469_s11, %s9462_s23 }
  0x87   : > { %p9465_p11 = pnand %p9463_p10, %p10152_p6 }
  0x88   : > { %p9472_p1 = por %p9471_p13, %p9470_p0 }
  0x89   : > { %p9466_p12 = pneg %p9465_p11 }
  0x8a   : > { %8714 = dma.hbm_to_vmem [thread:$0]  (!%p10142_p5), %s11076_s12, 16, %s927_s0, [#allocation18]  }
  0x8b   : > { %p9473_p3 = pnand %p9472_p1, %p9466_p12 }
  0x8d   : > { %9476 = shalt.err (!%p9473_p3)
}
  0x8e   : > { %8720 = dma.hbm_to_vmem [thread:$0]  (!%p10142_p5), %s10039_s27, 16, %s951_s1, [#allocation21]  }
  0x8f   : > { %s9933_s17 = smov [#allocation23]   ;;  %s9934_s22 = smov [#allocation26]  }
  0x90   : > { %s974_s16 = sshll.u32 %s9933_s17, 4  ;;  %s1002_s10 = sshll.u32 %s9934_s22, 4  ;;  %s975_s16 = int_to_ptr.vmem [resolvable:$true] %s974_s16  ;;  %s1003_s10 = int_to_ptr.vmem [resolvable:$true] %s1002_s10 }
  0x91   : > { %s9488_s0 = scalar_lea.vmem %s975_s16, 3072  ;;  %p9496_p2 = scmp.lt.s32.totalorder %s975_s16, %s975_s16 }
  0x92   : > { %p9489_p4 = scmp.ne.s32.totalorder %s975_s16, %s9488_s0  ;;  %p9497_p9 = scmp.lt.s32.totalorder %s9488_s0, %s9488_s0 }
  0x94   : > { %p9491_p7 = pnand %p9489_p4, %p10152_p6  ;;  %p9498_p10 = por %p9497_p9, %p9496_p2 }
  0x96   : > { %p9492_p8 = pneg %p9491_p7 }
  0x98   : > { %p9499_p11 = pnand %p9498_p10, %p9492_p8 }
  0x9a   : > { %9502 = shalt.err (!%p9499_p11)
}
  0x9b   : > { %s11077_s18 = smov 4   ;;  %s11078_s23 = smov 64  }
  0x9c   : > { %s11079_s3 = sld [smem:[#allocation56_spill]]  ;;  %s9514_s1 = scalar_lea.vmem %s1003_s10, 16 }
  0x9d   : > { %p9515_p3 = scmp.ne.s32.totalorder %s1003_s10, %s9514_s1  ;;  %s9521_s11 = scalar_lea.vmem %s1003_s10, 32 }
  0x9e   : > { %p9522_p13 = scmp.lt.s32.totalorder %s1003_s10, %s1003_s10  ;;  %p9523_p1 = scmp.lt.s32.totalorder %s9521_s11, %s9514_s1 }
  0x9f   : > { %p9517_p12 = pnand %p9515_p3, %p10152_p6 }
  0xa0   : > { %p9524_p4 = por %p9523_p1, %p9522_p13 }
  0xa1   : > { %p9518_p0 = pneg %p9517_p12 }
  0xa2   : > { %8726 = dma.hbm_to_vmem [thread:$0]  (!%p10142_p5), %s11079_s3, 3072, %s975_s16, [#allocation24], %s11078_s23, %s11078_s23, %s11077_s18  }
  0xa3   : > { %p9525_p7 = pnand %p9524_p4, %p9518_p0 }
  0xa5   : > { %9528 = shalt.err (!%p9525_p7)
}
  0xa6   : > { %8732 = dma.hbm_to_vmem [thread:$0]  (!%p10142_p5), %s10069_s13, 16, %s1003_s10, [#allocation27]  }
  0xa7   : > { %s9935_s17 = smov [#allocation29]   ;;  %s9936_s16 = smov [#allocation3]  }
  0xa8   : > { %s1026_s22 = sshll.u32 %s9935_s17, 4  ;;  %s806_s0 = sshll.u32 %s9936_s16, 4  ;;  %s1027_s22 = int_to_ptr.vmem [resolvable:$true] %s1026_s22  ;;  %s807_s0 = int_to_ptr.vmem [resolvable:$true] %s806_s0 }
  0xa9   : > { %s9540_s3 = scalar_lea.vmem %s1027_s22, 16  ;;  %s9547_s12 = scalar_lea.vmem %s1027_s22, 32 }
  0xaa   : > { %p9541_p8 = scmp.ne.s32.totalorder %s1027_s22, %s9540_s3  ;;  %p9548_p10 = scmp.lt.s32.totalorder %s1027_s22, %s1027_s22 }
  0xab   : > { %p9549_p11 = scmp.lt.s32.totalorder %s9547_s12, %s9540_s3 }
  0xac   : > { %p9543_p2 = pnand %p9541_p8, %p10152_p6 }
  0xad   : > { %p9550_p3 = por %p9549_p11, %p9548_p10 }
  0xae   : > { %p9544_p9 = pneg %p9543_p2 }
  0xb0   : > { %p9551_p12 = pnand %p9550_p3, %p9544_p9 }
  0xb2   : > { %9554 = shalt.err (!%p9551_p12)
}
  0xb3   : > { %8738 = dma.hbm_to_vmem [thread:$0]  (!%p10142_p5), %s10079_s25, 16, %s1027_s22, [#allocation30]  }
  0xb4   : > { %s9566_s10 = scalar_lea.vmem %s807_s0, 512  ;;  %p9574_p4 = scmp.lt.s32.totalorder %s807_s0, %s807_s0 }
  0xb5   : > { %p9567_p0 = scmp.ne.s32.totalorder %s807_s0, %s9566_s10  ;;  %p9575_p7 = scmp.lt.s32.totalorder %s9566_s10, %s9566_s10 }
  0xb7   : > { %p9569_p13 = pnand %p9567_p0, %p10152_p6  ;;  %p9576_p8 = por %p9575_p7, %p9574_p4 }
  0xb9   : > { %p9570_p1 = pneg %p9569_p13 }
  0xbb   : > { %p9577_p2 = pnand %p9576_p8, %p9570_p1 }
  0xbd   : > { %9580 = shalt.err (!%p9577_p2)
}
  0xbe   : > { %s9937_s3 = smov 128   ;;  %s9938_s12 = smov 8  }
  0xbf   : > { %8687 = dma.hbm_to_vmem [thread:$0]  (!%p10142_p5), %s9964_s9, 512, %s807_s0, [#allocation4], %s9937_s3, %s9937_s3, %s9938_s12  }
  0xc0   : > { %s9939_s1 = smov [#allocation7]   ;;  %s9940_s17 = smov [#allocation10]  }
  0xc1   : > { %s836_s11 = sshll.u32 %s9939_s1, 4  ;;  %s864_s22 = sshll.u32 %s9940_s17, 4  ;;  %s837_s11 = int_to_ptr.vmem [resolvable:$true] %s836_s11  ;;  %s865_s22 = int_to_ptr.vmem [resolvable:$true] %s864_s22 }
  0xc2   : > { %s9592_s16 = scalar_lea.vmem %s837_s11, 16  ;;  %s9599_s10 = scalar_lea.vmem %s837_s11, 32 }
  0xc3   : > { %p9593_p9 = scmp.ne.s32.totalorder %s837_s11, %s9592_s16  ;;  %p9600_p3 = scmp.lt.s32.totalorder %s837_s11, %s837_s11 }
  0xc4   : > { %p9601_p12 = scmp.lt.s32.totalorder %s9599_s10, %s9592_s16 }
  0xc5   : > { %p9595_p10 = pnand %p9593_p9, %p10152_p6 }
  0xc6   : > { %p9602_p0 = por %p9601_p12, %p9600_p3 }
  0xc7   : > { %p9596_p11 = pneg %p9595_p10 }
  0xc9   : > { %p9603_p13 = pnand %p9602_p0, %p9596_p11 }
  0xcb   : > { %9606 = shalt.err (!%p9603_p13)
}
  0xcc   : > { %8693 = dma.hbm_to_vmem [thread:$0]  (!%p10142_p5), %s9979_s21, 16, %s837_s11, [#allocation6]  }
  0xcd   : > { %s9618_s0 = scalar_lea.vmem %s865_s22, 16  ;;  %s9625_s3 = scalar_lea.vmem %s865_s22, 32 }
  0xce   : > { %p9619_p1 = scmp.ne.s32.totalorder %s865_s22, %s9618_s0  ;;  %p9626_p8 = scmp.lt.s32.totalorder %s865_s22, %s865_s22 }
  0xcf   : > { %p9627_p2 = scmp.lt.s32.totalorder %s9625_s3, %s9618_s0 }
  0xd0   : > { %p9621_p4 = pnand %p9619_p1, %p10152_p6 }
  0xd1   : > { %p9628_p9 = por %p9627_p2, %p9626_p8 }
  0xd2   : > { %p9622_p7 = pneg %p9621_p4 }
  0xd4   : > { %p9629_p10 = pnand %p9628_p9, %p9622_p7 }
  0xd6   : > { %9632 = shalt.err (!%p9629_p10)
}
  0xd7   : > { %8699 = dma.hbm_to_vmem [thread:$0]  (!%p10142_p5), %s9999_s8, 16, %s865_s22, [#allocation9]  }
  0xd8   : > { %s9941_s12 = smov [#allocation13]   ;;  %s9942_s11 = smov [#allocation16]  }
  0xd9   : > { %s888_s1 = sshll.u32 %s9941_s12, 4  ;;  %s912_s17 = sshll.u32 %s9942_s11, 4  ;;  %s889_s1 = int_to_ptr.vmem [resolvable:$true] %s888_s1  ;;  %s913_s17 = int_to_ptr.vmem [resolvable:$true] %s912_s17 }
  0xda   : > { %s9644_s16 = scalar_lea.vmem %s889_s1, 3072  ;;  %p9652_p0 = scmp.lt.s32.totalorder %s889_s1, %s889_s1 }
  0xdb   : > { %p9645_p11 = scmp.ne.s32.totalorder %s889_s1, %s9644_s16  ;;  %p9653_p13 = scmp.lt.s32.totalorder %s9644_s16, %s9644_s16 }
  0xdd   : > { %p9647_p3 = pnand %p9645_p11, %p10152_p6  ;;  %p9654_p1 = por %p9653_p13, %p9652_p0 }
  0xdf   : > { %p9648_p12 = pneg %p9647_p3 }
  0xe1   : > { %p9655_p4 = pnand %p9654_p1, %p9648_p12 }
  0xe3   : > { %9658 = shalt.err (!%p9655_p4)
}
  0xe4   : > { %8705 = dma.hbm_to_vmem [thread:$0]  (!%p10142_p5), %s10014_s24, 3072, %s889_s1, [#allocation12], %s11078_s23, %s11078_s23, %s11077_s18  }
  0xe5   : > { %s9670_s22 = scalar_lea.vmem %s913_s17, 3072  ;;  %p9678_p9 = scmp.lt.s32.totalorder %s913_s17, %s913_s17 }
  0xe6   : > { %p9671_p7 = scmp.ne.s32.totalorder %s913_s17, %s9670_s22  ;;  %p9679_p10 = scmp.lt.s32.totalorder %s9670_s22, %s9670_s22 }
  0xe8   : > { %p9673_p8 = pnand %p9671_p7, %p10152_p6  ;;  %p9680_p11 = por %p9679_p10, %p9678_p9 }
  0xea   : > { %p9674_p2 = pneg %p9673_p8 }
  0xec   : > { %p9681_p3 = pnand %p9680_p11, %p9674_p2 }
  0xee   : > { %9684 = shalt.err (!%p9681_p3)
}
  0xef   : > { %s11080_s6 = sld [smem:[#allocation51_spill]]  ;;  %s9943_s10 = smov [#allocation19]  }
  0xf0   : > { %s936_s0 = sshll.u32 %s9943_s10, 4  ;;  %s9944_s3 = smov [#allocation22]   ;;  %s937_s0 = int_to_ptr.vmem [resolvable:$true] %s936_s0 }
  0xf1   : > { %s964_s12 = sshll.u32 %s9944_s3, 4  ;;  %s9696_s1 = scalar_lea.vmem %s937_s0, 3072  ;;  %s965_s12 = int_to_ptr.vmem [resolvable:$true] %s964_s12 }
  0xf2   : > { %p9697_p12 = scmp.ne.s32.totalorder %s937_s0, %s9696_s1  ;;  %p9704_p1 = scmp.lt.s32.totalorder %s937_s0, %s937_s0 }
  0xf3   : > { %p9705_p4 = scmp.lt.s32.totalorder %s9696_s1, %s9696_s1 }
  0xf4   : > { %p9699_p0 = pnand %p9697_p12, %p10152_p6 }
  0xf5   : > { %8711 = dma.hbm_to_vmem [thread:$0]  (!%p10142_p5), %s11080_s6, 3072, %s913_s17, [#allocation15], %s11078_s23, %s11078_s23, %s11077_s18  }
  0xf6   : > { %p9700_p13 = pneg %p9699_p0  ;;  %p9706_p7 = por %p9705_p4, %p9704_p1 }
  0xf8   : > { %p9707_p8 = pnand %p9706_p7, %p9700_p13 }
  0xfa   : > { %9710 = shalt.err (!%p9707_p8)
}
  0xfb   : > { %s11081_s11 = sld [smem:[#allocation53_spill]]  ;;  %s9722_s17 = scalar_lea.vmem %s965_s12, 16 }
  0xfc   : > { %p9723_p2 = scmp.ne.s32.totalorder %s965_s12, %s9722_s17  ;;  %s9729_s16 = scalar_lea.vmem %s965_s12, 32 }
  0xfd   : > { %p9730_p11 = scmp.lt.s32.totalorder %s965_s12, %s965_s12  ;;  %p9731_p3 = scmp.lt.s32.totalorder %s9729_s16, %s9722_s17 }
  0xfe   : > { %p9725_p9 = pnand %p9723_p2, %p10152_p6 }
  0xff   : > { %p9732_p12 = por %p9731_p3, %p9730_p11 }
 0x100   : > { %p9726_p10 = pneg %p9725_p9 }
 0x101   : > { %8717 = dma.hbm_to_vmem [thread:$0]  (!%p10142_p5), %s11081_s11, 3072, %s937_s0, [#allocation18], %s11078_s23, %s11078_s23, %s11077_s18  }
 0x102   : > { %p9733_p0 = pnand %p9732_p12, %p9726_p10 }
 0x104   : > { %9736 = shalt.err (!%p9733_p0)
}
 0x105   : > { %s11082_s22 = sld [smem:[#allocation55_spill]]  ;;  %s9945_s10 = smov [#allocation25]  }
 0x106   : > { %s988_s3 = sshll.u32 %s9945_s10, 4  ;;  %s9946_s0 = smov [#allocation28]   ;;  %s989_s3 = int_to_ptr.vmem [resolvable:$true] %s988_s3 }
 0x107   : > { %s1012_s1 = sshll.u32 %s9946_s0, 4  ;;  %s9748_s11 = scalar_lea.vmem %s989_s3, 16  ;;  %s1013_s1 = int_to_ptr.vmem [resolvable:$true] %s1012_s1 }
 0x108   : > { %p9749_p13 = scmp.ne.s32.totalorder %s989_s3, %s9748_s11  ;;  %s9755_s6 = scalar_lea.vmem %s989_s3, 32 }
 0x109   : > { %p9756_p7 = scmp.lt.s32.totalorder %s989_s3, %s989_s3  ;;  %p9757_p8 = scmp.lt.s32.totalorder %s9755_s6, %s9748_s11 }
 0x10a   : > { %p9751_p1 = pnand %p9749_p13, %p10152_p6 }
 0x10b   : > { %8723 = dma.hbm_to_vmem [thread:$0]  (!%p10142_p5), %s11082_s22, 16, %s965_s12, [#allocation21]  }
 0x10c   : > { %p9752_p4 = pneg %p9751_p1  ;;  %p9758_p2 = por %p9757_p8, %p9756_p7 }
 0x10e   : > { %p9759_p9 = pnand %p9758_p2, %p9752_p4 }
 0x110   : > { %9762 = shalt.err (!%p9759_p9)
}
 0x111   : > { %s11083_s17 = sld [smem:[#allocation57_spill]]  ;;  %s9774_s12 = scalar_lea.vmem %s1013_s1, 2304 }
 0x112   : > { %p9775_p10 = scmp.ne.s32.totalorder %s1013_s1, %s9774_s12  ;;  %p9782_p12 = scmp.lt.s32.totalorder %s1013_s1, %s1013_s1 }
 0x113   : > { %p9783_p0 = scmp.lt.s32.totalorder %s9774_s12, %s9774_s12 }
 0x114   : > { %p9777_p11 = pnand %p9775_p10, %p10152_p6 }
 0x115   : > { %p9784_p13 = por %p9783_p0, %p9782_p12 }
 0x116   : > { %p9778_p3 = pneg %p9777_p11 }
 0x117   : > { %8729 = dma.hbm_to_vmem [thread:$0]  (!%p10142_p5), %s11083_s17, 16, %s989_s3, [#allocation24]  }
 0x118   : > { %p9785_p1 = pnand %p9784_p13, %p9778_p3 }
 0x11a   : > { %9788 = shalt.err (!%p9785_p1)
}
 0x11b   : > { %s11084_s6 = sld [smem:[#allocation59_spill]]  ;;  %s9947_s16 = smov [#allocation31]  }
 0x11c   : > { %s1036_s22 = sshll.u32 %s9947_s16, 4  ;;  %s9948_s10 = smov [#allocation32]   ;;  %s1037_s22 = int_to_ptr.vmem [resolvable:$true] %s1036_s22 }
 0x11d   : > { %s1050_s3 = sshll.u32 %s9948_s10, 4  ;;  %s9800_s0 = scalar_lea.vmem %s1037_s22, 3072  ;;  %s1051_s3 = int_to_ptr.vmem [resolvable:$true] %s1050_s3 }
 0x11e   : > { %p9801_p4 = scmp.ne.s32.totalorder %s1037_s22, %s9800_s0  ;;  %p9808_p2 = scmp.lt.s32.totalorder %s1037_s22, %s1037_s22 }
 0x11f   : > { %p9809_p9 = scmp.lt.s32.totalorder %s9800_s0, %s9800_s0 }
 0x120   : > { %p9803_p7 = pnand %p9801_p4, %p10152_p6 }
 0x121   : > { %8735 = dma.hbm_to_vmem [thread:$0]  (!%p10142_p5), %s11084_s6, 2304, %s1013_s1, [#allocation27], %s11078_s23, %s11078_s23, %s11077_s18  }
 0x122   : > { %p9804_p8 = pneg %p9803_p7  ;;  %p9810_p10 = por %p9809_p9, %p9808_p2 }
 0x124   : > { %p9811_p11 = pnand %p9810_p10, %p9804_p8 }
 0x126   : > { %9814 = shalt.err (!%p9811_p11)
}
 0x127   : > { %s11085_s1 = sld [smem:[#allocation60_spill]]  ;;  %s9826_s11 = scalar_lea.vmem %s1051_s3, 16 }
 0x128   : > { %p9827_p3 = scmp.ne.s32.totalorder %s1051_s3, %s9826_s11  ;;  %s9833_s17 = scalar_lea.vmem %s1051_s3, 32 }
 0x129   : > { %p9834_p13 = scmp.lt.s32.totalorder %s1051_s3, %s1051_s3  ;;  %p9835_p1 = scmp.lt.s32.totalorder %s9833_s17, %s9826_s11 }
 0x12a   : > { %p9829_p12 = pnand %p9827_p3, %p10152_p6 }
 0x12b   : > { %p9836_p4 = por %p9835_p1, %p9834_p13 }
 0x12c   : > { %p9830_p0 = pneg %p9829_p12 }
 0x12d   : > { %8741 = dma.hbm_to_vmem [thread:$0]  (!%p10142_p5), %s11085_s1, 3072, %s1037_s22, [#allocation30], %s11078_s23, %s11078_s23, %s11077_s18  }
 0x12e   : > { %p9837_p7 = pnand %p9836_p4, %p9830_p0 }
 0x130   : > { %9840 = shalt.err (!%p9837_p7)
}
 0x131   : > { %s11086_s12 = sld [smem:[#allocation61_spill]]  ;;  %p11087_p8 = scmp.ne.s32.totalorder %s11072_s7, 0 }
 0x133   : > { %1086 = sbr.rel (%p11087_p8) target bundleno = 2410 (0x96a), region = 148 }
 0x137   : > { %8744 = dma.hbm_to_vmem [thread:$0]  (!%p10142_p5), %s11086_s12, 16, %s1051_s3, [#allocation33]  }
 0x138   : > { %p11088_p2 = scmp.eq.s32.totalorder %s10127_s2, 0 }
 0x13a   : > { %9846 = dma.done.wait (%p11088_p2), [#allocation4], 512   ;;  %p11089_p9 = pmov %p11088_p2 }
 0x13b   : > { %p11090_p6 = pmov %p11088_p2 }
 0x13c   : > { %9848 = vsyncadd (%p11089_p9), [#allocation4], 4294966784 }
 0x13d   : > { %9850 = dma.done.wait (%p11090_p6), [#allocation6], 4112   ;;  %p11091_p10 = pmov %p11088_p2 }
 0x13e   : > { %p11092_p11 = pmov %p11088_p2 }
 0x13f   : > { %9852 = vsyncadd (%p11091_p10), [#allocation6], 4294963184 }
 0x140   : > { %9854 = dma.done.wait (%p11092_p11), [#allocation9], 32   ;;  %p11093_p5 = pmov %p11088_p2 }
 0x141   : > { %p11094_p3 = pmov %p11088_p2 }
 0x142   : > { %9856 = vsyncadd (%p11093_p5), [#allocation9], 4294967264 }
 0x143   : > { %9858 = dma.done.wait (%p11094_p3), [#allocation12], 3088   ;;  %p11095_p12 = pmov %p11088_p2 }
 0x144   : > { %p11096_p0 = pmov %p11088_p2 }
 0x145   : > { %9860 = vsyncadd (%p11095_p12), [#allocation12], 4294964208 }
 0x146   : > { %9862 = dma.done.wait (%p11096_p0), [#allocation15], 3088   ;;  %p11097_p13 = pmov %p11096_p0 }
 0x147   : > { %p11098_p1 = pmov %p11096_p0 }
 0x148   : > { %9864 = vsyncadd (%p11097_p13), [#allocation15], 4294964208 }
 0x149   : > { %9866 = dma.done.wait (%p11098_p1), [#allocation18], 3088   ;;  %p11099_p4 = pmov %p11096_p0 }
 0x14a   : > { %p11100_p7 = pmov %p11096_p0 }
 0x14b   : > { %9868 = vsyncadd (%p11099_p4), [#allocation18], 4294964208 }
 0x14c   : > { %9870 = dma.done.wait (%p11100_p7), [#allocation21], 32   ;;  %p11101_p8 = pmov %p11096_p0 }
 0x14d   : > { %p11102_p2 = pmov %p11096_p0 }
 0x14e   : > { %9872 = vsyncadd (%p11101_p8), [#allocation21], 4294967264 }
 0x14f   : > { %9874 = dma.done.wait (%p11102_p2), [#allocation24], 3088   ;;  %p11103_p9 = pmov %p11096_p0 }
 0x150   : > { %p11104_p6 = pmov %p11096_p0 }
 0x151   : > { %9876 = vsyncadd (%p11103_p9), [#allocation24], 4294964208 }
 0x152   : > { %9878 = dma.done.wait (%p11104_p6), [#allocation27], 2320   ;;  %p11105_p10 = pmov %p11096_p0 }
 0x153   : > { %p11106_p11 = pmov %p11096_p0 }
 0x154   : > { %9880 = vsyncadd (%p11105_p10), [#allocation27], 4294964976 }
 0x155   : > { %9882 = dma.done.wait (%p11106_p11), [#allocation30], 3088   ;;  %p11107_p5 = pmov %p11096_p0 }
 0x156   : > { %p11108_p3 = pmov %p11096_p0 }
 0x157   : > { %9884 = vsyncadd (%p11107_p5), [#allocation30], 4294964208 }
 0x158   : > { %9886 = dma.done.wait (%p11108_p3), [#allocation33], 16   ;;  %p11109_p12 = pmov %p11096_p0 }
 0x159   : > { %s11110_s7 = sld [smem:[#allocation45_spill]]  ;;  %p1244_p0 = scmp.lt.s32.totalorder %s10127_s2, 1  ;;  %v9949_v0 = vmov 0.0   ;;  %v1259_v5 = vld [vmem:[#allocation3] sm:$0xff]  ;;  %vm1263_vm0 = vcmask 130048   ;;  %v1260_v14 = vld [vmem:[#allocation3 + $0x8] sm:$0xff] }
 0x15a   : > { %9888 = vsyncadd (%p11109_p12), [#allocation33], 4294967280  ;;  %1340 = vmatprep.mubr.f32.mxu0 %v9949_v0  ;;  %3162 = vst [vmem:[#allocation2] sm:$0xff] %v9949_v0  ;;  %s11111_s15 = sld [smem:[#allocation46_spill]]  ;;  %v1261_v21 = vld [vmem:[#allocation3 + $0x10] sm:$0xff]  ;;  %v1262_v28 = vld [vmem:[#allocation3 + $0x18] sm:$0xff] }
 0x15b   : > { %3163 = vst [vmem:[#allocation2 + $0x8] sm:$0xff] %v9949_v0  ;;  %3164 = vst [vmem:[#allocation2 + $0x10] sm:$0xff] %v9949_v0  ;;  %s11124_s2 = smov (!%p1244_p0, %s10127_s2), 1  ;;  %s11112_s23 = sld [smem:[#allocation48_spill]]  ;;  %vm4882_vm1 = vcmask 523264   ;;  %vm4959_vm2 = vcmask 785408  }
 0x15c   : > { %3165 = vst [vmem:[#allocation2 + $0x18] sm:$0xff] %v9949_v0  ;;  %3166 = vst [vmem:[#allocation2 + $0x20] sm:$0xff] %v9949_v0  ;;  %s7808_s26 = sshll.u32 %s11124_s2, 5  ;;  %s11113_s6 = sld [smem:[#allocation49_spill]] }
 0x15d   : > { %3167 = vst [vmem:[#allocation2 + $0x28] sm:$0x3] %v9949_v0  ;;  %s11114_s16 = sld [smem:[#allocation50_spill]]  ;;  %s7809_s1 = sshll.u32 %s11124_s2, 7 }
 0x15e   : > { %3555 = vst [vmem:[#allocation2 + $0x28] sm:$0x3] %v9949_v0  ;;  %s11115_s22 = sld [smem:[#allocation54_spill]]  ;;  %s11011_s2 = scalar_lea.vmem %s10119_s20, %s7809_s1 }
 0x15f   : > { %3947 = vst [vmem:[#allocation2 + $0x28] sm:$0x3] %v9949_v0  ;;  %s1248_s18 = scalar_lea.vmem %s11110_s7, %s7808_s26  ;;  %s11116_s10 = sld [smem:[#allocation58_spill]] }
 0x160   : > { %4465 = vst [vmem:[#allocation2 + $0x28] sm:$0x3] %v9949_v0  ;;  %v1258_v1 = vld [vmem:[%s1248_s18 + $0x18] sm:$0xff]  ;;  %v1257_v2 = vld [vmem:[%s1248_s18 + $0x10] sm:$0xff]  ;;  %v1256_v3 = vld [vmem:[%s1248_s18 + $0x8] sm:$0xff]  ;;  %s11117_s3 = sld [smem:[#allocation62_spill]] }
 0x161   : > { %4958 = vst [vmem:[#allocation2 + $0x28] sm:$0x3] %v9949_v0  ;;  %1304 = vmatprep.subr.mxu0 %v1258_v1  ;;  %v1255_v4 = vld [vmem:[%s1248_s18] sm:$0xff]  ;;  %v1426_v6 = vld [vmem:[%s11111_s15 + $0x1e8] sm:$0xff]  ;;  %v1428_v7 = vld [vmem:[%s11111_s15 + $0x1f8] sm:$0xff]  ;;  %s11118_s0 = sld [smem:[#allocation63_spill]] }
 0x162   : > { %5321 = vst [vmem:[#allocation2 + $0x28] sm:$0x3] %v9949_v0  ;;  %1305 = vmatpush1.msra.mxu0 %v1257_v2  ;;  %1493 = vmatprep.subr.mxu1 %v1426_v6  ;;  %v1425_v8 = vld [vmem:[%s11111_s15 + $0x1e0] sm:$0xff]  ;;  %v1427_v9 = vld [vmem:[%s11111_s15 + $0x1f0] sm:$0xff]  ;;  %v1422_v10 = vld [vmem:[%s11111_s15 + $0x1c8] sm:$0xff] }
 0x163   : > { %1306 = vmatprep.subr.mxu0 %v1256_v3  ;;  %1494 = vmatpush1.msra.mxu1 %v1425_v8  ;;  %v1424_v11 = vld [vmem:[%s11111_s15 + $0x1d8] sm:$0xff]  ;;  %v1421_v12 = vld [vmem:[%s11111_s15 + $0x1c0] sm:$0xff]  ;;  %v1423_v13 = vld [vmem:[%s11111_s15 + $0x1d0] sm:$0xff] }
 0x164   : > { %1307 = vmatpush1.msra.mxu0 %v1255_v4  ;;  %v1418_v15 = vld [vmem:[%s11111_s15 + $0x1a8] sm:$0xff]  ;;  %1495 = vmatprep.subr.mxu1 %v1422_v10  ;;  %v1420_v16 = vld [vmem:[%s11111_s15 + $0x1b8] sm:$0xff]  ;;  %v1417_v17 = vld [vmem:[%s11111_s15 + $0x1a0] sm:$0xff] }
 0x165   : > { %7376 = vmatmul.mubr.msk.f32.vlgmr.msra.gmra.mxu0 %vm1263_vm0, %v1259_v5  ;;  %1582 = vmatprep.subr.mxu0 %v1428_v7  ;;  %v1419_v18 = vld [vmem:[%s11111_s15 + $0x1b0] sm:$0xff]  ;;  %v1414_v19 = vld [vmem:[%s11111_s15 + $0x188] sm:$0xff]  ;;  %v1416_v20 = vld [vmem:[%s11111_s15 + $0x198] sm:$0xff] }
 0x166   : > { %1346 = vmatprep.mubr.f32.mxu0 %v9949_v0  ;;  %1583 = vmatpush1.msra.mxu0 %v1427_v9  ;;  %v1413_v22 = vld [vmem:[%s11111_s15 + $0x180] sm:$0xff]  ;;  %v1415_v23 = vld [vmem:[%s11111_s15 + $0x190] sm:$0xff]  ;;  %v1410_v24 = vld [vmem:[%s11111_s15 + $0x168] sm:$0xff] }
 0x167   : > { %1584 = vmatprep.subr.mxu0 %v1424_v11  ;;  %1496 = vmatpush1.msra.mxu1 %v1421_v12  ;;  %v1412_v25 = vld [vmem:[%s11111_s15 + $0x178] sm:$0xff]  ;;  %v1409_v26 = vld [vmem:[%s11111_s15 + $0x160] sm:$0xff]  ;;  %v1411_v27 = vld [vmem:[%s11111_s15 + $0x170] sm:$0xff] }
 0x168   : > { %1585 = vmatpush1.msra.mxu0 %v1423_v13  ;;  %1497 = vmatprep.subr.mxu1 %v1418_v15  ;;  %v1406_v29 = vld [vmem:[%s11111_s15 + $0x148] sm:$0xff]  ;;  %v1408_v30 = vld [vmem:[%s11111_s15 + $0x158] sm:$0xff]  ;;  %v1405_v31 = vld [vmem:[%s11111_s15 + $0x140] sm:$0xff] }
 0x169   : > { %7377 = vmatmul.mubr.msk.f32.gmra.mxu0 %vm1263_vm0, %v1260_v14  ;;  %1586 = vmatprep.subr.mxu0 %v1420_v16  ;;  %v1407_v32 = vld [vmem:[%s11111_s15 + $0x150] sm:$0xff]  ;;  %v1402_v33 = vld [vmem:[%s11111_s15 + $0x128] sm:$0xff]  ;;  %v1404_v34 = vld [vmem:[%s11111_s15 + $0x138] sm:$0xff] }
 0x16a   : > { %1352 = vmatprep.mubr.f32.mxu0 %v9949_v0  ;;  %1498 = vmatpush1.msra.mxu1 %v1417_v17  ;;  %v1401_v35 = vld [vmem:[%s11111_s15 + $0x120] sm:$0xff]  ;;  %v1403_v36 = vld [vmem:[%s11111_s15 + $0x130] sm:$0xff]  ;;  %v1398_v37 = vld [vmem:[%s11111_s15 + $0x108] sm:$0xff] }
 0x16b   : > { %1587 = vmatpush1.msra.mxu0 %v1419_v18  ;;  %1499 = vmatprep.subr.mxu1 %v1414_v19  ;;  %v1400_v38 = vld [vmem:[%s11111_s15 + $0x118] sm:$0xff]  ;;  %v1397_v39 = vld [vmem:[%s11111_s15 + $0x100] sm:$0xff]  ;;  %v1399_v40 = vld [vmem:[%s11111_s15 + $0x110] sm:$0xff] }
 0x16c   : > { %1588 = vmatprep.subr.mxu0 %v1416_v20  ;;  %1500 = vmatpush1.msra.mxu1 %v1413_v22  ;;  %v1394_v41 = vld [vmem:[%s11111_s15 + $0xe8] sm:$0xff]  ;;  %v1396_v42 = vld [vmem:[%s11111_s15 + $0xf8] sm:$0xff]  ;;  %v1393_v43 = vld [vmem:[%s11111_s15 + $0xe0] sm:$0xff] }
 0x16d   : > { %7378 = vmatmul.mubr.msk.f32.gmra.mxu0 %vm1263_vm0, %v1261_v21  ;;  %1501 = vmatprep.subr.mxu1 %v1410_v24  ;;  %v1395_v44 = vld [vmem:[%s11111_s15 + $0xf0] sm:$0xff]  ;;  %v1390_v45 = vld [vmem:[%s11111_s15 + $0xc8] sm:$0xff]  ;;  %v1392_v46 = vld [vmem:[%s11111_s15 + $0xd8] sm:$0xff] }
 0x16e   : > { %1358 = vmatprep.mubr.f32.mxu0 %v9949_v0  ;;  %1589 = vmatpush1.msra.mxu0 %v1415_v23  ;;  %v1389_v47 = vld [vmem:[%s11111_s15 + $0xc0] sm:$0xff]  ;;  %v1391_v48 = vld [vmem:[%s11111_s15 + $0xd0] sm:$0xff]  ;;  %v1386_v49 = vld [vmem:[%s11111_s15 + $0xa8] sm:$0xff] }
 0x16f   : > { %1590 = vmatprep.subr.mxu0 %v1412_v25  ;;  %1502 = vmatpush1.msra.mxu1 %v1409_v26  ;;  %v1388_v50 = vld [vmem:[%s11111_s15 + $0xb8] sm:$0xff]  ;;  %v1385_v51 = vld [vmem:[%s11111_s15 + $0xa0] sm:$0xff]  ;;  %v1387_v52 = vld [vmem:[%s11111_s15 + $0xb0] sm:$0xff] }
 0x170   : > { %1591 = vmatpush1.msra.mxu0 %v1411_v27  ;;  %1503 = vmatprep.subr.mxu1 %v1406_v29  ;;  %v1382_v53 = vld [vmem:[%s11111_s15 + $0x88] sm:$0xff]  ;;  %v1384_v54 = vld [vmem:[%s11111_s15 + $0x98] sm:$0xff]  ;;  %v1381_v55 = vld [vmem:[%s11111_s15 + $0x80] sm:$0xff] }
 0x171   : > { %7379 = vmatmul.mubr.msk.f32.gmra.mxu0 %vm1263_vm0, %v1262_v28  ;;  %1592 = vmatprep.subr.mxu0 %v1408_v30  ;;  %v1383_v56 = vld [vmem:[%s11111_s15 + $0x90] sm:$0xff]  ;;  %v1378_v57 = vld [vmem:[%s11111_s15 + $0x68] sm:$0xff]  ;;  %v1380_v58 = vld [vmem:[%s11111_s15 + $0x78] sm:$0xff] }
 0x172   : > { %1504 = vmatpush1.msra.mxu1 %v1405_v31  ;;  %1593 = vmatpush1.msra.mxu0 %v1407_v32  ;;  %v1377_v59 = vld [vmem:[%s11111_s15 + $0x60] sm:$0xff]  ;;  %v1379_v60 = vld [vmem:[%s11111_s15 + $0x70] sm:$0xff]  ;;  %v1374_v61 = vld [vmem:[%s11111_s15 + $0x48] sm:$0xff] }
 0x173   : > { %1505 = vmatprep.subr.mxu1 %v1402_v33  ;;  %1594 = vmatprep.subr.mxu0 %v1404_v34  ;;  %v1376_v62 = vld [vmem:[%s11111_s15 + $0x58] sm:$0xff]  ;;  %v1373_v63 = vld [vmem:[%s11111_s15 + $0x40] sm:$0xff]  ;;  %v1375_v1 = vld [vmem:[%s11111_s15 + $0x50] sm:$0xff] }
 0x174   : > { %1506 = vmatpush1.msra.mxu1 %v1401_v35  ;;  %1595 = vmatpush1.msra.mxu0 %v1403_v36  ;;  %v1370_v2 = vld [vmem:[%s11111_s15 + $0x28] sm:$0xff]  ;;  %v1372_v3 = vld [vmem:[%s11111_s15 + $0x38] sm:$0xff]  ;;  %v1369_v4 = vld [vmem:[%s11111_s15 + $0x20] sm:$0xff] }
 0x175   : > { %1507 = vmatprep.subr.mxu1 %v1398_v37  ;;  %1596 = vmatprep.subr.mxu0 %v1400_v38  ;;  %v1371_v5 = vld [vmem:[%s11111_s15 + $0x30] sm:$0xff]  ;;  %v1366_v6 = vld [vmem:[%s11111_s15 + $0x8] sm:$0xff]  ;;  %v1368_v7 = vld [vmem:[%s11111_s15 + $0x18] sm:$0xff] }
 0x176   : > { %1508 = vmatpush1.msra.mxu1 %v1397_v39  ;;  %1597 = vmatpush1.msra.mxu0 %v1399_v40  ;;  %v1365_v8 = vld [vmem:[%s11111_s15] sm:$0xff]  ;;  %v1367_v9 = vld [vmem:[%s11111_s15 + $0x10] sm:$0xff]  ;;  %v1490_v10 = vld [vmem:[%s11111_s15 + $0x3e8] sm:$0xff] }
 0x177   : > { %1509 = vmatprep.subr.mxu1 %v1394_v41  ;;  %1598 = vmatprep.subr.mxu0 %v1396_v42  ;;  %v1492_v11 = vld [vmem:[%s11111_s15 + $0x3f8] sm:$0xff]  ;;  %v1489_v12 = vld [vmem:[%s11111_s15 + $0x3e0] sm:$0xff]  ;;  %v1491_v13 = vld [vmem:[%s11111_s15 + $0x3f0] sm:$0xff] }
 0x178   : > { %1510 = vmatpush1.msra.mxu1 %v1393_v43  ;;  %1599 = vmatpush1.msra.mxu0 %v1395_v44  ;;  %v1486_v14 = vld [vmem:[%s11111_s15 + $0x3c8] sm:$0xff]  ;;  %v1488_v15 = vld [vmem:[%s11111_s15 + $0x3d8] sm:$0xff]  ;;  %v1485_v16 = vld [vmem:[%s11111_s15 + $0x3c0] sm:$0xff] }
 0x179   : > { %1511 = vmatprep.subr.mxu1 %v1390_v45  ;;  %1600 = vmatprep.subr.mxu0 %v1392_v46  ;;  %v1487_v17 = vld [vmem:[%s11111_s15 + $0x3d0] sm:$0xff]  ;;  %v1482_v18 = vld [vmem:[%s11111_s15 + $0x3a8] sm:$0xff]  ;;  %v1484_v19 = vld [vmem:[%s11111_s15 + $0x3b8] sm:$0xff] }
 0x17a   : > { %1512 = vmatpush1.msra.mxu1 %v1389_v47  ;;  %1601 = vmatpush1.msra.mxu0 %v1391_v48  ;;  %v1481_v20 = vld [vmem:[%s11111_s15 + $0x3a0] sm:$0xff]  ;;  %v1483_v21 = vld [vmem:[%s11111_s15 + $0x3b0] sm:$0xff]  ;;  %v1478_v22 = vld [vmem:[%s11111_s15 + $0x388] sm:$0xff] }
 0x17b   : > { %1513 = vmatprep.subr.mxu1 %v1386_v49  ;;  %1602 = vmatprep.subr.mxu0 %v1388_v50  ;;  %v1480_v23 = vld [vmem:[%s11111_s15 + $0x398] sm:$0xff]  ;;  %v1477_v24 = vld [vmem:[%s11111_s15 + $0x380] sm:$0xff]  ;;  %v1479_v25 = vld [vmem:[%s11111_s15 + $0x390] sm:$0xff] }
 0x17c   : > { %1514 = vmatpush1.msra.mxu1 %v1385_v51  ;;  %1603 = vmatpush1.msra.mxu0 %v1387_v52  ;;  %v1474_v26 = vld [vmem:[%s11111_s15 + $0x368] sm:$0xff]  ;;  %v1476_v27 = vld [vmem:[%s11111_s15 + $0x378] sm:$0xff]  ;;  %v1473_v28 = vld [vmem:[%s11111_s15 + $0x360] sm:$0xff] }
 0x17d   : > { %1515 = vmatprep.subr.mxu1 %v1382_v53  ;;  %1604 = vmatprep.subr.mxu0 %v1384_v54  ;;  %v1475_v29 = vld [vmem:[%s11111_s15 + $0x370] sm:$0xff]  ;;  %v1470_v30 = vld [vmem:[%s11111_s15 + $0x348] sm:$0xff]  ;;  %v1472_v31 = vld [vmem:[%s11111_s15 + $0x358] sm:$0xff] }
 0x17e   : > { %1516 = vmatpush1.msra.mxu1 %v1381_v55  ;;  %1605 = vmatpush1.msra.mxu0 %v1383_v56  ;;  %v1469_v32 = vld [vmem:[%s11111_s15 + $0x340] sm:$0xff]  ;;  %v1471_v33 = vld [vmem:[%s11111_s15 + $0x350] sm:$0xff]  ;;  %v1466_v34 = vld [vmem:[%s11111_s15 + $0x328] sm:$0xff] }
 0x17f   : > { %1517 = vmatprep.subr.mxu1 %v1378_v57  ;;  %1606 = vmatprep.subr.mxu0 %v1380_v58  ;;  %v1468_v35 = vld [vmem:[%s11111_s15 + $0x338] sm:$0xff]  ;;  %v1465_v36 = vld [vmem:[%s11111_s15 + $0x320] sm:$0xff]  ;;  %v1467_v37 = vld [vmem:[%s11111_s15 + $0x330] sm:$0xff] }
 0x180   : > { %1518 = vmatpush1.msra.mxu1 %v1377_v59  ;;  %1607 = vmatpush1.msra.mxu0 %v1379_v60  ;;  %v1462_v38 = vld [vmem:[%s11111_s15 + $0x308] sm:$0xff]  ;;  %v1464_v39 = vld [vmem:[%s11111_s15 + $0x318] sm:$0xff]  ;;  %v1461_v40 = vld [vmem:[%s11111_s15 + $0x300] sm:$0xff] }
 0x181   : > { %1519 = vmatprep.subr.mxu1 %v1374_v61  ;;  %1608 = vmatprep.subr.mxu0 %v1376_v62  ;;  %v1463_v41 = vld [vmem:[%s11111_s15 + $0x310] sm:$0xff]  ;;  %v1458_v42 = vld [vmem:[%s11111_s15 + $0x2e8] sm:$0xff]  ;;  %v1460_v43 = vld [vmem:[%s11111_s15 + $0x2f8] sm:$0xff] }
 0x182   : > { %1520 = vmatpush1.msra.mxu1 %v1373_v63  ;;  %1609 = vmatpush1.msra.mxu0 %v1375_v1  ;;  %v1457_v44 = vld [vmem:[%s11111_s15 + $0x2e0] sm:$0xff]  ;;  %v1459_v45 = vld [vmem:[%s11111_s15 + $0x2f0] sm:$0xff]  ;;  %v1454_v46 = vld [vmem:[%s11111_s15 + $0x2c8] sm:$0xff] }
 0x183   : > { %1521 = vmatprep.subr.mxu1 %v1370_v2  ;;  %1610 = vmatprep.subr.mxu0 %v1372_v3  ;;  %v1456_v47 = vld [vmem:[%s11111_s15 + $0x2d8] sm:$0xff]  ;;  %v1453_v48 = vld [vmem:[%s11111_s15 + $0x2c0] sm:$0xff]  ;;  %v1455_v49 = vld [vmem:[%s11111_s15 + $0x2d0] sm:$0xff] }
 0x184   : > { %1522 = vmatpush1.msra.mxu1 %v1369_v4  ;;  %1611 = vmatpush1.msra.mxu0 %v1371_v5  ;;  %v1450_v50 = vld [vmem:[%s11111_s15 + $0x2a8] sm:$0xff]  ;;  %v1452_v51 = vld [vmem:[%s11111_s15 + $0x2b8] sm:$0xff]  ;;  %v1449_v52 = vld [vmem:[%s11111_s15 + $0x2a0] sm:$0xff] }
 0x185   : > { %1523 = vmatprep.subr.mxu1 %v1366_v6  ;;  %1612 = vmatprep.subr.mxu0 %v1368_v7  ;;  %v1451_v53 = vld [vmem:[%s11111_s15 + $0x2b0] sm:$0xff]  ;;  %v1446_v54 = vld [vmem:[%s11111_s15 + $0x288] sm:$0xff]  ;;  %v1448_v55 = vld [vmem:[%s11111_s15 + $0x298] sm:$0xff] }
 0x186   : > { %1524 = vmatpush1.msra.mxu1 %v1365_v8  ;;  %1613 = vmatpush1.msra.mxu0 %v1367_v9  ;;  %v1445_v56 = vld [vmem:[%s11111_s15 + $0x280] sm:$0xff]  ;;  %v1447_v57 = vld [vmem:[%s11111_s15 + $0x290] sm:$0xff]  ;;  %v1442_v58 = vld [vmem:[%s11111_s15 + $0x268] sm:$0xff] }
 0x187   : > { %1525 = vmatprep.subr.mxu1 %v1490_v10  ;;  %1614 = vmatprep.subr.mxu0 %v1492_v11  ;;  %v1444_v59 = vld [vmem:[%s11111_s15 + $0x278] sm:$0xff]  ;;  %v1441_v60 = vld [vmem:[%s11111_s15 + $0x260] sm:$0xff]  ;;  %v1443_v61 = vld [vmem:[%s11111_s15 + $0x270] sm:$0xff] }
 0x188   : > { %1526 = vmatpush2.msra.mxu1 %v1489_v12  ;;  %1615 = vmatpush2.msra.mxu0 %v1491_v13  ;;  %v1438_v62 = vld [vmem:[%s11111_s15 + $0x248] sm:$0xff]  ;;  %v1440_v63 = vld [vmem:[%s11111_s15 + $0x258] sm:$0xff]  ;;  %v1437_v1 = vld [vmem:[%s11111_s15 + $0x240] sm:$0xff] }
 0x189   : > { %1527 = vmatprep.subr.mxu1 %v1486_v14  ;;  %1616 = vmatprep.subr.mxu0 %v1488_v15  ;;  %v1439_v2 = vld [vmem:[%s11111_s15 + $0x250] sm:$0xff]  ;;  %v1434_v3 = vld [vmem:[%s11111_s15 + $0x228] sm:$0xff]  ;;  %v1436_v4 = vld [vmem:[%s11111_s15 + $0x238] sm:$0xff] }
 0x18a   : > { %1528 = vmatpush2.msra.mxu1 %v1485_v16  ;;  %1617 = vmatpush2.msra.mxu0 %v1487_v17  ;;  %v1433_v5 = vld [vmem:[%s11111_s15 + $0x220] sm:$0xff]  ;;  %v1435_v6 = vld [vmem:[%s11111_s15 + $0x230] sm:$0xff]  ;;  %v1430_v7 = vld [vmem:[%s11111_s15 + $0x208] sm:$0xff] }
 0x18b   : > { %1529 = vmatprep.subr.mxu1 %v1482_v18  ;;  %1618 = vmatprep.subr.mxu0 %v1484_v19  ;;  %v1432_v8 = vld [vmem:[%s11111_s15 + $0x218] sm:$0xff]  ;;  %v1429_v9 = vld [vmem:[%s11111_s15 + $0x200] sm:$0xff]  ;;  %v1431_v10 = vld [vmem:[%s11111_s15 + $0x210] sm:$0xff] }
 0x18c   : > { %1530 = vmatpush2.msra.mxu1 %v1481_v20  ;;  %1619 = vmatpush2.msra.mxu0 %v1483_v21  ;;  %v8851_v11 = vld [vmem:[#allocation5 + $0x78] sm:$0xff]   ;;  %v8855_v16 = vld [vmem:[#allocation5 + $0x70] sm:$0xff]  }
 0x18d   : > { %1531 = vmatprep.subr.mxu1 %v1478_v22  ;;  %1620 = vmatprep.subr.mxu0 %v1480_v23  ;;  %v8852_v12 = vld [vmem:[#allocation5 + $0xf8] sm:$0xff]   ;;  %v8856_v17 = vld [vmem:[#allocation5 + $0xf0] sm:$0xff]   ;;  %v8859_v22 = vld [vmem:[#allocation5 + $0x68] sm:$0xff]  }
 0x18e   : > { %1532 = vmatpush2.msra.mxu1 %v1477_v24  ;;  %1621 = vmatpush2.msra.mxu0 %v1479_v25  ;;  %v8853_v13 = vld [vmem:[#allocation5 + $0x38] sm:$0xff]   ;;  %v8857_v19 = vld [vmem:[#allocation5 + $0x30] sm:$0xff]   ;;  %v8860_v23 = vld [vmem:[#allocation5 + $0xe8] sm:$0xff]  }
 0x18f   : > { %1533 = vmatprep.subr.mxu1 %v1474_v26  ;;  %1622 = vmatprep.subr.mxu0 %v1476_v27  ;;  %v8854_v14 = vld [vmem:[#allocation5 + $0xb8] sm:$0xff]   ;;  %v8858_v20 = vld [vmem:[#allocation5 + $0xb0] sm:$0xff]   ;;  %v8861_v25 = vld [vmem:[#allocation5 + $0x28] sm:$0xff]  }
 0x190   : > { %1534 = vmatpush2.msra.mxu1 %v1473_v28  ;;  %1623 = vmatpush2.msra.mxu0 %v1475_v29  ;;  %v8862_v26 = vld [vmem:[#allocation5 + $0xa8] sm:$0xff]   ;;  %v8863_v28 = vld [vmem:[#allocation5 + $0x60] sm:$0xff]  }
 0x191   : > { %1535 = vmatprep.subr.mxu1 %v1470_v30  ;;  %1624 = vmatprep.subr.mxu0 %v1472_v31  ;;  %v8864_v29 = vld [vmem:[#allocation5 + $0xe0] sm:$0xff]  }
 0x192   : > { %1536 = vmatpush2.msra.mxu1 %v1469_v32  ;;  %1625 = vmatpush2.msra.mxu0 %v1471_v33  ;;  %v8865_v31 = vld [vmem:[#allocation5 + $0x20] sm:$0xff]  }
 0x193   : > { %1537 = vmatprep.subr.mxu1 %v1466_v34  ;;  %1626 = vmatprep.subr.mxu0 %v1468_v35  ;;  %v8866_v32 = vld [vmem:[#allocation5 + $0xa0] sm:$0xff]   ;;  %v8867_v34 = vld [vmem:[#allocation5 + $0x58] sm:$0xff]  }
 0x194   : > { %1538 = vmatpush2.msra.mxu1 %v1465_v36  ;;  %1627 = vmatpush2.msra.mxu0 %v1467_v37  ;;  %v8868_v35 = vld [vmem:[#allocation5 + $0xd8] sm:$0xff]  }
 0x195   : > { %1539 = vmatprep.subr.mxu1 %v1462_v38  ;;  %1628 = vmatprep.subr.mxu0 %v1464_v39  ;;  %v8869_v37 = vld [vmem:[#allocation5 + $0x18] sm:$0xff]   ;;  %v8871_v39 = vld [vmem:[#allocation5 + $0x50] sm:$0xff]  }
 0x196   : > { %1540 = vmatpush2.msra.mxu1 %v1461_v40  ;;  %1629 = vmatpush2.msra.mxu0 %v1463_v41  ;;  %v8870_v38 = vld [vmem:[#allocation5 + $0x98] sm:$0xff]   ;;  %v8872_v40 = vld [vmem:[#allocation5 + $0xd0] sm:$0xff]  }
 0x197   : > { %1541 = vmatprep.subr.mxu1 %v1458_v42  ;;  %1630 = vmatprep.subr.mxu0 %v1460_v43  ;;  %v8873_v41 = vld [vmem:[#allocation5 + $0x10] sm:$0xff]   ;;  %v8875_v43 = vld [vmem:[#allocation5 + $0x48] sm:$0xff]  }
 0x198   : > { %1542 = vmatpush2.msra.mxu1 %v1457_v44  ;;  %1631 = vmatpush2.msra.mxu0 %v1459_v45  ;;  %v8874_v42 = vld [vmem:[#allocation5 + $0x90] sm:$0xff]   ;;  %v8876_v44 = vld [vmem:[#allocation5 + $0xc8] sm:$0xff]  }
 0x199   : > { %1543 = vmatprep.subr.mxu1 %v1454_v46  ;;  %1632 = vmatprep.subr.mxu0 %v1456_v47  ;;  %v8877_v45 = vld [vmem:[#allocation5 + $0x8] sm:$0xff]   ;;  %v8879_v47 = vld [vmem:[#allocation5 + $0x40] sm:$0xff]  }
 0x19a   : > { %1544 = vmatpush2.msra.mxu1 %v1453_v48  ;;  %1633 = vmatpush2.msra.mxu0 %v1455_v49  ;;  %v8878_v46 = vld [vmem:[#allocation5 + $0x88] sm:$0xff]   ;;  %v8880_v48 = vld [vmem:[#allocation5 + $0xc0] sm:$0xff]  }
 0x19b   : > { %1545 = vmatprep.subr.mxu1 %v1450_v50  ;;  %1634 = vmatprep.subr.mxu0 %v1452_v51  ;;  %v8881_v49 = vld [vmem:[#allocation5] sm:$0xff]   ;;  %v8883_v51 = vld [vmem:[%s11112_s23 + $0x78] sm:$0xff]  }
 0x19c   : > { %1546 = vmatpush2.msra.mxu1 %v1449_v52  ;;  %1635 = vmatpush2.msra.mxu0 %v1451_v53  ;;  %v8882_v50 = vld [vmem:[#allocation5 + $0x80] sm:$0xff]   ;;  %v8884_v52 = vld [vmem:[%s11112_s23 + $0xf8] sm:$0xff]  }
 0x19d   : > { %1547 = vmatprep.subr.mxu1 %v1446_v54  ;;  %1636 = vmatprep.subr.mxu0 %v1448_v55 }
 0x19e   : > { %1548 = vmatpush2.msra.mxu1 %v1445_v56  ;;  %1637 = vmatpush2.msra.mxu0 %v1447_v57 }
 0x19f   : > { %1549 = vmatprep.subr.mxu1 %v1442_v58  ;;  %1638 = vmatprep.subr.mxu0 %v1444_v59 }
 0x1a0   : > { %1550 = vmatpush2.msra.mxu1 %v1441_v60  ;;  %1639 = vmatpush2.msra.mxu0 %v1443_v61 }
 0x1a1   : > { %1551 = vmatprep.subr.mxu1 %v1438_v62  ;;  %1640 = vmatprep.subr.mxu0 %v1440_v63  ;;  %v8885_v63 = vld [vmem:[%s11112_s23 + $0x38] sm:$0xff]  }
 0x1a2   : > { %1552 = vmatpush2.msra.mxu1 %v1437_v1  ;;  %1641 = vmatpush2.msra.mxu0 %v1439_v2  ;;  %v8886_v1 = vld [vmem:[%s11112_s23 + $0xb8] sm:$0xff]  }
 0x1a3   : > { %1553 = vmatprep.subr.mxu1 %v1434_v3  ;;  %1642 = vmatprep.subr.mxu0 %v1436_v4 }
 0x1a4   : > { %1554 = vmatpush2.msra.mxu1 %v1433_v5  ;;  %1643 = vmatpush2.msra.mxu0 %v1435_v6  ;;  %v8887_v6 = vld [vmem:[%s11112_s23 + $0x70] sm:$0xff]  }
 0x1a5   : > { %1555 = vmatprep.subr.mxu1 %v1430_v7  ;;  %1644 = vmatprep.subr.mxu0 %v1432_v8  ;;  %v8888_v7 = vld [vmem:[%s11112_s23 + $0xf0] sm:$0xff]  }
 0x1a6   : > { %1556 = vmatpush2.msra.mxu1 %v1429_v9  ;;  %1645 = vmatpush2.msra.mxu0 %v1431_v10  ;;  %v8889_v10 = vld [vmem:[%s11112_s23 + $0x30] sm:$0xff]  }
 0x1a7   : > { %7810 = vmatprep.subr.bf16.mxu1 %v8851_v11  ;;  %7838 = vmatprep.subr.bf16.mxu0 %v8852_v12  ;;  %v8890_v11 = vld [vmem:[%s11112_s23 + $0xb0] sm:$0xff]  }
 0x225   : > { %v1342_v15 = vpop.f32.mrf.mxu0 }
 0x227   : > { %v1344_v18 = vpop.f32.mrf.mxu0 }
 0x228   : > { %1557 = vmatprep.mubr.f32.mxu1 %v1344_v18  ;;  %1646 = vmatprep.mubr.f32.mxu0 %v1344_v18 }
 0x229   : > { %v1348_v21 = vpop.f32.mrf.mxu0  ;;  %1558 = vmatmul.mubr.f32.vlgmr.msra.gmra.mxu1 %v1342_v15  ;;  %1647 = vmatmul.mubr.f32.vlgmr.msra.gmra.mxu0 %v1342_v15  ;;  %v8892_v15 = vld [vmem:[%s11112_s23 + $0xe8] sm:$0xff]  }
 0x22a   : > { %7811 = vmatpush3.bf16.msra.mxu1 %v8853_v13  ;;  %7839 = vmatpush3.bf16.msra.mxu0 %v8854_v14  ;;  %v8891_v14 = vld [vmem:[%s11112_s23 + $0x68] sm:$0xff]  }
 0x22b   : > { %v1350_v24 = vpop.f32.mrf.mxu0  ;;  %7812 = vmatprep.subr.bf16.mxu1 %v8855_v16  ;;  %7840 = vmatprep.subr.bf16.mxu0 %v8856_v17 }
 0x22c   : > { %1563 = vmatprep.mubr.f32.mxu1 %v1350_v24  ;;  %1652 = vmatprep.mubr.f32.mxu0 %v1350_v24  ;;  %v8895_v24 = vld [vmem:[%s11112_s23 + $0x60] sm:$0xff]  }
 0x22d   : > { %v1354_v27 = vpop.f32.mrf.mxu0  ;;  %1564 = vmatmul.mubr.f32.gmra.mxu1 %v1348_v21  ;;  %1653 = vmatmul.mubr.f32.gmra.mxu0 %v1348_v21  ;;  %v8894_v21 = vld [vmem:[%s11112_s23 + $0xa8] sm:$0xff]  }
 0x22e   : > { %7813 = vmatpush3.bf16.msra.mxu1 %v8857_v19  ;;  %7841 = vmatpush3.bf16.msra.mxu0 %v8858_v20  ;;  %v8893_v20 = vld [vmem:[%s11112_s23 + $0x28] sm:$0xff]  }
 0x22f   : > { %v1356_v30 = vpop.f32.mrf.mxu0  ;;  %7814 = vmatprep.subr.bf16.mxu1 %v8859_v22  ;;  %7842 = vmatprep.subr.bf16.mxu0 %v8860_v23 }
 0x230   : > { %1569 = vmatprep.mubr.f32.mxu1 %v1356_v30  ;;  %1658 = vmatprep.mubr.f32.mxu0 %v1356_v30  ;;  %v8901_v30 = vld [vmem:[%s11112_s23 + $0x18] sm:$0xff]  }
 0x231   : > { %v1360_v33 = vpop.f32.mrf.mxu0  ;;  %1570 = vmatmul.mubr.f32.gmra.mxu1 %v1354_v27  ;;  %1659 = vmatmul.mubr.f32.gmra.mxu0 %v1354_v27  ;;  %v8898_v27 = vld [vmem:[%s11112_s23 + $0xa0] sm:$0xff]  }
 0x232   : > { %7815 = vmatpush3.bf16.msra.mxu1 %v8861_v25  ;;  %7843 = vmatpush3.bf16.msra.mxu0 %v8862_v26  ;;  %v8896_v25 = vld [vmem:[%s11112_s23 + $0xe0] sm:$0xff]  }
 0x233   : > { %v1362_v36 = vpop.f32.mrf.mxu0  ;;  %7816 = vmatprep.subr.bf16.mxu1 %v8863_v28  ;;  %7844 = vmatprep.subr.bf16.mxu0 %v8864_v29  ;;  %v8897_v26 = vld [vmem:[%s11112_s23 + $0x20] sm:$0xff]   ;;  %v8899_v28 = vld [vmem:[%s11112_s23 + $0x58] sm:$0xff]  }
 0x234   : > { %1575 = vmatprep.mubr.f32.mxu1 %v1362_v36  ;;  %1664 = vmatprep.mubr.f32.mxu0 %v1362_v36  ;;  %v8900_v29 = vld [vmem:[%s11112_s23 + $0xd8] sm:$0xff]   ;;  %v8907_v36 = vld [vmem:[%s11112_s23 + $0x48] sm:$0xff]  }
 0x235   : > { %1576 = vmatmul.mubr.f32.gmra.mxu1 %v1360_v33  ;;  %1665 = vmatmul.mubr.f32.gmra.mxu0 %v1360_v33  ;;  %v8904_v33 = vld [vmem:[%s11112_s23 + $0xd0] sm:$0xff]  }
 0x236   : > { %7817 = vmatpush3.bf16.msra.mxu1 %v8865_v31  ;;  %7845 = vmatpush3.bf16.msra.mxu0 %v8866_v32  ;;  %v8902_v31 = vld [vmem:[%s11112_s23 + $0x98] sm:$0xff]   ;;  %v8903_v32 = vld [vmem:[%s11112_s23 + $0x50] sm:$0xff]  }
 0x237   : > { %7818 = vmatprep.subr.bf16.mxu1 %v8867_v34  ;;  %7846 = vmatprep.subr.bf16.mxu0 %v8868_v35  ;;  %v8905_v34 = vld [vmem:[%s11112_s23 + $0x10] sm:$0xff]  }
 0x238   : > { %v8906_v35 = vld [vmem:[%s11112_s23 + $0x90] sm:$0xff]  }
 0x23a   : > { %7819 = vmatpush3.bf16.msra.mxu1 %v8869_v37  ;;  %7847 = vmatpush3.bf16.msra.mxu0 %v8870_v38  ;;  %v8908_v37 = vld [vmem:[%s11112_s23 + $0xc8] sm:$0xff]  }
 0x23b   : > { %7820 = vmatprep.subr.bf16.mxu1 %v8871_v39  ;;  %7848 = vmatprep.subr.bf16.mxu0 %v8872_v40  ;;  %v8909_v38 = vld [vmem:[%s11112_s23 + $0x8] sm:$0xff]   ;;  %v8911_v40 = vld [vmem:[%s11112_s23 + $0x40] sm:$0xff]  }
 0x23c   : > { %v8910_v39 = vld [vmem:[%s11112_s23 + $0x88] sm:$0xff]  }
 0x23e   : > { %7821 = vmatpush3.bf16.msra.mxu1 %v8873_v41  ;;  %7849 = vmatpush3.bf16.msra.mxu0 %v8874_v42  ;;  %v8912_v41 = vld [vmem:[%s11112_s23 + $0xc0] sm:$0xff]  }
 0x23f   : > { %7822 = vmatprep.subr.bf16.mxu1 %v8875_v43  ;;  %7850 = vmatprep.subr.bf16.mxu0 %v8876_v44  ;;  %v8913_v42 = vld [vmem:[%s11112_s23] sm:$0xff]   ;;  %v8915_v44 = vld [vmem:[%s11113_s6 + $0x78] sm:$0xff]  }
 0x240   : > { %v8914_v43 = vld [vmem:[%s11112_s23 + $0x80] sm:$0xff]  }
 0x242   : > { %7823 = vmatpush3.bf16.msra.mxu1 %v8877_v45  ;;  %7851 = vmatpush3.bf16.msra.mxu0 %v8878_v46  ;;  %v8916_v45 = vld [vmem:[%s11113_s6 + $0xf8] sm:$0xff]  }
 0x243   : > { %7824 = vmatprep.subr.bf16.mxu1 %v8879_v47  ;;  %7852 = vmatprep.subr.bf16.mxu0 %v8880_v48  ;;  %v8917_v46 = vld [vmem:[%s11113_s6 + $0x38] sm:$0xff]   ;;  %v8919_v48 = vld [vmem:[%s11113_s6 + $0x70] sm:$0xff]  }
 0x244   : > { %v8918_v47 = vld [vmem:[%s11113_s6 + $0xb8] sm:$0xff]  }
 0x246   : > { %7825 = vmatpush3.bf16.msra.mxu1 %v8881_v49  ;;  %7853 = vmatpush3.bf16.msra.mxu0 %v8882_v50  ;;  %v8920_v49 = vld [vmem:[%s11113_s6 + $0xf0] sm:$0xff]  }
 0x247   : > { %7866 = vmatprep.subr.bf16.mxu1 %v8883_v51  ;;  %7894 = vmatprep.subr.bf16.mxu0 %v8884_v52  ;;  %v8921_v50 = vld [vmem:[%s11113_s6 + $0x30] sm:$0xff]   ;;  %v8923_v52 = vld [vmem:[%s11113_s6 + $0x68] sm:$0xff]  }
 0x248   : > { %v8922_v51 = vld [vmem:[%s11113_s6 + $0xb0] sm:$0xff]  }
 0x2e9   : > { %v1559_v53 = vpop.f32.mrf.mxu1  ;;  %v1648_v54 = vpop.f32.mrf.mxu0 }
 0x2eb   : > { %v1561_v55 = vpop.f32.mrf.mxu1  ;;  %v1650_v56 = vpop.f32.mrf.mxu0 }
 0x2ed   : > { %v1565_v57 = vpop.f32.mrf.mxu1  ;;  %v1654_v58 = vpop.f32.mrf.mxu0 }
 0x2ee   : > { %v10497_v2 = vpack.c.bf16 %v1565_v57, %v1559_v53  ;;  %v10499_v3 = vpack.c.bf16 %v1654_v58, %v1648_v54  ;;  %v8924_v53 = vld [vmem:[%s11113_s6 + $0xe8] sm:$0xff]   ;;  %v8928_v57 = vld [vmem:[%s11113_s6 + $0xe0] sm:$0xff]  }
 0x2ef   : > { %v1567_v59 = vpop.f32.mrf.mxu1  ;;  %v1656_v60 = vpop.f32.mrf.mxu0  ;;  %v8925_v54 = vld [vmem:[%s11113_s6 + $0x28] sm:$0xff]   ;;  %v8929_v58 = vld [vmem:[%s11113_s6 + $0x20] sm:$0xff]  }
 0x2f0   : > { %v10491_v61 = vpack.c.bf16 %v1567_v59, %v1561_v55  ;;  %v10493_v62 = vpack.c.bf16 %v1656_v60, %v1650_v56  ;;  %v8926_v55 = vld [vmem:[%s11113_s6 + $0xa8] sm:$0xff]   ;;  %v8927_v56 = vld [vmem:[%s11113_s6 + $0x60] sm:$0xff]   ;;  %v8931_v60 = vld [vmem:[%s11113_s6 + $0x58] sm:$0xff]  }
 0x2f1   : > { %v1571_v4 = vpop.f32.mrf.mxu1  ;;  %v1660_v5 = vpop.f32.mrf.mxu0  ;;  %v8930_v59 = vld [vmem:[%s11113_s6 + $0xa0] sm:$0xff]  }
 0x2f2   : > { %1974 = vmatprep.mubr.bf16.mxu1 %v10491_v61  ;;  %2023 = vmatprep.mubr.bf16.mxu0 %v10493_v62 }
 0x2f3   : > { %v1573_v8 = vpop.f32.mrf.mxu1  ;;  %v1662_v9 = vpop.f32.mrf.mxu0  ;;  %1975 = vmatmul.mubr.bf16.vlgmr.msra.gmra.mxu1 %v10497_v2  ;;  %2024 = vmatmul.mubr.bf16.vlgmr.msra.gmra.mxu0 %v10499_v3 }
 0x2f4   : > { %7867 = vmatpush3.bf16.msra.mxu1 %v8885_v63  ;;  %7895 = vmatpush3.bf16.msra.mxu0 %v8886_v1  ;;  %v8932_v63 = vld [vmem:[%s11113_s6 + $0xd8] sm:$0xff]  }
 0x2f5   : > { %v1577_v12 = vpop.f32.mrf.mxu1  ;;  %v1666_v13 = vpop.f32.mrf.mxu0  ;;  %7868 = vmatprep.subr.bf16.mxu1 %v8887_v6  ;;  %7896 = vmatprep.subr.bf16.mxu0 %v8888_v7  ;;  %v8933_v1 = vld [vmem:[%s11113_s6 + $0x18] sm:$0xff]   ;;  %v8936_v6 = vld [vmem:[%s11113_s6 + $0xd0] sm:$0xff]  }
 0x2f6   : > { %v10517_v22 = vpack.c.bf16 %v1577_v12, %v1571_v4  ;;  %v10519_v23 = vpack.c.bf16 %v1666_v13, %v1660_v5  ;;  %v8934_v4 = vld [vmem:[%s11113_s6 + $0x98] sm:$0xff]   ;;  %v8935_v5 = vld [vmem:[%s11113_s6 + $0x50] sm:$0xff]   ;;  %v8942_v12 = vld [vmem:[%s11113_s6 + $0x88] sm:$0xff]  }
 0x2f7   : > { %v1579_v16 = vpop.f32.mrf.mxu1  ;;  %v1668_v17 = vpop.f32.mrf.mxu0  ;;  %v8937_v7 = vld [vmem:[%s11113_s6 + $0x10] sm:$0xff]   ;;  %v8943_v13 = vld [vmem:[%s11113_s6 + $0x40] sm:$0xff]  }
 0x2f8   : > { %v10511_v18 = vpack.c.bf16 %v1579_v16, %v1573_v8  ;;  %v10513_v19 = vpack.c.bf16 %v1668_v17, %v1662_v9  ;;  %7869 = vmatpush3.bf16.msra.mxu1 %v8889_v10  ;;  %7897 = vmatpush3.bf16.msra.mxu0 %v8890_v11  ;;  %v8938_v8 = vld [vmem:[%s11113_s6 + $0x90] sm:$0xff]   ;;  %v8939_v9 = vld [vmem:[%s11113_s6 + $0x48] sm:$0xff]   ;;  %v8946_v16 = vld [vmem:[%s11113_s6 + $0x80] sm:$0xff]  }
 0x2f9   : > { %7870 = vmatprep.subr.bf16.mxu1 %v8891_v14  ;;  %7898 = vmatprep.subr.bf16.mxu0 %v8892_v15  ;;  %v8940_v10 = vld [vmem:[%s11113_s6 + $0xc8] sm:$0xff]   ;;  %v8944_v14 = vld [vmem:[%s11113_s6 + $0xc0] sm:$0xff]   ;;  %v8947_v17 = vld [vmem:[%s11114_s16 + $0x78] sm:$0xff]  }
 0x2fa   : > { %1982 = vmatprep.mubr.bf16.mxu1 %v10511_v18  ;;  %2031 = vmatprep.mubr.bf16.mxu0 %v10513_v19  ;;  %v8941_v11 = vld [vmem:[%s11113_s6 + $0x8] sm:$0xff]   ;;  %v8945_v15 = vld [vmem:[%s11113_s6] sm:$0xff]  }
 0x2fb   : > { %1983 = vmatmul.mubr.bf16.gmra.mxu1 %v10517_v22  ;;  %2032 = vmatmul.mubr.bf16.gmra.mxu0 %v10519_v23 }
 0x2fc   : > { %7871 = vmatpush3.bf16.msra.mxu1 %v8893_v20  ;;  %7899 = vmatpush3.bf16.msra.mxu0 %v8894_v21  ;;  %v8948_v20 = vld [vmem:[%s11114_s16 + $0xf8] sm:$0xff]  }
 0x2fd   : > { %2343 = vmatprep.mubr.bf16.mxu1 %v10491_v61  ;;  %2392 = vmatprep.mubr.bf16.mxu0 %v10493_v62  ;;  %v8949_v21 = vld [vmem:[%s11114_s16 + $0x38] sm:$0xff]  }
 0x2fe   : > { %7872 = vmatprep.subr.bf16.mxu1 %v8895_v24  ;;  %7900 = vmatprep.subr.bf16.mxu0 %v8896_v25  ;;  %v8950_v24 = vld [vmem:[%s11114_s16 + $0xb8] sm:$0xff]   ;;  %v8951_v25 = vld [vmem:[%s11114_s16 + $0x70] sm:$0xff]  }
 0x300   : > { %7873 = vmatpush3.bf16.msra.mxu1 %v8897_v26  ;;  %7901 = vmatpush3.bf16.msra.mxu0 %v8898_v27  ;;  %v8952_v26 = vld [vmem:[%s11114_s16 + $0xf0] sm:$0xff]  }
 0x301   : > { %7874 = vmatprep.subr.bf16.mxu1 %v8899_v28  ;;  %7902 = vmatprep.subr.bf16.mxu0 %v8900_v29  ;;  %v8953_v27 = vld [vmem:[%s11114_s16 + $0x30] sm:$0xff]   ;;  %v8955_v29 = vld [vmem:[%s11114_s16 + $0x68] sm:$0xff]  }
 0x302   : > { %v8954_v28 = vld [vmem:[%s11114_s16 + $0xb0] sm:$0xff]  }
 0x304   : > { %7875 = vmatpush3.bf16.msra.mxu1 %v8901_v30  ;;  %7903 = vmatpush3.bf16.msra.mxu0 %v8902_v31  ;;  %v8956_v30 = vld [vmem:[%s11114_s16 + $0xe8] sm:$0xff]  }
 0x305   : > { %7876 = vmatprep.subr.bf16.mxu1 %v8903_v32  ;;  %7904 = vmatprep.subr.bf16.mxu0 %v8904_v33  ;;  %v8957_v31 = vld [vmem:[%s11114_s16 + $0x28] sm:$0xff]   ;;  %v8959_v33 = vld [vmem:[%s11114_s16 + $0x60] sm:$0xff]  }
 0x306   : > { %v8958_v32 = vld [vmem:[%s11114_s16 + $0xa8] sm:$0xff]  }
 0x308   : > { %7877 = vmatpush3.bf16.msra.mxu1 %v8905_v34  ;;  %7905 = vmatpush3.bf16.msra.mxu0 %v8906_v35  ;;  %v8960_v34 = vld [vmem:[%s11114_s16 + $0xe0] sm:$0xff]  }
 0x309   : > { %7878 = vmatprep.subr.bf16.mxu1 %v8907_v36  ;;  %7906 = vmatprep.subr.bf16.mxu0 %v8908_v37  ;;  %v8961_v35 = vld [vmem:[%s11114_s16 + $0x20] sm:$0xff]   ;;  %v8963_v37 = vld [vmem:[%s11114_s16 + $0x58] sm:$0xff]  }
 0x30a   : > { %v8962_v36 = vld [vmem:[%s11114_s16 + $0xa0] sm:$0xff]  }
 0x30c   : > { %7879 = vmatpush3.bf16.msra.mxu1 %v8909_v38  ;;  %7907 = vmatpush3.bf16.msra.mxu0 %v8910_v39  ;;  %v8964_v38 = vld [vmem:[%s11114_s16 + $0xd8] sm:$0xff]  }
 0x30d   : > { %7880 = vmatprep.subr.bf16.mxu1 %v8911_v40  ;;  %7908 = vmatprep.subr.bf16.mxu0 %v8912_v41  ;;  %v8965_v39 = vld [vmem:[%s11114_s16 + $0x18] sm:$0xff]   ;;  %v8968_v40 = vld [vmem:[%s11114_s16 + $0xd0] sm:$0xff]  }
 0x30e   : > { %v8969_v41 = vld [vmem:[%s11114_s16 + $0x10] sm:$0xff]  }
 0x310   : > { %7881 = vmatpush3.bf16.msra.mxu1 %v8913_v42  ;;  %7909 = vmatpush3.bf16.msra.mxu0 %v8914_v43  ;;  %v8970_v42 = vld [vmem:[%s11114_s16 + $0x90] sm:$0xff]   ;;  %v8971_v43 = vld [vmem:[%s11114_s16 + $0x48] sm:$0xff]  }
 0x311   : > { %7922 = vmatprep.subr.bf16.mxu1 %v8915_v44  ;;  %7950 = vmatprep.subr.bf16.mxu0 %v8916_v45  ;;  %v8972_v44 = vld [vmem:[%s11114_s16 + $0xc8] sm:$0xff]  }
 0x312   : > { %v8973_v45 = vld [vmem:[%s11114_s16 + $0x8] sm:$0xff]  }
 0x313   : > { %2344 = vmatmul.mubr.bf16.vlgmr.msra.gmra.mxu1 %v10497_v2  ;;  %2393 = vmatmul.mubr.bf16.vlgmr.msra.gmra.mxu0 %v10499_v3 }
 0x314   : > { %2351 = vmatprep.mubr.bf16.mxu1 %v10511_v18  ;;  %2400 = vmatprep.mubr.bf16.mxu0 %v10513_v19 }
 0x315   : > { %7923 = vmatpush3.bf16.msra.mxu1 %v8917_v46  ;;  %7951 = vmatpush3.bf16.msra.mxu0 %v8918_v47  ;;  %v8974_v46 = vld [vmem:[%s11114_s16 + $0x88] sm:$0xff]   ;;  %v8975_v47 = vld [vmem:[%s11114_s16 + $0x40] sm:$0xff]  }
 0x316   : > { %7924 = vmatprep.subr.bf16.mxu1 %v8919_v48  ;;  %7952 = vmatprep.subr.bf16.mxu0 %v8920_v49  ;;  %v8976_v48 = vld [vmem:[%s11114_s16 + $0xc0] sm:$0xff]  }
 0x317   : > { %v8977_v49 = vld [vmem:[%s11114_s16] sm:$0xff]  }
 0x319   : > { %7925 = vmatpush3.bf16.msra.mxu1 %v8921_v50  ;;  %7953 = vmatpush3.bf16.msra.mxu0 %v8922_v51  ;;  %v8978_v50 = vld [vmem:[%s11114_s16 + $0x80] sm:$0xff]   ;;  %v8979_v51 = vld [vmem:[#allocation13 + $0x38] sm:$0xff]  }
 0x31a   : > { %7926 = vmatprep.subr.bf16.mxu1 %v8923_v52  ;;  %7954 = vmatprep.subr.bf16.mxu0 %v8924_v53  ;;  %v8980_v52 = vld [vmem:[#allocation13 + $0x78] sm:$0xff]   ;;  %v8981_v53 = vld [vmem:[#allocation13 + $0x30] sm:$0xff]  }
 0x31b   : > { %2352 = vmatmul.mubr.bf16.gmra.mxu1 %v10517_v22  ;;  %2401 = vmatmul.mubr.bf16.gmra.mxu0 %v10519_v23 }
 0x31c   : > { %2712 = vmatprep.mubr.bf16.mxu1 %v10491_v61  ;;  %2761 = vmatprep.mubr.bf16.mxu0 %v10493_v62 }
 0x31d   : > { %7927 = vmatpush3.bf16.msra.mxu1 %v8925_v54  ;;  %7955 = vmatpush3.bf16.msra.mxu0 %v8926_v55  ;;  %v8982_v54 = vld [vmem:[#allocation13 + $0x70] sm:$0xff]   ;;  %v8983_v55 = vld [vmem:[#allocation13 + $0x28] sm:$0xff]  }
 0x31e   : > { %7928 = vmatprep.subr.bf16.mxu1 %v8927_v56  ;;  %7956 = vmatprep.subr.bf16.mxu0 %v8928_v57  ;;  %v8984_v56 = vld [vmem:[#allocation13 + $0x68] sm:$0xff]   ;;  %v8985_v57 = vld [vmem:[#allocation13 + $0x20] sm:$0xff]  }
 0x321   : > { %7929 = vmatpush3.bf16.msra.mxu1 %v8929_v58  ;;  %7957 = vmatpush3.bf16.msra.mxu0 %v8930_v59  ;;  %v8986_v58 = vld [vmem:[#allocation13 + $0x60] sm:$0xff]   ;;  %v8991_v59 = vld [vmem:[#allocation13 + $0x8] sm:$0xff]  }
 0x322   : > { %7930 = vmatprep.subr.bf16.mxu1 %v8931_v60  ;;  %7958 = vmatprep.subr.bf16.mxu0 %v8932_v63  ;;  %v8994_v60 = vld [vmem:[#allocation13 + $0x40] sm:$0xff]   ;;  %v10633_v63 = vld [vmem:[#allocation13 + $0xb8] sm:$0xff]  }
 0x325   : > { %7931 = vmatpush3.bf16.msra.mxu1 %v8933_v1  ;;  %7959 = vmatpush3.bf16.msra.mxu0 %v8934_v4  ;;  %v8996_v1 = vld [vmem:[#allocation16 + $0x38] sm:$0xff]  }
 0x326   : > { %7932 = vmatprep.subr.bf16.mxu1 %v8935_v5  ;;  %7960 = vmatprep.subr.bf16.mxu0 %v8936_v6 }
 0x329   : > { %7933 = vmatpush3.bf16.msra.mxu1 %v8937_v7  ;;  %7961 = vmatpush3.bf16.msra.mxu0 %v8938_v8 }
 0x32a   : > { %7934 = vmatprep.subr.bf16.mxu1 %v8939_v9  ;;  %7962 = vmatprep.subr.bf16.mxu0 %v8940_v10  ;;  %v7380_v10 = vld [vmem:[#allocation7] ss:$0 sm:$0xff] }
 0x32d   : > { %7935 = vmatpush3.bf16.msra.mxu1 %v8941_v11  ;;  %7963 = vmatpush3.bf16.msra.mxu0 %v8942_v12 }
 0x32e   : > { %7936 = vmatprep.subr.bf16.mxu1 %v8943_v13  ;;  %7964 = vmatprep.subr.bf16.mxu0 %v8944_v14 }
 0x331   : > { %7937 = vmatpush3.bf16.msra.mxu1 %v8945_v15  ;;  %7965 = vmatpush3.bf16.msra.mxu0 %v8946_v16 }
 0x332   : > { %7978 = vmatprep.subr.bf16.mxu1 %v8947_v17  ;;  %8006 = vmatprep.subr.bf16.mxu0 %v8948_v20 }
 0x334   : > { %2713 = vmatmul.mubr.bf16.vlgmr.msra.gmra.mxu1 %v10497_v2  ;;  %2762 = vmatmul.mubr.bf16.vlgmr.msra.gmra.mxu0 %v10499_v3 }
 0x335   : > { %2720 = vmatprep.mubr.bf16.mxu1 %v10511_v18  ;;  %2769 = vmatprep.mubr.bf16.mxu0 %v10513_v19 }
 0x336   : > { %7979 = vmatpush3.bf16.msra.mxu1 %v8949_v21  ;;  %8007 = vmatpush3.bf16.msra.mxu0 %v8950_v24 }
 0x337   : > { %7980 = vmatprep.subr.bf16.mxu1 %v8951_v25  ;;  %8008 = vmatprep.subr.bf16.mxu0 %v8952_v26 }
 0x33a   : > { %7981 = vmatpush3.bf16.msra.mxu1 %v8953_v27  ;;  %8009 = vmatpush3.bf16.msra.mxu0 %v8954_v28 }
 0x33b   : > { %7982 = vmatprep.subr.bf16.mxu1 %v8955_v29  ;;  %8010 = vmatprep.subr.bf16.mxu0 %v8956_v30 }
 0x33c   : > { %2721 = vmatmul.mubr.bf16.gmra.mxu1 %v10517_v22  ;;  %2770 = vmatmul.mubr.bf16.gmra.mxu0 %v10519_v23 }
 0x33d   : > { %3081 = vmatprep.mubr.bf16.mxu1 %v10491_v61  ;;  %3130 = vmatprep.mubr.bf16.mxu0 %v10493_v62  ;;  %v8966_v61 = vld [vmem:[%s11114_s16 + $0x98] sm:$0xff]   ;;  %v8967_v62 = vld [vmem:[%s11114_s16 + $0x50] sm:$0xff]  }
 0x33e   : > { %7983 = vmatpush3.bf16.msra.mxu1 %v8957_v31  ;;  %8011 = vmatpush3.bf16.msra.mxu0 %v8958_v32 }
 0x33f   : > { %7984 = vmatprep.subr.bf16.mxu1 %v8959_v33  ;;  %8012 = vmatprep.subr.bf16.mxu0 %v8960_v34 }
 0x342   : > { %7985 = vmatpush3.bf16.msra.mxu1 %v8961_v35  ;;  %8013 = vmatpush3.bf16.msra.mxu0 %v8962_v36 }
 0x343   : > { %7986 = vmatprep.subr.bf16.mxu1 %v8963_v37  ;;  %8014 = vmatprep.subr.bf16.mxu0 %v8964_v38 }
 0x346   : > { %7987 = vmatpush3.bf16.msra.mxu1 %v8965_v39  ;;  %8015 = vmatpush3.bf16.msra.mxu0 %v8966_v61 }
 0x347   : > { %7988 = vmatprep.subr.bf16.mxu1 %v8967_v62  ;;  %8016 = vmatprep.subr.bf16.mxu0 %v8968_v40 }
 0x34a   : > { %7989 = vmatpush3.bf16.msra.mxu1 %v8969_v41  ;;  %8017 = vmatpush3.bf16.msra.mxu0 %v8970_v42 }
 0x34b   : > { %7990 = vmatprep.subr.bf16.mxu1 %v8971_v43  ;;  %8018 = vmatprep.subr.bf16.mxu0 %v8972_v44 }
 0x34e   : > { %7991 = vmatpush3.bf16.msra.mxu1 %v8973_v45  ;;  %8019 = vmatpush3.bf16.msra.mxu0 %v8974_v46 }
 0x34f   : > { %7992 = vmatprep.subr.bf16.mxu1 %v8975_v47  ;;  %8020 = vmatprep.subr.bf16.mxu0 %v8976_v48 }
 0x352   : > { %7993 = vmatpush3.bf16.msra.mxu1 %v8977_v49  ;;  %8021 = vmatpush3.bf16.msra.mxu0 %v8978_v50  ;;  %v8998_v49 = vld [vmem:[#allocation16 + $0x30] sm:$0xff]  }
 0x353   : > { %8224 = vmatprep.subr.bf16.mxu1 %v8979_v51  ;;  %8244 = vmatprep.subr.bf16.mxu0 %v8980_v52 }
 0x355   : > { %3082 = vmatmul.mubr.bf16.vlgmr.msra.gmra.mxu1 %v10497_v2  ;;  %3131 = vmatmul.mubr.bf16.vlgmr.msra.gmra.mxu0 %v10499_v3  ;;  %v8987_v2 = vld [vmem:[#allocation13 + $0x18] sm:$0xff]  }
 0x356   : > { %3089 = vmatprep.mubr.bf16.mxu1 %v10511_v18  ;;  %3138 = vmatprep.mubr.bf16.mxu0 %v10513_v19  ;;  %v8988_v3 = vld [vmem:[#allocation13 + $0x58] sm:$0xff]   ;;  %v8989_v18 = vld [vmem:[#allocation13 + $0x10] sm:$0xff]  }
 0x357   : > { %8225 = vmatpush3.bf16.msra.mxu1 %v8979_v51  ;;  %8245 = vmatpush3.bf16.msra.mxu0 %v8980_v52  ;;  %v8990_v19 = vld [vmem:[#allocation13 + $0x50] sm:$0xff]  }
 0x358   : > { %8226 = vmatprep.subr.bf16.mxu1 %v8981_v53  ;;  %8246 = vmatprep.subr.bf16.mxu0 %v8982_v54  ;;  %v9000_v51 = vld [vmem:[#allocation16 + $0x28] sm:$0xff]  }
 0x35b   : > { %8227 = vmatpush3.bf16.msra.mxu1 %v8981_v53  ;;  %8247 = vmatpush3.bf16.msra.mxu0 %v8982_v54 }
 0x35c   : > { %8228 = vmatprep.subr.bf16.mxu1 %v8983_v55  ;;  %8248 = vmatprep.subr.bf16.mxu0 %v8984_v56 }
 0x35d   : > { %3090 = vmatmul.mubr.bf16.gmra.mxu1 %v10517_v22  ;;  %3139 = vmatmul.mubr.bf16.gmra.mxu0 %v10519_v23  ;;  %v8992_v22 = vld [vmem:[#allocation13 + $0x48] sm:$0xff]   ;;  %v8993_v23 = vld [vmem:[#allocation13] sm:$0xff]  }
 0x35f   : > { %8229 = vmatpush3.bf16.msra.mxu1 %v8983_v55  ;;  %8249 = vmatpush3.bf16.msra.mxu0 %v8984_v56 }
 0x360   : > { %8230 = vmatprep.subr.bf16.mxu1 %v8985_v57  ;;  %8250 = vmatprep.subr.bf16.mxu0 %v8986_v58 }
 0x363   : > { %8231 = vmatpush3.bf16.msra.mxu1 %v8985_v57  ;;  %8251 = vmatpush3.bf16.msra.mxu0 %v8986_v58  ;;  %v8997_v57 = vld [vmem:[#allocation13 + $0xb0] sm:$0xff]  }
 0x364   : > { %8232 = vmatprep.subr.bf16.mxu1 %v8987_v2  ;;  %8252 = vmatprep.subr.bf16.mxu0 %v8988_v3 }
 0x367   : > { %8233 = vmatpush3.bf16.msra.mxu1 %v8987_v2  ;;  %8253 = vmatpush3.bf16.msra.mxu0 %v8988_v3 }
 0x368   : > { %8234 = vmatprep.subr.bf16.mxu1 %v8989_v18  ;;  %8254 = vmatprep.subr.bf16.mxu0 %v8990_v19 }
 0x36b   : > { %8235 = vmatpush3.bf16.msra.mxu1 %v8989_v18  ;;  %8255 = vmatpush3.bf16.msra.mxu0 %v8990_v19  ;;  %v9002_v18 = vld [vmem:[#allocation16 + $0x20] sm:$0xff]  }
 0x36c   : > { %8236 = vmatprep.subr.bf16.mxu1 %v8991_v59  ;;  %8256 = vmatprep.subr.bf16.mxu0 %v8992_v22 }
 0x36f   : > { %8237 = vmatpush3.bf16.msra.mxu1 %v8991_v59  ;;  %8257 = vmatpush3.bf16.msra.mxu0 %v8992_v22 }
 0x370   : > { %8238 = vmatprep.subr.bf16.mxu1 %v8993_v23  ;;  %8258 = vmatprep.subr.bf16.mxu0 %v8994_v60 }
 0x373   : > { %8239 = vmatpush3.bf16.msra.mxu1 %v8993_v23  ;;  %8259 = vmatpush3.bf16.msra.mxu0 %v8994_v60  ;;  %v8999_v60 = vld [vmem:[#allocation13 + $0xa8] sm:$0xff]  }
 0x374   : > { %8264 = vmatprep.subr.bf16.mxu1 %v10633_v63  ;;  %8284 = vmatprep.subr.bf16.mxu0 %v8996_v1 }
 0x3b3   : > { %v7826_v4 = vpop.f32.mrf.mxu1  ;;  %v7854_v5 = vpop.f32.mrf.mxu0 }
 0x3b5   : > { %v7827_v6 = vpop.f32.mrf.mxu1  ;;  %v7855_v7 = vpop.f32.mrf.mxu0 }
 0x3b6   : > { %v7828_v8 = vadd.f32 %v7827_v6, %v7826_v4  ;;  %v7856_v9 = vadd.f32 %v7855_v7, %v7854_v5  ;;  %v9004_v6 = vld [vmem:[#allocation16 + $0x18] sm:$0xff]  }
 0x3b7   : > { %v7829_v11 = vpop.f32.mrf.mxu1  ;;  %v7857_v12 = vpop.f32.mrf.mxu0 }
 0x3b8   : > { %v2026_v13 = vadd.f32 %v7856_v9, %v7828_v8 }
 0x3b9   : > { %v7830_v14 = vpop.f32.mrf.mxu1  ;;  %v7858_v15 = vpop.f32.mrf.mxu0 }
 0x3ba   : > { %v2040_v16 = vadd.f32 %v7380_v10, %v2026_v13  ;;  %v7831_v17 = vadd.f32 %v7830_v14, %v7829_v11  ;;  %v7859_v20 = vadd.f32 %v7858_v15, %v7857_v12  ;;  %v9006_v15 = vld [vmem:[#allocation16 + $0x10] sm:$0xff]  }
 0x3bb   : > { %v7832_v21 = vpop.f32.mrf.mxu1  ;;  %v7860_v24 = vpop.f32.mrf.mxu0 }
 0x3bc   : > { %v2044_v25 = vmax.f32 %v2040_v16, 0.0  ;;  %v2029_v26 = vadd.f32 %v7859_v20, %v7831_v17 }
 0x3bd   : > { %v7833_v27 = vpop.f32.mrf.mxu1  ;;  %v7861_v28 = vpop.f32.mrf.mxu0 }
 0x3be   : > { %3168 = vst [vmem:[#allocation2 + $0x5] sm:$0xff] %v2044_v25  ;;  %v2041_v29 = vadd.f32 %v7380_v10, %v2029_v26  ;;  %v7834_v30 = vadd.f32 %v7833_v27, %v7832_v21  ;;  %v7862_v31 = vadd.f32 %v7861_v28, %v7860_v24  ;;  %v9003_v27 = vld [vmem:[#allocation13 + $0x98] sm:$0xff]  }
 0x3bf   : > { %v7835_v32 = vpop.f32.mrf.mxu1  ;;  %v7863_v33 = vpop.f32.mrf.mxu0 }
 0x3c0   : > { %v2045_v34 = vmax.f32 %v2041_v29, 0.0  ;;  %v2034_v35 = vadd.f32 %v7862_v31, %v7834_v30  ;;  %v9008_v30 = vld [vmem:[#allocation16 + $0x8] sm:$0xff]  }
 0x3c1   : > { %v7836_v36 = vpop.f32.mrf.mxu1  ;;  %v7864_v37 = vpop.f32.mrf.mxu0 }
 0x3c2   : > { %3169 = vst [vmem:[#allocation2 + $0xd] sm:$0xff] %v2045_v34  ;;  %v2042_v38 = vadd.f32 %v7380_v10, %v2034_v35  ;;  %v7837_v39 = vadd.f32 %v7836_v36, %v7835_v32  ;;  %v7865_v61 = vadd.f32 %v7864_v37, %v7863_v33  ;;  %v3299_v62 = vpack.c.bf16 %v2045_v34, %v2044_v25 }
 0x3c4   : > { %v2046_v40 = vmax.f32 %v2042_v38, 0.0  ;;  %v2037_v41 = vadd.f32 %v7865_v61, %v7837_v39  ;;  %8260 = vmatprep.mubr.bf16.mxu0 %v3299_v62  ;;  %v9005_v38 = vld [vmem:[#allocation13 + $0x90] sm:$0xff]   ;;  %v9010_v39 = vld [vmem:[#allocation16] sm:$0xff]  }
 0x3c5   : > { %v3172_v44 = vld [vmem:[#allocation2 + $0x4] sm:$0xff] }
 0x3c6   : > { %3170 = vst [vmem:[#allocation2 + $0x15] sm:$0xff] %v2046_v40  ;;  %v2043_v42 = vadd.f32 %v7380_v10, %v2037_v41  ;;  %v9007_v41 = vld [vmem:[#allocation13 + $0x88] sm:$0xff]  }
 0x3c8   : > { %v2047_v43 = vmax.f32 %v2043_v42, 0.0  ;;  %v9012_v42 = vld [vmem:[#allocation16 + $0xb8] sm:$0xff]  }
 0x3c9   : > { %v3173_v45 = vld [vmem:[#allocation2 + $0xc] sm:$0xff] }
 0x3ca   : > { %v3419_v46 = vld [vmem:[#allocation2 + $0x6] sm:$0xff]  ;;  %3171 = vst [vmem:[#allocation2 + $0x1d] sm:$0xff] %v2047_v43  ;;  %v3176_v47 = vpack.c.bf16 %v3173_v45, %v3172_v44  ;;  %v3300_v48 = vpack.c.bf16 %v2047_v43, %v2046_v40 }
 0x3cb   : > { %3550 = vst [vmem:[#allocation2] sm:$0xff] %v9949_v0 }
 0x3cc   : > { %8240 = vmatprep.mubr.bf16.mxu1 %v3176_v47  ;;  %8261 = vmatmul.mubr.bf16.vlgmr.msra.gmra.mxu0 %v3300_v48  ;;  %v9009_v48 = vld [vmem:[#allocation13 + $0x80] sm:$0xff]  }
 0x3cd   : > { %v3420_v50 = vld [vmem:[#allocation2 + $0xe] sm:$0xff]  ;;  %8285 = vmatpush3.bf16.msra.mxu0 %v8996_v1 }
 0x3ce   : > { %3551 = vst [vmem:[#allocation2 + $0x8] sm:$0xff] %v9949_v0  ;;  %8286 = vmatprep.subr.bf16.mxu0 %v8998_v49  ;;  %v3174_v52 = vld [vmem:[#allocation2 + $0x14] sm:$0xff]  ;;  %v3423_v3 = vpack.c.bf16 %v3420_v50, %v3419_v46  ;;  %v7413_v1 = vld [vmem:[#allocation8] ss:$0 sm:$0xff] }
 0x3cf   : > { %v9011_v50 = vld [vmem:[#allocation16 + $0x78] sm:$0xff]  }
 0x3d1   : > { %v3175_v53 = vld [vmem:[#allocation2 + $0x1c] sm:$0xff]  ;;  %8287 = vmatpush3.bf16.msra.mxu0 %v8998_v49 }
 0x3d2   : > { %v10638_v54 = vld [vmem:[#allocation2 + $0x16] sm:$0xff]  ;;  %v10640_v55 = vld [vmem:[#allocation2 + $0x1e] sm:$0xff]  ;;  %v3177_v56 = vpack.c.bf16 %v3175_v53, %v3174_v52  ;;  %8288 = vmatprep.subr.bf16.mxu0 %v9000_v51 }
 0x3d3   : > { %3552 = vst [vmem:[#allocation2 + $0x10] sm:$0xff] %v9949_v0  ;;  %3553 = vst [vmem:[#allocation2 + $0x18] sm:$0xff] %v9949_v0  ;;  %v7882_v58 = vpop.f32.mrf.mxu1  ;;  %v7910_v2 = vpop.f32.mrf.mxu0 }
 0x3d4   : > { %3554 = vst [vmem:[#allocation2 + $0x20] sm:$0xff] %v9949_v0  ;;  %8241 = vmatmul.mubr.bf16.vlgmr.msra.gmra.mxu1 %v3177_v56 }
 0x3d5   : > { %v7883_v19 = vpop.f32.mrf.mxu1  ;;  %v7911_v59 = vpop.f32.mrf.mxu0  ;;  %8265 = vmatpush3.bf16.msra.mxu1 %v10633_v63  ;;  %8280 = vmatprep.mubr.bf16.mxu1 %v3423_v3  ;;  %v9001_v63 = vld [vmem:[#allocation13 + $0xa0] sm:$0xff]   ;;  %v9013_v3 = vld [vmem:[#allocation16 + $0x70] sm:$0xff]  }
 0x3d6   : > { %v7884_v22 = vadd.f32 %v7883_v19, %v7882_v58  ;;  %v7912_v23 = vadd.f32 %v7911_v59, %v7910_v2  ;;  %8266 = vmatprep.subr.bf16.mxu1 %v8997_v57  ;;  %8289 = vmatpush3.bf16.msra.mxu0 %v9000_v51 }
 0x3d7   : > { %v7885_v4 = vpop.f32.mrf.mxu1  ;;  %v7913_v5 = vpop.f32.mrf.mxu0  ;;  %8290 = vmatprep.subr.bf16.mxu0 %v9002_v18 }
 0x3d8   : > { %v2395_v7 = vadd.f32 %v7912_v23, %v7884_v22  ;;  %v9015_v23 = vld [vmem:[#allocation16 + $0x68] sm:$0xff]  }
 0x3d9   : > { %v7886_v8 = vpop.f32.mrf.mxu1  ;;  %v7914_v9 = vpop.f32.mrf.mxu0  ;;  %8267 = vmatpush3.bf16.msra.mxu1 %v8997_v57  ;;  %v3424_v57 = vpack.c.bf16 %v10640_v55, %v10638_v54 }
 0x3da   : > { %v10646_v10 = vadd.f32 %v7413_v1, %v2395_v7  ;;  %v7887_v11 = vadd.f32 %v7886_v8, %v7885_v4  ;;  %v7915_v12 = vadd.f32 %v7914_v9, %v7913_v5  ;;  %8268 = vmatprep.subr.bf16.mxu1 %v8999_v60  ;;  %8291 = vmatpush3.bf16.msra.mxu0 %v9002_v18  ;;  %v9014_v18 = vld [vmem:[#allocation16 + $0xb0] sm:$0xff]   ;;  %v9017_v7 = vld [vmem:[#allocation16 + $0x60] sm:$0xff]  }
 0x3db   : > { %v7888_v13 = vpop.f32.mrf.mxu1  ;;  %v7916_v14 = vpop.f32.mrf.mxu0  ;;  %8292 = vmatprep.subr.bf16.mxu0 %v9004_v6  ;;  %v9018_v8 = vld [vmem:[#allocation16 + $0xa0] sm:$0xff]  }
 0x3dc   : > { %v2413_v16 = vmax.f32 %v10646_v10, 0.0  ;;  %v2398_v17 = vadd.f32 %v7915_v12, %v7887_v11 }
 0x3dd   : > { %v7889_v20 = vpop.f32.mrf.mxu1  ;;  %v7917_v21 = vpop.f32.mrf.mxu0  ;;  %8269 = vmatpush3.bf16.msra.mxu1 %v8999_v60  ;;  %v9016_v60 = vld [vmem:[#allocation16 + $0xa8] sm:$0xff]  }
 0x3de   : > { %3556 = vst [vmem:[#allocation2 + $0x5] sm:$0xff] %v2413_v16  ;;  %v10651_v24 = vadd.f32 %v7413_v1, %v2398_v17  ;;  %v7890_v25 = vadd.f32 %v7889_v20, %v7888_v13  ;;  %v7918_v26 = vadd.f32 %v7917_v21, %v7916_v14  ;;  %8270 = vmatprep.subr.bf16.mxu1 %v9001_v63 }
 0x3df   : > { %8293 = vmatpush3.bf16.msra.mxu0 %v9004_v6  ;;  %v7891_v28 = vpop.f32.mrf.mxu1  ;;  %v7919_v29 = vpop.f32.mrf.mxu0 }
 0x3e0   : > { %8294 = vmatprep.subr.bf16.mxu0 %v9006_v15  ;;  %v2414_v31 = vmax.f32 %v10651_v24, 0.0  ;;  %v2403_v32 = vadd.f32 %v7918_v26, %v7890_v25  ;;  %v9021_v25 = vld [vmem:[#allocation16 + $0x50] sm:$0xff]  }
 0x3e1   : > { %v7892_v33 = vpop.f32.mrf.mxu1  ;;  %v7920_v34 = vpop.f32.mrf.mxu0  ;;  %8271 = vmatpush3.bf16.msra.mxu1 %v9001_v63  ;;  %v9019_v63 = vld [vmem:[#allocation16 + $0x58] sm:$0xff]  }
 0x3e2   : > { %3557 = vst [vmem:[#allocation2 + $0xd] sm:$0xff] %v2414_v31  ;;  %v10654_v35 = vadd.f32 %v7413_v1, %v2403_v32  ;;  %v7893_v36 = vadd.f32 %v7892_v33, %v7891_v28  ;;  %v7921_v37 = vadd.f32 %v7920_v34, %v7919_v29  ;;  %8272 = vmatprep.subr.bf16.mxu1 %v9003_v27  ;;  %v9022_v28 = vld [vmem:[#allocation16 + $0x90] sm:$0xff]   ;;  %v10693_v29 = vld [vmem:[#allocation10] ss:$0 sm:$0xff]  ;;  %v9023_v32 = vld [vmem:[#allocation16 + $0x48] sm:$0xff]  }
 0x3e3   : > { %8295 = vmatpush3.bf16.msra.mxu0 %v9006_v15  ;;  %v3687_v2 = vpack.c.bf16 %v2414_v31, %v2413_v16  ;;  %v9020_v15 = vld [vmem:[#allocation16 + $0x98] sm:$0xff]   ;;  %v9024_v34 = vld [vmem:[#allocation16 + $0x88] sm:$0xff]  }
 0x3e4   : > { %8296 = vmatprep.subr.bf16.mxu0 %v9008_v30  ;;  %v2415_v61 = vmax.f32 %v10654_v35, 0.0  ;;  %v2406_v62 = vadd.f32 %v7921_v37, %v7893_v36 }
 0x3e5   : > { %8273 = vmatpush3.bf16.msra.mxu1 %v9003_v27  ;;  %v3560_v45 = vld [vmem:[#allocation2 + $0x4] sm:$0xff] }
 0x3e6   : > { %3558 = vst [vmem:[#allocation2 + $0x15] sm:$0xff] %v2415_v61  ;;  %v10659_v40 = vadd.f32 %v7413_v1, %v2406_v62  ;;  %8274 = vmatprep.subr.bf16.mxu1 %v9005_v38  ;;  %v9026_v62 = vld [vmem:[#allocation16 + $0x80] sm:$0xff]  }
 0x3e7   : > { %8297 = vmatpush3.bf16.msra.mxu0 %v9008_v30 }
 0x3e8   : > { %8298 = vmatprep.subr.bf16.mxu0 %v9010_v39  ;;  %v2416_v43 = vmax.f32 %v10659_v40, 0.0 }
 0x3e9   : > { %v3807_v44 = vld [vmem:[#allocation2 + $0x6] sm:$0xff]  ;;  %8275 = vmatpush3.bf16.msra.mxu1 %v9005_v38  ;;  %v9025_v38 = vld [vmem:[#allocation16 + $0x40] sm:$0xff]  }
 0x3ea   : > { %v3561_v46 = vld [vmem:[#allocation2 + $0xc] sm:$0xff]  ;;  %3559 = vst [vmem:[#allocation2 + $0x1d] sm:$0xff] %v2416_v43  ;;  %8276 = vmatprep.subr.bf16.mxu1 %v9007_v41  ;;  %3942 = vst [vmem:[#allocation2] sm:$0xff] %v9949_v0 }
 0x3eb   : > { %v3564_v47 = vpack.c.bf16 %v3561_v46, %v3560_v45  ;;  %8299 = vmatpush3.bf16.msra.mxu0 %v9010_v39 }
 0x3ec   : > { %8324 = vmatprep.subr.bf16.mxu0 %v9012_v42 }
 0x3ed   : > { %8300 = vmatprep.mubr.bf16.mxu0 %v3564_v47  ;;  %v3808_v49 = vld [vmem:[#allocation2 + $0xe] sm:$0xff]  ;;  %8277 = vmatpush3.bf16.msra.mxu1 %v9007_v41  ;;  %v3688_v41 = vpack.c.bf16 %v2416_v43, %v2415_v61 }
 0x3ee   : > { %8278 = vmatprep.subr.bf16.mxu1 %v9009_v48  ;;  %3943 = vst [vmem:[#allocation2 + $0x8] sm:$0xff] %v9949_v0  ;;  %v3562_v51 = vld [vmem:[#allocation2 + $0x14] sm:$0xff]  ;;  %v3811_v54 = vpack.c.bf16 %v3808_v49, %v3807_v44 }
 0x3f1   : > { %v3563_v52 = vld [vmem:[#allocation2 + $0x1c] sm:$0xff]  ;;  %8279 = vmatpush3.bf16.msra.mxu1 %v9009_v48 }
 0x3f2   : > { %v10666_v53 = vld [vmem:[#allocation2 + $0x16] sm:$0xff]  ;;  %v10668_v56 = vld [vmem:[#allocation2 + $0x1e] sm:$0xff]  ;;  %v3565_v58 = vpack.c.bf16 %v3563_v52, %v3562_v51  ;;  %8304 = vmatprep.subr.bf16.mxu1 %v9011_v50 }
 0x3f3   : > { %3944 = vst [vmem:[#allocation2 + $0x10] sm:$0xff] %v9949_v0  ;;  %3945 = vst [vmem:[#allocation2 + $0x18] sm:$0xff] %v9949_v0 }
 0x3f4   : > { %3946 = vst [vmem:[#allocation2 + $0x20] sm:$0xff] %v9949_v0  ;;  %v10677_v19 = vpop.f32.mrf.mxu1  ;;  %v10679_v59 = vpop.f32.mrf.mxu0  ;;  %8281 = vmatmul.mubr.bf16.vlgmr.msra.gmra.mxu1 %v3424_v57  ;;  %8301 = vmatmul.mubr.bf16.vlgmr.msra.gmra.mxu0 %v3565_v58  ;;  %v7479_v57 = vld [vmem:[#allocation11] ss:$0 sm:$0xff] }
 0x3f5   : > { %8305 = vmatpush3.bf16.msra.mxu1 %v9011_v50  ;;  %8320 = vmatprep.mubr.bf16.mxu1 %v3687_v2 }
 0x3f6   : > { %v10681_v55 = vpop.f32.mrf.mxu1  ;;  %v10683_v22 = vpop.f32.mrf.mxu0  ;;  %8325 = vmatpush3.bf16.msra.mxu0 %v9012_v42  ;;  %8340 = vmatprep.mubr.bf16.mxu0 %v3811_v54  ;;  %v3812_v42 = vpack.c.bf16 %v10668_v56, %v10666_v53 }
 0x3f7   : > { %8306 = vmatprep.subr.bf16.mxu1 %v9013_v3  ;;  %8326 = vmatprep.subr.bf16.mxu0 %v9014_v18 }
 0x3f8   : > { %v10685_v1 = vpop.f32.mrf.mxu1  ;;  %v10687_v4 = vpop.f32.mrf.mxu0 }
 0x3f9   : > { %8307 = vmatpush3.bf16.msra.mxu1 %v9013_v3 }
 0x3fa   : > { %v10689_v5 = vpop.f32.mrf.mxu1  ;;  %v10691_v6 = vpop.f32.mrf.mxu0  ;;  %8327 = vmatpush3.bf16.msra.mxu0 %v9014_v18  ;;  %8308 = vmatprep.subr.bf16.mxu1 %v9015_v23 }
 0x3fb   : > { %8328 = vmatprep.subr.bf16.mxu0 %v9016_v60 }
 0x3fc   : > { %v7944_v9 = vpop.f32.mrf.mxu1  ;;  %v7972_v10 = vpop.f32.mrf.mxu0 }
 0x3fd   : > { %8309 = vmatpush3.bf16.msra.mxu1 %v9015_v23 }
 0x3fe   : > { %v7945_v11 = vpop.f32.mrf.mxu1  ;;  %v7973_v12 = vpop.f32.mrf.mxu0  ;;  %8329 = vmatpush3.bf16.msra.mxu0 %v9016_v60  ;;  %8310 = vmatprep.subr.bf16.mxu1 %v9017_v7 }
 0x3ff   : > { %v7946_v13 = vadd.f32 %v7945_v11, %v7944_v9  ;;  %v7974_v14 = vadd.f32 %v7973_v12, %v7972_v10  ;;  %8330 = vmatprep.subr.bf16.mxu0 %v9018_v8 }
 0x400   : > { %v7947_v16 = vpop.f32.mrf.mxu1  ;;  %v7975_v17 = vpop.f32.mrf.mxu0 }
 0x401   : > { %v2772_v20 = vadd.f32 %v7974_v14, %v7946_v13  ;;  %8311 = vmatpush3.bf16.msra.mxu1 %v9017_v7 }
 0x402   : > { %v7948_v21 = vpop.f32.mrf.mxu1  ;;  %v7976_v24 = vpop.f32.mrf.mxu0  ;;  %8331 = vmatpush3.bf16.msra.mxu0 %v9018_v8  ;;  %8312 = vmatprep.subr.bf16.mxu1 %v9019_v63 }
 0x403   : > { %v7949_v26 = vadd.f32 %v7948_v21, %v7947_v16  ;;  %v7977_v27 = vadd.f32 %v7976_v24, %v7975_v17  ;;  %8332 = vmatprep.subr.bf16.mxu0 %v9020_v15  ;;  %v2780_v30 = vadd.f32 %v10693_v29, %v2772_v20 }
 0x405   : > { %v2775_v31 = vadd.f32 %v7977_v27, %v7949_v26  ;;  %8313 = vmatpush3.bf16.msra.mxu1 %v9019_v63  ;;  %v2784_v36 = vmax.f32 %v2780_v30, 0.0  ;;  %v9027_v26 = vld [vmem:[#allocation19 + $0x38] sm:$0xff]   ;;  %v9030_v30 = vld [vmem:[#allocation19 + $0x70] sm:$0xff]  }
 0x406   : > { %8333 = vmatpush3.bf16.msra.mxu0 %v9020_v15  ;;  %8314 = vmatprep.subr.bf16.mxu1 %v9021_v25  ;;  %v9028_v27 = vld [vmem:[#allocation19 + $0x78] sm:$0xff]  }
 0x407   : > { %v2781_v33 = vadd.f32 %v10693_v29, %v2775_v31  ;;  %8334 = vmatprep.subr.bf16.mxu0 %v9022_v28  ;;  %v9031_v31 = vld [vmem:[#allocation19 + $0x28] sm:$0xff]  }
 0x409   : > { %v2785_v37 = vmax.f32 %v2781_v33, 0.0  ;;  %8315 = vmatpush3.bf16.msra.mxu1 %v9021_v25  ;;  %v9034_v33 = vld [vmem:[#allocation19 + $0x60] sm:$0xff]  }
 0x40a   : > { %8335 = vmatpush3.bf16.msra.mxu0 %v9022_v28  ;;  %8316 = vmatprep.subr.bf16.mxu1 %v9023_v32  ;;  %v9029_v28 = vld [vmem:[#allocation19 + $0x30] sm:$0xff]  }
 0x40b   : > { %v10697_v39 = vpack.c.bf16 %v2785_v37, %v2784_v36  ;;  %8336 = vmatprep.subr.bf16.mxu0 %v9024_v34  ;;  %v9033_v36 = vld [vmem:[#allocation19 + $0x20] sm:$0xff]   ;;  %v9038_v37 = vld [vmem:[#allocation19 + $0x50] sm:$0xff]  }
 0x40d   : > { %8317 = vmatpush3.bf16.msra.mxu1 %v9023_v32  ;;  %v9032_v32 = vld [vmem:[#allocation19 + $0x68] sm:$0xff]  }
 0x40e   : > { %8337 = vmatpush3.bf16.msra.mxu0 %v9024_v34  ;;  %8318 = vmatprep.subr.bf16.mxu1 %v9025_v38  ;;  %v9036_v34 = vld [vmem:[#allocation19 + $0x58] sm:$0xff]  }
 0x40f   : > { %8338 = vmatprep.subr.bf16.mxu0 %v9026_v62 }
 0x411   : > { %8319 = vmatpush3.bf16.msra.mxu1 %v9025_v38  ;;  %v9035_v38 = vld [vmem:[#allocation19 + $0x18] sm:$0xff]  }
 0x412   : > { %8339 = vmatpush3.bf16.msra.mxu0 %v9026_v62  ;;  %8344 = vmatprep.subr.bf16.mxu1 %v9027_v26  ;;  %v9040_v62 = vld [vmem:[#allocation19 + $0x48] sm:$0xff]  }
 0x413   : > { %8364 = vmatprep.subr.bf16.mxu0 %v9028_v27 }
 0x414   : > { %8321 = vmatmul.mubr.bf16.vlgmr.msra.gmra.mxu1 %v3688_v41  ;;  %v9037_v41 = vld [vmem:[#allocation19 + $0x10] sm:$0xff]  }
 0x415   : > { %v7994_v44 = vpop.f32.mrf.mxu1  ;;  %v8022_v45 = vpop.f32.mrf.mxu0  ;;  %8341 = vmatmul.mubr.bf16.vlgmr.msra.gmra.mxu0 %v3812_v42  ;;  %8345 = vmatpush3.bf16.msra.mxu1 %v9027_v26  ;;  %v9042_v42 = vld [vmem:[#allocation19 + $0x40] sm:$0xff]  }
 0x416   : > { %8365 = vmatpush3.bf16.msra.mxu0 %v9028_v27  ;;  %8346 = vmatprep.subr.bf16.mxu1 %v9029_v28 }
 0x417   : > { %v7995_v46 = vpop.f32.mrf.mxu1  ;;  %v8023_v47 = vpop.f32.mrf.mxu0  ;;  %8366 = vmatprep.subr.bf16.mxu0 %v9030_v30 }
 0x418   : > { %v7996_v48 = vadd.f32 %v7995_v46, %v7994_v44  ;;  %v8024_v49 = vadd.f32 %v8023_v47, %v8022_v45  ;;  %v9039_v44 = vld [vmem:[#allocation19 + $0x8] sm:$0xff]   ;;  %v9041_v45 = vld [vmem:[#allocation19] sm:$0xff]   ;;  %v10713_v47 = vld [vmem:[#allocation19 + $0xb8] sm:$0xff]  }
 0x419   : > { %v7997_v50 = vpop.f32.mrf.mxu1  ;;  %v8025_v51 = vpop.f32.mrf.mxu0  ;;  %8347 = vmatpush3.bf16.msra.mxu1 %v9029_v28  ;;  %v10710_v46 = vld [vmem:[%s11115_s22 + $0x38] sm:$0xff]   ;;  %v7940_v28 = vadd.f32 %v10681_v55, %v10677_v19 }
 0x41a   : > { %v3133_v52 = vadd.f32 %v8024_v49, %v7996_v48  ;;  %8367 = vmatpush3.bf16.msra.mxu0 %v9030_v30  ;;  %8348 = vmatprep.subr.bf16.mxu1 %v9031_v31  ;;  %v7512_v49 = vld [vmem:[#allocation14] ss:$0 sm:$0xff]  ;;  %v7968_v30 = vadd.f32 %v10683_v22, %v10679_v59 }
 0x41b   : > { %v7998_v58 = vpop.f32.mrf.mxu1  ;;  %v8026_v35 = vpop.f32.mrf.mxu0  ;;  %8368 = vmatprep.subr.bf16.mxu0 %v9032_v32 }
 0x41c   : > { %v7999_v2 = vadd.f32 %v7998_v58, %v7997_v50  ;;  %v8027_v40 = vadd.f32 %v8026_v35, %v8025_v51  ;;  %v3147_v3 = vadd.f32 %v7479_v57, %v3133_v52 }
 0x41d   : > { %v8000_v61 = vpop.f32.mrf.mxu1  ;;  %v8028_v43 = vpop.f32.mrf.mxu0  ;;  %8349 = vmatpush3.bf16.msra.mxu1 %v9031_v31 }
 0x41e   : > { %v3136_v53 = vadd.f32 %v8027_v40, %v7999_v2  ;;  %v3151_v9 = vmax.f32 %v3147_v3, 0.0  ;;  %8369 = vmatpush3.bf16.msra.mxu0 %v9032_v32  ;;  %8350 = vmatprep.subr.bf16.mxu1 %v9033_v36 }
 0x41f   : > { %v8001_v56 = vpop.f32.mrf.mxu1  ;;  %v8029_v18 = vpop.f32.mrf.mxu0  ;;  %8370 = vmatprep.subr.bf16.mxu0 %v9034_v33 }
 0x420   : > { %v3148_v54 = vadd.f32 %v7479_v57, %v3136_v53  ;;  %v8002_v23 = vadd.f32 %v8001_v56, %v8000_v61  ;;  %v8030_v60 = vadd.f32 %v8029_v18, %v8028_v43 }
 0x421   : > { %v8003_v7 = vpop.f32.mrf.mxu1  ;;  %v8031_v8 = vpop.f32.mrf.mxu0  ;;  %8351 = vmatpush3.bf16.msra.mxu1 %v9033_v36 }
 0x422   : > { %v3152_v10 = vmax.f32 %v3148_v54, 0.0  ;;  %v3141_v11 = vadd.f32 %v8030_v60, %v8002_v23  ;;  %8371 = vmatpush3.bf16.msra.mxu0 %v9034_v33  ;;  %8352 = vmatprep.subr.bf16.mxu1 %v9035_v38 }
 0x423   : > { %v8004_v12 = vpop.f32.mrf.mxu1  ;;  %v8032_v63 = vpop.f32.mrf.mxu0  ;;  %8372 = vmatprep.subr.bf16.mxu0 %v9036_v34 }
 0x424   : > { %v10705_v13 = vpack.c.bf16 %v3152_v10, %v3151_v9  ;;  %v8005_v14 = vadd.f32 %v8004_v12, %v8003_v7  ;;  %v8033_v15 = vadd.f32 %v8032_v63, %v8031_v8  ;;  %v3149_v16 = vadd.f32 %v7479_v57, %v3141_v11 }
 0x425   : > { %8353 = vmatpush3.bf16.msra.mxu1 %v9035_v38 }
 0x426   : > { %v3144_v17 = vadd.f32 %v8033_v15, %v8005_v14  ;;  %v3153_v21 = vmax.f32 %v3149_v16, 0.0  ;;  %8373 = vmatpush3.bf16.msra.mxu0 %v9036_v34  ;;  %8354 = vmatprep.subr.bf16.mxu1 %v9037_v41 }
 0x427   : > { %8374 = vmatprep.subr.bf16.mxu0 %v9038_v37 }
 0x428   : > { %v3150_v20 = vadd.f32 %v7479_v57, %v3144_v17 }
 0x429   : > { %8355 = vmatpush3.bf16.msra.mxu1 %v9037_v41  ;;  %v2764_v41 = vadd.f32 %v7968_v30, %v7940_v28  ;;  %v9057_v28 = vld [vmem:[#allocation19 + $0x80] sm:$0xff]  }
 0x42a   : > { %v3154_v24 = vmax.f32 %v3150_v20, 0.0  ;;  %8375 = vmatpush3.bf16.msra.mxu0 %v9038_v37  ;;  %8356 = vmatprep.subr.bf16.mxu1 %v9039_v44  ;;  %v7537_v20 = vld [vmem:[#allocation17] ss:$0 sm:$0xff] }
 0x42b   : > { %8376 = vmatprep.subr.bf16.mxu0 %v9040_v62 }
 0x42c   : > { %v10707_v25 = vpack.c.bf16 %v3154_v24, %v3153_v21  ;;  %v7943_v21 = vadd.f32 %v10689_v5, %v10685_v1  ;;  %v7971_v24 = vadd.f32 %v10691_v6, %v10687_v4 }
 0x42d   : > { %8357 = vmatpush3.bf16.msra.mxu1 %v9039_v44 }
 0x42e   : > { %8377 = vmatpush3.bf16.msra.mxu0 %v9040_v62  ;;  %8358 = vmatprep.subr.bf16.mxu1 %v9041_v45  ;;  %v2767_v37 = vadd.f32 %v7971_v24, %v7943_v21  ;;  %v9051_v21 = vld [vmem:[#allocation19 + $0x98] sm:$0xff]   ;;  %v9053_v24 = vld [vmem:[#allocation19 + $0x90] sm:$0xff]  }
 0x42f   : > { %8378 = vmatprep.subr.bf16.mxu0 %v9042_v42 }
 0x430   : > { %v2779_v59 = vadd.f32 %v10693_v29, %v2767_v37  ;;  %v9063_v37 = vld [vmem:[#allocation23 + $0x28] sm:$0xff]  }
 0x431   : > { %8359 = vmatpush3.bf16.msra.mxu1 %v9041_v45 }
 0x432   : > { %8379 = vmatpush3.bf16.msra.mxu0 %v9042_v42  ;;  %8384 = vmatprep.subr.bf16.mxu1 %v10713_v47 }
 0x433   : > { %8404 = vmatprep.subr.bf16.mxu0 %v10710_v46 }
 0x48c   : > { %v8262_v48 = vpop.f32.mrf.mxu0 }
 0x48e   : > { %v3400_v51 = vpop.f32.mrf.mxu0 }
 0x490   : > { %v8263_v40 = vpop.f32.mrf.mxu0 }
 0x492   : > { %v3403_v18 = vpop.f32.mrf.mxu0 }
 0x494   : > { %v8242_v50 = vpop.f32.mrf.mxu1 }
 0x495   : > { %v3293_v52 = vadd.f32 %v8242_v50, %v7512_v49 }
 0x496   : > { %v3276_v57 = vpop.f32.mrf.mxu1 }
 0x497   : > { %v3417_v58 = vadd.f32 %v8262_v48, %v3293_v52  ;;  %v3291_v35 = vadd.f32 %v7512_v49, %v3276_v57 }
 0x498   : > { %v8243_v2 = vpop.f32.mrf.mxu1 }
 0x499   : > { %v3415_v61 = vadd.f32 %v3400_v51, %v3291_v35  ;;  %v3294_v43 = vadd.f32 %v8243_v2, %v7512_v49  ;;  %v2778_v51 = vadd.f32 %v10693_v29, %v2764_v41  ;;  %v9072_v41 = vld [vmem:[#allocation23 + $0x48] sm:$0xff]  }
 0x49a   : > { %v3279_v3 = vpop.f32.mrf.mxu1 }
 0x49b   : > { %v3418_v53 = vadd.f32 %v8263_v40, %v3294_v43  ;;  %v3292_v56 = vadd.f32 %v7512_v49, %v3279_v3  ;;  %v2782_v2 = vmax.f32 %v2778_v51, 0.0  ;;  %v9046_v43 = vld [vmem:[%s11115_s22 + $0x30] sm:$0xff]  }
 0x49d   : > { %v3416_v54 = vadd.f32 %v3403_v18, %v3292_v56  ;;  %v9048_v56 = vld [vmem:[%s11115_s22 + $0x28] sm:$0xff]  }
 0x4b4   : > { %v8282_v23 = vpop.f32.mrf.mxu1  ;;  %v8302_v15 = vpop.f32.mrf.mxu0 }
 0x4b5   : > { %v3541_v60 = vadd.f32 %v8282_v23, %v3417_v58  ;;  %v3681_v26 = vadd.f32 %v8302_v15, %v7537_v20  ;;  %v2783_v58 = vmax.f32 %v2779_v59, 0.0  ;;  %v9047_v15 = vld [vmem:[#allocation19 + $0xa8] sm:$0xff]   ;;  %v7562_v59 = vld [vmem:[#allocation20] ss:$0 sm:$0xff] }
 0x4b6   : > { %v3524_v7 = vpop.f32.mrf.mxu1  ;;  %v3664_v16 = vpop.f32.mrf.mxu0 }
 0x4b7   : > { %v3539_v8 = vadd.f32 %v3524_v7, %v3415_v61  ;;  %v3679_v32 = vadd.f32 %v7537_v20, %v3664_v16  ;;  %v4330_v3 = vpack.c.bf16 %v2783_v58, %v2782_v2  ;;  %v9052_v16 = vld [vmem:[%s11115_s22 + $0x18] sm:$0xff]  }
 0x4b8   : > { %v8283_v9 = vpop.f32.mrf.mxu1  ;;  %v8303_v17 = vpop.f32.mrf.mxu0 }
 0x4b9   : > { %v3542_v10 = vadd.f32 %v8283_v9, %v3418_v53  ;;  %v3682_v38 = vadd.f32 %v8303_v17, %v7537_v20  ;;  %v9049_v17 = vld [vmem:[#allocation19 + $0xa0] sm:$0xff]  }
 0x4ba   : > { %v3527_v11 = vpop.f32.mrf.mxu1  ;;  %v3667_v27 = vpop.f32.mrf.mxu0 }
 0x4bb   : > { %v10716_v12 = vpack.c.bf16 %v3542_v10, %v3541_v60  ;;  %v3540_v63 = vadd.f32 %v3527_v11, %v3416_v54  ;;  %v3680_v6 = vadd.f32 %v7537_v20, %v3667_v27  ;;  %v9054_v20 = vld [vmem:[%s11115_s22 + $0x10] sm:$0xff]   ;;  %v9055_v27 = vld [vmem:[#allocation19 + $0x88] sm:$0xff]  }
 0x4bd   : > { %v10718_v14 = vpack.c.bf16 %v3540_v63, %v3539_v8  ;;  %v9050_v63 = vld [vmem:[%s11115_s22 + $0x20] sm:$0xff]  }
 0x4d4   : > { %v8322_v31 = vpop.f32.mrf.mxu1 }
 0x4d5   : > { %v3805_v33 = vadd.f32 %v8322_v31, %v3681_v26  ;;  %v8342_v34 = vpop.f32.mrf.mxu0  ;;  %v9058_v26 = vld [vmem:[%s11115_s22] sm:$0xff]   ;;  %v9060_v31 = vld [vmem:[#allocation23 + $0x78] sm:$0xff]  }
 0x4d6   : > { %v3788_v36 = vpop.f32.mrf.mxu1 }
 0x4d7   : > { %v3929_v62 = vadd.f32 %v8342_v34, %v3805_v33  ;;  %v3803_v1 = vadd.f32 %v3788_v36, %v3679_v32  ;;  %v3912_v5 = vpop.f32.mrf.mxu0  ;;  %v9062_v32 = vld [vmem:[#allocation23 + $0x70] sm:$0xff]   ;;  %v9059_v33 = vld [vmem:[#allocation23 + $0x38] sm:$0xff]   ;;  %v9064_v36 = vld [vmem:[#allocation23 + $0x68] sm:$0xff]  }
 0x4d8   : > { %v8323_v4 = vpop.f32.mrf.mxu1  ;;  %v9061_v34 = vld [vmem:[#allocation23 + $0x30] sm:$0xff]  }
 0x4d9   : > { %v3933_v42 = vmax.f32 %v3929_v62, 0.0  ;;  %v3927_v44 = vadd.f32 %v3912_v5, %v3803_v1  ;;  %v3806_v45 = vadd.f32 %v8323_v4, %v3682_v38  ;;  %v8343_v19 = vpop.f32.mrf.mxu0  ;;  %v9068_v38 = vld [vmem:[#allocation23 + $0x58] sm:$0xff]   ;;  %v9065_v62 = vld [vmem:[#allocation23 + $0x20] sm:$0xff]   ;;  %v9070_v1 = vld [vmem:[#allocation23 + $0x50] sm:$0xff]  }
 0x4da   : > { %v3791_v55 = vpop.f32.mrf.mxu1  ;;  %v9067_v5 = vld [vmem:[#allocation23 + $0x18] sm:$0xff]   ;;  %v9069_v4 = vld [vmem:[#allocation23 + $0x10] sm:$0xff]  }
 0x4db   : > { %3950 = vst [vmem:[#allocation2 + $0x15] sm:$0xff] %v3933_v42  ;;  %v3931_v22 = vmax.f32 %v3927_v44, 0.0  ;;  %v3930_v48 = vadd.f32 %v8343_v19, %v3806_v45  ;;  %v3804_v49 = vadd.f32 %v3791_v55, %v3680_v6  ;;  %v3915_v50 = vpop.f32.mrf.mxu0  ;;  %v9074_v6 = vld [vmem:[#allocation23 + $0x40] sm:$0xff]   ;;  %v9076_v44 = vld [vmem:[%s11116_s10 + $0x18] sm:$0xff]  }
 0x4dc   : > { %v9073_v45 = vld [vmem:[#allocation23] sm:$0xff]   ;;  %v10746_v19 = vld [vmem:[#allocation23 + $0xb8] sm:$0xff]  }
 0x4dd   : > { %3948 = vst [vmem:[#allocation2 + $0x5] sm:$0xff] %v3931_v22  ;;  %v3934_v52 = vmax.f32 %v3930_v48, 0.0  ;;  %v3928_v57 = vadd.f32 %v3915_v50, %v3804_v49 }
 0x4df   : > { %3951 = vst [vmem:[#allocation2 + $0x1d] sm:$0xff] %v3934_v52  ;;  %v3932_v35 = vmax.f32 %v3928_v57, 0.0  ;;  %v4080_v61 = vpack.c.bf16 %v3934_v52, %v3933_v42  ;;  %v9071_v42 = vld [vmem:[#allocation23 + $0x8] sm:$0xff]  }
 0x4e1   : > { %3949 = vst [vmem:[#allocation2 + $0xd] sm:$0xff] %v3932_v35  ;;  %v4079_v40 = vpack.c.bf16 %v3932_v35, %v3931_v22 }
 0x4e3   : > { %8380 = vmatprep.mubr.bf16.mxu0 %v4079_v40 }
 0x4e4   : > { %v3952_v53 = vld [vmem:[#allocation2 + $0x2] sm:$0xff]  ;;  %8381 = vmatmul.mubr.bf16.vlgmr.msra.gmra.mxu0 %v4080_v61 }
 0x4e5   : > { %4460 = vst [vmem:[#allocation2] sm:$0xff] %v9949_v0  ;;  %8405 = vmatpush3.bf16.msra.mxu0 %v10710_v46  ;;  %8420 = vmatprep.mubr.bf16.mxu0 %v4330_v3  ;;  %v9045_v46 = vld [vmem:[#allocation19 + $0xb0] sm:$0xff]  }
 0x4e6   : > { %v3955_v29 = vld [vmem:[#allocation2 + $0x1a] sm:$0xff]  ;;  %8406 = vmatprep.subr.bf16.mxu0 %v9046_v43 }
 0x4e7   : > { %v4202_v18 = vld [vmem:[#allocation2 + $0x20] sm:$0xff]  ;;  %v4201_v54 = vld [vmem:[#allocation2 + $0x18] sm:$0xff] }
 0x4e8   : > { %4464 = vst [vmem:[#allocation2 + $0x20] sm:$0xff] %v9949_v0  ;;  %v3953_v23 = vld [vmem:[#allocation2 + $0xa] sm:$0xff]  ;;  %v3954_v60 = vld [vmem:[#allocation2 + $0x12] sm:$0xff]  ;;  %v4204_v30 = vpack.c.bf16 %v4202_v18, %v4201_v54 }
 0x4e9   : > { %v4199_v7 = vld [vmem:[#allocation2 + $0x8] sm:$0xff]  ;;  %v3956_v8 = vpack.c.bf16 %v3953_v23, %v3952_v53  ;;  %v3957_v9 = vpack.c.bf16 %v3955_v29, %v3954_v60  ;;  %v4200_v10 = vld [vmem:[#allocation2 + $0x10] sm:$0xff]  ;;  %8407 = vmatpush3.bf16.msra.mxu0 %v9046_v43  ;;  %4463 = vst [vmem:[#allocation2 + $0x18] sm:$0xff] %v9949_v0  ;;  %v7587_v29 = vld [vmem:[#allocation22] ss:$0 sm:$0xff] }
 0x4ea   : > { %4461 = vst [vmem:[#allocation2 + $0x8] sm:$0xff] %v9949_v0  ;;  %4462 = vst [vmem:[#allocation2 + $0x10] sm:$0xff] %v9949_v0  ;;  %8408 = vmatprep.subr.bf16.mxu0 %v9048_v56  ;;  %v4203_v11 = vpack.c.bf16 %v4200_v10, %v4199_v7 }
 0x4eb   : > { %8360 = vmatprep.mubr.bf16.mxu1 %v3956_v8 }
 0x4ec   : > { %8361 = vmatmul.mubr.bf16.vlgmr.msra.gmra.mxu1 %v3957_v9 }
 0x4ed   : > { %8385 = vmatpush3.bf16.msra.mxu1 %v10713_v47  ;;  %8400 = vmatprep.mubr.bf16.mxu1 %v4203_v11  ;;  %v9056_v47 = vld [vmem:[%s11115_s22 + $0x8] sm:$0xff]  }
 0x4ee   : > { %8386 = vmatprep.subr.bf16.mxu1 %v9045_v46  ;;  %8409 = vmatpush3.bf16.msra.mxu0 %v9048_v56 }
 0x4ef   : > { %8410 = vmatprep.subr.bf16.mxu0 %v9050_v63 }
 0x4f1   : > { %8387 = vmatpush3.bf16.msra.mxu1 %v9045_v46 }
 0x4f2   : > { %8388 = vmatprep.subr.bf16.mxu1 %v9047_v15  ;;  %8411 = vmatpush3.bf16.msra.mxu0 %v9050_v63 }
 0x4f3   : > { %8412 = vmatprep.subr.bf16.mxu0 %v9052_v16 }
 0x4f5   : > { %8389 = vmatpush3.bf16.msra.mxu1 %v9047_v15 }
 0x4f6   : > { %8390 = vmatprep.subr.bf16.mxu1 %v9049_v17  ;;  %8413 = vmatpush3.bf16.msra.mxu0 %v9052_v16 }
 0x4f7   : > { %8414 = vmatprep.subr.bf16.mxu0 %v9054_v20 }
 0x4f9   : > { %8391 = vmatpush3.bf16.msra.mxu1 %v9049_v17 }
 0x4fa   : > { %8392 = vmatprep.subr.bf16.mxu1 %v9051_v21  ;;  %8415 = vmatpush3.bf16.msra.mxu0 %v9054_v20 }
 0x4fb   : > { %8416 = vmatprep.subr.bf16.mxu0 %v9056_v47 }
 0x4fd   : > { %8393 = vmatpush3.bf16.msra.mxu1 %v9051_v21 }
 0x4fe   : > { %8394 = vmatprep.subr.bf16.mxu1 %v9053_v24  ;;  %8417 = vmatpush3.bf16.msra.mxu0 %v9056_v47 }
 0x4ff   : > { %8418 = vmatprep.subr.bf16.mxu0 %v9058_v26 }
 0x501   : > { %8395 = vmatpush3.bf16.msra.mxu1 %v9053_v24 }
 0x502   : > { %8396 = vmatprep.subr.bf16.mxu1 %v9055_v27  ;;  %8419 = vmatpush3.bf16.msra.mxu0 %v9058_v26 }
 0x503   : > { %8444 = vmatprep.subr.bf16.mxu0 %v9060_v31 }
 0x505   : > { %8397 = vmatpush3.bf16.msra.mxu1 %v9055_v27  ;;  %8421 = vmatmul.mubr.bf16.vlgmr.msra.gmra.mxu0 %v10697_v39  ;;  %v9066_v39 = vld [vmem:[#allocation23 + $0x60] sm:$0xff]   ;;  %v9078_v27 = vld [vmem:[%s11116_s10 + $0x10] sm:$0xff]  }
 0x506   : > { %8398 = vmatprep.subr.bf16.mxu1 %v9057_v28  ;;  %8445 = vmatpush3.bf16.msra.mxu0 %v9060_v31 }
 0x507   : > { %8446 = vmatprep.subr.bf16.mxu0 %v9062_v32 }
 0x509   : > { %8399 = vmatpush3.bf16.msra.mxu1 %v9057_v28 }
 0x50a   : > { %8424 = vmatprep.subr.bf16.mxu1 %v9059_v33  ;;  %8447 = vmatpush3.bf16.msra.mxu0 %v9062_v32 }
 0x50b   : > { %8448 = vmatprep.subr.bf16.mxu0 %v9064_v36 }
 0x50c   : > { %8401 = vmatmul.mubr.bf16.vlgmr.msra.gmra.mxu1 %v4204_v30 }
 0x50d   : > { %8425 = vmatpush3.bf16.msra.mxu1 %v9059_v33 }
 0x50e   : > { %8426 = vmatprep.subr.bf16.mxu1 %v9061_v34  ;;  %8449 = vmatpush3.bf16.msra.mxu0 %v9064_v36  ;;  %v9080_v36 = vld [vmem:[%s11116_s10 + $0x8] sm:$0xff]  }
 0x50f   : > { %8450 = vmatprep.subr.bf16.mxu0 %v9066_v39 }
 0x511   : > { %8427 = vmatpush3.bf16.msra.mxu1 %v9061_v34 }
 0x512   : > { %8428 = vmatprep.subr.bf16.mxu1 %v9063_v37  ;;  %8451 = vmatpush3.bf16.msra.mxu0 %v9066_v39 }
 0x513   : > { %8452 = vmatprep.subr.bf16.mxu0 %v9068_v38 }
 0x515   : > { %8429 = vmatpush3.bf16.msra.mxu1 %v9063_v37 }
 0x516   : > { %8453 = vmatpush3.bf16.msra.mxu0 %v9068_v38  ;;  %8430 = vmatprep.subr.bf16.mxu1 %v9065_v62 }
 0x517   : > { %8454 = vmatprep.subr.bf16.mxu0 %v9070_v1 }
 0x519   : > { %8431 = vmatpush3.bf16.msra.mxu1 %v9065_v62 }
 0x51a   : > { %8455 = vmatpush3.bf16.msra.mxu0 %v9070_v1  ;;  %8432 = vmatprep.subr.bf16.mxu1 %v9067_v5 }
 0x51b   : > { %8456 = vmatprep.subr.bf16.mxu0 %v9072_v41 }
 0x51d   : > { %8433 = vmatpush3.bf16.msra.mxu1 %v9067_v5 }
 0x51e   : > { %8457 = vmatpush3.bf16.msra.mxu0 %v9072_v41  ;;  %8434 = vmatprep.subr.bf16.mxu1 %v9069_v4 }
 0x51f   : > { %8458 = vmatprep.subr.bf16.mxu0 %v9074_v6 }
 0x521   : > { %8435 = vmatpush3.bf16.msra.mxu1 %v9069_v4 }
 0x522   : > { %8459 = vmatpush3.bf16.msra.mxu0 %v9074_v6  ;;  %8436 = vmatprep.subr.bf16.mxu1 %v9071_v42 }
 0x523   : > { %8484 = vmatprep.subr.bf16.mxu0 %v9076_v44 }
 0x525   : > { %8437 = vmatpush3.bf16.msra.mxu1 %v9071_v42  ;;  %v9082_v42 = vld [vmem:[%s11116_s10] sm:$0xff]  }
 0x526   : > { %8438 = vmatprep.subr.bf16.mxu1 %v9073_v45 }
 0x529   : > { %8439 = vmatpush3.bf16.msra.mxu1 %v9073_v45  ;;  %v9081_v45 = vld [vmem:[#allocation23 + $0xa0] sm:$0xff]  }
 0x52a   : > { %8464 = vmatprep.subr.bf16.mxu1 %v10746_v19 }
 0x5a4   : > { %v8382_v55 = vpop.f32.mrf.mxu0 }
 0x5a6   : > { %v4180_v48 = vpop.f32.mrf.mxu0 }
 0x5a8   : > { %v8383_v58 = vpop.f32.mrf.mxu0 }
 0x5aa   : > { %v4183_v3 = vpop.f32.mrf.mxu0 }
 0x5ac   : > { %v8362_v22 = vpop.f32.mrf.mxu1 }
 0x5ad   : > { %v4073_v49 = vadd.f32 %v8362_v22, %v7562_v59  ;;  %v9086_v22 = vld [vmem:[#allocation23 + $0x80] sm:$0xff]  }
 0x5ae   : > { %v4056_v50 = vpop.f32.mrf.mxu1 }
 0x5af   : > { %v4197_v51 = vadd.f32 %v8382_v55, %v4073_v49  ;;  %v4071_v52 = vadd.f32 %v7562_v59, %v4056_v50  ;;  %v9083_v55 = vld [vmem:[#allocation23 + $0x98] sm:$0xff]   ;;  %v9087_v49 = vld [vmem:[#allocation28 + $0x28] sm:$0xff]  }
 0x5b0   : > { %v8363_v57 = vpop.f32.mrf.mxu1  ;;  %v9088_v50 = vld [vmem:[#allocation28 + $0x58] sm:$0xff]  }
 0x5b1   : > { %v4195_v35 = vadd.f32 %v4180_v48, %v4071_v52  ;;  %v4074_v2 = vadd.f32 %v8363_v57, %v7562_v59  ;;  %v9091_v52 = vld [vmem:[#allocation28 + $0x18] sm:$0xff]   ;;  %v9092_v57 = vld [vmem:[#allocation28 + $0x48] sm:$0xff]  }
 0x5b2   : > { %v4059_v40 = vpop.f32.mrf.mxu1 }
 0x5b3   : > { %v4198_v61 = vadd.f32 %v8383_v58, %v4074_v2  ;;  %v4072_v43 = vadd.f32 %v7562_v59, %v4059_v40  ;;  %v9084_v59 = vld [vmem:[#allocation23 + $0x90] sm:$0xff]   ;;  %v9096_v40 = vld [vmem:[#allocation28 + $0x38] sm:$0xff]  }
 0x5b4   : > { %v9093_v58 = vld [vmem:[#allocation28 + $0x10] sm:$0xff]   ;;  %v9095_v2 = vld [vmem:[#allocation28 + $0x8] sm:$0xff]  }
 0x5b5   : > { %v4196_v53 = vadd.f32 %v4183_v3, %v4072_v43  ;;  %v9098_v43 = vld [vmem:[#allocation28 + $0x30] sm:$0xff]   ;;  %v10766_v3 = vld [vmem:[#allocation28 + $0x88] sm:$0xff]  }
 0x5c5   : > { %v8422_v56 = vpop.f32.mrf.mxu0 }
 0x5c6   : > { %v4447_v18 = vadd.f32 %v8422_v56, %v7587_v29 }
 0x5c7   : > { %v4430_v54 = vpop.f32.mrf.mxu0 }
 0x5c8   : > { %v4451_v23 = vmax.f32 %v4447_v18, 0.0  ;;  %v4445_v60 = vadd.f32 %v7587_v29, %v4430_v54 }
 0x5c9   : > { %v8423_v7 = vpop.f32.mrf.mxu0 }
 0x5ca   : > { %4468 = vst [vmem:[#allocation2 + $0x15] sm:$0xff] %v4451_v23  ;;  %v4449_v8 = vmax.f32 %v4445_v60, 0.0  ;;  %v4448_v9 = vadd.f32 %v8423_v7, %v7587_v29 }
 0x5cb   : > { %v4433_v10 = vpop.f32.mrf.mxu0 }
 0x5cc   : > { %v8402_v46 = vpop.f32.mrf.mxu1  ;;  %4466 = vst [vmem:[#allocation2 + $0x5] sm:$0xff] %v4449_v8  ;;  %v4452_v11 = vmax.f32 %v4448_v9, 0.0  ;;  %v4446_v63 = vadd.f32 %v7587_v29, %v4433_v10  ;;  %v7596_v29 = vld [vmem:[#allocation25] ss:$0 sm:$0xff] }
 0x5cd   : > { %v4321_v15 = vadd.f32 %v8402_v46, %v4197_v51  ;;  %v9090_v51 = vld [vmem:[#allocation28 + $0x50] sm:$0xff]  }
 0x5ce   : > { %v4304_v16 = vpop.f32.mrf.mxu1  ;;  %4469 = vst [vmem:[#allocation2 + $0x1d] sm:$0xff] %v4452_v11  ;;  %v4450_v17 = vmax.f32 %v4446_v63, 0.0  ;;  %v4598_v26 = vpack.c.bf16 %v4452_v11, %v4451_v23 }
 0x5cf   : > { %v4319_v20 = vadd.f32 %v4304_v16, %v4195_v35  ;;  %v9094_v35 = vld [vmem:[#allocation28 + $0x40] sm:$0xff]  }
 0x5d0   : > { %v8403_v21 = vpop.f32.mrf.mxu1  ;;  %4467 = vst [vmem:[#allocation2 + $0xd] sm:$0xff] %v4450_v17  ;;  %v4597_v47 = vpack.c.bf16 %v4450_v17, %v4449_v8  ;;  %v7621_v17 = vld [vmem:[#allocation26] ss:$0 sm:$0xff] }
 0x5d1   : > { %v4322_v24 = vadd.f32 %v8403_v21, %v4198_v61  ;;  %v9097_v61 = vld [vmem:[#allocation28] sm:$0xff]  }
 0x5d2   : > { %v4307_v28 = vpop.f32.mrf.mxu1  ;;  %8460 = vmatprep.mubr.bf16.mxu0 %v4597_v47 }
 0x5d3   : > { %v10750_v30 = vpack.c.bf16 %v4322_v24, %v4321_v15  ;;  %v4320_v31 = vadd.f32 %v4307_v28, %v4196_v53  ;;  %v4470_v32 = vld [vmem:[#allocation2 + $0x2] sm:$0xff]  ;;  %8461 = vmatmul.mubr.bf16.vlgmr.msra.gmra.mxu0 %v4598_v26 }
 0x5d4   : > { %4953 = vst [vmem:[#allocation2] sm:$0xff] %v9949_v0  ;;  %8485 = vmatpush3.bf16.msra.mxu0 %v9076_v44  ;;  %8492 = vmatprep.mubr.msk.bf16.mxu0 %vm4882_vm1, %v10705_v13  ;;  %v9077_v13 = vld [vmem:[#allocation23 + $0xb0] sm:$0xff]   ;;  %v9079_v44 = vld [vmem:[#allocation23 + $0xa8] sm:$0xff]  }
 0x5d5   : > { %v10755_v33 = vpack.c.bf16 %v4320_v31, %v4319_v20  ;;  %v4473_v34 = vld [vmem:[#allocation2 + $0x1a] sm:$0xff]  ;;  %8486 = vmatprep.subr.bf16.mxu0 %v9078_v27 }
 0x5d6   : > { %v4720_v37 = vld [vmem:[#allocation2 + $0x20] sm:$0xff]  ;;  %v4719_v39 = vld [vmem:[#allocation2 + $0x18] sm:$0xff] }
 0x5d7   : > { %4957 = vst [vmem:[#allocation2 + $0x20] sm:$0xff] %v9949_v0  ;;  %v4471_v38 = vld [vmem:[#allocation2 + $0xa] sm:$0xff]  ;;  %v4472_v62 = vld [vmem:[#allocation2 + $0x12] sm:$0xff]  ;;  %v4722_v48 = vpack.c.bf16 %v4720_v37, %v4719_v39 }
 0x5d8   : > { %v4717_v1 = vld [vmem:[#allocation2 + $0x8] sm:$0xff]  ;;  %v4474_v5 = vpack.c.bf16 %v4471_v38, %v4470_v32  ;;  %v4475_v41 = vpack.c.bf16 %v4473_v34, %v4472_v62  ;;  %v4718_v4 = vld [vmem:[#allocation2 + $0x10] sm:$0xff]  ;;  %8487 = vmatpush3.bf16.msra.mxu0 %v9078_v27  ;;  %4956 = vst [vmem:[#allocation2 + $0x18] sm:$0xff] %v9949_v0 }
 0x5d9   : > { %4954 = vst [vmem:[#allocation2 + $0x8] sm:$0xff] %v9949_v0  ;;  %4955 = vst [vmem:[#allocation2 + $0x10] sm:$0xff] %v9949_v0  ;;  %8488 = vmatprep.subr.bf16.mxu0 %v9080_v36  ;;  %v4721_v6 = vpack.c.bf16 %v4718_v4, %v4717_v1 }
 0x5da   : > { %8440 = vmatprep.mubr.bf16.mxu1 %v4474_v5 }
 0x5db   : > { %8441 = vmatmul.mubr.bf16.vlgmr.msra.gmra.mxu1 %v4475_v41 }
 0x5dc   : > { %8465 = vmatpush3.bf16.msra.mxu1 %v10746_v19  ;;  %8480 = vmatprep.mubr.bf16.mxu1 %v4721_v6  ;;  %v9085_v19 = vld [vmem:[#allocation23 + $0x88] sm:$0xff]  }
 0x5dd   : > { %8466 = vmatprep.subr.bf16.mxu1 %v9077_v13  ;;  %8489 = vmatpush3.bf16.msra.mxu0 %v9080_v36 }
 0x5de   : > { %8490 = vmatprep.subr.bf16.mxu0 %v9082_v42 }
 0x5e0   : > { %8467 = vmatpush3.bf16.msra.mxu1 %v9077_v13 }
 0x5e1   : > { %8468 = vmatprep.subr.bf16.mxu1 %v9079_v44  ;;  %8491 = vmatpush3.bf16.msra.mxu0 %v9082_v42 }
 0x5e2   : > { %8496 = vmatprep.subr.bf16.mxu0 %v9087_v49 }
 0x5e4   : > { %8469 = vmatpush3.bf16.msra.mxu1 %v9079_v44  ;;  %8493 = vmatmul.mubr.msk.bf16.vlgmr.msra.gmra.mxu0 %vm4882_vm1, %v10707_v25  ;;  %v9089_v25 = vld [vmem:[#allocation28 + $0x20] sm:$0xff]  }
 0x5e5   : > { %8470 = vmatprep.subr.bf16.mxu1 %v9081_v45  ;;  %8497 = vmatpush3.bf16.msra.mxu0 %v9087_v49  ;;  %v9100_v49 = vld [vmem:[#allocation28 + $0x80] sm:$0xff]  }
 0x5e6   : > { %8498 = vmatprep.subr.bf16.mxu0 %v9089_v25 }
 0x5e8   : > { %8471 = vmatpush3.bf16.msra.mxu1 %v9081_v45 }
 0x5e9   : > { %8472 = vmatprep.subr.bf16.mxu1 %v9083_v55  ;;  %8499 = vmatpush3.bf16.msra.mxu0 %v9089_v25 }
 0x5ea   : > { %8500 = vmatprep.subr.bf16.mxu0 %v9091_v52 }
 0x5ec   : > { %8473 = vmatpush3.bf16.msra.mxu1 %v9083_v55 }
 0x5ed   : > { %8474 = vmatprep.subr.bf16.mxu1 %v9084_v59  ;;  %8501 = vmatpush3.bf16.msra.mxu0 %v9091_v52  ;;  %v9101_v52 = vld [vmem:[#allocation28 + $0x78] sm:$0xff]  }
 0x5ee   : > { %8502 = vmatprep.subr.bf16.mxu0 %v9093_v58 }
 0x5f0   : > { %8475 = vmatpush3.bf16.msra.mxu1 %v9084_v59 }
 0x5f1   : > { %8476 = vmatprep.subr.bf16.mxu1 %v9085_v19  ;;  %8503 = vmatpush3.bf16.msra.mxu0 %v9093_v58 }
 0x5f2   : > { %8504 = vmatprep.subr.bf16.mxu0 %v9095_v2 }
 0x5f4   : > { %8477 = vmatpush3.bf16.msra.mxu1 %v9085_v19 }
 0x5f5   : > { %8478 = vmatprep.subr.bf16.mxu1 %v9086_v22  ;;  %8505 = vmatpush3.bf16.msra.mxu0 %v9095_v2  ;;  %v9102_v2 = vld [vmem:[#allocation28 + $0x70] sm:$0xff]  }
 0x5f6   : > { %8506 = vmatprep.subr.bf16.mxu0 %v9097_v61 }
 0x5f8   : > { %8479 = vmatpush3.bf16.msra.mxu1 %v9086_v22 }
 0x5f9   : > { %8512 = vmatprep.subr.bf16.mxu1 %v9088_v50  ;;  %8507 = vmatpush3.bf16.msra.mxu0 %v9097_v61 }
 0x5fa   : > { %8528 = vmatprep.subr.bf16.mxu0 %v10766_v3 }
 0x5fb   : > { %8481 = vmatmul.mubr.bf16.vlgmr.msra.gmra.mxu1 %v4722_v48 }
 0x5fc   : > { %8513 = vmatpush3.bf16.msra.mxu1 %v9088_v50 }
 0x5fd   : > { %8514 = vmatprep.subr.bf16.mxu1 %v9090_v51 }
 0x600   : > { %8515 = vmatpush3.bf16.msra.mxu1 %v9090_v51 }
 0x601   : > { %8516 = vmatprep.subr.bf16.mxu1 %v9092_v57 }
 0x604   : > { %8517 = vmatpush3.bf16.msra.mxu1 %v9092_v57 }
 0x605   : > { %8518 = vmatprep.subr.bf16.mxu1 %v9094_v35 }
 0x608   : > { %8519 = vmatpush3.bf16.msra.mxu1 %v9094_v35 }
 0x609   : > { %8520 = vmatprep.subr.bf16.mxu1 %v9096_v40 }
 0x60c   : > { %8521 = vmatpush3.bf16.msra.mxu1 %v9096_v40 }
 0x60d   : > { %8522 = vmatprep.subr.bf16.mxu1 %v9098_v43 }
 0x610   : > { %8523 = vmatpush3.bf16.msra.mxu1 %v9098_v43 }
 0x693   : > { %v8462_v53 = vpop.f32.mrf.mxu0 }
 0x695   : > { %v4698_v56 = vpop.f32.mrf.mxu0 }
 0x697   : > { %v8463_v8 = vpop.f32.mrf.mxu0 }
 0x699   : > { %v4701_v16 = vpop.f32.mrf.mxu0 }
 0x69b   : > { %v8442_v18 = vpop.f32.mrf.mxu1 }
 0x69c   : > { %v4591_v54 = vadd.f32 %v8442_v18, %v7596_v29  ;;  %v9106_v18 = vld [vmem:[#allocation31 + $0x78] sm:$0xff]  }
 0x69d   : > { %v4574_v23 = vpop.f32.mrf.mxu1 }
 0x69e   : > { %v4715_v60 = vadd.f32 %v8462_v53, %v4591_v54  ;;  %v4589_v7 = vadd.f32 %v7596_v29, %v4574_v23  ;;  %v9108_v54 = vld [vmem:[#allocation31 + $0x70] sm:$0xff]   ;;  %v9105_v23 = vld [vmem:[#allocation31 + $0x38] sm:$0xff]  }
 0x69f   : > { %v8443_v9 = vpop.f32.mrf.mxu1  ;;  %8544 = vmatprep.subr.bf16.mxu1 %v9105_v23 }
 0x6a0   : > { %v4713_v10 = vadd.f32 %v4698_v56, %v4589_v7  ;;  %v4592_v46 = vadd.f32 %v8443_v9, %v7596_v29  ;;  %v9110_v7 = vld [vmem:[#allocation31 + $0x68] sm:$0xff]   ;;  %v9112_v9 = vld [vmem:[#allocation31 + $0x60] sm:$0xff]  }
 0x6a1   : > { %v4577_v11 = vpop.f32.mrf.mxu1 }
 0x6a2   : > { %v4716_v63 = vadd.f32 %v8463_v8, %v4592_v46  ;;  %v4590_v15 = vadd.f32 %v7596_v29, %v4577_v11  ;;  %v9104_v29 = vld [vmem:[#allocation28 + $0x60] sm:$0xff]   ;;  %v9111_v46 = vld [vmem:[#allocation31 + $0x20] sm:$0xff]  }
 0x6a3   : > { %v9109_v8 = vld [vmem:[#allocation31 + $0x28] sm:$0xff]   ;;  %v9116_v11 = vld [vmem:[#allocation31 + $0x50] sm:$0xff]  }
 0x6a4   : > { %v4714_v20 = vadd.f32 %v4701_v16, %v4590_v15  ;;  %v8494_v21 = vpop.f32.mrf.mxu0  ;;  %v9118_v15 = vld [vmem:[#allocation31 + $0x48] sm:$0xff]   ;;  %v9115_v16 = vld [vmem:[#allocation31 + $0x10] sm:$0xff]  }
 0x6a5   : > { %v4940_v47 = vadd.f32 %v8494_v21, %v7621_v17  ;;  %v9119_v21 = vld [vmem:[#allocation31] sm:$0xff]  }
 0x6a6   : > { %v4923_v24 = vpop.f32.mrf.mxu0 }
 0x6a7   : > { %v4944_v26 = vmax.f32 %v4940_v47, 0.0  ;;  %v4938_v27 = vadd.f32 %v7621_v17, %v4923_v24  ;;  %v9124_v47 = vld [vmem:[%s11117_s3 + $0xe4] ss:$16 sps:$4 sm:$0xff]  }
 0x6a8   : > { %v8495_v28 = vpop.f32.mrf.mxu0  ;;  %v9121_v24 = vld [vmem:[#allocation31 + $0xb8] sm:$0xff]  }
 0x6a9   : > { %v4942_v31 = vmax.f32 %v4938_v27, 0.0  ;;  %v4941_v32 = vadd.f32 %v8495_v28, %v7621_v17  ;;  %4962 = vst.msk [vmem:[#allocation2 + $0x15] sm:$0xff] %vm4959_vm2, %v4944_v26  ;;  %v7628_v28 = vld [vmem:[#allocation29] ss:$0 sm:$0xff] }
 0x6aa   : > { %v4926_v34 = vpop.f32.mrf.mxu0 }
 0x6ab   : > { %v4945_v36 = vmax.f32 %v4941_v32, 0.0  ;;  %v4939_v37 = vadd.f32 %v7621_v17, %v4926_v34  ;;  %4960 = vst.msk [vmem:[#allocation2 + $0x5] sm:$0xff] %vm4959_vm2, %v4942_v31  ;;  %v9120_v17 = vld [vmem:[#allocation31 + $0x40] sm:$0xff]  }
 0x6ad   : > { %v4943_v39 = vmax.f32 %v4939_v37, 0.0  ;;  %4963 = vst.msk [vmem:[#allocation2 + $0x1d] sm:$0xff] %vm4959_vm2, %v4945_v36 }
 0x6af   : > { %4961 = vst.msk [vmem:[#allocation2 + $0xd] sm:$0xff] %vm4959_vm2, %v4943_v39 }
 0x6b0   : > { %v5079_v5 = vld [vmem:[#allocation2 + $0x15] sm:$0xff] }
 0x6b2   : > { %v4964_v38 = vld [vmem:[#allocation2 + $0x4] sm:$0xff] }
 0x6b3   : > { %v5077_v62 = vld [vmem:[#allocation2 + $0x5] sm:$0xff] }
 0x6b4   : > { %v4967_v1 = vld [vmem:[#allocation2 + $0x1c] sm:$0xff] }
 0x6b5   : > { %v5080_v41 = vld [vmem:[#allocation2 + $0x1d] sm:$0xff] }
 0x6b6   : > { %v5193_v4 = vld [vmem:[#allocation2 + $0x16] sm:$0xff]  ;;  %v5194_v13 = vld [vmem:[#allocation2 + $0x1e] sm:$0xff]  ;;  %v4965_v6 = vld [vmem:[#allocation2 + $0xc] sm:$0xff]  ;;  %v5082_v48 = vpack.c.bf16 %v5080_v41, %v5079_v5 }
 0x6b7   : > { %v5078_v42 = vld [vmem:[#allocation2 + $0xd] sm:$0xff]  ;;  %5320 = vst [vmem:[#allocation2 + $0x20] sm:$0xff] %v9949_v0  ;;  %v4968_v45 = vpack.c.bf16 %v4965_v6, %v4964_v38  ;;  %v5196_v56 = vpack.c.bf16 %v5194_v13, %v5193_v4 }
 0x6b8   : > { %v4966_v44 = vld [vmem:[#allocation2 + $0x14] sm:$0xff]  ;;  %v5081_v55 = vpack.c.bf16 %v5078_v42, %v5077_v62  ;;  %v5191_v19 = vld [vmem:[#allocation2 + $0x6] sm:$0xff] }
 0x6b9   : > { %v4969_v59 = vpack.c.bf16 %v4967_v1, %v4966_v44  ;;  %v5192_v22 = vld [vmem:[#allocation2 + $0xe] sm:$0xff]  ;;  %5319 = vst [vmem:[#allocation2 + $0x18] sm:$0xff] %v9949_v0  ;;  %5316 = vst [vmem:[#allocation2] sm:$0xff] %v9949_v0  ;;  %8508 = vmatprep.mubr.msk.bf16.mxu0 %vm4959_vm2, %v4968_v45 }
 0x6ba   : > { %5317 = vst [vmem:[#allocation2 + $0x8] sm:$0xff] %v9949_v0  ;;  %5318 = vst [vmem:[#allocation2 + $0x10] sm:$0xff] %v9949_v0  ;;  %8524 = vmatprep.mubr.msk.bf16.mxu1 %vm4959_vm2, %v5081_v55  ;;  %v5195_v50 = vpack.c.bf16 %v5192_v22, %v5191_v19 }
 0x6bb   : > { %8509 = vmatmul.mubr.msk.bf16.vlgmr.msra.gmra.mxu0 %vm4959_vm2, %v4969_v59  ;;  %8525 = vmatmul.mubr.msk.bf16.vlgmr.msra.gmra.mxu1 %vm4959_vm2, %v5082_v48  ;;  %v8482_v25 = vpop.f32.mrf.mxu1 }
 0x6bc   : > { %8529 = vmatpush3.bf16.msra.mxu0 %v10766_v3  ;;  %8540 = vmatprep.mubr.msk.bf16.mxu0 %vm4959_vm2, %v5195_v50  ;;  %v4839_v51 = vadd.f32 %v8482_v25, %v4715_v60  ;;  %v9103_v3 = vld [vmem:[#allocation28 + $0x68] sm:$0xff]  }
 0x6bd   : > { %8530 = vmatprep.subr.bf16.mxu0 %v9100_v49  ;;  %v4822_v57 = vpop.f32.mrf.mxu1  ;;  %v9107_v60 = vld [vmem:[#allocation31 + $0x30] sm:$0xff]   ;;  %8545 = vmatpush3.bf16.msra.mxu1 %v9105_v23 }
 0x6be   : > { %v4837_v58 = vadd.f32 %v4822_v57, %v4713_v10  ;;  %8546 = vmatprep.subr.bf16.mxu1 %v9107_v60  ;;  %v9114_v10 = vld [vmem:[#allocation31 + $0x58] sm:$0xff]  }
 0x6bf   : > { %v8483_v0 = vpop.f32.mrf.mxu1  ;;  %v9122_v57 = vld [vmem:[%s11117_s3 + $0xe0] ss:$16 sps:$4 sm:$0xff]  }
 0x6c0   : > { %8531 = vmatpush3.bf16.msra.mxu0 %v9100_v49  ;;  %v4840_v35 = vadd.f32 %v8483_v0, %v4716_v63  ;;  %v9113_v63 = vld [vmem:[#allocation31 + $0x18] sm:$0xff]  }
 0x6c1   : > { %8532 = vmatprep.subr.bf16.mxu0 %v9101_v52  ;;  %v4825_v40 = vpop.f32.mrf.mxu1  ;;  %8547 = vmatpush3.bf16.msra.mxu1 %v9107_v60  ;;  %v9128_v0 = vld [vmem:[%s11117_s3 + $0xc4] ss:$16 sps:$4 sm:$0xff]  }
 0x6c2   : > { %v10784_v61 = vpack.c.bf16 %v4840_v35, %v4839_v51  ;;  %v4838_v43 = vadd.f32 %v4825_v40, %v4714_v20  ;;  %8548 = vmatprep.subr.bf16.mxu1 %v9109_v8  ;;  %v9117_v20 = vld [vmem:[#allocation31 + $0x8] sm:$0xff]  }
 0x6c3   : > { %v9126_v35 = vld [vmem:[%s11117_s3 + $0xc0] ss:$16 sps:$4 sm:$0xff]   ;;  %v9132_v40 = vld [vmem:[%s11117_s3 + $0xa4] ss:$16 sps:$4 sm:$0xff]  }
 0x6c4   : > { %8533 = vmatpush3.bf16.msra.mxu0 %v9101_v52  ;;  %v10786_v53 = vpack.c.bf16 %v4838_v43, %v4837_v58 }
 0x6c5   : > { %8534 = vmatprep.subr.bf16.mxu0 %v9102_v2  ;;  %8549 = vmatpush3.bf16.msra.mxu1 %v9109_v8  ;;  %v9130_v8 = vld [vmem:[%s11117_s3 + $0xa0] ss:$16 sps:$4 sm:$0xff]  }
 0x6c6   : > { %8550 = vmatprep.subr.bf16.mxu1 %v9111_v46 }
 0x6c8   : > { %8535 = vmatpush3.bf16.msra.mxu0 %v9102_v2  ;;  %v9950_v2 = vmov 0  }
 0x6c9   : > { %8536 = vmatprep.subr.bf16.mxu0 %v9103_v3  ;;  %8551 = vmatpush3.bf16.msra.mxu1 %v9111_v46  ;;  %v9129_v46 = vld [vmem:[#allocation31 + $0xa8] sm:$0xff]  }
 0x6ca   : > { %8552 = vmatprep.subr.bf16.mxu1 %v9113_v63 }
 0x6cc   : > { %8537 = vmatpush3.bf16.msra.mxu0 %v9103_v3 }
 0x6cd   : > { %8538 = vmatprep.subr.bf16.mxu0 %v9104_v29  ;;  %8553 = vmatpush3.bf16.msra.mxu1 %v9113_v63  ;;  %v9140_v63 = vld [vmem:[%s11117_s3 + $0x64] ss:$16 sps:$4 sm:$0xff]  }
 0x6ce   : > { %8554 = vmatprep.subr.bf16.mxu1 %v9115_v16 }
 0x6d0   : > { %8539 = vmatpush3.bf16.msra.mxu0 %v9104_v29 }
 0x6d1   : > { %8564 = vmatprep.subr.bf16.mxu0 %v9106_v18  ;;  %8555 = vmatpush3.bf16.msra.mxu1 %v9115_v16  ;;  %v9138_v16 = vld [vmem:[%s11117_s3 + $0x60] ss:$16 sps:$4 sm:$0xff]  }
 0x6d2   : > { %8556 = vmatprep.subr.bf16.mxu1 %v9117_v20 }
 0x6d3   : > { %8541 = vmatmul.mubr.msk.bf16.vlgmr.msra.gmra.mxu0 %vm4959_vm2, %v5196_v56 }
 0x6d4   : > { %8565 = vmatpush3.bf16.msra.mxu0 %v9106_v18 }
 0x6d5   : > { %8566 = vmatprep.subr.bf16.mxu0 %v9108_v54  ;;  %8557 = vmatpush3.bf16.msra.mxu1 %v9117_v20  ;;  %v9137_v20 = vld [vmem:[#allocation31 + $0x98] sm:$0xff]  }
 0x6d6   : > { %8558 = vmatprep.subr.bf16.mxu1 %v9119_v21 }
 0x6d8   : > { %8567 = vmatpush3.bf16.msra.mxu0 %v9108_v54 }
 0x6d9   : > { %8568 = vmatprep.subr.bf16.mxu0 %v9110_v7  ;;  %8559 = vmatpush3.bf16.msra.mxu1 %v9119_v21  ;;  %v9142_v21 = vld [vmem:[%s11117_s3 + $0x40] ss:$16 sps:$4 sm:$0xff]  }
 0x6da   : > { %8584 = vmatprep.subr.bf16.mxu1 %v9121_v24 }
 0x6dc   : > { %8569 = vmatpush3.bf16.msra.mxu0 %v9110_v7  ;;  %v9125_v7 = vld [vmem:[#allocation31 + $0xb0] sm:$0xff]  }
 0x6dd   : > { %8570 = vmatprep.subr.bf16.mxu0 %v9112_v9 }
 0x6e0   : > { %8571 = vmatpush3.bf16.msra.mxu0 %v9112_v9 }
 0x6e1   : > { %8572 = vmatprep.subr.bf16.mxu0 %v9114_v10 }
 0x6e4   : > { %8573 = vmatpush3.bf16.msra.mxu0 %v9114_v10  ;;  %v9136_v10 = vld [vmem:[%s11117_s3 + $0x84] ss:$16 sps:$4 sm:$0xff]  }
 0x6e5   : > { %8574 = vmatprep.subr.bf16.mxu0 %v9116_v11 }
 0x6e8   : > { %8575 = vmatpush3.bf16.msra.mxu0 %v9116_v11  ;;  %v9134_v11 = vld [vmem:[%s11117_s3 + $0x80] ss:$16 sps:$4 sm:$0xff]  }
 0x6e9   : > { %8576 = vmatprep.subr.bf16.mxu0 %v9118_v15 }
 0x6ec   : > { %8577 = vmatpush3.bf16.msra.mxu0 %v9118_v15  ;;  %v9133_v15 = vld [vmem:[#allocation31 + $0xa0] sm:$0xff]  }
 0x6ed   : > { %8578 = vmatprep.subr.bf16.mxu0 %v9120_v17 }
 0x6f0   : > { %8579 = vmatpush3.bf16.msra.mxu0 %v9120_v17  ;;  %v9144_v17 = vld [vmem:[%s11117_s3 + $0x44] ss:$16 sps:$4 sm:$0xff]  }
 0x6f1   : > { %5913 = vmatprep.subr.bf16.mxu0 %v9124_v47  ;;  %v9148_v47 = vld [vmem:[%s11117_s3 + $0x24] ss:$16 sps:$4 sm:$0xff]  }
 0x77b   : > { %v8510_v26 = vpop.f32.mrf.mxu0  ;;  %v8526_v31 = vpop.f32.mrf.mxu1 }
 0x77c   : > { %v5075_v34 = vadd.f32 %v8510_v26, %v7628_v28  ;;  %v9146_v26 = vld [vmem:[%s11117_s3 + $0x20] ss:$16 sps:$4 sm:$0xff]  }
 0x77d   : > { %v5058_v27 = vpop.f32.mrf.mxu0  ;;  %v5172_v36 = vpop.f32.mrf.mxu1 }
 0x77e   : > { %v5073_v37 = vadd.f32 %v7628_v28, %v5058_v27  ;;  %v5189_v38 = vadd.f32 %v8526_v31, %v5075_v34  ;;  %v9152_v27 = vld [vmem:[%s11117_s3 + $0x4] ss:$16 sps:$4 sm:$0xff]   ;;  %v9150_v31 = vld [vmem:[%s11117_s3] ss:$16 sps:$4 sm:$0xff]  }
 0x77f   : > { %v8511_v32 = vpop.f32.mrf.mxu0  ;;  %v8527_v1 = vpop.f32.mrf.mxu1  ;;  %v9149_v34 = vld [vmem:[#allocation31 + $0x80] sm:$0xff]  }
 0x780   : > { %v5076_v62 = vadd.f32 %v8511_v32, %v7628_v28  ;;  %v5187_v41 = vadd.f32 %v5172_v36, %v5073_v37  ;;  %v9158_v32 = vld [vmem:[%s11118_s0 + $0xe4] ss:$16 sps:$4 sm:$0xff]   ;;  %v9156_v36 = vld [vmem:[%s11118_s0 + $0xe0] ss:$16 sps:$4 sm:$0xff]  }
 0x781   : > { %v5061_v39 = vpop.f32.mrf.mxu0  ;;  %v5175_v55 = vpop.f32.mrf.mxu1  ;;  %v9164_v37 = vld [vmem:[%s11118_s0 + $0xc4] ss:$16 sps:$4 sm:$0xff]  }
 0x782   : > { %v5074_v4 = vadd.f32 %v7628_v28, %v5061_v39  ;;  %v5190_v42 = vadd.f32 %v8527_v1, %v5076_v62  ;;  %v9145_v28 = vld [vmem:[#allocation31 + $0x88] sm:$0xff]  }
 0x783   : > { %v9155_v39 = vld [vmem:[%s11117_s3 + $0xec] ss:$16 sps:$4 sm:$0xff]  }
 0x784   : > { %v5188_v19 = vadd.f32 %v5175_v55, %v5074_v4  ;;  %v9174_v55 = vld [vmem:[%s11118_s0 + $0x80] ss:$16 sps:$4 sm:$0xff]  }
 0x793   : > { %v8542_v5 = vpop.f32.mrf.mxu0 }
 0x794   : > { %v5303_v13 = vadd.f32 %v8542_v5, %v5189_v38  ;;  %v9162_v38 = vld [vmem:[%s11118_s0 + $0xc0] ss:$16 sps:$4 sm:$0xff]   ;;  %v9170_v5 = vld [vmem:[%s11118_s0 + $0xa4] ss:$16 sps:$4 sm:$0xff]  }
 0x795   : > { %v5286_v6 = vpop.f32.mrf.mxu0 }
 0x796   : > { %v5307_v44 = vmax.f32 %v5303_v13, 0.0  ;;  %v5301_v45 = vadd.f32 %v5286_v6, %v5187_v41  ;;  %v9153_v41 = vld [vmem:[%s11117_s3 + $0xe8] ss:$16 sps:$4 sm:$0xff]   ;;  %v9161_v13 = vld [vmem:[%s11117_s3 + $0xcc] ss:$16 sps:$4 sm:$0xff]  }
 0x797   : > { %v8543_v59 = vpop.f32.mrf.mxu0  ;;  %v9168_v6 = vld [vmem:[%s11118_s0 + $0xa0] ss:$16 sps:$4 sm:$0xff]  }
 0x798   : > { %5324 = vst [vmem:[#allocation2 + $0x15] sm:$0xff] %v5307_v44  ;;  %v5305_v22 = vmax.f32 %v5301_v45, 0.0  ;;  %v5304_v48 = vadd.f32 %v8543_v59, %v5190_v42  ;;  %v9176_v42 = vld [vmem:[%s11118_s0 + $0x84] ss:$16 sps:$4 sm:$0xff]   ;;  %v9167_v45 = vld [vmem:[%s11117_s3 + $0xac] ss:$16 sps:$4 sm:$0xff]  }
 0x799   : > { %v5289_v49 = vpop.f32.mrf.mxu0  ;;  %v9182_v59 = vld [vmem:[%s11118_s0 + $0x64] ss:$16 sps:$4 sm:$0xff]  }
 0x79a   : > { %5322 = vst [vmem:[#allocation2 + $0x5] sm:$0xff] %v5305_v22  ;;  %v5308_v50 = vmax.f32 %v5304_v48, 0.0  ;;  %v5302_v25 = vadd.f32 %v5289_v49, %v5188_v19  ;;  %v9165_v19 = vld [vmem:[%s11117_s3 + $0xa8] ss:$16 sps:$4 sm:$0xff]   ;;  %v9180_v48 = vld [vmem:[%s11118_s0 + $0x60] ss:$16 sps:$4 sm:$0xff]  }
 0x79b   : > { %v9188_v49 = vld [vmem:[%s11118_s0 + $0x44] ss:$16 sps:$4 sm:$0xff]  }
 0x79c   : > { %5325 = vst [vmem:[#allocation2 + $0x1d] sm:$0xff] %v5308_v50  ;;  %v5306_v51 = vmax.f32 %v5302_v25, 0.0  ;;  %v5454_v58 = vpack.c.bf16 %v5308_v50, %v5307_v44  ;;  %v9159_v44 = vld [vmem:[%s11117_s3 + $0xc8] ss:$16 sps:$4 sm:$0xff]   ;;  %v9179_v25 = vld [vmem:[%s11117_s3 + $0x6c] ss:$16 sps:$4 sm:$0xff]  }
 0x79d   : > { %v9171_v50 = vld [vmem:[%s11117_s3 + $0x88] ss:$16 sps:$4 sm:$0xff]  }
 0x79e   : > { %5323 = vst [vmem:[#allocation2 + $0xd] sm:$0xff] %v5306_v51  ;;  %v5453_v52 = vpack.c.bf16 %v5306_v51, %v5305_v22  ;;  %v9173_v22 = vld [vmem:[%s11117_s3 + $0x8c] ss:$16 sps:$4 sm:$0xff]   ;;  %v9186_v51 = vld [vmem:[%s11118_s0 + $0x40] ss:$16 sps:$4 sm:$0xff]  }
 0x7a0   : > { %8580 = vmatprep.mubr.bf16.mxu0 %v5453_v52  ;;  %v9194_v52 = vld [vmem:[%s11118_s0 + $0x24] ss:$16 sps:$4 sm:$0xff]  }
 0x7a1   : > { %8581 = vmatmul.mubr.bf16.vlgmr.msra.gmra.mxu0 %v5454_v58  ;;  %v5326_v43 = vld [vmem:[#allocation2] sm:$0xff]  ;;  %v9185_v58 = vld [vmem:[%s11117_s3 + $0x4c] ss:$16 sps:$4 sm:$0xff]  }
 0x7a2   : > { %5914 = vmatpush1.bf16.msra.mxu0 %v9122_v57  ;;  %5945 = vmatprep.mubr.bf16.mxu0 %v9950_v2  ;;  %v9177_v57 = vld [vmem:[%s11117_s3 + $0x68] ss:$16 sps:$4 sm:$0xff]  }
 0x7a3   : > { %5915 = vmatprep.subr.bf16.mxu0 %v9128_v0  ;;  %v5329_v3 = vld [vmem:[#allocation2 + $0x18] sm:$0xff]  ;;  %v5576_v1 = vld [vmem:[#allocation2 + $0x22] sm:$0xff] }
 0x7a4   : > { %v5575_v62 = vld [vmem:[#allocation2 + $0x1a] sm:$0xff] }
 0x7a5   : > { %v5327_v29 = vld [vmem:[#allocation2 + $0x8] sm:$0xff]  ;;  %v5328_v56 = vld [vmem:[#allocation2 + $0x10] sm:$0xff]  ;;  %v5578_v4 = vpack.c.bf16 %v5576_v1, %v5575_v62 }
 0x7a6   : > { %v5573_v18 = vld [vmem:[#allocation2 + $0xa] sm:$0xff]  ;;  %v5330_v54 = vpack.c.bf16 %v5327_v29, %v5326_v43  ;;  %v5331_v23 = vpack.c.bf16 %v5329_v3, %v5328_v56  ;;  %v5574_v60 = vld [vmem:[#allocation2 + $0x12] sm:$0xff]  ;;  %5916 = vmatpush1.bf16.msra.mxu0 %v9126_v35 }
 0x7a7   : > { %5917 = vmatprep.subr.bf16.mxu0 %v9132_v40  ;;  %v5577_v9 = vpack.c.bf16 %v5574_v60, %v5573_v18  ;;  %v9192_v0 = vld [vmem:[%s11118_s0 + $0x20] ss:$16 sps:$4 sm:$0xff]   ;;  %v9200_v35 = vld [vmem:[%s11118_s0 + $0x4] ss:$16 sps:$4 sm:$0xff]   ;;  %v9183_v40 = vld [vmem:[%s11117_s3 + $0x48] ss:$16 sps:$4 sm:$0xff]  }
 0x7a8   : > { %8560 = vmatprep.mubr.bf16.mxu1 %v5330_v54  ;;  %v9191_v43 = vld [vmem:[%s11117_s3 + $0x2c] ss:$16 sps:$4 sm:$0xff]   ;;  %v9198_v3 = vld [vmem:[%s11118_s0] ss:$16 sps:$4 sm:$0xff]   ;;  %v9206_v29 = vld [vmem:[%s10104_s4 + $0xe4] ss:$16 sps:$4 sm:$0xff]  }
 0x7a9   : > { %8561 = vmatmul.mubr.bf16.vlgmr.msra.gmra.mxu1 %v5331_v23  ;;  %v9189_v56 = vld [vmem:[%s11117_s3 + $0x28] ss:$16 sps:$4 sm:$0xff]   ;;  %v9197_v18 = vld [vmem:[%s11117_s3 + $0xc] ss:$16 sps:$4 sm:$0xff]   ;;  %v9204_v54 = vld [vmem:[%s10104_s4 + $0xe0] ss:$16 sps:$4 sm:$0xff]  }
 0x7aa   : > { %8585 = vmatpush3.bf16.msra.mxu1 %v9121_v24  ;;  %8600 = vmatprep.mubr.bf16.mxu1 %v5577_v9  ;;  %v9141_v24 = vld [vmem:[#allocation31 + $0x90] sm:$0xff]  }
 0x7ab   : > { %8586 = vmatprep.subr.bf16.mxu1 %v9125_v7  ;;  %5918 = vmatpush1.bf16.msra.mxu0 %v9130_v8  ;;  %v9212_v23 = vld [vmem:[%s10104_s4 + $0xc4] ss:$16 sps:$4 sm:$0xff]   ;;  %v9195_v60 = vld [vmem:[%s11117_s3 + $0x8] ss:$16 sps:$4 sm:$0xff]   ;;  %v9210_v8 = vld [vmem:[%s10104_s4 + $0xc0] ss:$16 sps:$4 sm:$0xff]  }
 0x7ac   : > { %5919 = vmatprep.subr.bf16.mxu0 %v9136_v10  ;;  %v9218_v9 = vld [vmem:[%s10104_s4 + $0xa4] ss:$16 sps:$4 sm:$0xff]   ;;  %v9201_v10 = vld [vmem:[%s11118_s0 + $0xe8] ss:$16 sps:$4 sm:$0xff]  }
 0x7ad   : > { %v9275_v62 = vld [vmem:[%s10109_s14 + $0xe4] ss:$16 sps:$4 sm:$0xff]   ;;  %v9237_v1 = vld [vmem:[%s11118_s0 + $0x28] ss:$16 sps:$4 sm:$0xff]  }
 0x7ae   : > { %8587 = vmatpush3.bf16.msra.mxu1 %v9125_v7  ;;  %v9203_v7 = vld [vmem:[%s11118_s0 + $0xec] ss:$16 sps:$4 sm:$0xff]  }
 0x7af   : > { %8588 = vmatprep.subr.bf16.mxu1 %v9129_v46  ;;  %5920 = vmatpush1.bf16.msra.mxu0 %v9134_v11  ;;  %v9216_v11 = vld [vmem:[%s10104_s4 + $0xa0] ss:$16 sps:$4 sm:$0xff]  }
 0x7b0   : > { %5921 = vmatprep.subr.bf16.mxu0 %v9140_v63  ;;  %v9224_v63 = vld [vmem:[%s10104_s4 + $0x84] ss:$16 sps:$4 sm:$0xff]  }
 0x7b2   : > { %8589 = vmatpush3.bf16.msra.mxu1 %v9129_v46  ;;  %v9209_v46 = vld [vmem:[%s11118_s0 + $0xcc] ss:$16 sps:$4 sm:$0xff]  }
 0x7b3   : > { %8590 = vmatprep.subr.bf16.mxu1 %v9133_v15  ;;  %5922 = vmatpush1.bf16.msra.mxu0 %v9138_v16  ;;  %v9215_v16 = vld [vmem:[%s11118_s0 + $0xac] ss:$16 sps:$4 sm:$0xff]  }
 0x7b4   : > { %5923 = vmatprep.subr.bf16.mxu0 %v9144_v17  ;;  %v9222_v17 = vld [vmem:[%s10104_s4 + $0x80] ss:$16 sps:$4 sm:$0xff]  }
 0x7b6   : > { %8591 = vmatpush3.bf16.msra.mxu1 %v9133_v15  ;;  %v9207_v15 = vld [vmem:[%s11118_s0 + $0xc8] ss:$16 sps:$4 sm:$0xff]  }
 0x7b7   : > { %8592 = vmatprep.subr.bf16.mxu1 %v9137_v20  ;;  %5924 = vmatpush1.bf16.msra.mxu0 %v9142_v21  ;;  %v9221_v21 = vld [vmem:[%s11118_s0 + $0x8c] ss:$16 sps:$4 sm:$0xff]  }
 0x7b8   : > { %5925 = vmatprep.subr.bf16.mxu0 %v9148_v47  ;;  %v9228_v47 = vld [vmem:[%s10104_s4 + $0x60] ss:$16 sps:$4 sm:$0xff]  }
 0x7ba   : > { %8593 = vmatpush3.bf16.msra.mxu1 %v9137_v20  ;;  %v9213_v20 = vld [vmem:[%s11118_s0 + $0xa8] ss:$16 sps:$4 sm:$0xff]  }
 0x7bb   : > { %8594 = vmatprep.subr.bf16.mxu1 %v9141_v24  ;;  %5926 = vmatpush1.bf16.msra.mxu0 %v9146_v26  ;;  %v9219_v26 = vld [vmem:[%s11118_s0 + $0x88] ss:$16 sps:$4 sm:$0xff]  }
 0x7bc   : > { %5927 = vmatprep.subr.bf16.mxu0 %v9152_v27  ;;  %v9227_v27 = vld [vmem:[%s11118_s0 + $0x6c] ss:$16 sps:$4 sm:$0xff]  }
 0x7be   : > { %8595 = vmatpush3.bf16.msra.mxu1 %v9141_v24  ;;  %v9236_v24 = vld [vmem:[%s10104_s4 + $0x44] ss:$16 sps:$4 sm:$0xff]  }
 0x7bf   : > { %8596 = vmatprep.subr.bf16.mxu1 %v9145_v28  ;;  %5928 = vmatpush1.bf16.msra.mxu0 %v9150_v31  ;;  %v9242_v31 = vld [vmem:[%s10104_s4 + $0x24] ss:$16 sps:$4 sm:$0xff]  }
 0x7c0   : > { %6229 = vmatprep.subr.bf16.mxu0 %v9158_v32  ;;  %v9233_v32 = vld [vmem:[%s11118_s0 + $0x4c] ss:$16 sps:$4 sm:$0xff]  }
 0x7c2   : > { %8597 = vmatpush3.bf16.msra.mxu1 %v9145_v28  ;;  %5946 = vmatmul.mubr.bf16.vlgmr.msra.gmra.mxu0 %v10718_v14  ;;  %v9234_v28 = vld [vmem:[%s10104_s4 + $0x40] ss:$16 sps:$4 sm:$0xff]  }
 0x7c3   : > { %8598 = vmatprep.subr.bf16.mxu1 %v9149_v34  ;;  %6230 = vmatpush1.bf16.msra.mxu0 %v9156_v36  ;;  %v9248_v36 = vld [vmem:[%s10104_s4 + $0x4] ss:$16 sps:$4 sm:$0xff]  }
 0x7c4   : > { %6231 = vmatprep.subr.bf16.mxu0 %v9164_v37  ;;  %5955 = vmatprep.mubr.bf16.mxu0 %v9950_v2  ;;  %v9231_v37 = vld [vmem:[%s11118_s0 + $0x48] ss:$16 sps:$4 sm:$0xff]  }
 0x7c6   : > { %8599 = vmatpush3.bf16.msra.mxu1 %v9149_v34  ;;  %v9240_v34 = vld [vmem:[%s10104_s4 + $0x20] ss:$16 sps:$4 sm:$0xff]  }
 0x7c7   : > { %5966 = vmatprep.subr.bf16.mxu1 %v9155_v39  ;;  %6232 = vmatpush1.bf16.msra.mxu0 %v9162_v38  ;;  %v9239_v39 = vld [vmem:[%s11118_s0 + $0x2c] ss:$16 sps:$4 sm:$0xff]   ;;  %v9246_v38 = vld [vmem:[%s10104_s4] ss:$16 sps:$4 sm:$0xff]  }
 0x7c8   : > { %6233 = vmatprep.subr.bf16.mxu0 %v9170_v5  ;;  %v9245_v5 = vld [vmem:[%s11118_s0 + $0xc] ss:$16 sps:$4 sm:$0xff]  }
 0x7c9   : > { %8601 = vmatmul.mubr.bf16.vlgmr.msra.gmra.mxu1 %v5578_v4  ;;  %v9281_v4 = vld [vmem:[%s10109_s14 + $0xc4] ss:$16 sps:$4 sm:$0xff]  }
 0x7ca   : > { %5967 = vmatpush1.bf16.msra.mxu1 %v9153_v41  ;;  %5956 = vmatmul.mubr.bf16.gmra.mxu0 %v10716_v12  ;;  %v9273_v41 = vld [vmem:[%s10109_s14 + $0xe0] ss:$16 sps:$4 sm:$0xff]  }
 0x7cb   : > { %5968 = vmatprep.subr.bf16.mxu1 %v9161_v13  ;;  %6234 = vmatpush1.bf16.msra.mxu0 %v9168_v6  ;;  %v9243_v13 = vld [vmem:[%s11118_s0 + $0x8] ss:$16 sps:$4 sm:$0xff]   ;;  %v9251_v6 = vld [vmem:[%s10104_s4 + $0xec] ss:$16 sps:$4 sm:$0xff]  }
 0x7cc   : > { %6235 = vmatprep.subr.bf16.mxu0 %v9176_v42  ;;  %5998 = vmatprep.mubr.bf16.mxu1 %v9950_v2  ;;  %v9279_v42 = vld [vmem:[%s10109_s14 + $0xc0] ss:$16 sps:$4 sm:$0xff]  }
 0x7cd   : > { %6261 = vmatprep.mubr.bf16.mxu0 %v9950_v2 }
 0x7ce   : > { %5969 = vmatpush1.bf16.msra.mxu1 %v9159_v44  ;;  %v9287_v44 = vld [vmem:[%s10109_s14 + $0xa4] ss:$16 sps:$4 sm:$0xff]  }
 0x7cf   : > { %5970 = vmatprep.subr.bf16.mxu1 %v9167_v45  ;;  %6236 = vmatpush1.bf16.msra.mxu0 %v9174_v55  ;;  %v9249_v45 = vld [vmem:[%s10104_s4 + $0xe8] ss:$16 sps:$4 sm:$0xff]   ;;  %v9254_v55 = vld [vmem:[%s10104_s4 + $0xcc] ss:$16 sps:$4 sm:$0xff]  }
 0x7d0   : > { %6237 = vmatprep.subr.bf16.mxu0 %v9182_v59  ;;  %v9285_v59 = vld [vmem:[%s10109_s14 + $0xa0] ss:$16 sps:$4 sm:$0xff]  }
 0x7d2   : > { %5971 = vmatpush1.bf16.msra.mxu1 %v9165_v19  ;;  %v9293_v19 = vld [vmem:[%s10109_s14 + $0x84] ss:$16 sps:$4 sm:$0xff]  }
 0x7d3   : > { %5972 = vmatprep.subr.bf16.mxu1 %v9173_v22  ;;  %6238 = vmatpush1.bf16.msra.mxu0 %v9180_v48  ;;  %v9252_v22 = vld [vmem:[%s10104_s4 + $0xc8] ss:$16 sps:$4 sm:$0xff]   ;;  %v9257_v48 = vld [vmem:[%s10104_s4 + $0xac] ss:$16 sps:$4 sm:$0xff]  }
 0x7d4   : > { %6239 = vmatprep.subr.bf16.mxu0 %v9188_v49  ;;  %v9291_v49 = vld [vmem:[%s10109_s14 + $0x80] ss:$16 sps:$4 sm:$0xff]  }
 0x7d6   : > { %5973 = vmatpush1.bf16.msra.mxu1 %v9171_v50  ;;  %v9255_v50 = vld [vmem:[%s10104_s4 + $0xa8] ss:$16 sps:$4 sm:$0xff]  }
 0x7d7   : > { %5974 = vmatprep.subr.bf16.mxu1 %v9179_v25  ;;  %6240 = vmatpush1.bf16.msra.mxu0 %v9186_v51  ;;  %v9260_v25 = vld [vmem:[%s10104_s4 + $0x8c] ss:$16 sps:$4 sm:$0xff]   ;;  %v9297_v51 = vld [vmem:[%s10109_s14 + $0x60] ss:$16 sps:$4 sm:$0xff]  }
 0x7d8   : > { %6241 = vmatprep.subr.bf16.mxu0 %v9194_v52  ;;  %v9305_v52 = vld [vmem:[%s10109_s14 + $0x44] ss:$16 sps:$4 sm:$0xff]  }
 0x7da   : > { %5975 = vmatpush1.bf16.msra.mxu1 %v9177_v57  ;;  %v9258_v57 = vld [vmem:[%s10104_s4 + $0x88] ss:$16 sps:$4 sm:$0xff]  }
 0x7db   : > { %5976 = vmatprep.subr.bf16.mxu1 %v9185_v58  ;;  %6242 = vmatpush1.bf16.msra.mxu0 %v9192_v0  ;;  %v9263_v58 = vld [vmem:[%s10104_s4 + $0x6c] ss:$16 sps:$4 sm:$0xff]   ;;  %v9303_v0 = vld [vmem:[%s10109_s14 + $0x40] ss:$16 sps:$4 sm:$0xff]  }
 0x7dc   : > { %6243 = vmatprep.subr.bf16.mxu0 %v9200_v35  ;;  %v9311_v35 = vld [vmem:[%s10109_s14 + $0x24] ss:$16 sps:$4 sm:$0xff]  }
 0x7de   : > { %5977 = vmatpush1.bf16.msra.mxu1 %v9183_v40  ;;  %v9266_v40 = vld [vmem:[%s10104_s4 + $0x4c] ss:$16 sps:$4 sm:$0xff]  }
 0x7df   : > { %5978 = vmatprep.subr.bf16.mxu1 %v9191_v43  ;;  %6244 = vmatpush1.bf16.msra.mxu0 %v9198_v3  ;;  %v9309_v43 = vld [vmem:[%s10109_s14 + $0x20] ss:$16 sps:$4 sm:$0xff]   ;;  %v9317_v3 = vld [vmem:[%s10109_s14 + $0x4] ss:$16 sps:$4 sm:$0xff]  }
 0x7e0   : > { %6545 = vmatprep.subr.bf16.mxu0 %v9206_v29  ;;  %v9264_v29 = vld [vmem:[%s10104_s4 + $0x48] ss:$16 sps:$4 sm:$0xff]  }
 0x7e2   : > { %5979 = vmatpush1.bf16.msra.mxu1 %v9189_v56  ;;  %6262 = vmatmul.mubr.bf16.vlgmr.msra.gmra.mxu0 %v10755_v33  ;;  %v9269_v56 = vld [vmem:[%s10104_s4 + $0x2c] ss:$16 sps:$4 sm:$0xff]  }
 0x7e3   : > { %5980 = vmatprep.subr.bf16.mxu1 %v9197_v18  ;;  %6546 = vmatpush1.bf16.msra.mxu0 %v9204_v54  ;;  %v9315_v18 = vld [vmem:[%s10109_s14] ss:$16 sps:$4 sm:$0xff]   ;;  %v9267_v54 = vld [vmem:[%s10104_s4 + $0x28] ss:$16 sps:$4 sm:$0xff]  }
 0x7e4   : > { %6547 = vmatprep.subr.bf16.mxu0 %v9212_v23  ;;  %6271 = vmatprep.mubr.bf16.mxu0 %v9950_v2  ;;  %v9272_v23 = vld [vmem:[%s10104_s4 + $0xc] ss:$16 sps:$4 sm:$0xff]  }
 0x7e6   : > { %5981 = vmatpush1.bf16.msra.mxu1 %v9195_v60  ;;  %v9270_v60 = vld [vmem:[%s10104_s4 + $0x8] ss:$16 sps:$4 sm:$0xff]  }
 0x7e7   : > { %6282 = vmatprep.subr.bf16.mxu1 %v9203_v7  ;;  %6548 = vmatpush1.bf16.msra.mxu0 %v9210_v8  ;;  %v9278_v7 = vld [vmem:[%s10109_s14 + $0xec] ss:$16 sps:$4 sm:$0xff]   ;;  %v9276_v8 = vld [vmem:[%s10109_s14 + $0xe8] ss:$16 sps:$4 sm:$0xff]  }
 0x7e8   : > { %6549 = vmatprep.subr.bf16.mxu0 %v9218_v9  ;;  %v9284_v9 = vld [vmem:[%s10109_s14 + $0xcc] ss:$16 sps:$4 sm:$0xff]  }
 0x7e9   : > { %5999 = vmatmul.mubr.bf16.vlgmr.msra.gmra.mxu1 %v10718_v14  ;;  %v9230_v14 = vld [vmem:[%s10104_s4 + $0x64] ss:$16 sps:$4 sm:$0xff]  }
 0x7ea   : > { %6283 = vmatpush1.bf16.msra.mxu1 %v9201_v10  ;;  %6008 = vmatprep.mubr.bf16.mxu1 %v9950_v2  ;;  %v9282_v10 = vld [vmem:[%s10109_s14 + $0xc8] ss:$16 sps:$4 sm:$0xff]  }
 0x7eb   : > { %6284 = vmatprep.subr.bf16.mxu1 %v9209_v46  ;;  %6272 = vmatmul.mubr.bf16.gmra.mxu0 %v10750_v30  ;;  %v9290_v46 = vld [vmem:[%s10109_s14 + $0xac] ss:$16 sps:$4 sm:$0xff]  }
 0x7ec   : > { %6550 = vmatpush1.bf16.msra.mxu0 %v9216_v11  ;;  %6577 = vmatprep.mubr.bf16.mxu0 %v9950_v2  ;;  %v9288_v11 = vld [vmem:[%s10109_s14 + $0xa8] ss:$16 sps:$4 sm:$0xff]  }
 0x7ed   : > { %6551 = vmatprep.subr.bf16.mxu0 %v9224_v63  ;;  %v9296_v63 = vld [vmem:[%s10109_s14 + $0x8c] ss:$16 sps:$4 sm:$0xff]  }
 0x7ee   : > { %6285 = vmatpush1.bf16.msra.mxu1 %v9207_v15  ;;  %v9302_v15 = vld [vmem:[%s10109_s14 + $0x6c] ss:$16 sps:$4 sm:$0xff]  }
 0x7ef   : > { %6286 = vmatprep.subr.bf16.mxu1 %v9215_v16  ;;  %v9300_v16 = vld [vmem:[%s10109_s14 + $0x68] ss:$16 sps:$4 sm:$0xff]  }
 0x7f0   : > { %6552 = vmatpush1.bf16.msra.mxu0 %v9222_v17  ;;  %v9308_v17 = vld [vmem:[%s10109_s14 + $0x4c] ss:$16 sps:$4 sm:$0xff]  }
 0x7f1   : > { %6009 = vmatmul.mubr.bf16.gmra.mxu1 %v10716_v12  ;;  %6553 = vmatprep.subr.bf16.mxu0 %v9230_v14  ;;  %v9225_v12 = vld [vmem:[%s11118_s0 + $0x68] ss:$16 sps:$4 sm:$0xff]  }
 0x7f2   : > { %6287 = vmatpush1.bf16.msra.mxu1 %v9213_v20  ;;  %6314 = vmatprep.mubr.bf16.mxu1 %v9950_v2  ;;  %v9306_v14 = vld [vmem:[%s10109_s14 + $0x48] ss:$16 sps:$4 sm:$0xff]   ;;  %v9314_v20 = vld [vmem:[%s10109_s14 + $0x2c] ss:$16 sps:$4 sm:$0xff]  }
 0x7f3   : > { %6288 = vmatprep.subr.bf16.mxu1 %v9221_v21  ;;  %v9312_v21 = vld [vmem:[%s10109_s14 + $0x28] ss:$16 sps:$4 sm:$0xff]  }
 0x7f4   : > { %6554 = vmatpush1.bf16.msra.mxu0 %v9228_v47  ;;  %v9318_v47 = vld [vmem:[%s10109_s14 + $0x8] ss:$16 sps:$4 sm:$0xff]  }
 0x7f5   : > { %6555 = vmatprep.subr.bf16.mxu0 %v9236_v24 }
 0x7f6   : > { %6289 = vmatpush1.bf16.msra.mxu1 %v9219_v26 }
 0x7f7   : > { %6290 = vmatprep.subr.bf16.mxu1 %v9227_v27 }
 0x7f8   : > { %6556 = vmatpush1.bf16.msra.mxu0 %v9234_v28 }
 0x7f9   : > { %6557 = vmatprep.subr.bf16.mxu0 %v9242_v31 }
 0x7fa   : > { %6291 = vmatpush1.bf16.msra.mxu1 %v9225_v12 }
 0x7fb   : > { %6292 = vmatprep.subr.bf16.mxu1 %v9233_v32  ;;  %v7653_v32 = vld [vmem:[#allocation32] ss:$0 sm:$0xff] }
 0x7fc   : > { %6558 = vmatpush1.bf16.msra.mxu0 %v9240_v34 }
 0x7fd   : > { %6559 = vmatprep.subr.bf16.mxu0 %v9248_v36 }
 0x7fe   : > { %6293 = vmatpush1.bf16.msra.mxu1 %v9231_v37 }
 0x7ff   : > { %6294 = vmatprep.subr.bf16.mxu1 %v9239_v39 }
 0x800   : > { %6560 = vmatpush1.bf16.msra.mxu0 %v9246_v38 }
 0x801   : > { %6861 = vmatprep.subr.bf16.mxu0 %v9275_v62 }
 0x802   : > { %6295 = vmatpush1.bf16.msra.mxu1 %v9237_v1 }
 0x803   : > { %6296 = vmatprep.subr.bf16.mxu1 %v9245_v5  ;;  %6578 = vmatmul.mubr.bf16.vlgmr.msra.gmra.mxu0 %v10786_v53 }
 0x804   : > { %6587 = vmatprep.mubr.bf16.mxu0 %v9950_v2  ;;  %6862 = vmatpush1.bf16.msra.mxu0 %v9273_v41 }
 0x805   : > { %6863 = vmatprep.subr.bf16.mxu0 %v9281_v4 }
 0x806   : > { %6297 = vmatpush1.bf16.msra.mxu1 %v9243_v13 }
 0x807   : > { %6598 = vmatprep.subr.bf16.mxu1 %v9251_v6 }
 0x808   : > { %6864 = vmatpush1.bf16.msra.mxu0 %v9279_v42 }
 0x809   : > { %6315 = vmatmul.mubr.bf16.vlgmr.msra.gmra.mxu1 %v10755_v33  ;;  %6865 = vmatprep.subr.bf16.mxu0 %v9287_v44  ;;  %v9299_v33 = vld [vmem:[%s10109_s14 + $0x64] ss:$16 sps:$4 sm:$0xff]  }
 0x80a   : > { %6599 = vmatpush1.bf16.msra.mxu1 %v9249_v45  ;;  %6324 = vmatprep.mubr.bf16.mxu1 %v9950_v2 }
 0x80b   : > { %6600 = vmatprep.subr.bf16.mxu1 %v9254_v55  ;;  %6588 = vmatmul.mubr.bf16.gmra.mxu0 %v10784_v61 }
 0x80c   : > { %6866 = vmatpush1.bf16.msra.mxu0 %v9285_v59  ;;  %6893 = vmatprep.mubr.bf16.mxu0 %v9950_v2 }
 0x80d   : > { %6867 = vmatprep.subr.bf16.mxu0 %v9293_v19 }
 0x80e   : > { %6601 = vmatpush1.bf16.msra.mxu1 %v9252_v22 }
 0x80f   : > { %6602 = vmatprep.subr.bf16.mxu1 %v9257_v48 }
 0x810   : > { %6868 = vmatpush1.bf16.msra.mxu0 %v9291_v49 }
 0x811   : > { %6325 = vmatmul.mubr.bf16.gmra.mxu1 %v10750_v30  ;;  %6869 = vmatprep.subr.bf16.mxu0 %v9299_v33  ;;  %v9261_v30 = vld [vmem:[%s10104_s4 + $0x68] ss:$16 sps:$4 sm:$0xff]  }
 0x812   : > { %6603 = vmatpush1.bf16.msra.mxu1 %v9255_v50  ;;  %6630 = vmatprep.mubr.bf16.mxu1 %v9950_v2 }
 0x813   : > { %6604 = vmatprep.subr.bf16.mxu1 %v9260_v25 }
 0x814   : > { %6870 = vmatpush1.bf16.msra.mxu0 %v9297_v51 }
 0x815   : > { %6871 = vmatprep.subr.bf16.mxu0 %v9305_v52 }
 0x816   : > { %6605 = vmatpush1.bf16.msra.mxu1 %v9258_v57 }
 0x817   : > { %6606 = vmatprep.subr.bf16.mxu1 %v9263_v58 }
 0x818   : > { %6872 = vmatpush1.bf16.msra.mxu0 %v9303_v0 }
 0x819   : > { %6873 = vmatprep.subr.bf16.mxu0 %v9311_v35 }
 0x81a   : > { %6607 = vmatpush1.bf16.msra.mxu1 %v9261_v30 }
 0x81b   : > { %6608 = vmatprep.subr.bf16.mxu1 %v9266_v40 }
 0x81c   : > { %6874 = vmatpush1.bf16.msra.mxu0 %v9309_v43 }
 0x81d   : > { %6875 = vmatprep.subr.bf16.mxu0 %v9317_v3 }
 0x81e   : > { %6609 = vmatpush1.bf16.msra.mxu1 %v9264_v29 }
 0x81f   : > { %6610 = vmatprep.subr.bf16.mxu1 %v9269_v56 }
 0x820   : > { %6876 = vmatpush1.bf16.msra.mxu0 %v9315_v18 }
 0x822   : > { %6611 = vmatpush1.bf16.msra.mxu1 %v9267_v54 }
 0x823   : > { %6612 = vmatprep.subr.bf16.mxu1 %v9272_v23 }
 0x826   : > { %6613 = vmatpush1.bf16.msra.mxu1 %v9270_v60 }
 0x827   : > { %6914 = vmatprep.subr.bf16.mxu1 %v9278_v7 }
 0x829   : > { %6631 = vmatmul.mubr.bf16.vlgmr.msra.gmra.mxu1 %v10786_v53  ;;  %v9294_v53 = vld [vmem:[%s10109_s14 + $0x88] ss:$16 sps:$4 sm:$0xff]  }
 0x82a   : > { %6640 = vmatprep.mubr.bf16.mxu1 %v9950_v2  ;;  %6915 = vmatpush1.bf16.msra.mxu1 %v9276_v8 }
 0x82b   : > { %6916 = vmatprep.subr.bf16.mxu1 %v9284_v9 }
 0x82e   : > { %6917 = vmatpush1.bf16.msra.mxu1 %v9282_v10 }
 0x82f   : > { %6918 = vmatprep.subr.bf16.mxu1 %v9290_v46 }
 0x831   : > { %6641 = vmatmul.mubr.bf16.gmra.mxu1 %v10784_v61  ;;  %v9320_v61 = vld [vmem:[%s10109_s14 + $0xc] ss:$16 sps:$4 sm:$0xff]  }
 0x832   : > { %6919 = vmatpush1.bf16.msra.mxu1 %v9288_v11  ;;  %6946 = vmatprep.mubr.bf16.mxu1 %v9950_v2 }
 0x833   : > { %6920 = vmatprep.subr.bf16.mxu1 %v9296_v63 }
 0x836   : > { %6921 = vmatpush1.bf16.msra.mxu1 %v9294_v53 }
 0x837   : > { %6922 = vmatprep.subr.bf16.mxu1 %v9302_v15 }
 0x83a   : > { %6923 = vmatpush1.bf16.msra.mxu1 %v9300_v16 }
 0x83b   : > { %6924 = vmatprep.subr.bf16.mxu1 %v9308_v17 }
 0x83e   : > { %6925 = vmatpush1.bf16.msra.mxu1 %v9306_v14 }
 0x83f   : > { %6926 = vmatprep.subr.bf16.mxu1 %v9314_v20 }
 0x842   : > { %6927 = vmatpush1.bf16.msra.mxu1 %v9312_v21 }
 0x843   : > { %6928 = vmatprep.subr.bf16.mxu1 %v9320_v61 }
 0x846   : > { %6929 = vmatpush1.bf16.msra.mxu1 %v9318_v47  ;;  %v5699_v47 = vlaneseq }
 0x861   : > { %v8582_v27 = vpop.f32.mrf.mxu0 }
 0x863   : > { %v5554_v31 = vpop.f32.mrf.mxu0 }
 0x865   : > { %v8583_v34 = vpop.f32.mrf.mxu0 }
 0x867   : > { %v5557_v62 = vpop.f32.mrf.mxu0 }
 0x869   : > { %v8562_v24 = vpop.f32.mrf.mxu1 }
 0x86a   : > { %v5447_v44 = vadd.f32 %v8562_v24, %v7653_v32 }
 0x86b   : > { %v5430_v26 = vpop.f32.mrf.mxu1 }
 0x86c   : > { %v5445_v37 = vadd.f32 %v7653_v32, %v5430_v26  ;;  %v5571_v59 = vadd.f32 %v8582_v27, %v5447_v44  ;;  %v5700_v27 = vshrl.u32 %v5699_v47, 7 }
 0x86d   : > { %v8563_v28 = vpop.f32.mrf.mxu1 }
 0x86e   : > { %v5569_v5 = vadd.f32 %v5554_v31, %v5445_v37  ;;  %v5448_v13 = vadd.f32 %v8563_v28, %v7653_v32  ;;  %v5709_v37 = vsub.s32 2, %v5700_v27 }
 0x86f   : > { %v5433_v12 = vpop.f32.mrf.mxu1 }
 0x870   : > { %v5446_v39 = vadd.f32 %v7653_v32, %v5433_v12  ;;  %v5572_v55 = vadd.f32 %v8583_v34, %v5448_v13  ;;  %v5701_v12 = vsub.s32 0, %v5700_v27  ;;  %v5705_v32 = vsub.s32 1, %v5700_v27  ;;  %v5697_v34 = vld [vmem:[%s10114_s5] sm:$0xf] }
 0x872   : > { %v5570_v41 = vadd.f32 %v5557_v62, %v5446_v39  ;;  %v5713_v39 = vsub.s32 3, %v5700_v27  ;;  %v5702_v62 = vrot.slane %v5697_v34, %v5701_v12 }
 0x882   : > { %v5947_v49 = vpop.f32.mrf.mxu0 }
 0x884   : > { %v5949_v50 = vpop.f32.mrf.mxu0 }
 0x886   : > { %v5951_v51 = vpop.f32.mrf.mxu0 }
 0x887   : > { %v6023_v44 = vadd.f32 %v5951_v51, %v5702_v62 }
 0x888   : > { %v5953_v57 = vpop.f32.mrf.mxu0 }
 0x889   : > { %v8602_v36 = vpop.f32.mrf.mxu1 }
 0x88a   : > { %v5695_v22 = vadd.f32 %v8602_v36, %v5571_v59  ;;  %v5957_v0 = vpop.f32.mrf.mxu0 }
 0x88b   : > { %v5678_v38 = vpop.f32.mrf.mxu1 }
 0x88c   : > { %v5693_v6 = vadd.f32 %v5678_v38, %v5569_v5  ;;  %v5959_v35 = vpop.f32.mrf.mxu0 }
 0x88d   : > { %v8603_v1 = vpop.f32.mrf.mxu1 }
 0x88e   : > { %v5696_v19 = vadd.f32 %v8603_v1, %v5572_v55  ;;  %v5961_v40 = vpop.f32.mrf.mxu0  ;;  %v5706_v1 = vrot.slane %v5697_v34, %v5705_v32  ;;  %v6027_v55 = vadd.f32 %v5957_v0, %v5702_v62 }
 0x88f   : > { %v5681_v4 = vpop.f32.mrf.mxu1 }
 0x890   : > { %v5694_v42 = vadd.f32 %v5681_v4, %v5570_v41  ;;  %v6668_v48 = vpack.c.bf16 %v5696_v19, %v5695_v22  ;;  %v5963_v3 = vpop.f32.mrf.mxu0  ;;  %v5710_v41 = vrot.slane %v5697_v34, %v5709_v37  ;;  %v5714_v4 = vrot.slane %v5697_v34, %v5713_v39 }
 0x891   : > { %v6028_v59 = vadd.f32 %v5959_v35, %v5706_v1  ;;  %v6031_v19 = vadd.f32 %v5961_v40, %v5702_v62  ;;  %v6032_v22 = vadd.f32 %v5963_v3, %v5706_v1 }
 0x892   : > { %v6667_v45 = vpack.c.bf16 %v5694_v42, %v5693_v6  ;;  %v6019_v6 = vadd.f32 %v5947_v49, %v5702_v62  ;;  %v6020_v42 = vadd.f32 %v5949_v50, %v5706_v1 }
 0x894   : > { %6894 = vmatmul.mubr.bf16.vlgmr.msra.gmra.mxu0 %v6667_v45  ;;  %6947 = vmatmul.mubr.bf16.vlgmr.msra.gmra.mxu1 %v6667_v45  ;;  %v6024_v45 = vadd.f32 %v5953_v57, %v5706_v1 }
 0x895   : > { %6903 = vmatprep.mubr.bf16.mxu0 %v9950_v2  ;;  %6956 = vmatprep.mubr.bf16.mxu1 %v9950_v2 }
 0x89c   : > { %6904 = vmatmul.mubr.bf16.gmra.mxu0 %v6668_v48  ;;  %6957 = vmatmul.mubr.bf16.gmra.mxu1 %v6668_v48 }
 0x8a2   : > { %v6263_v56 = vpop.f32.mrf.mxu0 }
 0x8a3   : > { %v6335_v48 = vadd.f32 %v6263_v56, %v6019_v6 }
 0x8a4   : > { %v6265_v54 = vpop.f32.mrf.mxu0 }
 0x8a5   : > { %v6336_v47 = vadd.f32 %v6265_v54, %v6020_v42 }
 0x8a6   : > { %v6267_v60 = vpop.f32.mrf.mxu0 }
 0x8a8   : > { %v6269_v8 = vpop.f32.mrf.mxu0 }
 0x8a9   : > { %v10945_v33 = vpop.f32.mrf.mxu1 }
 0x8aa   : > { %v6021_v12 = vadd.f32 %v10945_v33, %v5710_v41 }
 0x8ab   : > { %v10947_v25 = vpop.f32.mrf.mxu1  ;;  %v6273_v10 = vpop.f32.mrf.mxu0 }
 0x8ac   : > { %v6022_v32 = vadd.f32 %v10947_v25, %v5714_v4  ;;  %v6343_v37 = vadd.f32 %v6273_v10, %v6027_v55 }
 0x8ad   : > { %v10949_v52 = vpop.f32.mrf.mxu1  ;;  %v6275_v11 = vpop.f32.mrf.mxu0 }
 0x8ae   : > { %v6025_v34 = vadd.f32 %v10949_v52, %v5710_v41  ;;  %v6344_v57 = vadd.f32 %v6275_v11, %v6028_v59 }
 0x8af   : > { %v10951_v58 = vpop.f32.mrf.mxu1  ;;  %v6277_v53 = vpop.f32.mrf.mxu0 }
 0x8b0   : > { %v6026_v50 = vadd.f32 %v10951_v58, %v5714_v4  ;;  %v6347_v0 = vadd.f32 %v6277_v53, %v6031_v19 }
 0x8b1   : > { %v10953_v2 = vpop.f32.mrf.mxu1  ;;  %v6279_v16 = vpop.f32.mrf.mxu0 }
 0x8b2   : > { %v6029_v51 = vadd.f32 %v10953_v2, %v5710_v41  ;;  %v6348_v33 = vadd.f32 %v6279_v16, %v6032_v22 }
 0x8b3   : > { %v10955_v30 = vpop.f32.mrf.mxu1 }
 0x8b4   : > { %v6030_v35 = vadd.f32 %v10955_v30, %v5714_v4 }
 0x8b5   : > { %v10957_v43 = vpop.f32.mrf.mxu1 }
 0x8b6   : > { %v6033_v40 = vadd.f32 %v10957_v43, %v5710_v41 }
 0x8b7   : > { %v10959_v29 = vpop.f32.mrf.mxu1 }
 0x8b8   : > { %v6034_v3 = vadd.f32 %v10959_v29, %v5714_v4 }
 0x8c3   : > { %v6579_v14 = vpop.f32.mrf.mxu0 }
 0x8c4   : > { %v6651_v56 = vadd.f32 %v6579_v14, %v6335_v48 }
 0x8c5   : > { %v6581_v21 = vpop.f32.mrf.mxu0 }
 0x8c6   : > { %v6652_v52 = vadd.f32 %v6581_v21, %v6336_v47 }
 0x8c7   : > { %v6583_v24 = vpop.f32.mrf.mxu0 }
 0x8c9   : > { %v10961_v18 = vpop.f32.mrf.mxu1  ;;  %v6585_v28 = vpop.f32.mrf.mxu0 }
 0x8ca   : > { %v6337_v25 = vadd.f32 %v10961_v18, %v6021_v12 }
 0x8cb   : > { %v10963_v23 = vpop.f32.mrf.mxu1  ;;  %v6589_v36 = vpop.f32.mrf.mxu0 }
 0x8cc   : > { %v6338_v58 = vadd.f32 %v10963_v23, %v6022_v32  ;;  %v6659_v10 = vadd.f32 %v6589_v36, %v6343_v37 }
 0x8cd   : > { %v10965_v7 = vpop.f32.mrf.mxu1  ;;  %v6591_v5 = vpop.f32.mrf.mxu0 }
 0x8ce   : > { %v6341_v2 = vadd.f32 %v10965_v7, %v6025_v34  ;;  %v10996_v43 = vadd.f32 %v6591_v5, %v6344_v57 }
 0x8cf   : > { %v10967_v9 = vpop.f32.mrf.mxu1  ;;  %v6593_v27 = vpop.f32.mrf.mxu0 }
 0x8d0   : > { %v6342_v30 = vadd.f32 %v10967_v9, %v6026_v50  ;;  %v10998_v29 = vadd.f32 %v6593_v27, %v6347_v0 }
 0x8d1   : > { %v10969_v46 = vpop.f32.mrf.mxu1 }
 0x8d2   : > { %v6345_v18 = vadd.f32 %v10969_v46, %v6029_v51 }
 0x8d3   : > { %v10971_v63 = vpop.f32.mrf.mxu1 }
 0x8d4   : > { %v6346_v16 = vadd.f32 %v10971_v63, %v6030_v35 }
 0x8d5   : > { %v10973_v15 = vpop.f32.mrf.mxu1 }
 0x8d6   : > { %v6349_v23 = vadd.f32 %v10973_v15, %v6033_v40 }
 0x8d7   : > { %v10975_v17 = vpop.f32.mrf.mxu1 }
 0x8e9   : > { %v6632_v20 = vpop.f32.mrf.mxu1 }
 0x8ea   : > { %v6653_v53 = vadd.f32 %v6632_v20, %v6337_v25 }
 0x8eb   : > { %v10977_v61 = vpop.f32.mrf.mxu1 }
 0x8ec   : > { %v6654_v9 = vadd.f32 %v10977_v61, %v6338_v58 }
 0x8ed   : > { %v10979_v26 = vpop.f32.mrf.mxu1 }
 0x8ee   : > { %11119 = vst [vmem:[#allocation64_spill] sm:$0xff] %v10979_v26  ;;  %v6340_v26 = vadd.f32 %v6269_v8, %v6024_v45 }
 0x8ef   : > { %v10981_v31 = vpop.f32.mrf.mxu1 }
 0x8f0   : > { %11120 = vst [vmem:[#allocation65_spill] sm:$0xff] %v10981_v31  ;;  %v6339_v31 = vadd.f32 %v6267_v60, %v6023_v44  ;;  %v6595_v60 = vpop.f32.mrf.mxu0  ;;  %v6656_v8 = vadd.f32 %v6585_v28, %v6340_v26 }
 0x8f1   : > { %v6642_v38 = vpop.f32.mrf.mxu1  ;;  %v11004_v14 = vadd.f32 %v6595_v60, %v6348_v33 }
 0x8f2   : > { %v6655_v54 = vadd.f32 %v6583_v24, %v6339_v31  ;;  %v6350_v24 = vadd.f32 %v10975_v17, %v6034_v3  ;;  %v6661_v46 = vadd.f32 %v6642_v38, %v6345_v18 }
 0x8f3   : > { %v6644_v13 = vpop.f32.mrf.mxu1 }
 0x8f4   : > { %v6662_v62 = vadd.f32 %v6644_v13, %v6346_v16 }
 0x8f5   : > { %v6646_v49 = vpop.f32.mrf.mxu1  ;;  %v11121_v31 = vld [vmem:[#allocation64_spill] sm:$0xff] }
 0x8f6   : > { %v6657_v20 = vadd.f32 %v11121_v31, %v6341_v2  ;;  %v6665_v5 = vadd.f32 %v6646_v49, %v6349_v23 }
 0x8f7   : > { %v6648_v11 = vpop.f32.mrf.mxu1  ;;  %v11122_v36 = vld [vmem:[#allocation65_spill] sm:$0xff] }
 0x8f8   : > { %v6658_v39 = vadd.f32 %v11122_v36, %v6342_v30  ;;  %v11013_v61 = vadd.f32 %v6648_v11, %v6350_v24 }
 0x954   : > { %v6895_v7 = vpop.f32.mrf.mxu0  ;;  %v6948_v21 = vpop.f32.mrf.mxu1 }
 0x955   : > { %v6967_v26 = vadd.f32 %v6895_v7, %v6651_v56  ;;  %v6969_v28 = vadd.f32 %v6948_v21, %v6653_v53 }
 0x956   : > { %v6897_v1 = vpop.f32.mrf.mxu0  ;;  %v6950_v63 = vpop.f32.mrf.mxu1 }
 0x957   : > { %vm6983_vm3 = vcmp.gt.f32.partialorder %v6967_v26, 0.0  ;;  %v6999_v15 = vmul.f32 0.1, %v6967_v26  ;;  %vm6985_vm4 = vcmp.gt.f32.partialorder %v6969_v28, 0.0  ;;  %v7001_v17 = vmul.f32 0.1, %v6969_v28 }
 0x958   : > { %v6968_v41 = vadd.f32 %v6897_v1, %v6652_v52  ;;  %v6970_v4 = vadd.f32 %v6950_v63, %v6654_v9  ;;  %v6899_v6 = vpop.f32.mrf.mxu0  ;;  %v6952_v42 = vpop.f32.mrf.mxu1 }
 0x959   : > { %v7015_v44 = vsel %vm6983_vm3, %v6967_v26, %v6999_v15  ;;  %v7017_v38 = vsel %vm6985_vm4, %v6969_v28, %v7001_v17  ;;  %v6971_v13 = vadd.f32 %v6899_v6, %v6655_v54  ;;  %v6973_v45 = vadd.f32 %v6952_v42, %v6657_v20 }
 0x95a   : > { %7031 = vst [vmem:[%s11011_s2] sm:$0xff] %v7015_v44  ;;  %7033 = vst [vmem:[%s11011_s2 + $0x10] sm:$0xff] %v7017_v38  ;;  %vm6984_vm5 = vcmp.gt.f32.partialorder %v6968_v41, 0.0  ;;  %v7000_v55 = vmul.f32 0.1, %v6968_v41  ;;  %vm6986_vm6 = vcmp.gt.f32.partialorder %v6970_v4, 0.0  ;;  %v6901_v19 = vpop.f32.mrf.mxu0  ;;  %v6954_v22 = vpop.f32.mrf.mxu1 }
 0x95b   : > { %v7002_v59 = vmul.f32 0.1, %v6970_v4  ;;  %vm6987_vm7 = vcmp.gt.f32.partialorder %v6971_v13, 0.0  ;;  %v7003_v48 = vmul.f32 0.1, %v6971_v13  ;;  %vm6989_vm8 = vcmp.gt.f32.partialorder %v6973_v45, 0.0 }
 0x95c   : > { %v7005_v47 = vmul.f32 0.1, %v6973_v45  ;;  %v7016_v27 = vsel %vm6984_vm5, %v6968_v41, %v7000_v55  ;;  %v6972_v32 = vadd.f32 %v6901_v19, %v6656_v8  ;;  %v6974_v34 = vadd.f32 %v6954_v22, %v6658_v39  ;;  %v6905_v37 = vpop.f32.mrf.mxu0  ;;  %v6958_v49 = vpop.f32.mrf.mxu1 }
 0x95d   : > { %v7018_v12 = vsel %vm6986_vm6, %v6970_v4, %v7002_v59  ;;  %7032 = vst [vmem:[%s11011_s2 + $0x8] sm:$0xff] %v7016_v27  ;;  %v7019_v50 = vsel %vm6987_vm7, %v6971_v13, %v7003_v48  ;;  %v6975_v57 = vadd.f32 %v6905_v37, %v6659_v10  ;;  %v6977_v0 = vadd.f32 %v6958_v49, %v6661_v46 }
 0x95e   : > { %7034 = vst [vmem:[%s11011_s2 + $0x18] sm:$0xff] %v7018_v12  ;;  %v7021_v51 = vsel %vm6989_vm8, %v6973_v45, %v7005_v47  ;;  %7035 = vst [vmem:[%s11011_s2 + $0x20] sm:$0xff] %v7019_v50  ;;  %vm6988_vm9 = vcmp.gt.f32.partialorder %v6972_v32, 0.0  ;;  %v7004_v35 = vmul.f32 0.1, %v6972_v32  ;;  %vm6990_vm10 = vcmp.gt.f32.partialorder %v6974_v34, 0.0  ;;  %v6907_v3 = vpop.f32.mrf.mxu0  ;;  %v6960_v33 = vpop.f32.mrf.mxu1 }
 0x95f   : > { %7037 = vst [vmem:[%s11011_s2 + $0x30] sm:$0xff] %v7021_v51  ;;  %v7006_v40 = vmul.f32 0.1, %v6974_v34  ;;  %vm6991_vm11 = vcmp.gt.f32.partialorder %v6975_v57, 0.0  ;;  %v7007_v25 = vmul.f32 0.1, %v6975_v57  ;;  %v6976_v60 = vadd.f32 %v6907_v3, %v10996_v43 }
 0x960   : > { %vm6993_vm12 = vcmp.gt.f32.partialorder %v6977_v0, 0.0  ;;  %v7009_v56 = vmul.f32 0.1, %v6977_v0  ;;  %v7020_v52 = vsel %vm6988_vm9, %v6972_v32, %v7004_v35  ;;  %v6978_v58 = vadd.f32 %v6960_v33, %v6662_v62  ;;  %v6909_v2 = vpop.f32.mrf.mxu0  ;;  %v6962_v8 = vpop.f32.mrf.mxu1 }
 0x961   : > { %v7022_v54 = vsel %vm6990_vm10, %v6974_v34, %v7006_v40  ;;  %7036 = vst [vmem:[%s11011_s2 + $0x28] sm:$0xff] %v7020_v52  ;;  %v7023_v10 = vsel %vm6991_vm11, %v6975_v57, %v7007_v25  ;;  %v6979_v30 = vadd.f32 %v6909_v2, %v10998_v29  ;;  %v6981_v53 = vadd.f32 %v6962_v8, %v6665_v5 }
 0x962   : > { %7038 = vst [vmem:[%s11011_s2 + $0x38] sm:$0xff] %v7022_v54  ;;  %v7025_v11 = vsel %vm6993_vm12, %v6977_v0, %v7009_v56  ;;  %7039 = vst [vmem:[%s11011_s2 + $0x40] sm:$0xff] %v7023_v10  ;;  %vm6992_vm13 = vcmp.gt.f32.partialorder %v6976_v60, 0.0  ;;  %v7008_v18 = vmul.f32 0.1, %v6976_v60  ;;  %vm6994_vm14 = vcmp.gt.f32.partialorder %v6978_v58, 0.0  ;;  %v6911_v43 = vpop.f32.mrf.mxu0  ;;  %v6964_v23 = vpop.f32.mrf.mxu1 }
 0x963   : > { %7041 = vst [vmem:[%s11011_s2 + $0x50] sm:$0xff] %v7025_v11  ;;  %v7010_v16 = vmul.f32 0.1, %v6978_v58  ;;  %vm6995_vm15 = vcmp.gt.f32.partialorder %v6979_v30, 0.0  ;;  %v7011_v7 = vmul.f32 0.1, %v6979_v30  ;;  %v6980_v9 = vadd.f32 %v6911_v43, %v11004_v14 }
 0x964   : > { %vm6997_vm0 = vcmp.gt.f32.partialorder %v6981_v53, 0.0  ;;  %v7013_v21 = vmul.f32 0.1, %v6981_v53  ;;  %v7024_v24 = vsel %vm6992_vm13, %v6976_v60, %v7008_v18  ;;  %v6982_v26 = vadd.f32 %v6964_v23, %v11013_v61 }
 0x965   : > { %v7026_v29 = vsel %vm6994_vm14, %v6978_v58, %v7010_v16  ;;  %7040 = vst [vmem:[%s11011_s2 + $0x48] sm:$0xff] %v7024_v24  ;;  %v7027_v28 = vsel %vm6995_vm15, %v6979_v30, %v7011_v7  ;;  %vm6996_vm1 = vcmp.gt.f32.partialorder %v6980_v9, 0.0  ;;  %v7012_v20 = vmul.f32 0.1, %v6980_v9 }
 0x966   : > { %7042 = vst [vmem:[%s11011_s2 + $0x58] sm:$0xff] %v7026_v29  ;;  %v7029_v31 = vsel %vm6997_vm0, %v6981_v53, %v7013_v21  ;;  %7043 = vst [vmem:[%s11011_s2 + $0x60] sm:$0xff] %v7027_v28  ;;  %vm6998_vm2 = vcmp.gt.f32.partialorder %v6982_v26, 0.0  ;;  %v7014_v36 = vmul.f32 0.1, %v6982_v26 }
 0x967   : > { %7045 = vst [vmem:[%s11011_s2 + $0x70] sm:$0xff] %v7029_v31  ;;  %v7028_v39 = vsel %vm6996_vm1, %v6980_v9, %v7012_v20 }
 0x968   : > { %v7030_v46 = vsel %vm6998_vm2, %v6982_v26, %v7014_v36  ;;  %7044 = vst [vmem:[%s11011_s2 + $0x68] sm:$0xff] %v7028_v39 }
 0x969   : > { %7046 = vst [vmem:[%s11011_s2 + $0x78] sm:$0xff] %v7030_v46 }
 0x96a PF: > { %s86_s28 = sadd.s32 1, %s9891_s28  }
 0x96b   : > { %p83_p13 = scmp.ge.s32.totalorder %s86_s28, 4  }
 0x96d   :  { %85 = sbr.rel (!%p83_p13) target bundleno = 65 (0x41), region = 303 }
 0x972   :  { %7068 = vsyncpa [#allocation4], 1 }
 0x973   :  { %7070 = vsyncpa [#allocation4 + $0x1], 1 }
 0x974   :  { %7071 = vsyncpa [#allocation6], 1 }
 0x975   :  { %7072 = vsyncpa [#allocation9], 1 }
 0x976   :  { %7073 = vsyncpa [#allocation12], 1 }
 0x977   :  { %7074 = vsyncpa [#allocation15], 1 }
 0x978   :  { %7075 = vsyncpa [#allocation18], 1 }
 0x979   :  { %7076 = vsyncpa [#allocation21], 1 }
 0x97a   :  { %7077 = vsyncpa [#allocation24], 1 }
 0x97b   :  { %7078 = vsyncpa [#allocation27], 1 }
 0x97c   :  { %7079 = vsyncpa [#allocation30], 1 }
 0x97d   :  { %7080 = vsyncpa [#allocation33], 1 }

</bundles_post_ra>
